<compile_context>
chip_gen: v7x
topology: tpu7x:2x2x1
jax: 0.10.0
libtpu: 0.0.40
codegen_flags: <defaults>
</compile_context>

<pallas_src>
import numpy as np

import jax
import jax.numpy as jnp
from jax import lax
from jax.experimental import pallas as pl
from jax.experimental.pallas import tpu as pltpu


# ----------------------------------------------------------------------------- kernel

def _mxu(a, b):
    """MXU matmul: bf16 operands, f32 accumulation (fast path on v5e/v6e/v7x)."""
    return jnp.dot(a.astype(jnp.bfloat16), b.astype(jnp.bfloat16),
                   preferred_element_type=jnp.float32)


def _gatv2_layer(xin, mask3, sel_tgt, sel_src, wcat, bcat, att_a, head_exp, bias,
                 gamma=None, beta=None):
    """One GATv2Conv layer (+ optional LayerNorm) + ReLU; returns (node_out, per_edge_alpha)."""
    n = xin.shape[0]
    num_heads = head_exp.shape[0]
    hc = head_exp.shape[1]                                  # heads * out_channels

    # fused lin_l / lin_r projection: one MXU pass, then lane-slice
    xlr = _mxu(xin, wcat) + bcat                            # (N, 2*HC)
    xl = xlr[:, :hc]                                        # lin_l(x): source / message features
    xr = xlr[:, hc:]                                        # lin_r(x): target features

    # all heads at once: pairwise sums at full H*C lane width
    s = xr[:, None, :] + xl[None, :, :]                     # (N, N, HC)
    s = jnp.where(s > 0, s, 0.2 * s)                        # LeakyReLU(0.2)
    # per-head logits via one MXU matmul against block-diagonal att embedding
    e = _mxu(s.reshape(n * n, hc), att_a).reshape(n, n, num_heads)   # (N, N, H)

    # masked softmax over sources j (axis=1); exp * mask replaces the -inf select
    m_r = jnp.max(e, axis=1)                                # (N, H)
    p = jnp.exp(e - m_r[:, None, :]) * mask3                # (N, N, H)
    d_r = jnp.sum(p, axis=1)                                # (N, H)
    inv_r = pl.reciprocal(jnp.maximum(d_r, 1e-30), approx=True)      # (N, H), EUP not VALU
    alpha = p * inv_r[:, None, :]                           # (N, N, H)

    # aggregation for all heads jointly: expand alpha to HC lanes with a 0/1 matmul
    alpha_exp = jnp.dot(alpha.reshape(n * n, num_heads), head_exp,
                        preferred_element_type=jnp.float32).reshape(n, n, hc)
    out = jnp.sum(alpha_exp * xl[None, :, :], axis=1) + bias          # (N, HC)

    # per-edge attention coefficients (PyG convention), recomputed from the same row
    # statistics -> identical to the dense alpha at (tgt, src); the dense (N, N, H)
    # tensor never leaves VMEM. Selector gathers stay in f32 (exact one-hot matmuls).
    s_e = (jnp.dot(sel_tgt, xr, preferred_element_type=jnp.float32)
           + jnp.dot(sel_src, xl, preferred_element_type=jnp.float32))   # (E_pad, HC)
    s_e = jnp.where(s_e > 0, s_e, 0.2 * s_e)
    logit_e = _mxu(s_e, att_a)                                           # (E_pad, H)
    m_e = jnp.dot(sel_tgt, m_r, preferred_element_type=jnp.float32)      # (E_pad, H)
    inv_e = jnp.dot(sel_tgt, inv_r, preferred_element_type=jnp.float32)  # (E_pad, H)
    alpha_e = jnp.exp(logit_e - m_e) * inv_e                             # (E_pad, H)

    if gamma is not None:                                   # nn.LayerNorm over features
        mu = jnp.mean(out, axis=-1, keepdims=True)
        var = jnp.mean((out - mu) ** 2, axis=-1, keepdims=True)
        out = (out - mu) * lax.rsqrt(var + 1e-5) * gamma + beta
    out = jnp.maximum(out, 0.0)                             # torch.relu
    return out, alpha_e


def _gatv2_fused_kernel(
        # graph-level inputs
        x_ref, mask3_ref, sel_tgt_ref, sel_src_ref, pool_ref,
        # layer 1 (4 heads x 8) + LayerNorm
        wc1_ref, bc1_ref, at1_ref, hx1_ref, ob1_ref, g1_ref, be1_ref,
        # layer 2 (4 heads x 8) + LayerNorm
        wc2_ref, bc2_ref, at2_ref, hx2_ref, ob2_ref, g2_ref, be2_ref,
        # layer 3 (6 heads x 4), no LayerNorm
        wc3_ref, bc3_ref, at3_ref, hx3_ref, ob3_ref,
        # MLP head
        fw1_ref, fb1_ref, fw2_ref, fb2_ref,
        # outputs
        logits_ref, alpha_ref):
    x = x_ref[...]
    mask3 = mask3_ref[...]
    sel_tgt = sel_tgt_ref[...]
    sel_src = sel_src_ref[...]

    x1, ae1 = _gatv2_layer(x, mask3, sel_tgt, sel_src,
                           wc1_ref[...], bc1_ref[...], at1_ref[...], hx1_ref[...],
                           ob1_ref[...], g1_ref[...], be1_ref[...])
    x2, ae2 = _gatv2_layer(x1, mask3, sel_tgt, sel_src,
                           wc2_ref[...], bc2_ref[...], at2_ref[...], hx2_ref[...],
                           ob2_ref[...], g2_ref[...], be2_ref[...])
    x3, ae3 = _gatv2_layer(x2, mask3, sel_tgt, sel_src,
                           wc3_ref[...], bc3_ref[...], at3_ref[...], hx3_ref[...],
                           ob3_ref[...])

    x_res = x + x3                                          # residual (in_channels == 6*hidden3)

    # global_mean_pool as a matmul with the normalized one-hot batch matrix, then fc1/relu/fc2
    pooled = jnp.dot(pool_ref[...], x_res, preferred_element_type=jnp.float32)   # (B, F)
    h = jnp.maximum(_mxu(pooled, fw1_ref[...]) + fb1_ref[...], 0.0)
    logits_ref[...] = _mxu(h, fw2_ref[...]) + fb2_ref[...]

    # pack all per-edge alphas into one small slab: columns [0:4 | 4:8 | 8:14 | pad]
    pieces = [ae1, ae2, ae3]
    used = ae1.shape[1] + ae2.shape[1] + ae3.shape[1]
    pad_w = alpha_ref.shape[1] - used
    if pad_w:
        pieces.append(jnp.zeros((ae1.shape[0], pad_w), jnp.float32))
    alpha_ref[...] = jnp.concatenate(pieces, axis=-1)


# ----------------------------------------------------------------------------- wrapper

@jax.jit
def gatv2_forward(x, mask3, sel_tgt, sel_src, pool_mat, p1, p2, p3, fc1, fc2):
    flat = [x, mask3, sel_tgt, sel_src, pool_mat, *p1, *p2, *p3, *fc1, *fc2]
    n_graphs = pool_mat.shape[0]
    out_dim = fc2[0].shape[1]
    e_pad = sel_tgt.shape[0]
    h_tot = p1[3].shape[0] + p2[3].shape[0] + p3[3].shape[0]
    h_pad = max(8, -(-h_tot // 8) * 8)
    vmem = pl.BlockSpec(memory_space=pltpu.MemorySpace.VMEM)
    logits, alpha_slab = pl.pallas_call(
        _gatv2_fused_kernel,
        out_shape=(jax.ShapeDtypeStruct((n_graphs, out_dim), jnp.float32),
                   jax.ShapeDtypeStruct((e_pad, h_pad), jnp.float32)),
        in_specs=[vmem] * len(flat),
        out_specs=(vmem, vmem),
    )(*flat)
    return logits, alpha_slab


# ----------------------------------------------------------------------------- param init

def _glorot(key, shape):
    fan_in, fan_out = shape[0], shape[-1]
    lim = np.sqrt(6.0 / (fan_in + fan_out))
    return jax.random.uniform(key, shape, jnp.float32, -lim, lim)


def init_gatv2_conv(key, in_ch, out_ch, heads, with_ln):
    k = jax.random.split(key, 3)
    hc = heads * out_ch
    wl = _glorot(k[0], (in_ch, hc))                       # lin_l (source / message)
    wr = _glorot(k[1], (in_ch, hc))                       # lin_r (target)
    att = _glorot(k[2], (heads, out_ch))                  # per-head attention vector
    wcat = jnp.concatenate([wl, wr], axis=1)              # fused projection weights
    bcat = jnp.zeros((1, 2 * hc), jnp.float32)            # lin_l.bias | lin_r.bias
    # att embedded block-diagonally: A[h*C + c, h] = att[h, c]
    att_a = (att[:, :, None] * jnp.eye(heads, dtype=jnp.float32)[:, None, :]).reshape(hc, heads)
    # head expansion: R[h, h*C + c] = 1  (lets the aggregation run all heads at once)
    head_exp = jnp.repeat(jnp.eye(heads, dtype=jnp.float32), out_ch, axis=1)
    bias = jnp.zeros((1, hc), jnp.float32)                # GATv2Conv output bias
    params = (wcat, bcat, att_a, head_exp, bias)
    if with_ln:
        params = params + (jnp.ones((1, hc), jnp.float32), jnp.zeros((1, hc), jnp.float32))
    return params


def init_linear(key, in_f, out_f):
    lim = 1.0 / np.sqrt(in_f)
    w = jax.random.uniform(key, (in_f, out_f), jnp.float32, -lim, lim)
    b = jnp.zeros((1, out_f), jnp.float32)
    return w, b


# ----------------------------------------------------------------------------- main

if __name__ == "__main__":
    # sizes: in_channels=24, hidden1=8 (x4 heads -> 32), hidden2=8 (->32),
    #        hidden3=4 (x6 heads -> 24, matches in_channels for the residual), out=2
    N, B = 16, 2
    IN_CH, H1C, H2C, H3C, OUT_CH = 24, 8, 8, 4, 2
    HEADS12, HEADS3 = 4, 6

    key = jax.random.PRNGKey(0)
    kx, k1, k2, k3, k4, k5 = jax.random.split(key, 6)
    x = jax.random.normal(kx, (N, IN_CH), jnp.float32)

    # graph: two 8-node rings (both directions) + self loops (PyG GATv2Conv adds self
    # loops before attention, so they appear in the returned edge_index)
    edges = []
    for g in range(B):
        base = g * 8
        for i in range(8):
            j = (i + 1) % 8
            edges.append((base + i, base + j))
            edges.append((base + j, base + i))
    src = np.array([e[0] for e in edges] + list(range(N)), dtype=np.int32)
    tgt = np.array([e[1] for e in edges] + list(range(N)), dtype=np.int32)
    E = src.shape[0]                                       # 48
    E_PAD = max(128, -(-E // 128) * 128)                   # lane-sized edge slab
    edge_index_sl = jnp.stack([jnp.asarray(src), jnp.asarray(tgt)])       # (2, E')

    mask_np = np.zeros((N, N), np.float32)
    mask_np[tgt, src] = 1.0                                # mask[i, j] == 1 <=> edge j -> i
    mask3 = jnp.asarray(mask_np)[:, :, None]               # (N, N, 1)

    sel_tgt_np = np.zeros((E_PAD, N), np.float32)
    sel_src_np = np.zeros((E_PAD, N), np.float32)
    sel_tgt_np[np.arange(E), tgt] = 1.0                    # one-hot selectors for the
    sel_src_np[np.arange(E), src] = 1.0                    # in-kernel per-edge gather
    sel_tgt = jnp.asarray(sel_tgt_np)
    sel_src = jnp.asarray(sel_src_np)

    batch = np.array([0] * 8 + [1] * 8, np.int32)          # node -> graph id
    onehot = (batch[None, :] == np.arange(B)[:, None]).astype(np.float32)
    pool_mat = jnp.asarray(onehot / onehot.sum(axis=1, keepdims=True))    # mean pooling

    p1 = init_gatv2_conv(k1, IN_CH, H1C, HEADS12, with_ln=True)
    p2 = init_gatv2_conv(k2, H1C * HEADS12, H2C, HEADS12, with_ln=True)
    p3 = init_gatv2_conv(k3, H2C * HEADS12, H3C, HEADS3, with_ln=False)
    fc1 = init_linear(k4, H3C * HEADS3, 32)
    fc2 = init_linear(k5, 32, OUT_CH)

    logits, alpha_slab = gatv2_forward(x, mask3, sel_tgt, sel_src, pool_mat,
                                       p1, p2, p3, fc1, fc2)
    jax.block_until_ready((logits, alpha_slab))

    # per-edge attention in the PyG (edge_index, (E', heads)) convention
    attn1 = (edge_index_sl, alpha_slab[:E, 0:4])
    attn2 = (edge_index_sl, alpha_slab[:E, 4:8])
    attn3 = (edge_index_sl, alpha_slab[:E, 8:14])

    assert logits.shape == (B, OUT_CH)
    assert attn1[1].shape == (E, 4) and attn2[1].shape == (E, 4) and attn3[1].shape == (E, 6)
    # softmax sanity: attention over the incoming edges of every node sums to ~1 per head
    for a, nh in ((attn1[1], 4), (attn2[1], 4), (attn3[1], 6)):
        sums = np.zeros((N, nh), np.float32)
        np.add.at(sums, tgt, np.asarray(a))
        assert np.allclose(sums, 1.0, atol=5e-2)
    print("KERNEL_OK")
</pallas_src>

<mosaic_0001>
module attributes {stable_mosaic.version = 11 : i64} {
  func.func @_gatv2_fused_kernel(%arg0: memref<16x24xf32, #tpu.memory_space<vmem>>, %arg1: memref<16x16x1xf32, #tpu.memory_space<vmem>>, %arg2: memref<128x16xf32, #tpu.memory_space<vmem>>, %arg3: memref<128x16xf32, #tpu.memory_space<vmem>>, %arg4: memref<2x16xf32, #tpu.memory_space<vmem>>, %arg5: memref<24x64xf32, #tpu.memory_space<vmem>>, %arg6: memref<1x64xf32, #tpu.memory_space<vmem>>, %arg7: memref<32x4xf32, #tpu.memory_space<vmem>>, %arg8: memref<4x32xf32, #tpu.memory_space<vmem>>, %arg9: memref<1x32xf32, #tpu.memory_space<vmem>>, %arg10: memref<1x32xf32, #tpu.memory_space<vmem>>, %arg11: memref<1x32xf32, #tpu.memory_space<vmem>>, %arg12: memref<32x64xf32, #tpu.memory_space<vmem>>, %arg13: memref<1x64xf32, #tpu.memory_space<vmem>>, %arg14: memref<32x4xf32, #tpu.memory_space<vmem>>, %arg15: memref<4x32xf32, #tpu.memory_space<vmem>>, %arg16: memref<1x32xf32, #tpu.memory_space<vmem>>, %arg17: memref<1x32xf32, #tpu.memory_space<vmem>>, %arg18: memref<1x32xf32, #tpu.memory_space<vmem>>, %arg19: memref<32x48xf32, #tpu.memory_space<vmem>>, %arg20: memref<1x48xf32, #tpu.memory_space<vmem>>, %arg21: memref<24x6xf32, #tpu.memory_space<vmem>>, %arg22: memref<6x24xf32, #tpu.memory_space<vmem>>, %arg23: memref<1x24xf32, #tpu.memory_space<vmem>>, %arg24: memref<24x32xf32, #tpu.memory_space<vmem>>, %arg25: memref<1x32xf32, #tpu.memory_space<vmem>>, %arg26: memref<32x2xf32, #tpu.memory_space<vmem>>, %arg27: memref<1x2xf32, #tpu.memory_space<vmem>>, %arg28: memref<2x2xf32, #tpu.memory_space<vmem>>, %arg29: memref<128x16xf32, #tpu.memory_space<vmem>>) attributes {dimension_semantics = [], scalar_prefetch = 0 : i64, scratch_operands = 0 : i64, tpu.core_type = #tpu.core_type<tc>} {
    %c0 = arith.constant 0 : index
    %c0_0 = arith.constant 0 : index
    %0 = vector.load %arg0[%c0, %c0_0] : memref<16x24xf32, #tpu.memory_space<vmem>>, vector<16x24xf32>
    %c0_1 = arith.constant 0 : index
    %c0_2 = arith.constant 0 : index
    %c0_3 = arith.constant 0 : index
    %1 = vector.load %arg1[%c0_1, %c0_2, %c0_3] : memref<16x16x1xf32, #tpu.memory_space<vmem>>, vector<16x16x1xf32>
    %c0_4 = arith.constant 0 : index
    %c0_5 = arith.constant 0 : index
    %2 = vector.load %arg2[%c0_4, %c0_5] : memref<128x16xf32, #tpu.memory_space<vmem>>, vector<128x16xf32>
    %c0_6 = arith.constant 0 : index
    %c0_7 = arith.constant 0 : index
    %3 = vector.load %arg3[%c0_6, %c0_7] : memref<128x16xf32, #tpu.memory_space<vmem>>, vector<128x16xf32>
    %c0_8 = arith.constant 0 : index
    %c0_9 = arith.constant 0 : index
    %4 = vector.load %arg5[%c0_8, %c0_9] : memref<24x64xf32, #tpu.memory_space<vmem>>, vector<24x64xf32>
    %c0_10 = arith.constant 0 : index
    %c0_11 = arith.constant 0 : index
    %5 = vector.load %arg6[%c0_10, %c0_11] : memref<1x64xf32, #tpu.memory_space<vmem>>, vector<1x64xf32>
    %c0_12 = arith.constant 0 : index
    %c0_13 = arith.constant 0 : index
    %6 = vector.load %arg7[%c0_12, %c0_13] : memref<32x4xf32, #tpu.memory_space<vmem>>, vector<32x4xf32>
    %c0_14 = arith.constant 0 : index
    %c0_15 = arith.constant 0 : index
    %7 = vector.load %arg8[%c0_14, %c0_15] : memref<4x32xf32, #tpu.memory_space<vmem>>, vector<4x32xf32>
    %c0_16 = arith.constant 0 : index
    %c0_17 = arith.constant 0 : index
    %8 = vector.load %arg9[%c0_16, %c0_17] : memref<1x32xf32, #tpu.memory_space<vmem>>, vector<1x32xf32>
    %c0_18 = arith.constant 0 : index
    %c0_19 = arith.constant 0 : index
    %9 = vector.load %arg10[%c0_18, %c0_19] : memref<1x32xf32, #tpu.memory_space<vmem>>, vector<1x32xf32>
    %c0_20 = arith.constant 0 : index
    %c0_21 = arith.constant 0 : index
    %10 = vector.load %arg11[%c0_20, %c0_21] : memref<1x32xf32, #tpu.memory_space<vmem>>, vector<1x32xf32>
    %11 = arith.truncf %0 : vector<16x24xf32> to vector<16x24xbf16>
    %12 = arith.truncf %4 : vector<24x64xf32> to vector<24x64xbf16>
    %cst = arith.constant dense<0.000000e+00> : vector<16x64xf32>
    %13 = tpu.matmul %11, %12, %cst {dimension_numbers = #tpu.dot_dimension_numbers<[1], [0], [0], [1], [0, 0, 1, 1], [], []>} : vector<16x24xbf16>, vector<24x64xbf16>, vector<16x64xf32> -> vector<16x64xf32>
    %14 = vector.broadcast %5 : vector<1x64xf32> to vector<16x64xf32>
    %15 = arith.addf %13, %14 : vector<16x64xf32>
    %16 = vector.extract_strided_slice %15 {offsets = [0, 0], sizes = [16, 32], strides = [1, 1]} : vector<16x64xf32> to vector<16x32xf32>
    %17 = vector.extract_strided_slice %15 {offsets = [0, 32], sizes = [16, 32], strides = [1, 1]} : vector<16x64xf32> to vector<16x32xf32>
    %18 = vector.shape_cast %17 : vector<16x32xf32> to vector<16x1x32xf32>
    %19 = vector.shape_cast %16 : vector<16x32xf32> to vector<1x16x32xf32>
    %20 = vector.broadcast %18 : vector<16x1x32xf32> to vector<16x16x32xf32>
    %21 = vector.broadcast %19 : vector<1x16x32xf32> to vector<16x16x32xf32>
    %22 = arith.addf %20, %21 : vector<16x16x32xf32>
    %cst_22 = arith.constant 0.000000e+00 : f32
    %23 = vector.broadcast %cst_22 : f32 to vector<16x16x32xf32>
    %24 = arith.cmpf ogt, %22, %23 : vector<16x16x32xf32>
    %cst_23 = arith.constant 2.000000e-01 : f32
    %25 = vector.broadcast %cst_23 : f32 to vector<16x16x32xf32>
    %26 = arith.mulf %25, %22 : vector<16x16x32xf32>
    %27 = arith.select %24, %22, %26 : vector<16x16x32xi1>, vector<16x16x32xf32>
    %28 = vector.shape_cast %27 : vector<16x16x32xf32> to vector<256x32xf32>
    %29 = arith.truncf %28 : vector<256x32xf32> to vector<256x32xbf16>
    %30 = arith.truncf %6 : vector<32x4xf32> to vector<32x4xbf16>
    %cst_24 = arith.constant dense<0.000000e+00> : vector<256x4xf32>
    %31 = tpu.matmul %29, %30, %cst_24 {dimension_numbers = #tpu.dot_dimension_numbers<[1], [0], [0], [1], [0, 0, 1, 1], [], []>} : vector<256x32xbf16>, vector<32x4xbf16>, vector<256x4xf32> -> vector<256x4xf32>
    %32 = vector.shape_cast %31 : vector<256x4xf32> to vector<16x16x4xf32>
    %cst_25 = arith.constant dense<0xFF800000> : vector<16x4xf32>
    %33 = vector.multi_reduction <maximumf>, %32, %cst_25 [1] : vector<16x16x4xf32> to vector<16x4xf32>
    %34 = vector.shape_cast %33 : vector<16x4xf32> to vector<16x1x4xf32>
    %35 = vector.broadcast %34 : vector<16x1x4xf32> to vector<16x16x4xf32>
    %36 = arith.subf %32, %35 : vector<16x16x4xf32>
    %37 = math.exp %36 : vector<16x16x4xf32>
    %38 = vector.broadcast %1 : vector<16x16x1xf32> to vector<16x16x4xf32>
    %39 = arith.mulf %37, %38 : vector<16x16x4xf32>
    %cst_26 = arith.constant dense<0.000000e+00> : vector<16x4xf32>
    %40 = vector.multi_reduction <add>, %39, %cst_26 [1] : vector<16x16x4xf32> to vector<16x4xf32>
    %cst_27 = arith.constant 1.000000e-30 : f32
    %41 = vector.broadcast %cst_27 : f32 to vector<16x4xf32>
    %42 = arith.maximumf %40, %41 : vector<16x4xf32>
    %43 = tpu.reciprocal %42 {approx = true} : vector<16x4xf32> -> vector<16x4xf32>
    %44 = vector.shape_cast %43 : vector<16x4xf32> to vector<16x1x4xf32>
    %45 = vector.broadcast %44 : vector<16x1x4xf32> to vector<16x16x4xf32>
    %46 = arith.mulf %39, %45 : vector<16x16x4xf32>
    %47 = vector.shape_cast %46 : vector<16x16x4xf32> to vector<256x4xf32>
    %cst_28 = arith.constant dense<0.000000e+00> : vector<256x32xf32>
    %48 = tpu.matmul %47, %7, %cst_28 {dimension_numbers = #tpu.dot_dimension_numbers<[1], [0], [0], [1], [0, 0, 1, 1], [], []>} : vector<256x4xf32>, vector<4x32xf32>, vector<256x32xf32> -> vector<256x32xf32>
    %49 = vector.shape_cast %48 : vector<256x32xf32> to vector<16x16x32xf32>
    %50 = vector.shape_cast %16 : vector<16x32xf32> to vector<1x16x32xf32>
    %51 = vector.broadcast %50 : vector<1x16x32xf32> to vector<16x16x32xf32>
    %52 = arith.mulf %49, %51 : vector<16x16x32xf32>
    %cst_29 = arith.constant dense<0.000000e+00> : vector<16x32xf32>
    %53 = vector.multi_reduction <add>, %52, %cst_29 [1] : vector<16x16x32xf32> to vector<16x32xf32>
    %54 = vector.broadcast %8 : vector<1x32xf32> to vector<16x32xf32>
    %55 = arith.addf %53, %54 : vector<16x32xf32>
    %cst_30 = arith.constant dense<0.000000e+00> : vector<128x32xf32>
    %56 = tpu.matmul %2, %17, %cst_30 {dimension_numbers = #tpu.dot_dimension_numbers<[1], [0], [0], [1], [0, 0, 1, 1], [], []>} : vector<128x16xf32>, vector<16x32xf32>, vector<128x32xf32> -> vector<128x32xf32>
    %cst_31 = arith.constant dense<0.000000e+00> : vector<128x32xf32>
    %57 = tpu.matmul %3, %16, %cst_31 {dimension_numbers = #tpu.dot_dimension_numbers<[1], [0], [0], [1], [0, 0, 1, 1], [], []>} : vector<128x16xf32>, vector<16x32xf32>, vector<128x32xf32> -> vector<128x32xf32>
    %58 = arith.addf %56, %57 : vector<128x32xf32>
    %cst_32 = arith.constant 0.000000e+00 : f32
    %59 = vector.broadcast %cst_32 : f32 to vector<128x32xf32>
    %60 = arith.cmpf ogt, %58, %59 : vector<128x32xf32>
    %cst_33 = arith.constant 2.000000e-01 : f32
    %61 = vector.broadcast %cst_33 : f32 to vector<128x32xf32>
    %62 = arith.mulf %61, %58 : vector<128x32xf32>
    %63 = arith.select %60, %58, %62 : vector<128x32xi1>, vector<128x32xf32>
    %64 = arith.truncf %63 : vector<128x32xf32> to vector<128x32xbf16>
    %65 = arith.truncf %6 : vector<32x4xf32> to vector<32x4xbf16>
    %cst_34 = arith.constant dense<0.000000e+00> : vector<128x4xf32>
    %66 = tpu.matmul %64, %65, %cst_34 {dimension_numbers = #tpu.dot_dimension_numbers<[1], [0], [0], [1], [0, 0, 1, 1], [], []>} : vector<128x32xbf16>, vector<32x4xbf16>, vector<128x4xf32> -> vector<128x4xf32>
    %cst_35 = arith.constant dense<0.000000e+00> : vector<128x4xf32>
    %67 = tpu.matmul %2, %33, %cst_35 {dimension_numbers = #tpu.dot_dimension_numbers<[1], [0], [0], [1], [0, 0, 1, 1], [], []>} : vector<128x16xf32>, vector<16x4xf32>, vector<128x4xf32> -> vector<128x4xf32>
    %cst_36 = arith.constant dense<0.000000e+00> : vector<128x4xf32>
    %68 = tpu.matmul %2, %43, %cst_36 {dimension_numbers = #tpu.dot_dimension_numbers<[1], [0], [0], [1], [0, 0, 1, 1], [], []>} : vector<128x16xf32>, vector<16x4xf32>, vector<128x4xf32> -> vector<128x4xf32>
    %69 = arith.subf %66, %67 : vector<128x4xf32>
    %70 = math.exp %69 : vector<128x4xf32>
    %71 = arith.mulf %70, %68 : vector<128x4xf32>
    %cst_37 = arith.constant dense<0.000000e+00> : vector<16xf32>
    %72 = vector.multi_reduction <add>, %55, %cst_37 [1] : vector<16x32xf32> to vector<16xf32>
    %73 = vector.shape_cast %72 : vector<16xf32> to vector<16x1xf32>
    %cst_38 = arith.constant 3.200000e+01 : f32
    %74 = vector.broadcast %cst_38 : f32 to vector<16x1xf32>
    %75 = arith.divf %73, %74 : vector<16x1xf32>
    %76 = vector.broadcast %75 : vector<16x1xf32> to vector<16x32xf32>
    %77 = arith.subf %55, %76 : vector<16x32xf32>
    %78 = arith.mulf %77, %77 : vector<16x32xf32>
    %cst_39 = arith.constant dense<0.000000e+00> : vector<16xf32>
    %79 = vector.multi_reduction <add>, %78, %cst_39 [1] : vector<16x32xf32> to vector<16xf32>
    %80 = vector.shape_cast %79 : vector<16xf32> to vector<16x1xf32>
    %cst_40 = arith.constant 3.200000e+01 : f32
    %81 = vector.broadcast %cst_40 : f32 to vector<16x1xf32>
    %82 = arith.divf %80, %81 : vector<16x1xf32>
    %83 = vector.broadcast %75 : vector<16x1xf32> to vector<16x32xf32>
    %84 = arith.subf %55, %83 : vector<16x32xf32>
    %cst_41 = arith.constant 9.99999974E-6 : f32
    %85 = vector.broadcast %cst_41 : f32 to vector<16x1xf32>
    %86 = arith.addf %82, %85 : vector<16x1xf32>
    %87 = math.rsqrt %86 : vector<16x1xf32>
    %88 = vector.broadcast %87 : vector<16x1xf32> to vector<16x32xf32>
    %89 = arith.mulf %84, %88 : vector<16x32xf32>
    %90 = vector.broadcast %9 : vector<1x32xf32> to vector<16x32xf32>
    %91 = arith.mulf %89, %90 : vector<16x32xf32>
    %92 = vector.broadcast %10 : vector<1x32xf32> to vector<16x32xf32>
    %93 = arith.addf %91, %92 : vector<16x32xf32>
    %cst_42 = arith.constant 0.000000e+00 : f32
    %94 = vector.broadcast %cst_42 : f32 to vector<16x32xf32>
    %95 = arith.maximumf %93, %94 : vector<16x32xf32>
    %c0_43 = arith.constant 0 : index
    %c0_44 = arith.constant 0 : index
    %96 = vector.load %arg12[%c0_43, %c0_44] : memref<32x64xf32, #tpu.memory_space<vmem>>, vector<32x64xf32>
    %c0_45 = arith.constant 0 : index
    %c0_46 = arith.constant 0 : index
    %97 = vector.load %arg13[%c0_45, %c0_46] : memref<1x64xf32, #tpu.memory_space<vmem>>, vector<1x64xf32>
    %c0_47 = arith.constant 0 : index
    %c0_48 = arith.constant 0 : index
    %98 = vector.load %arg14[%c0_47, %c0_48] : memref<32x4xf32, #tpu.memory_space<vmem>>, vector<32x4xf32>
    %c0_49 = arith.constant 0 : index
    %c0_50 = arith.constant 0 : index
    %99 = vector.load %arg15[%c0_49, %c0_50] : memref<4x32xf32, #tpu.memory_space<vmem>>, vector<4x32xf32>
    %c0_51 = arith.constant 0 : index
    %c0_52 = arith.constant 0 : index
    %100 = vector.load %arg16[%c0_51, %c0_52] : memref<1x32xf32, #tpu.memory_space<vmem>>, vector<1x32xf32>
    %c0_53 = arith.constant 0 : index
    %c0_54 = arith.constant 0 : index
    %101 = vector.load %arg17[%c0_53, %c0_54] : memref<1x32xf32, #tpu.memory_space<vmem>>, vector<1x32xf32>
    %c0_55 = arith.constant 0 : index
    %c0_56 = arith.constant 0 : index
    %102 = vector.load %arg18[%c0_55, %c0_56] : memref<1x32xf32, #tpu.memory_space<vmem>>, vector<1x32xf32>
    %103 = arith.truncf %95 : vector<16x32xf32> to vector<16x32xbf16>
    %104 = arith.truncf %96 : vector<32x64xf32> to vector<32x64xbf16>
    %cst_57 = arith.constant dense<0.000000e+00> : vector<16x64xf32>
    %105 = tpu.matmul %103, %104, %cst_57 {dimension_numbers = #tpu.dot_dimension_numbers<[1], [0], [0], [1], [0, 0, 1, 1], [], []>} : vector<16x32xbf16>, vector<32x64xbf16>, vector<16x64xf32> -> vector<16x64xf32>
    %106 = vector.broadcast %97 : vector<1x64xf32> to vector<16x64xf32>
    %107 = arith.addf %105, %106 : vector<16x64xf32>
    %108 = vector.extract_strided_slice %107 {offsets = [0, 0], sizes = [16, 32], strides = [1, 1]} : vector<16x64xf32> to vector<16x32xf32>
    %109 = vector.extract_strided_slice %107 {offsets = [0, 32], sizes = [16, 32], strides = [1, 1]} : vector<16x64xf32> to vector<16x32xf32>
    %110 = vector.shape_cast %109 : vector<16x32xf32> to vector<16x1x32xf32>
    %111 = vector.shape_cast %108 : vector<16x32xf32> to vector<1x16x32xf32>
    %112 = vector.broadcast %110 : vector<16x1x32xf32> to vector<16x16x32xf32>
    %113 = vector.broadcast %111 : vector<1x16x32xf32> to vector<16x16x32xf32>
    %114 = arith.addf %112, %113 : vector<16x16x32xf32>
    %cst_58 = arith.constant 0.000000e+00 : f32
    %115 = vector.broadcast %cst_58 : f32 to vector<16x16x32xf32>
    %116 = arith.cmpf ogt, %114, %115 : vector<16x16x32xf32>
    %cst_59 = arith.constant 2.000000e-01 : f32
    %117 = vector.broadcast %cst_59 : f32 to vector<16x16x32xf32>
    %118 = arith.mulf %117, %114 : vector<16x16x32xf32>
    %119 = arith.select %116, %114, %118 : vector<16x16x32xi1>, vector<16x16x32xf32>
    %120 = vector.shape_cast %119 : vector<16x16x32xf32> to vector<256x32xf32>
    %121 = arith.truncf %120 : vector<256x32xf32> to vector<256x32xbf16>
    %122 = arith.truncf %98 : vector<32x4xf32> to vector<32x4xbf16>
    %cst_60 = arith.constant dense<0.000000e+00> : vector<256x4xf32>
    %123 = tpu.matmul %121, %122, %cst_60 {dimension_numbers = #tpu.dot_dimension_numbers<[1], [0], [0], [1], [0, 0, 1, 1], [], []>} : vector<256x32xbf16>, vector<32x4xbf16>, vector<256x4xf32> -> vector<256x4xf32>
    %124 = vector.shape_cast %123 : vector<256x4xf32> to vector<16x16x4xf32>
    %cst_61 = arith.constant dense<0xFF800000> : vector<16x4xf32>
    %125 = vector.multi_reduction <maximumf>, %124, %cst_61 [1] : vector<16x16x4xf32> to vector<16x4xf32>
    %126 = vector.shape_cast %125 : vector<16x4xf32> to vector<16x1x4xf32>
    %127 = vector.broadcast %126 : vector<16x1x4xf32> to vector<16x16x4xf32>
    %128 = arith.subf %124, %127 : vector<16x16x4xf32>
    %129 = math.exp %128 : vector<16x16x4xf32>
    %130 = vector.broadcast %1 : vector<16x16x1xf32> to vector<16x16x4xf32>
    %131 = arith.mulf %129, %130 : vector<16x16x4xf32>
    %cst_62 = arith.constant dense<0.000000e+00> : vector<16x4xf32>
    %132 = vector.multi_reduction <add>, %131, %cst_62 [1] : vector<16x16x4xf32> to vector<16x4xf32>
    %cst_63 = arith.constant 1.000000e-30 : f32
    %133 = vector.broadcast %cst_63 : f32 to vector<16x4xf32>
    %134 = arith.maximumf %132, %133 : vector<16x4xf32>
    %135 = tpu.reciprocal %134 {approx = true} : vector<16x4xf32> -> vector<16x4xf32>
    %136 = vector.shape_cast %135 : vector<16x4xf32> to vector<16x1x4xf32>
    %137 = vector.broadcast %136 : vector<16x1x4xf32> to vector<16x16x4xf32>
    %138 = arith.mulf %131, %137 : vector<16x16x4xf32>
    %139 = vector.shape_cast %138 : vector<16x16x4xf32> to vector<256x4xf32>
    %cst_64 = arith.constant dense<0.000000e+00> : vector<256x32xf32>
    %140 = tpu.matmul %139, %99, %cst_64 {dimension_numbers = #tpu.dot_dimension_numbers<[1], [0], [0], [1], [0, 0, 1, 1], [], []>} : vector<256x4xf32>, vector<4x32xf32>, vector<256x32xf32> -> vector<256x32xf32>
    %141 = vector.shape_cast %140 : vector<256x32xf32> to vector<16x16x32xf32>
    %142 = vector.shape_cast %108 : vector<16x32xf32> to vector<1x16x32xf32>
    %143 = vector.broadcast %142 : vector<1x16x32xf32> to vector<16x16x32xf32>
    %144 = arith.mulf %141, %143 : vector<16x16x32xf32>
    %cst_65 = arith.constant dense<0.000000e+00> : vector<16x32xf32>
    %145 = vector.multi_reduction <add>, %144, %cst_65 [1] : vector<16x16x32xf32> to vector<16x32xf32>
    %146 = vector.broadcast %100 : vector<1x32xf32> to vector<16x32xf32>
    %147 = arith.addf %145, %146 : vector<16x32xf32>
    %cst_66 = arith.constant dense<0.000000e+00> : vector<128x32xf32>
    %148 = tpu.matmul %2, %109, %cst_66 {dimension_numbers = #tpu.dot_dimension_numbers<[1], [0], [0], [1], [0, 0, 1, 1], [], []>} : vector<128x16xf32>, vector<16x32xf32>, vector<128x32xf32> -> vector<128x32xf32>
    %cst_67 = arith.constant dense<0.000000e+00> : vector<128x32xf32>
    %149 = tpu.matmul %3, %108, %cst_67 {dimension_numbers = #tpu.dot_dimension_numbers<[1], [0], [0], [1], [0, 0, 1, 1], [], []>} : vector<128x16xf32>, vector<16x32xf32>, vector<128x32xf32> -> vector<128x32xf32>
    %150 = arith.addf %148, %149 : vector<128x32xf32>
    %cst_68 = arith.constant 0.000000e+00 : f32
    %151 = vector.broadcast %cst_68 : f32 to vector<128x32xf32>
    %152 = arith.cmpf ogt, %150, %151 : vector<128x32xf32>
    %cst_69 = arith.constant 2.000000e-01 : f32
    %153 = vector.broadcast %cst_69 : f32 to vector<128x32xf32>
    %154 = arith.mulf %153, %150 : vector<128x32xf32>
    %155 = arith.select %152, %150, %154 : vector<128x32xi1>, vector<128x32xf32>
    %156 = arith.truncf %155 : vector<128x32xf32> to vector<128x32xbf16>
    %157 = arith.truncf %98 : vector<32x4xf32> to vector<32x4xbf16>
    %cst_70 = arith.constant dense<0.000000e+00> : vector<128x4xf32>
    %158 = tpu.matmul %156, %157, %cst_70 {dimension_numbers = #tpu.dot_dimension_numbers<[1], [0], [0], [1], [0, 0, 1, 1], [], []>} : vector<128x32xbf16>, vector<32x4xbf16>, vector<128x4xf32> -> vector<128x4xf32>
    %cst_71 = arith.constant dense<0.000000e+00> : vector<128x4xf32>
    %159 = tpu.matmul %2, %125, %cst_71 {dimension_numbers = #tpu.dot_dimension_numbers<[1], [0], [0], [1], [0, 0, 1, 1], [], []>} : vector<128x16xf32>, vector<16x4xf32>, vector<128x4xf32> -> vector<128x4xf32>
    %cst_72 = arith.constant dense<0.000000e+00> : vector<128x4xf32>
    %160 = tpu.matmul %2, %135, %cst_72 {dimension_numbers = #tpu.dot_dimension_numbers<[1], [0], [0], [1], [0, 0, 1, 1], [], []>} : vector<128x16xf32>, vector<16x4xf32>, vector<128x4xf32> -> vector<128x4xf32>
    %161 = arith.subf %158, %159 : vector<128x4xf32>
    %162 = math.exp %161 : vector<128x4xf32>
    %163 = arith.mulf %162, %160 : vector<128x4xf32>
    %cst_73 = arith.constant dense<0.000000e+00> : vector<16xf32>
    %164 = vector.multi_reduction <add>, %147, %cst_73 [1] : vector<16x32xf32> to vector<16xf32>
    %165 = vector.shape_cast %164 : vector<16xf32> to vector<16x1xf32>
    %cst_74 = arith.constant 3.200000e+01 : f32
    %166 = vector.broadcast %cst_74 : f32 to vector<16x1xf32>
    %167 = arith.divf %165, %166 : vector<16x1xf32>
    %168 = vector.broadcast %167 : vector<16x1xf32> to vector<16x32xf32>
    %169 = arith.subf %147, %168 : vector<16x32xf32>
    %170 = arith.mulf %169, %169 : vector<16x32xf32>
    %cst_75 = arith.constant dense<0.000000e+00> : vector<16xf32>
    %171 = vector.multi_reduction <add>, %170, %cst_75 [1] : vector<16x32xf32> to vector<16xf32>
    %172 = vector.shape_cast %171 : vector<16xf32> to vector<16x1xf32>
    %cst_76 = arith.constant 3.200000e+01 : f32
    %173 = vector.broadcast %cst_76 : f32 to vector<16x1xf32>
    %174 = arith.divf %172, %173 : vector<16x1xf32>
    %175 = vector.broadcast %167 : vector<16x1xf32> to vector<16x32xf32>
    %176 = arith.subf %147, %175 : vector<16x32xf32>
    %cst_77 = arith.constant 9.99999974E-6 : f32
    %177 = vector.broadcast %cst_77 : f32 to vector<16x1xf32>
    %178 = arith.addf %174, %177 : vector<16x1xf32>
    %179 = math.rsqrt %178 : vector<16x1xf32>
    %180 = vector.broadcast %179 : vector<16x1xf32> to vector<16x32xf32>
    %181 = arith.mulf %176, %180 : vector<16x32xf32>
    %182 = vector.broadcast %101 : vector<1x32xf32> to vector<16x32xf32>
    %183 = arith.mulf %181, %182 : vector<16x32xf32>
    %184 = vector.broadcast %102 : vector<1x32xf32> to vector<16x32xf32>
    %185 = arith.addf %183, %184 : vector<16x32xf32>
    %cst_78 = arith.constant 0.000000e+00 : f32
    %186 = vector.broadcast %cst_78 : f32 to vector<16x32xf32>
    %187 = arith.maximumf %185, %186 : vector<16x32xf32>
    %c0_79 = arith.constant 0 : index
    %c0_80 = arith.constant 0 : index
    %188 = vector.load %arg19[%c0_79, %c0_80] : memref<32x48xf32, #tpu.memory_space<vmem>>, vector<32x48xf32>
    %c0_81 = arith.constant 0 : index
    %c0_82 = arith.constant 0 : index
    %189 = vector.load %arg20[%c0_81, %c0_82] : memref<1x48xf32, #tpu.memory_space<vmem>>, vector<1x48xf32>
    %c0_83 = arith.constant 0 : index
    %c0_84 = arith.constant 0 : index
    %190 = vector.load %arg21[%c0_83, %c0_84] : memref<24x6xf32, #tpu.memory_space<vmem>>, vector<24x6xf32>
    %c0_85 = arith.constant 0 : index
    %c0_86 = arith.constant 0 : index
    %191 = vector.load %arg22[%c0_85, %c0_86] : memref<6x24xf32, #tpu.memory_space<vmem>>, vector<6x24xf32>
    %c0_87 = arith.constant 0 : index
    %c0_88 = arith.constant 0 : index
    %192 = vector.load %arg23[%c0_87, %c0_88] : memref<1x24xf32, #tpu.memory_space<vmem>>, vector<1x24xf32>
    %193 = arith.truncf %187 : vector<16x32xf32> to vector<16x32xbf16>
    %194 = arith.truncf %188 : vector<32x48xf32> to vector<32x48xbf16>
    %cst_89 = arith.constant dense<0.000000e+00> : vector<16x48xf32>
    %195 = tpu.matmul %193, %194, %cst_89 {dimension_numbers = #tpu.dot_dimension_numbers<[1], [0], [0], [1], [0, 0, 1, 1], [], []>} : vector<16x32xbf16>, vector<32x48xbf16>, vector<16x48xf32> -> vector<16x48xf32>
    %196 = vector.broadcast %189 : vector<1x48xf32> to vector<16x48xf32>
    %197 = arith.addf %195, %196 : vector<16x48xf32>
    %198 = vector.extract_strided_slice %197 {offsets = [0, 0], sizes = [16, 24], strides = [1, 1]} : vector<16x48xf32> to vector<16x24xf32>
    %199 = vector.extract_strided_slice %197 {offsets = [0, 24], sizes = [16, 24], strides = [1, 1]} : vector<16x48xf32> to vector<16x24xf32>
    %200 = vector.shape_cast %199 : vector<16x24xf32> to vector<16x1x24xf32>
    %201 = vector.shape_cast %198 : vector<16x24xf32> to vector<1x16x24xf32>
    %202 = vector.broadcast %200 : vector<16x1x24xf32> to vector<16x16x24xf32>
    %203 = vector.broadcast %201 : vector<1x16x24xf32> to vector<16x16x24xf32>
    %204 = arith.addf %202, %203 : vector<16x16x24xf32>
    %cst_90 = arith.constant 0.000000e+00 : f32
    %205 = vector.broadcast %cst_90 : f32 to vector<16x16x24xf32>
    %206 = arith.cmpf ogt, %204, %205 : vector<16x16x24xf32>
    %cst_91 = arith.constant 2.000000e-01 : f32
    %207 = vector.broadcast %cst_91 : f32 to vector<16x16x24xf32>
    %208 = arith.mulf %207, %204 : vector<16x16x24xf32>
    %209 = arith.select %206, %204, %208 : vector<16x16x24xi1>, vector<16x16x24xf32>
    %210 = vector.shape_cast %209 : vector<16x16x24xf32> to vector<256x24xf32>
    %211 = arith.truncf %210 : vector<256x24xf32> to vector<256x24xbf16>
    %212 = arith.truncf %190 : vector<24x6xf32> to vector<24x6xbf16>
    %cst_92 = arith.constant dense<0.000000e+00> : vector<256x6xf32>
    %213 = tpu.matmul %211, %212, %cst_92 {dimension_numbers = #tpu.dot_dimension_numbers<[1], [0], [0], [1], [0, 0, 1, 1], [], []>} : vector<256x24xbf16>, vector<24x6xbf16>, vector<256x6xf32> -> vector<256x6xf32>
    %214 = vector.shape_cast %213 : vector<256x6xf32> to vector<16x16x6xf32>
    %cst_93 = arith.constant dense<0xFF800000> : vector<16x6xf32>
    %215 = vector.multi_reduction <maximumf>, %214, %cst_93 [1] : vector<16x16x6xf32> to vector<16x6xf32>
    %216 = vector.shape_cast %215 : vector<16x6xf32> to vector<16x1x6xf32>
    %217 = vector.broadcast %216 : vector<16x1x6xf32> to vector<16x16x6xf32>
    %218 = arith.subf %214, %217 : vector<16x16x6xf32>
    %219 = math.exp %218 : vector<16x16x6xf32>
    %220 = vector.broadcast %1 : vector<16x16x1xf32> to vector<16x16x6xf32>
    %221 = arith.mulf %219, %220 : vector<16x16x6xf32>
    %cst_94 = arith.constant dense<0.000000e+00> : vector<16x6xf32>
    %222 = vector.multi_reduction <add>, %221, %cst_94 [1] : vector<16x16x6xf32> to vector<16x6xf32>
    %cst_95 = arith.constant 1.000000e-30 : f32
    %223 = vector.broadcast %cst_95 : f32 to vector<16x6xf32>
    %224 = arith.maximumf %222, %223 : vector<16x6xf32>
    %225 = tpu.reciprocal %224 {approx = true} : vector<16x6xf32> -> vector<16x6xf32>
    %226 = vector.shape_cast %225 : vector<16x6xf32> to vector<16x1x6xf32>
    %227 = vector.broadcast %226 : vector<16x1x6xf32> to vector<16x16x6xf32>
    %228 = arith.mulf %221, %227 : vector<16x16x6xf32>
    %229 = vector.shape_cast %228 : vector<16x16x6xf32> to vector<256x6xf32>
    %cst_96 = arith.constant dense<0.000000e+00> : vector<256x24xf32>
    %230 = tpu.matmul %229, %191, %cst_96 {dimension_numbers = #tpu.dot_dimension_numbers<[1], [0], [0], [1], [0, 0, 1, 1], [], []>} : vector<256x6xf32>, vector<6x24xf32>, vector<256x24xf32> -> vector<256x24xf32>
    %231 = vector.shape_cast %230 : vector<256x24xf32> to vector<16x16x24xf32>
    %232 = vector.shape_cast %198 : vector<16x24xf32> to vector<1x16x24xf32>
    %233 = vector.broadcast %232 : vector<1x16x24xf32> to vector<16x16x24xf32>
    %234 = arith.mulf %231, %233 : vector<16x16x24xf32>
    %cst_97 = arith.constant dense<0.000000e+00> : vector<16x24xf32>
    %235 = vector.multi_reduction <add>, %234, %cst_97 [1] : vector<16x16x24xf32> to vector<16x24xf32>
    %236 = vector.broadcast %192 : vector<1x24xf32> to vector<16x24xf32>
    %237 = arith.addf %235, %236 : vector<16x24xf32>
    %cst_98 = arith.constant dense<0.000000e+00> : vector<128x24xf32>
    %238 = tpu.matmul %2, %199, %cst_98 {dimension_numbers = #tpu.dot_dimension_numbers<[1], [0], [0], [1], [0, 0, 1, 1], [], []>} : vector<128x16xf32>, vector<16x24xf32>, vector<128x24xf32> -> vector<128x24xf32>
    %cst_99 = arith.constant dense<0.000000e+00> : vector<128x24xf32>
    %239 = tpu.matmul %3, %198, %cst_99 {dimension_numbers = #tpu.dot_dimension_numbers<[1], [0], [0], [1], [0, 0, 1, 1], [], []>} : vector<128x16xf32>, vector<16x24xf32>, vector<128x24xf32> -> vector<128x24xf32>
    %240 = arith.addf %238, %239 : vector<128x24xf32>
    %cst_100 = arith.constant 0.000000e+00 : f32
    %241 = vector.broadcast %cst_100 : f32 to vector<128x24xf32>
    %242 = arith.cmpf ogt, %240, %241 : vector<128x24xf32>
    %cst_101 = arith.constant 2.000000e-01 : f32
    %243 = vector.broadcast %cst_101 : f32 to vector<128x24xf32>
    %244 = arith.mulf %243, %240 : vector<128x24xf32>
    %245 = arith.select %242, %240, %244 : vector<128x24xi1>, vector<128x24xf32>
    %246 = arith.truncf %245 : vector<128x24xf32> to vector<128x24xbf16>
    %247 = arith.truncf %190 : vector<24x6xf32> to vector<24x6xbf16>
    %cst_102 = arith.constant dense<0.000000e+00> : vector<128x6xf32>
    %248 = tpu.matmul %246, %247, %cst_102 {dimension_numbers = #tpu.dot_dimension_numbers<[1], [0], [0], [1], [0, 0, 1, 1], [], []>} : vector<128x24xbf16>, vector<24x6xbf16>, vector<128x6xf32> -> vector<128x6xf32>
    %cst_103 = arith.constant dense<0.000000e+00> : vector<128x6xf32>
    %249 = tpu.matmul %2, %215, %cst_103 {dimension_numbers = #tpu.dot_dimension_numbers<[1], [0], [0], [1], [0, 0, 1, 1], [], []>} : vector<128x16xf32>, vector<16x6xf32>, vector<128x6xf32> -> vector<128x6xf32>
    %cst_104 = arith.constant dense<0.000000e+00> : vector<128x6xf32>
    %250 = tpu.matmul %2, %225, %cst_104 {dimension_numbers = #tpu.dot_dimension_numbers<[1], [0], [0], [1], [0, 0, 1, 1], [], []>} : vector<128x16xf32>, vector<16x6xf32>, vector<128x6xf32> -> vector<128x6xf32>
    %251 = arith.subf %248, %249 : vector<128x6xf32>
    %252 = math.exp %251 : vector<128x6xf32>
    %253 = arith.mulf %252, %250 : vector<128x6xf32>
    %cst_105 = arith.constant 0.000000e+00 : f32
    %254 = vector.broadcast %cst_105 : f32 to vector<16x24xf32>
    %255 = arith.maximumf %237, %254 : vector<16x24xf32>
    %256 = arith.addf %0, %255 : vector<16x24xf32>
    %c0_106 = arith.constant 0 : index
    %c0_107 = arith.constant 0 : index
    %257 = vector.load %arg4[%c0_106, %c0_107] : memref<2x16xf32, #tpu.memory_space<vmem>>, vector<2x16xf32>
    %cst_108 = arith.constant dense<0.000000e+00> : vector<2x24xf32>
    %258 = tpu.matmul %257, %256, %cst_108 {dimension_numbers = #tpu.dot_dimension_numbers<[1], [0], [0], [1], [0, 0, 1, 1], [], []>} : vector<2x16xf32>, vector<16x24xf32>, vector<2x24xf32> -> vector<2x24xf32>
    %c0_109 = arith.constant 0 : index
    %c0_110 = arith.constant 0 : index
    %259 = vector.load %arg24[%c0_109, %c0_110] : memref<24x32xf32, #tpu.memory_space<vmem>>, vector<24x32xf32>
    %260 = arith.truncf %258 : vector<2x24xf32> to vector<2x24xbf16>
    %261 = arith.truncf %259 : vector<24x32xf32> to vector<24x32xbf16>
    %cst_111 = arith.constant dense<0.000000e+00> : vector<2x32xf32>
    %262 = tpu.matmul %260, %261, %cst_111 {dimension_numbers = #tpu.dot_dimension_numbers<[1], [0], [0], [1], [0, 0, 1, 1], [], []>} : vector<2x24xbf16>, vector<24x32xbf16>, vector<2x32xf32> -> vector<2x32xf32>
    %c0_112 = arith.constant 0 : index
    %c0_113 = arith.constant 0 : index
    %263 = vector.load %arg25[%c0_112, %c0_113] : memref<1x32xf32, #tpu.memory_space<vmem>>, vector<1x32xf32>
    %264 = vector.broadcast %263 : vector<1x32xf32> to vector<2x32xf32>
    %265 = arith.addf %262, %264 : vector<2x32xf32>
    %cst_114 = arith.constant 0.000000e+00 : f32
    %266 = vector.broadcast %cst_114 : f32 to vector<2x32xf32>
    %267 = arith.maximumf %265, %266 : vector<2x32xf32>
    %c0_115 = arith.constant 0 : index
    %c0_116 = arith.constant 0 : index
    %268 = vector.load %arg26[%c0_115, %c0_116] : memref<32x2xf32, #tpu.memory_space<vmem>>, vector<32x2xf32>
    %269 = arith.truncf %267 : vector<2x32xf32> to vector<2x32xbf16>
    %270 = arith.truncf %268 : vector<32x2xf32> to vector<32x2xbf16>
    %cst_117 = arith.constant dense<0.000000e+00> : vector<2x2xf32>
    %271 = tpu.matmul %269, %270, %cst_117 {dimension_numbers = #tpu.dot_dimension_numbers<[1], [0], [0], [1], [0, 0, 1, 1], [], []>} : vector<2x32xbf16>, vector<32x2xbf16>, vector<2x2xf32> -> vector<2x2xf32>
    %c0_118 = arith.constant 0 : index
    %c0_119 = arith.constant 0 : index
    %272 = vector.load %arg27[%c0_118, %c0_119] : memref<1x2xf32, #tpu.memory_space<vmem>>, vector<1x2xf32>
    %273 = vector.broadcast %272 : vector<1x2xf32> to vector<2x2xf32>
    %274 = arith.addf %271, %273 : vector<2x2xf32>
    %c0_120 = arith.constant 0 : index
    %c0_121 = arith.constant 0 : index
    %275 = vector.load %arg28[%c0_120, %c0_121] : memref<2x2xf32, #tpu.memory_space<vmem>>, vector<2x2xf32>
    tpu.vector_store %arg28[%c0_120, %c0_121], %274 {strides = array<i32>} : memref<2x2xf32, #tpu.memory_space<vmem>>, vector<2x2xf32>,
    %cst_122 = arith.constant 0.000000e+00 : f32
    %276 = vector.broadcast %cst_122 : f32 to vector<128x2xf32>
    %277 = tpu.concatenate %71, %163, %253, %276 in 1 : vector<128x4xf32>, vector<128x4xf32>, vector<128x6xf32>, vector<128x2xf32> -> vector<128x16xf32>
    %c0_123 = arith.constant 0 : index
    %c0_124 = arith.constant 0 : index
    %278 = vector.load %arg29[%c0_123, %c0_124] : memref<128x16xf32, #tpu.memory_space<vmem>>, vector<128x16xf32>
    tpu.vector_store %arg29[%c0_123, %c0_124], %277 {strides = array<i32>} : memref<128x16xf32, #tpu.memory_space<vmem>>, vector<128x16xf32>,
    return
  }
}

</mosaic_0001>

<bundles_post_ra>
// kernel: gatv2_forward.1
= control target key start
LH: loop header
LB: loop body
LE: loop exit
PB: predicated region body
PF: predicated region fallthrough
CT: control target
= control target key end

     0   :  { %s11500_s6 = smov 1   ;;  %s11501_s10 = smov 2   ;;  %s15888_s0 = inlined_call_operand.smem [shape: u32[30], index: -1, kind: input, shape index: {}] }
   0x1   :  { %s11549_s5 = sld [smem:[%s15888_s0]]   ;;  %s11502_s14 = smov 3  }
   0x2   :  { %s11554_s9 = sld [smem:[%s15888_s0 + %s11500_s6]]   ;;  %s11503_s18 = smov 4  }
   0x3   :  { %s11559_s13 = sld [smem:[%s15888_s0 + %s11501_s10]]   ;;  %s11504_s22 = smov 5  }
   0x4   :  { %s11564_s17 = sld [smem:[%s15888_s0 + %s11502_s14]]   ;;  %s11505_s26 = smov 6  }
   0x5   :  { %s11569_s21 = sld [smem:[%s15888_s0 + %s11503_s18]]   ;;  %s11506_s30 = smov 7  }
   0x6   :  { %s11574_s25 = sld [smem:[%s15888_s0 + %s11504_s22]]   ;;  %s11507_s4 = smov 8  }
   0x7   :  { %s11579_s29 = sld [smem:[%s15888_s0 + %s11505_s26]]   ;;  %s11508_s10 = smov 9  }
   0x8   :  { %s11584_s3 = sld [smem:[%s15888_s0 + %s11506_s30]]   ;;  %s11509_s15 = smov 10  }
   0x9   :  { %s11589_s8 = sld [smem:[%s15888_s0 + %s11507_s4]]   ;;  %s11510_s20 = smov 11  }
   0xa   :  { %s11594_s14 = sld [smem:[%s15888_s0 + %s11508_s10]]   ;;  %s11511_s26 = smov 12  }
   0xb   :  { %15975 = sst [smem:[#allocation5_spill]] %s11569_s21  ;;  %s11512_s1 = smov 13  }
   0xc   :  { %s11599_s19 = sld [smem:[%s15888_s0 + %s11509_s15]]   ;;  %s11513_s7 = smov 14  }
   0xd   :  { %s11604_s24 = sld [smem:[%s15888_s0 + %s11510_s20]]   ;;  %s11514_s15 = smov 15  }
   0xe   :  { %s11609_s30 = sld [smem:[%s15888_s0 + %s11511_s26]]   ;;  %s11515_s22 = smov 16  }
   0xf   :  { %s11614_s6 = sld [smem:[%s15888_s0 + %s11512_s1]]   ;;  %s11516_s28 = smov 17  }
  0x10   :  { %s11619_s12 = sld [smem:[%s15888_s0 + %s11513_s7]]   ;;  %s11517_s7 = smov 18  }
  0x11   :  { %s11624_s20 = sld [smem:[%s15888_s0 + %s11514_s15]]   ;;  %s11518_s15 = smov 19  }
  0x12   :  { %s11629_s27 = sld [smem:[%s15888_s0 + %s11515_s22]]   ;;  %s11519_s22 = smov 20  }
  0x13   :  { %s11634_s4 = sld [smem:[%s15888_s0 + %s11516_s28]]   ;;  %s11520_s28 = smov 21  }
  0x14   :  { %s11639_s21 = sld [smem:[%s15888_s0 + %s11517_s7]]   ;;  %s11521_s7 = smov 22  }
  0x17   :  { %15976 = sst [smem:[#allocation6_spill]] %s11624_s20 }
  0x18   :  { %15977 = sst [smem:[#allocation7_spill]] %s11629_s27 }
  0x19   :  { %15978 = sst [smem:[#allocation8_spill]] %s11634_s4 }
  0x1a   :  { %15979 = sst [smem:[#allocation9_spill]] %s11639_s21 }
  0x1b   :  { %s11644_s20 = sld [smem:[%s15888_s0 + %s11518_s15]]   ;;  %s11522_s15 = smov 23  }
  0x1c   :  { %s11649_s27 = sld [smem:[%s15888_s0 + %s11519_s22]]   ;;  %s11523_s22 = smov 24  }
  0x1d   :  { %s11654_s4 = sld [smem:[%s15888_s0 + %s11520_s28]]   ;;  %s11524_s28 = smov 25  }
  0x1e   :  { %s11659_s21 = sld [smem:[%s15888_s0 + %s11521_s7]]   ;;  %s11525_s7 = smov 26  }
  0x21   :  { %15980 = sst [smem:[#allocation10_spill]] %s11644_s20 }
  0x22   :  { %15981 = sst [smem:[#allocation11_spill]] %s11649_s27 }
  0x23   :  { %15982 = sst [smem:[#allocation12_spill]] %s11654_s4 }
  0x24   :  { %15983 = sst [smem:[#allocation13_spill]] %s11659_s21 }
  0x25   :  { %s11664_s20 = sld [smem:[%s15888_s0 + %s11522_s15]]   ;;  %s11526_s15 = smov 27  }
  0x26   :  { %s11669_s27 = sld [smem:[%s15888_s0 + %s11523_s22]]   ;;  %s11527_s22 = smov 28  }
  0x27   :  { %s11674_s4 = sld [smem:[%s15888_s0 + %s11524_s28]]   ;;  %s11528_s28 = smov 29  }
  0x28   :  { %s11679_s21 = sld [smem:[%s15888_s0 + %s11525_s7]]  }
  0x2b   :  { %15984 = sst [smem:[#allocation14_spill]] %s11664_s20 }
  0x2c   :  { %15985 = sst [smem:[#allocation15_spill]] %s11669_s27 }
  0x2d   :  { %15986 = sst [smem:[#allocation16_spill]] %s11674_s4 }
  0x2e   :  { %s11684_s20 = sld [smem:[%s15888_s0 + %s11526_s15]]  }
  0x2f   :  { %s11689_s27 = sld [smem:[%s15888_s0 + %s11527_s22]]  }
  0x30   :  { %s11694_s4 = sld [smem:[%s15888_s0 + %s11528_s28]]  }
  0x31   :  { %v189_v0 = vld [vmem:[%s11574_s25] sm:$0xff]  ;;  %v190_v1 = vld [vmem:[%s11574_s25 + $0x8] sm:$0xff]  ;;  %v191_v2 = vld [vmem:[%s11574_s25 + $0x10] sm:$0xff]  ;;  %v15892_v3 = vmov 0.0   ;;  %vm15950_vm0 = vcmask 1043456   ;;  %vm15966_vm1 = vmmov 0  }
  0x32   :  { %10122 = vmatprep.subr.bf16.mxu0 %v15892_v3  ;;  %v202_v4 = vpack.c.bf16 %v190_v1, %v189_v0  ;;  %v203_v5 = vpack.c.bf16 %v191_v2, %v191_v2  ;;  %10126 = vmatprep.mubr.msk.bf16.mxu0 %vm15966_vm1, %v15892_v3 }
  0x33   :  { %65 = vsyncpa [#allocation3], 0  ;;  %v123_v6 = vld [vmem:[%s11549_s5] sm:$0xff]  ;;  %v124_v7 = vld [vmem:[%s11549_s5 + $0x8] sm:$0xff]  ;;  %vm15948_vm2 = vcmask 195584   ;;  %s11531_s0 = smov 32   ;;  %v265_v27 = vlaneseq }
  0x34   :  { %10123 = vmatpush3.bf16.msra.mxu0 %v202_v4  ;;  %v216_v8 = vsel %vm15950_vm0, %v203_v5, 0  ;;  %v201_v9 = vpack.c.bf16 %v124_v7, %v123_v6  ;;  %v193_v10 = vld [vmem:[%s11584_s3] sm:$0xff]  ;;  %v194_v11 = vld [vmem:[%s11584_s3 + $0x8] sm:$0xff]  ;;  %v195_v13 = vld [vmem:[%s11584_s3 + $0x10] sm:$0xff]  ;;  %v11532_v24 = vmov 0   ;;  %s11534_s25 = smov 96  }
  0x35   :  { %10124 = vmatprep.subr.bf16.mxu0 %v15892_v3  ;;  %v11709_v12 = vpack.c.bf16 %v194_v11, %v193_v10  ;;  %v196_v14 = vld [vmem:[%s11584_s3 + $0x18] sm:$0xff]  ;;  %v9324_v16 = vld [vmem:[%s11579_s29] ss:$0 sm:$0xff]  ;;  %10966 = vset.pattern.permute.xlu1 %v11532_v24  ;;  %v11533_v25 = vmov 1966171168   ;;  %v266_v29 = vshrl.u32 %v265_v27, 7 }
  0x36   :  { %v11715_v15 = vpack.c.bf16 %v196_v14, %v195_v13  ;;  %10965 = vset.pattern.permute.xlu0 %v11532_v24  ;;  %v263_v26 = vunpack.c.l.s4 %v11533_v25  ;;  %s16192_s29 = sld [smem:[#allocation7_spill]]  ;;  %s16197_s3 = sld [smem:[#allocation10_spill]] }
  0x37   :  { %15987 = vst [vmem:[#allocation17_spill] sm:$0xff] %v11709_v12  ;;  %10130 = vmatprep.subr.bf16.mxu1 %v11709_v12  ;;  %v11753_v50 = vsub.s32 0, %v266_v29  ;;  %s16327_s7 = sld [smem:[#allocation5_spill]]  ;;  %s16329_s10 = sld [smem:[#allocation15_spill]] }
  0x38   :  { %10125 = vmatpush3.bf16.msra.mxu0 %v216_v8  ;;  %10131 = vmatpush3.bf16.msra.mxu1 %v11709_v12  ;;  %15988 = vst [vmem:[#allocation18_spill] sm:$0xff] %v11715_v15  ;;  %v264_v28 = vunpack.c.0.s8 %v263_v26  ;;  %s16363_s11 = sld [smem:[#allocation16_spill]] }
  0x39   :  { %10132 = vmatprep.subr.bf16.mxu1 %v11715_v15  ;;  %15992 = vst [vmem:[#allocation22_spill] sm:$0xff] %v11753_v50 }
  0x3a   :  { %v11733_v30 = vsub.s32 %v264_v28, %v266_v29 }
  0x3b   :  { %10127 = vmatmul.mubr.msk.bf16.vlgmr.msra.gmra.mrb[0].mxu0 %vm15948_vm2, %v201_v9 }
  0x3c   :  { %10133 = vmatpush3.bf16.msra.mxu1 %v11715_v15  ;;  %15991 = vst [vmem:[#allocation21_spill] sm:$0xff] %v11733_v30 }
 0x10e   :  { %v252_v17 = vpop.f32.mrb[0].mxu0 }
 0x10f   :  { %v11720_v18 = vadd.f32 %v9324_v16, %v252_v17  ;;  %v10128_v19 = vpop.f32.mrb[1].mxu0 }
 0x110   :  { %v255_v20 = vpop.f32.mrb[2].mxu0 }
 0x111   :  { %15989 = vst [vmem:[#allocation19_spill] sm:$0xff] %v11720_v18  ;;  %v11722_v21 = vadd.f32 %v9324_v16, %v255_v20  ;;  %439 = vrot.lane.b32.xlu0 %v11720_v18, %s11531_s0  ;;  %v10129_v22 = vpop.f32.mrb[3].mxu0  ;;  %v261_v31 = vcombine.high %v11720_v18, %v11720_v18  ;;  %v268_v33 = vrot.slane %v11720_v18, %v11733_v30 }
 0x113   :  { %15990 = vst [vmem:[#allocation20_spill] sm:$0xff] %v11722_v21  ;;  %v11728_v23 = vpack.c.bf16 %v11722_v21, %v11720_v18  ;;  %v310_v32 = vcombine.high %v11722_v21, %v11722_v21  ;;  %v275_v34 = vrot.slane %v261_v31, %v11733_v30  ;;  %v317_v35 = vrot.slane %v11722_v21, %v11733_v30 }
 0x114   :  { %v276_v37 = vcombine.high %v268_v33, %v268_v33  ;;  %v284_v41 = vrot.slane %v268_v33, %v11733_v30 }
 0x115   :  { %441 = vrot.lane.b32.xlu0 %v11722_v21, %s11531_s0  ;;  %10824 = vmatprep.subr.bf16.mxu1 %v11728_v23  ;;  %v324_v36 = vrot.slane %v310_v32, %v11733_v30  ;;  %v277_v38 = vcombine.high %v275_v34, %v275_v34  ;;  %v325_v39 = vcombine.high %v317_v35, %v317_v35 }
 0x116   :  { %v291_v42 = vrot.slane %v275_v34, %v11733_v30  ;;  %v298_v43 = vrot.slane %v276_v37, %v11733_v30  ;;  %v333_v45 = vrot.slane %v317_v35, %v11733_v30  ;;  %v306_v49 = vcombine.high %v284_v41, %v284_v41 }
 0x117   :  { %v326_v40 = vcombine.high %v324_v36, %v324_v36  ;;  %v305_v44 = vrot.slane %v277_v38, %v11733_v30  ;;  %v347_v46 = vrot.slane %v325_v39, %v11733_v30  ;;  %v340_v47 = vrot.slane %v324_v36, %v11733_v30 }
 0x118   :  { %v307_v51 = vcombine.high %v291_v42, %v291_v42  ;;  %v308_v52 = vcombine.high %v298_v43, %v298_v43  ;;  %v355_v54 = vcombine.high %v333_v45, %v333_v45  ;;  %v370_v58 = vrot.slane %v306_v49, %v11753_v50 }
 0x119   :  { %v354_v48 = vrot.slane %v326_v40, %v11733_v30  ;;  %v309_v53 = vcombine.high %v305_v44, %v305_v44  ;;  %v357_v55 = vcombine.high %v347_v46, %v347_v46  ;;  %v356_v56 = vcombine.high %v340_v47, %v340_v47 }
 0x11a   :  { %v362_v59 = vrot.slane %v284_v41, %v11753_v50  ;;  %v378_v60 = vrot.slane %v291_v42, %v11753_v50  ;;  %v366_v61 = vrot.slane %v298_v43, %v11753_v50  ;;  %v386_v62 = vrot.slane %v307_v51, %v11753_v50 }
 0x11b   :  { %v358_v57 = vcombine.high %v354_v48, %v354_v48  ;;  %v374_v63 = vrot.slane %v308_v52, %v11753_v50  ;;  %v11762_v0 = vrot.slane %v305_v44, %v11753_v50  ;;  %v11765_v1 = vrot.slane %v333_v45, %v11753_v50 }
 0x11c   :  { %v11768_v2 = vrot.slane %v309_v53, %v11753_v50  ;;  %v11771_v4 = vrot.slane %v355_v54, %v11753_v50  ;;  %v11774_v5 = vrot.slane %v347_v46, %v11753_v50  ;;  %v11777_v6 = vrot.slane %v340_v47, %v11753_v50 }
 0x11d   :  { %v11782_v8 = vrot.slane %v357_v55, %v11753_v50  ;;  %v11785_v9 = vrot.slane %v356_v56, %v11753_v50  ;;  %v11788_v10 = vrot.slane %v354_v48, %v11753_v50  ;;  %v11791_v11 = vrot.slane %v358_v57, %v11753_v50 }
 0x183   :  { %v11779_v7 = vpop.permute.xlu0 %439 }
 0x184   :  { %v449_v13 = vadd.f32 %v11779_v7, %v370_v58  ;;  %v445_v14 = vadd.f32 %v11779_v7, %v362_v59  ;;  %v453_v16 = vadd.f32 %v11779_v7, %v378_v60  ;;  %v447_v17 = vadd.f32 %v11779_v7, %v366_v61 }
 0x185   :  { %v457_v19 = vadd.f32 %v11779_v7, %v386_v62  ;;  %v451_v20 = vadd.f32 %v11779_v7, %v374_v63  ;;  %v455_v22 = vadd.f32 %v11779_v7, %v11762_v0  ;;  %v11803_v24 = vadd.f32 %v11779_v7, %v11765_v1 }
 0x186   :  { %vm481_vm3 = vcmp.gt.f32.partialorder %v449_v13, 0.0  ;;  %v513_v25 = vmul.f32 0.2, %v449_v13  ;;  %vm477_vm4 = vcmp.gt.f32.partialorder %v445_v14, 0.0  ;;  %v509_v26 = vmul.f32 0.2, %v445_v14 }
 0x187   :  { %v11805_v27 = vpop.permute.xlu0 %441  ;;  %vm485_vm5 = vcmp.gt.f32.partialorder %v453_v16, 0.0  ;;  %v517_v28 = vmul.f32 0.2, %v453_v16  ;;  %vm479_vm6 = vcmp.gt.f32.partialorder %v447_v17, 0.0  ;;  %v511_v29 = vmul.f32 0.2, %v447_v17 }
 0x188   :  { %v450_v31 = vadd.f32 %v11805_v27, %v370_v58  ;;  %v545_v32 = vsel %vm481_vm3, %v449_v13, %v513_v25  ;;  %v446_v33 = vadd.f32 %v11805_v27, %v362_v59  ;;  %v541_v34 = vsel %vm477_vm4, %v445_v14, %v509_v26 }
 0x189   :  { %v454_v35 = vadd.f32 %v11805_v27, %v378_v60  ;;  %v549_v36 = vsel %vm485_vm5, %v453_v16, %v517_v28  ;;  %v448_v37 = vadd.f32 %v11805_v27, %v366_v61  ;;  %v543_v38 = vsel %vm479_vm6, %v447_v17, %v511_v29 }
 0x18a   :  { %vm482_vm7 = vcmp.gt.f32.partialorder %v450_v31, 0.0  ;;  %v514_v39 = vmul.f32 0.2, %v450_v31  ;;  %vm478_vm8 = vcmp.gt.f32.partialorder %v446_v33, 0.0  ;;  %v510_v40 = vmul.f32 0.2, %v446_v33 }
 0x18b   :  { %vm486_vm9 = vcmp.gt.f32.partialorder %v454_v35, 0.0  ;;  %v518_v41 = vmul.f32 0.2, %v454_v35  ;;  %vm480_vm10 = vcmp.gt.f32.partialorder %v448_v37, 0.0  ;;  %v512_v42 = vmul.f32 0.2, %v448_v37 }
 0x18c   :  { %v546_v43 = vsel %vm482_vm7, %v450_v31, %v514_v39  ;;  %v542_v44 = vsel %vm478_vm8, %v446_v33, %v510_v40  ;;  %v458_v45 = vadd.f32 %v11805_v27, %v386_v62  ;;  %vm489_vm11 = vcmp.gt.f32.partialorder %v457_v19, 0.0 }
 0x18d   :  { %v575_v46 = vpack.c.bf16 %v546_v43, %v545_v32  ;;  %v573_v47 = vpack.c.bf16 %v542_v44, %v541_v34  ;;  %v550_v48 = vsel %vm486_vm9, %v454_v35, %v518_v41  ;;  %v544_v49 = vsel %vm480_vm10, %v448_v37, %v512_v42 }
 0x18e   :  { %v577_v51 = vpack.c.bf16 %v550_v48, %v549_v36  ;;  %v574_v52 = vpack.c.bf16 %v544_v49, %v543_v38  ;;  %vm490_vm12 = vcmp.gt.f32.partialorder %v458_v45, 0.0  ;;  %v521_v53 = vmul.f32 0.2, %v457_v19 }
 0x18f   :  { %611 = vrot.lane.b32.xlu0 %v575_v46, %s11534_s25  ;;  %607 = vrot.lane.b32.xlu1 %v573_v47, %s11534_s25  ;;  %v522_v54 = vmul.f32 0.2, %v458_v45  ;;  %v452_v55 = vadd.f32 %v11805_v27, %v374_v63  ;;  %vm483_vm13 = vcmp.gt.f32.partialorder %v451_v20, 0.0  ;;  %v515_v56 = vmul.f32 0.2, %v451_v20 }
 0x190   :  { %v553_v57 = vsel %vm489_vm11, %v457_v19, %v521_v53  ;;  %v456_v58 = vadd.f32 %v11805_v27, %v11762_v0  ;;  %vm487_vm14 = vcmp.gt.f32.partialorder %v455_v22, 0.0  ;;  %v519_v59 = vmul.f32 0.2, %v455_v22 }
 0x191   :  { %v554_v60 = vsel %vm490_vm12, %v458_v45, %v522_v54  ;;  %vm484_vm15 = vcmp.gt.f32.partialorder %v452_v55, 0.0  ;;  %v516_v61 = vmul.f32 0.2, %v452_v55  ;;  %v547_v62 = vsel %vm483_vm13, %v451_v20, %v515_v56 }
 0x192   :  { %v579_v13 = vpack.c.bf16 %v554_v60, %v553_v57  ;;  %vm488_vm3 = vcmp.gt.f32.partialorder %v456_v58, 0.0  ;;  %v520_v14 = vmul.f32 0.2, %v456_v58  ;;  %v551_v16 = vsel %vm487_vm14, %v455_v22, %v519_v59 }
 0x193   :  { %615 = vrot.lane.b32.xlu0 %v577_v51, %s11534_s25  ;;  %609 = vrot.lane.b32.xlu1 %v574_v52, %s11534_s25  ;;  %v548_v63 = vsel %vm484_vm15, %v452_v55, %v516_v61  ;;  %v462_v17 = vadd.f32 %v11805_v27, %v11765_v1  ;;  %vm493_vm4 = vcmp.gt.f32.partialorder %v11803_v24, 0.0  ;;  %v525_v0 = vmul.f32 0.2, %v11803_v24 }
 0x194   :  { %v576_v19 = vpack.c.bf16 %v548_v63, %v547_v62  ;;  %v552_v25 = vsel %vm488_vm3, %v456_v58, %v520_v14  ;;  %v459_v20 = vadd.f32 %v11779_v7, %v11768_v2  ;;  %v460_v22 = vadd.f32 %v11805_v27, %v11768_v2 }
 0x195   :  { %v578_v26 = vpack.c.bf16 %v552_v25, %v551_v16  ;;  %vm494_vm5 = vcmp.gt.f32.partialorder %v462_v17, 0.0  ;;  %v526_v28 = vmul.f32 0.2, %v462_v17  ;;  %v557_v29 = vsel %vm493_vm4, %v11803_v24, %v525_v0 }
 0x196   :  { %vm491_vm6 = vcmp.gt.f32.partialorder %v459_v20, 0.0  ;;  %vm492_vm7 = vcmp.gt.f32.partialorder %v460_v22, 0.0  ;;  %v523_v1 = vmul.f32 0.2, %v459_v20  ;;  %v524_v31 = vmul.f32 0.2, %v460_v22 }
 0x197   :  { %619 = vrot.lane.b32.xlu0 %v579_v13, %s11534_s25  ;;  %613 = vrot.lane.b32.xlu1 %v576_v19, %s11534_s25  ;;  %v558_v32 = vsel %vm494_vm5, %v462_v17, %v526_v28  ;;  %v465_v33 = vadd.f32 %v11779_v7, %v11771_v4  ;;  %v466_v2 = vadd.f32 %v11805_v27, %v11771_v4 }
 0x198   :  { %v581_v34 = vpack.c.bf16 %v558_v32, %v557_v29  ;;  %v555_v35 = vsel %vm491_vm6, %v459_v20, %v523_v1  ;;  %v556_v36 = vsel %vm492_vm7, %v460_v22, %v524_v31  ;;  %v463_v24 = vadd.f32 %v11779_v7, %v11774_v5  ;;  %v126_v1 = vld [vmem:[%s11554_s9 + $0x8] sm:$0xff]  ;;  %v127_v31 = vld [vmem:[%s11554_s9 + $0x10] sm:$0xff]  ;;  %v129_v32 = vld [vmem:[%s11554_s9 + $0x20] sm:$0xff] }
 0x199   :  { %v580_v37 = vpack.c.bf16 %v556_v36, %v555_v35  ;;  %vm497_vm8 = vcmp.gt.f32.partialorder %v465_v33, 0.0  ;;  %vm498_vm9 = vcmp.gt.f32.partialorder %v466_v2, 0.0  ;;  %v529_v38 = vmul.f32 0.2, %v465_v33  ;;  %v128_v35 = vld [vmem:[%s11554_s9 + $0x18] sm:$0xff]  ;;  %v135_v36 = vld [vmem:[%s11554_s9 + $0x50] sm:$0xff] }
 0x19a   :  { %v530_v39 = vmul.f32 0.2, %v466_v2  ;;  %v464_v40 = vadd.f32 %v11805_v27, %v11774_v5  ;;  %vm495_vm10 = vcmp.gt.f32.partialorder %v463_v24, 0.0  ;;  %v527_v41 = vmul.f32 0.2, %v463_v24 }
 0x19b   :  { %617 = vrot.lane.b32.xlu1 %v578_v26, %s11534_s25  ;;  %623 = vrot.lane.b32.xlu0 %v581_v34, %s11534_s25  ;;  %v561_v4 = vsel %vm497_vm8, %v465_v33, %v529_v38  ;;  %v469_v42 = vadd.f32 %v11779_v7, %v11777_v6  ;;  %v470_v43 = vadd.f32 %v11805_v27, %v11777_v6  ;;  %v131_v33 = vld [vmem:[%s11554_s9 + $0x30] sm:$0xff]  ;;  %v133_v34 = vld [vmem:[%s11554_s9 + $0x40] sm:$0xff] }
 0x19c   :  { %v562_v44 = vsel %vm498_vm9, %v466_v2, %v530_v39  ;;  %vm496_vm11 = vcmp.gt.f32.partialorder %v464_v40, 0.0  ;;  %v528_v45 = vmul.f32 0.2, %v464_v40  ;;  %v559_v46 = vsel %vm495_vm10, %v463_v24, %v527_v41  ;;  %v125_v2 = vld [vmem:[%s11554_s9] sm:$0xff]  ;;  %v130_v24 = vld [vmem:[%s11554_s9 + $0x28] sm:$0xff]  ;;  %v132_v38 = vld [vmem:[%s11554_s9 + $0x38] sm:$0xff] }
 0x19d   :  { %v583_v47 = vpack.c.bf16 %v562_v44, %v561_v4  ;;  %vm501_vm12 = vcmp.gt.f32.partialorder %v469_v42, 0.0  ;;  %vm502_vm13 = vcmp.gt.f32.partialorder %v470_v43, 0.0  ;;  %v533_v5 = vmul.f32 0.2, %v469_v42  ;;  %v139_v39 = vld [vmem:[%s11554_s9 + $0x70] sm:$0xff]  ;;  %v141_v41 = vld [vmem:[%s11554_s9 + $0x80] sm:$0xff] }
 0x19e   :  { %v560_v48 = vsel %vm496_vm11, %v464_v40, %v528_v45  ;;  %v534_v49 = vmul.f32 0.2, %v470_v43  ;;  %v467_v51 = vadd.f32 %v11779_v7, %v11782_v8  ;;  %v468_v52 = vadd.f32 %v11805_v27, %v11782_v8  ;;  %v134_v40 = vld [vmem:[%s11554_s9 + $0x48] sm:$0xff]  ;;  %v136_v4 = vld [vmem:[%s11554_s9 + $0x58] sm:$0xff]  ;;  %v145_v44 = vld [vmem:[%s11554_s9 + $0xa0] sm:$0xff] }
 0x19f   :  { %621 = vrot.lane.b32.xlu1 %v580_v37, %s11534_s25  ;;  %627 = vrot.lane.b32.xlu0 %v583_v47, %s11534_s25  ;;  %v582_v6 = vpack.c.bf16 %v560_v48, %v559_v46  ;;  %v565_v53 = vsel %vm501_vm12, %v469_v42, %v533_v5  ;;  %v473_v54 = vadd.f32 %v11779_v7, %v11785_v9  ;;  %v137_v37 = vld [vmem:[%s11554_s9 + $0x60] sm:$0xff]  ;;  %v143_v42 = vld [vmem:[%s11554_s9 + $0x90] sm:$0xff]  ;;  %vm15973_vm9 = vcmask 261120  }
 0x1a0   :  { %v566_v55 = vsel %vm502_vm13, %v470_v43, %v534_v49  ;;  %vm499_vm14 = vcmp.gt.f32.partialorder %v467_v51, 0.0  ;;  %vm500_vm15 = vcmp.gt.f32.partialorder %v468_v52, 0.0  ;;  %v531_v56 = vmul.f32 0.2, %v467_v51  ;;  %v138_v43 = vld [vmem:[%s11554_s9 + $0x68] sm:$0xff]  ;;  %v140_v45 = vld [vmem:[%s11554_s9 + $0x78] sm:$0xff] }
 0x1a1   :  { %v585_v57 = vpack.c.bf16 %v566_v55, %v565_v53  ;;  %v532_v58 = vmul.f32 0.2, %v468_v52  ;;  %v474_v59 = vadd.f32 %v11805_v27, %v11785_v9  ;;  %vm505_vm3 = vcmp.gt.f32.partialorder %v473_v54, 0.0  ;;  %v147_v46 = vld [vmem:[%s11554_s9 + $0xb0] sm:$0xff]  ;;  %v142_v47 = vld [vmem:[%s11554_s9 + $0x88] sm:$0xff]  ;;  %v149_v5 = vld [vmem:[%s11554_s9 + $0xc0] sm:$0xff] }
 0x1a2   :  { %v563_v8 = vsel %vm499_vm14, %v467_v51, %v531_v56  ;;  %v537_v60 = vmul.f32 0.2, %v473_v54  ;;  %v471_v61 = vadd.f32 %v11779_v7, %v11788_v10  ;;  %v472_v62 = vadd.f32 %v11805_v27, %v11788_v10  ;;  %v144_v48 = vld [vmem:[%s11554_s9 + $0x98] sm:$0xff]  ;;  %v151_v49 = vld [vmem:[%s11554_s9 + $0xd0] sm:$0xff]  ;;  %v146_v51 = vld [vmem:[%s11554_s9 + $0xa8] sm:$0xff] }
 0x1a3   :  { %625 = vrot.lane.b32.xlu1 %v582_v6, %s11534_s25  ;;  %631 = vrot.lane.b32.xlu0 %v585_v57, %s11534_s25  ;;  %v564_v13 = vsel %vm500_vm15, %v468_v52, %v532_v58  ;;  %vm506_vm4 = vcmp.gt.f32.partialorder %v474_v59, 0.0  ;;  %v538_v14 = vmul.f32 0.2, %v474_v59  ;;  %v475_v16 = vadd.f32 %v11779_v7, %v11791_v11  ;;  %v153_v52 = vld [vmem:[%s11554_s9 + $0xe0] sm:$0xff]  ;;  %v148_v6 = vld [vmem:[%s11554_s9 + $0xb8] sm:$0xff] }
 0x1a4   :  { %v584_v9 = vpack.c.bf16 %v564_v13, %v563_v8  ;;  %v569_v63 = vsel %vm505_vm3, %v473_v54, %v537_v60  ;;  %vm503_vm5 = vcmp.gt.f32.partialorder %v471_v61, 0.0  ;;  %vm504_vm6 = vcmp.gt.f32.partialorder %v472_v62, 0.0  ;;  %v155_v53 = vld [vmem:[%s11554_s9 + $0xf0] sm:$0xff]  ;;  %v150_v54 = vld [vmem:[%s11554_s9 + $0xc8] sm:$0xff]  ;;  %v152_v56 = vld [vmem:[%s11554_s9 + $0xd8] sm:$0xff] }
 0x1a5   :  { %v570_v17 = vsel %vm506_vm4, %v474_v59, %v538_v14  ;;  %v535_v0 = vmul.f32 0.2, %v471_v61  ;;  %v536_v19 = vmul.f32 0.2, %v472_v62  ;;  %v476_v10 = vadd.f32 %v11805_v27, %v11791_v11  ;;  %v154_v57 = vld [vmem:[%s11554_s9 + $0xe8] sm:$0xff]  ;;  %v156_v58 = vld [vmem:[%s11554_s9 + $0xf8] sm:$0xff] }
 0x1a6   :  { %v587_v25 = vpack.c.bf16 %v570_v17, %v569_v63  ;;  %v539_v26 = vmul.f32 0.2, %v475_v16  ;;  %vm507_vm8 = vcmp.gt.f32.partialorder %v475_v16, 0.0  ;;  %v10967_v55 = vpack.i.bf16 %v11722_v21, %v11720_v18  ;;  %s16066_s9 = sld [smem:[#allocation6_spill]] }
 0x1a7   :  { %629 = vrot.lane.b32.xlu1 %v584_v9, %s11534_s25  ;;  %v568_v20 = vsel %vm504_vm6, %v472_v62, %v536_v19  ;;  %vm508_vm7 = vcmp.gt.f32.partialorder %v476_v10, 0.0  ;;  %v540_v22 = vmul.f32 0.2, %v476_v10  ;;  %v567_v7 = vsel %vm503_vm5, %v471_v61, %v535_v0 }
 0x1a8   :  { %635 = vrot.lane.b32.xlu0 %v587_v25, %s11534_s25  ;;  %v586_v28 = vpack.c.bf16 %v568_v20, %v567_v7  ;;  %v571_v11 = vsel %vm507_vm8, %v475_v16, %v539_v26  ;;  %v173_v26 = vld [vmem:[%s11564_s17] sm:$0xff]  ;;  %vm2012_vm10 = vcmask 130048   ;;  %vm15949_vm11 = vcmask 31744  }
 0x1a9   :  { %v572_v29 = vsel %vm508_vm7, %v476_v10, %v540_v22  ;;  %vm2598_vm12 = vcmask 1041409   ;;  %vm2600_vm13 = vcmask 1042434   ;;  %vm2602_vm14 = vcmask 1043459  }
 0x1aa   :  { %v588_v27 = vpack.c.bf16 %v572_v29, %v571_v11  ;;  %v174_v11 = vld [vmem:[%s11564_s17 + $0x8] sm:$0xff]  ;;  %vm2604_vm15 = vcmask 1044484   ;;  %vm2606_vm3 = vcmask 1045509   ;;  %vm2608_vm4 = vcmask 1046534  }
 0x1ab   :  { %633 = vrot.lane.b32.xlu1 %v586_v28, %s11534_s25  ;;  %vm15968_vm5 = vcmask 1047559  }
 0x1ac   :  { %1092 = vperm.xlu0 %10965, %v125_v2   ;;  %v178_v2 = vld [vmem:[%s11564_s17 + $0x28] sm:$0xff] }
 0x1af   :  { %637 = vrot.lane.b32.xlu1 %v588_v27, %s11534_s25  ;;  %v175_v27 = vld [vmem:[%s11564_s17 + $0x10] sm:$0xff] }
 0x1b0   :  { %1107 = vperm.xlu0 %10965, %v128_v35  }
 0x1b3   :  { %1097 = vperm.xlu1 %10966, %v126_v1  }
 0x1b4   :  { %1117 = vperm.xlu0 %10965, %v130_v24   ;;  %v181_v24 = vld [vmem:[%s11564_s17 + $0x40] sm:$0xff] }
 0x1b7   :  { %1102 = vperm.xlu1 %10966, %v127_v31   ;;  %v176_v31 = vld [vmem:[%s11564_s17 + $0x18] sm:$0xff] }
 0x1b8   :  { %1127 = vperm.xlu0 %10965, %v132_v38   ;;  %v182_v38 = vld [vmem:[%s11564_s17 + $0x48] sm:$0xff] }
 0x1bb   :  { %1112 = vperm.xlu1 %10966, %v129_v32   ;;  %v177_v32 = vld [vmem:[%s11564_s17 + $0x20] sm:$0xff] }
 0x1bc   :  { %1137 = vperm.xlu0 %10965, %v134_v40  }
 0x1bf   :  { %1122 = vperm.xlu1 %10966, %v131_v33  }
 0x1c0   :  { %1147 = vperm.xlu0 %10965, %v136_v4   ;;  %v185_v4 = vld [vmem:[%s11564_s17 + $0x60] sm:$0xff] }
 0x1c3   :  { %1132 = vperm.xlu1 %10966, %v133_v34   ;;  %v179_v34 = vld [vmem:[%s11564_s17 + $0x30] sm:$0xff] }
 0x1c4   :  { %1157 = vperm.xlu0 %10965, %v138_v43   ;;  %v186_v43 = vld [vmem:[%s11564_s17 + $0x68] sm:$0xff] }
 0x1c7   :  { %1142 = vperm.xlu1 %10966, %v135_v36   ;;  %v180_v36 = vld [vmem:[%s11564_s17 + $0x38] sm:$0xff] }
 0x1c8   :  { %1167 = vperm.xlu0 %10965, %v140_v45  }
 0x1cb   :  { %1152 = vperm.xlu1 %10966, %v137_v37  }
 0x1cc   :  { %1177 = vperm.xlu0 %10965, %v142_v47   ;;  %v157_v47 = vld [vmem:[%s11559_s13] sm:$0xff] }
 0x1cf   :  { %1162 = vperm.xlu1 %10966, %v139_v39   ;;  %v183_v39 = vld [vmem:[%s11564_s17 + $0x50] sm:$0xff] }
 0x1d0   :  { %1187 = vperm.xlu0 %10965, %v144_v48  }
 0x1d3   :  { %1172 = vperm.xlu1 %10966, %v141_v41   ;;  %v184_v41 = vld [vmem:[%s11564_s17 + $0x58] sm:$0xff] }
 0x1d4   :  { %1197 = vperm.xlu0 %10965, %v146_v51  }
 0x1d7   :  { %1182 = vperm.xlu1 %10966, %v143_v42  }
 0x1d8   :  { %1207 = vperm.xlu0 %10965, %v148_v6  }
 0x1db   :  { %1192 = vperm.xlu1 %10966, %v145_v44   ;;  %v187_v44 = vld [vmem:[%s11564_s17 + $0x70] sm:$0xff] }
 0x1dc   :  { %1217 = vperm.xlu0 %10965, %v150_v54  }
 0x1df   :  { %1202 = vperm.xlu1 %10966, %v147_v46   ;;  %v188_v46 = vld [vmem:[%s11564_s17 + $0x78] sm:$0xff] }
 0x1e0   :  { %1227 = vperm.xlu0 %10965, %v152_v56   ;;  %v159_v56 = vld [vmem:[%s11559_s13 + $0x10] sm:$0xff] }
 0x1e3   :  { %1212 = vperm.xlu1 %10966, %v149_v5  }
 0x1e4   :  { %1237 = vperm.xlu0 %10965, %v154_v57   ;;  %v160_v57 = vld [vmem:[%s11559_s13 + $0x18] sm:$0xff] }
 0x1e7   :  { %1222 = vperm.xlu1 %10966, %v151_v49  }
 0x1e8   :  { %1247 = vperm.xlu0 %10965, %v156_v58   ;;  %v197_v58 = vld [vmem:[%s11589_s8] sm:$0xf]  ;;  %s16209_s8 = sld [smem:[#allocation8_spill]] }
 0x1e9   :  { %10166 = vmatprep.subr.msk.mxu0 %vm15950_vm0, %v197_v58 }
 0x1ea   :  { %10167 = vmatpush3.msk.msra.mxu0 %vm15950_vm0, %v197_v58 }
 0x1eb   :  { %1232 = vperm.xlu1 %10966, %v153_v52   ;;  %10272 = vmatprep.subr.bf16.mxu0 %v11709_v12 }
 0x1ef   :  { %1242 = vperm.xlu1 %10966, %v155_v53  }
 0x1f3   :  { %10968 = vrot.lane.b32.xlu1 %v10967_v55, %s11534_s25  ;;  %v158_v55 = vld [vmem:[%s11559_s13 + $0x8] sm:$0xff] }
 0x201   :  { %v608_v59 = vpop.permute.xlu1 %607  ;;  %v612_v60 = vpop.permute.xlu0 %611 }
 0x202   :  { %10134 = vmatprep.mubr.msk.bf16.mxu1 %vm15973_vm9, %v608_v59 }
 0x205   :  { %v610_v8 = vpop.permute.xlu1 %609  ;;  %v616_v62 = vpop.permute.xlu0 %615 }
 0x206   :  { %10135 = vmatmul.mubr.msk.bf16.vlgmr.msra.gmra.mrb[0].mxu1 %vm15973_vm9, %v610_v8 }
 0x207   :  { %10826 = vmatpush3.bf16.msra.mxu1 %v11728_v23  ;;  %10138 = vmatprep.mubr.msk.bf16.mxu1 %vm15973_vm9, %v612_v60 }
 0x209   :  { %v614_v61 = vpop.permute.xlu1 %613  ;;  %v620_v14 = vpop.permute.xlu0 %619 }
 0x20d   :  { %v618_v13 = vpop.permute.xlu1 %617  ;;  %v624_v63 = vpop.permute.xlu0 %623 }
 0x20e   :  { %10139 = vmatmul.mubr.msk.bf16.gmra.mrb[4].mxu1 %vm15973_vm9, %v614_v61 }
 0x20f   :  { %10142 = vmatprep.mubr.msk.bf16.mxu1 %vm15973_vm9, %v616_v62 }
 0x211   :  { %v622_v16 = vpop.permute.xlu1 %621  ;;  %v628_v17 = vpop.permute.xlu0 %627 }
 0x215   :  { %v626_v9 = vpop.permute.xlu1 %625  ;;  %v632_v19 = vpop.permute.xlu0 %631 }
 0x216   :  { %10143 = vmatmul.mubr.msk.bf16.gmra.mrb[8].mxu1 %vm15973_vm9, %v618_v13 }
 0x217   :  { %10146 = vmatprep.mubr.msk.bf16.mxu1 %vm15973_vm9, %v620_v14 }
 0x219   :  { %v630_v23 = vpop.permute.xlu1 %629 }
 0x21a   :  { %v636_v20 = vpop.permute.xlu0 %635 }
 0x21d   :  { %v634_v0 = vpop.permute.xlu1 %633 }
 0x21e   :  { %10147 = vmatmul.mubr.msk.bf16.gmra.mrb[12].mxu1 %vm15973_vm9, %v622_v16 }
 0x21f   :  { %10150 = vmatprep.mubr.msk.bf16.mxu1 %vm15973_vm9, %v624_v63 }
 0x221   :  { %v638_v10 = vpop.permute.xlu1 %637 }
 0x226   :  { %10151 = vmatmul.mubr.msk.bf16.gmra.mrb[16].mxu1 %vm15973_vm9, %v626_v9 }
 0x227   :  { %10154 = vmatprep.mubr.msk.bf16.mxu1 %vm15973_vm9, %v628_v17 }
 0x22b   :  { %v11997_v60 = vpop.permute.xlu0 %1092 }
 0x22c   :  { %16009 = vst [vmem:[#allocation39_spill] sm:$0xff] %v11997_v60 }
 0x22e   :  { %10155 = vmatmul.mubr.msk.bf16.gmra.mrb[20].mxu1 %vm15973_vm9, %v630_v23 }
 0x22f   :  { %10158 = vmatprep.mubr.msk.bf16.mxu1 %vm15973_vm9, %v632_v19  ;;  %v12003_v19 = vpop.permute.xlu0 %1107 }
 0x230   :  { %16010 = vst [vmem:[#allocation40_spill] sm:$0xff] %v12003_v19 }
 0x232   :  { %v11918_v25 = vpop.permute.xlu1 %1097 }
 0x233   :  { %15993 = vst [vmem:[#allocation23_spill] sm:$0xff] %v11918_v25 }
 0x236   :  { %10159 = vmatmul.mubr.msk.bf16.gmra.mrb[24].mxu1 %vm15973_vm9, %v634_v0  ;;  %v11921_v22 = vpop.permute.xlu1 %1102 }
 0x237   :  { %15994 = vst [vmem:[#allocation24_spill] sm:$0xff] %v11921_v22  ;;  %10162 = vmatprep.mubr.msk.bf16.mxu1 %vm15973_vm9, %v636_v20 }
 0x23a   :  { %v11924_v7 = vpop.permute.xlu1 %1112 }
 0x23b   :  { %15995 = vst [vmem:[#allocation25_spill] sm:$0xff] %v11924_v7 }
 0x23e   :  { %10163 = vmatmul.mubr.msk.bf16.gmra.mrb[28].mxu1 %vm15973_vm9, %v638_v10  ;;  %v11928_v28 = vpop.permute.xlu1 %1122 }
 0x23f   :  { %15996 = vst [vmem:[#allocation26_spill] sm:$0xff] %v11928_v28  ;;  %10220 = vmatprep.mubr.msk.f32.mxu1 %vm2012_vm10, %v173_v26 }
 0x242   :  { %v11931_v29 = vpop.permute.xlu1 %1132 }
 0x243   :  { %15997 = vst [vmem:[#allocation27_spill] sm:$0xff] %v11931_v29 }
 0x246   :  { %v11935_v1 = vpop.permute.xlu1 %1142  ;;  %10221 = vmatmul.mubr.msk.f32.vlgmr.msra.gmra.mrb[32].mxu1 %vm2012_vm10, %v174_v11 }
 0x247   :  { %15998 = vst [vmem:[#allocation28_spill] sm:$0xff] %v11935_v1  ;;  %10223 = vmatprep.mubr.msk.f32.mxu1 %vm2012_vm10, %v175_v27 }
 0x24a   :  { %v11941_v33 = vpop.permute.xlu1 %1152  ;;  %10224 = vmatmul.mubr.msk.f32.gmra.mrb[34].mxu1 %vm2012_vm10, %v176_v31 }
 0x24b   :  { %15999 = vst [vmem:[#allocation29_spill] sm:$0xff] %v11941_v33  ;;  %10226 = vmatprep.mubr.msk.f32.mxu1 %vm2012_vm10, %v177_v32 }
 0x24e   :  { %v11947_v35 = vpop.permute.xlu1 %1162  ;;  %10227 = vmatmul.mubr.msk.f32.gmra.mrb[36].mxu1 %vm2012_vm10, %v178_v2 }
 0x24f   :  { %16000 = vst [vmem:[#allocation30_spill] sm:$0xff] %v11947_v35  ;;  %10229 = vmatprep.mubr.msk.f32.mxu1 %vm2012_vm10, %v179_v34 }
 0x252   :  { %v11953_v37 = vpop.permute.xlu1 %1172  ;;  %10230 = vmatmul.mubr.msk.f32.gmra.mrb[38].mxu1 %vm2012_vm10, %v180_v36 }
 0x253   :  { %16001 = vst [vmem:[#allocation31_spill] sm:$0xff] %v11953_v37  ;;  %10232 = vmatprep.mubr.msk.f32.mxu1 %vm2012_vm10, %v181_v24 }
 0x256   :  { %v11959_v40 = vpop.permute.xlu1 %1182  ;;  %10233 = vmatmul.mubr.msk.f32.gmra.mrb[40].mxu1 %vm2012_vm10, %v182_v38 }
 0x257   :  { %16002 = vst [vmem:[#allocation32_spill] sm:$0xff] %v11959_v40  ;;  %10235 = vmatprep.mubr.msk.f32.mxu1 %vm2012_vm10, %v183_v39 }
 0x25a   :  { %v11965_v42 = vpop.permute.xlu1 %1192  ;;  %10236 = vmatmul.mubr.msk.f32.gmra.mrb[42].mxu1 %vm2012_vm10, %v184_v41 }
 0x25b   :  { %16003 = vst [vmem:[#allocation33_spill] sm:$0xff] %v11965_v42  ;;  %10238 = vmatprep.mubr.msk.f32.mxu1 %vm2012_vm10, %v185_v4 }
 0x25e   :  { %v11971_v45 = vpop.permute.xlu1 %1202  ;;  %10239 = vmatmul.mubr.msk.f32.gmra.mrb[44].mxu1 %vm2012_vm10, %v186_v43 }
 0x25f   :  { %16004 = vst [vmem:[#allocation34_spill] sm:$0xff] %v11971_v45  ;;  %10241 = vmatprep.mubr.msk.f32.mxu1 %vm2012_vm10, %v187_v44  ;;  %v12021_v44 = vpop.permute.xlu0 %1117 }
 0x260   :  { %16011 = vst [vmem:[#allocation41_spill] sm:$0xff] %v12021_v44 }
 0x262   :  { %v11977_v5 = vpop.permute.xlu1 %1212  ;;  %10242 = vmatmul.mubr.msk.f32.gmra.mrb[46].mxu1 %vm2012_vm10, %v188_v46 }
 0x263   :  { %16005 = vst [vmem:[#allocation35_spill] sm:$0xff] %v11977_v5  ;;  %10248 = vmatprep.mubr.msk.f32.mxu1 %vm2012_vm10, %v157_v47 }
 0x266   :  { %v11981_v48 = vpop.permute.xlu1 %1222 }
 0x267   :  { %16006 = vst [vmem:[#allocation36_spill] sm:$0xff] %v11981_v48 }
 0x26a   :  { %v11983_v49 = vpop.permute.xlu1 %1232 }
 0x26b   :  { %16007 = vst [vmem:[#allocation37_spill] sm:$0xff] %v11983_v49 }
 0x26e   :  { %v11985_v51 = vpop.permute.xlu1 %1242 }
 0x26f   :  { %16008 = vst [vmem:[#allocation38_spill] sm:$0xff] %v11985_v51 }
 0x272   :  { %v10969_v52 = vpop.permute.xlu1 %10968 }
 0x273   :  { %v10971_v6 = vunpack.i.h.bf16 %v10969_v52  ;;  %v10970_v53 = vunpack.i.l.bf16 %v10969_v52 }
 0x275   :  { %v10827_v54 = vpack.c.bf16 %v10971_v6, %v10970_v53 }
 0x277   :  { %10828 = vmatprep.subr.bf16.mxu1 %v10827_v54 }
 0x278   :  { %10830 = vmatpush3.bf16.msra.mxu1 %v10827_v54 }
 0x27b   :  { %10249 = vmatmul.mubr.msk.f32.vlgmr.msra.gmra.mrb[32].mxu1 %vm2012_vm10, %v158_v55 }
 0x27c   :  { %10251 = vmatprep.mubr.msk.f32.mxu1 %vm2012_vm10, %v159_v56 }
 0x27f   :  { %10252 = vmatmul.mubr.msk.f32.gmra.mrb[34].mxu1 %vm2012_vm10, %v160_v57 }
 0x2d9   :  { %v10136_v59 = vpop.f32.mrb[0].mxu1 }
 0x2da   :  { %v722_v8 = vpop.f32.mrb[1].mxu1  ;;  %v859_v62 = vsel %vm15949_vm11, %v10136_v59, -inf }
 0x2db   :  { %v10137_v61 = vpop.f32.mrb[2].mxu1  ;;  %v850_v16 = vsel %vm15949_vm11, %v722_v8, -inf }
 0x2dc   :  { %v860_v13 = vsel %vm15949_vm11, %v10137_v61, -inf  ;;  %v725_v14 = vpop.f32.mrb[3].mxu1 }
 0x2dd   :  { %v861_v9 = vmax.f32 %v859_v62, %v860_v13  ;;  %v851_v63 = vsel %vm15949_vm11, %v725_v14, -inf }
 0x2de   :  { %v852_v23 = vmax.f32 %v850_v16, %v851_v63 }
 0x2df   :  { %v862_v17 = vrot.slane %v861_v9, 4 }
 0x2e0   :  { %v853_v0 = vrot.slane %v852_v23, 4 }
 0x2e1   :  { %v863_v10 = vmax.f32 %v861_v9, %v862_v17  ;;  %v12005_v20 = vpop.f32.mrb[4].mxu1 }
 0x2e2   :  { %v854_v26 = vmax.f32 %v852_v23, %v853_v0  ;;  %v12007_v11 = vpop.f32.mrb[5].mxu1  ;;  %v877_v2 = vsel %vm15949_vm11, %v12005_v20, -inf }
 0x2e3   :  { %v864_v27 = vrot.slane %v863_v10, 2  ;;  %v12009_v31 = vpop.f32.mrb[6].mxu1  ;;  %v868_v38 = vsel %vm15949_vm11, %v12007_v11, -inf }
 0x2e4   :  { %v855_v32 = vrot.slane %v854_v26, 2  ;;  %v878_v34 = vsel %vm15949_vm11, %v12009_v31, -inf  ;;  %v12015_v36 = vpop.f32.mrb[7].mxu1 }
 0x2e5   :  { %v865_v24 = vmax.f32 %v863_v10, %v864_v27  ;;  %v879_v39 = vmax.f32 %v877_v2, %v878_v34  ;;  %v869_v41 = vsel %vm15949_vm11, %v12015_v36, -inf  ;;  %v12034_v27 = vpop.permute.xlu0 %1127 }
 0x2e6   :  { %v856_v4 = vmax.f32 %v854_v26, %v855_v32  ;;  %v870_v43 = vmax.f32 %v868_v38, %v869_v41  ;;  %16012 = vst [vmem:[#allocation42_spill] sm:$0xff] %v12034_v27 }
 0x2e7   :  { %v866_v46 = vrot.slane %v865_v24, 1  ;;  %v880_v47 = vrot.slane %v879_v39, 4 }
 0x2e8   :  { %v857_v52 = vrot.slane %v856_v4, 1  ;;  %v871_v6 = vrot.slane %v870_v43, 4 }
 0x2e9   :  { %v867_v53 = vmax.f32 %v865_v24, %v866_v46  ;;  %v881_v54 = vmax.f32 %v879_v39, %v880_v47  ;;  %v12023_v55 = vpop.f32.mrb[8].mxu1 }
 0x2ea   :  { %v858_v56 = vmax.f32 %v856_v4, %v857_v52  ;;  %v872_v57 = vmax.f32 %v870_v43, %v871_v6  ;;  %v12025_v58 = vpop.f32.mrb[9].mxu1  ;;  %v895_v9 = vsel %vm15949_vm11, %v12023_v55, -inf }
 0x2eb   :  { %v996_v62 = vsub.f32 %v10136_v59, %v867_v53  ;;  %v997_v13 = vsub.f32 %v10137_v61, %v867_v53  ;;  %v882_v16 = vrot.slane %v881_v54, 2  ;;  %v12029_v63 = vpop.f32.mrb[10].mxu1 }
 0x2ec   :  { %v994_v23 = vsub.f32 %v722_v8, %v858_v56  ;;  %v995_v17 = vsub.f32 %v725_v14, %v858_v56  ;;  %v2599_v0 = vsel %vm2598_vm12, %v867_v53, %v858_v56  ;;  %v873_v10 = vrot.slane %v872_v57, 2  ;;  %v12032_v26 = vpop.f32.mrb[11].mxu1 }
 0x2ed   :  { %v1030_v32 = vmul.f32 1.442695, %v996_v62  ;;  %v1032_v2 = vmul.f32 1.442695, %v997_v13  ;;  %v883_v34 = vmax.f32 %v881_v54, %v882_v16  ;;  %v896_v59 = vsel %vm15949_vm11, %v12029_v63, -inf }
 0x2ee   :  { %v1026_v61 = vmul.f32 1.442695, %v994_v23  ;;  %v1028_v24 = vmul.f32 1.442695, %v995_v17  ;;  %v874_v38 = vmax.f32 %v872_v57, %v873_v10  ;;  %v897_v39 = vmax.f32 %v895_v9, %v896_v59  ;;  %v12046_v57 = vpop.permute.xlu0 %1137 }
 0x2ef   :  { %10982 = vpow2.f32 %v1030_v32  ;;  %v884_v8 = vrot.slane %v883_v34, 1  ;;  %v886_v14 = vsel %vm15949_vm11, %v12025_v58, -inf  ;;  %v887_v41 = vsel %vm15949_vm11, %v12032_v26, -inf  ;;  %16013 = vst [vmem:[#allocation43_spill] sm:$0xff] %v12046_v57 }
 0x2f0   :  { %10984 = vpow2.f32 %v1032_v2  ;;  %v875_v4 = vrot.slane %v874_v38, 1  ;;  %v898_v43 = vrot.slane %v897_v39, 4  ;;  %v888_v46 = vmax.f32 %v886_v14, %v887_v41 }
 0x2f1   :  { %10986 = vpow2.f32 %v1026_v61  ;;  %v885_v47 = vmax.f32 %v883_v34, %v884_v8  ;;  %v12042_v52 = vpop.f32.mrb[12].mxu1 }
 0x2f2   :  { %10988 = vpow2.f32 %v1028_v24  ;;  %v876_v6 = vmax.f32 %v874_v38, %v875_v4  ;;  %v899_v53 = vmax.f32 %v897_v39, %v898_v43  ;;  %v889_v54 = vrot.slane %v888_v46, 4  ;;  %v12044_v56 = vpop.f32.mrb[13].mxu1  ;;  %v12068_v43 = vpop.permute.xlu0 %1147 }
 0x2f3   :  { %v1000_v62 = vsub.f32 %v12005_v20, %v885_v47  ;;  %v1001_v13 = vsub.f32 %v12009_v31, %v885_v47  ;;  %v913_v16 = vsel %vm15949_vm11, %v12042_v52, -inf  ;;  %v904_v9 = vsel %vm15949_vm11, %v12044_v56, -inf  ;;  %v12054_v23 = vpop.f32.mrb[14].mxu1  ;;  %16014 = vst [vmem:[#allocation44_spill] sm:$0xff] %v12068_v43 }
 0x2f4   :  { %v998_v17 = vsub.f32 %v12007_v11, %v876_v6  ;;  %v999_v10 = vsub.f32 %v12015_v36, %v876_v6  ;;  %v2601_v32 = vsel %vm2600_vm13, %v876_v6, %v2599_v0  ;;  %v900_v2 = vrot.slane %v899_v53, 2  ;;  %v12059_v34 = vpop.f32.mrb[15].mxu1 }
 0x2f5   :  { %v1038_v20 = vmul.f32 1.442695, %v1000_v62  ;;  %v1040_v59 = vmul.f32 1.442695, %v1001_v13  ;;  %v890_v31 = vmax.f32 %v888_v46, %v889_v54  ;;  %v2603_v61 = vsel %vm2602_vm14, %v885_v47, %v2601_v32 }
 0x2f6   :  { %v1034_v24 = vmul.f32 1.442695, %v998_v17  ;;  %v1036_v38 = vmul.f32 1.442695, %v999_v10  ;;  %v901_v39 = vmax.f32 %v899_v53, %v900_v2  ;;  %v914_v8 = vsel %vm15949_vm11, %v12054_v23, -inf }
 0x2f7   :  { %10990 = vpow2.f32 %v1038_v20  ;;  %v891_v11 = vrot.slane %v890_v31, 2  ;;  %v915_v14 = vmax.f32 %v913_v16, %v914_v8  ;;  %v905_v36 = vsel %vm15949_vm11, %v12059_v34, -inf }
 0x2f8   :  { %10992 = vpow2.f32 %v1040_v59  ;;  %v902_v0 = vrot.slane %v901_v39, 1  ;;  %v906_v41 = vmax.f32 %v904_v9, %v905_v36 }
 0x2f9   :  { %v12066_v4 = vpop.eup %10982  ;;  %10994 = vpow2.f32 %v1034_v24  ;;  %v892_v46 = vmax.f32 %v890_v31, %v891_v11  ;;  %v916_v47 = vrot.slane %v915_v14, 4  ;;  %v12070_v6 = vpop.f32.mrb[16].mxu1 }
 0x2fa   :  { %v10985_v53 = vpop.eup %10984  ;;  %10996 = vpow2.f32 %v1036_v38  ;;  %v12072_v54 = vmax.f32 %v901_v39, %v902_v0  ;;  %v907_v62 = vrot.slane %v906_v41, 4  ;;  %v931_v13 = vsel %vm15949_vm11, %v12070_v6, -inf  ;;  %v12076_v16 = vpop.f32.mrb[17].mxu1 }
 0x2fb   :  { %v12078_v9 = vpop.eup %10986  ;;  %v12081_v17 = vmul.f32 %v10985_v53, %v12003_v19  ;;  %v893_v10 = vrot.slane %v892_v46, 1  ;;  %v917_v32 = vmax.f32 %v915_v14, %v916_v47  ;;  %v922_v2 = vsel %vm15949_vm11, %v12076_v16, -inf  ;;  %v12085_v20 = vpop.f32.mrb[18].mxu1 }
 0x2fc   :  { %v10989_v59 = vpop.eup %10988  ;;  %v1004_v31 = vsub.f32 %v12023_v55, %v12072_v54  ;;  %v1005_v24 = vsub.f32 %v12029_v63, %v12072_v54  ;;  %v908_v38 = vmax.f32 %v906_v41, %v907_v62  ;;  %v932_v39 = vsel %vm15949_vm11, %v12085_v20, -inf  ;;  %v12093_v8 = vpop.f32.mrb[19].mxu1 }
 0x2fd   :  { %v12096_v11 = vmul.f32 %v10989_v59, %v11918_v25  ;;  %v894_v14 = vmax.f32 %v892_v46, %v893_v10  ;;  %v918_v36 = vrot.slane %v917_v32, 2  ;;  %v933_v0 = vmax.f32 %v931_v13, %v932_v39  ;;  %v12100_v19 = vpop.permute.xlu0 %1157 }
 0x2fe   :  { %v1046_v47 = vmul.f32 1.442695, %v1004_v31  ;;  %v1048_v53 = vmul.f32 1.442695, %v1005_v24  ;;  %v909_v3 = vrot.slane %v908_v38, 2  ;;  %v923_v55 = vsel %vm15949_vm11, %v12093_v8, -inf }
 0x2ff   :  { %16015 = vst [vmem:[#allocation45_spill] sm:$0xff] %v12100_v19  ;;  %v1002_v63 = vsub.f32 %v12025_v58, %v894_v14  ;;  %v1003_v41 = vsub.f32 %v12032_v26, %v894_v14  ;;  %v12105_v62 = vsel %vm2604_vm15, %v894_v14, %v2603_v61  ;;  %v919_v59 = vmax.f32 %v917_v32, %v918_v36 }
 0x300   :  { %10998 = vpow2.f32 %v1046_v47  ;;  %v910_v46 = vmax.f32 %v908_v38, %v909_v3  ;;  %v934_v10 = vrot.slane %v933_v0, 4  ;;  %v924_v13 = vmax.f32 %v922_v2, %v923_v55 }
 0x301   :  { %v12107_v31 = vpop.eup %10990  ;;  %11000 = vpow2.f32 %v1048_v53  ;;  %v1042_v24 = vmul.f32 1.442695, %v1002_v63  ;;  %v1044_v39 = vmul.f32 1.442695, %v1003_v41  ;;  %v920_v25 = vrot.slane %v919_v59, 1  ;;  %v12109_v50 = vpop.f32.mrb[20].mxu1 }
 0x302   :  { %v10993_v30 = vpop.eup %10992  ;;  %v911_v58 = vrot.slane %v910_v46, 1  ;;  %v935_v18 = vmax.f32 %v933_v0, %v934_v10  ;;  %v925_v26 = vrot.slane %v924_v13, 4  ;;  %v949_v61 = vsel %vm15949_vm11, %v12109_v50, -inf  ;;  %v12113_v32 = vpop.f32.mrb[21].mxu1 }
 0x303   :  { %v12115_v3 = vpop.eup %10994  ;;  %v12118_v2 = vmul.f32 %v10993_v30, %v12034_v27  ;;  %11002 = vpow2.f32 %v1042_v24  ;;  %v12120_v38 = vmax.f32 %v919_v59, %v920_v25  ;;  %v940_v14 = vsel %vm15949_vm11, %v12113_v32, -inf  ;;  %v12124_v36 = vpop.f32.mrb[22].mxu1 }
 0x304   :  { %v10997_v0 = vpop.eup %10996  ;;  %11004 = vpow2.f32 %v1044_v39  ;;  %v12126_v47 = vmax.f32 %v910_v46, %v911_v58  ;;  %v936_v53 = vrot.slane %v935_v18, 2  ;;  %v926_v55 = vmax.f32 %v924_v13, %v925_v26  ;;  %v12128_v63 = vpop.f32.mrb[23].mxu1 }
 0x305   :  { %v12130_v41 = vpop.permute.xlu0 %1167  ;;  %v12133_v30 = vmul.f32 %v10997_v0, %v12021_v44  ;;  %v1008_v25 = vsub.f32 %v12042_v52, %v12120_v38  ;;  %v1009_v59 = vsub.f32 %v12054_v23, %v12120_v38  ;;  %v950_v10 = vsel %vm15949_vm11, %v12124_v36, -inf }
 0x306   :  { %16016 = vst [vmem:[#allocation46_spill] sm:$0xff] %v12130_v41  ;;  %v1006_v46 = vsub.f32 %v12044_v56, %v12126_v47  ;;  %v1007_v13 = vsub.f32 %v12059_v34, %v12126_v47  ;;  %v937_v24 = vmax.f32 %v935_v18, %v936_v53  ;;  %v927_v39 = vrot.slane %v926_v55, 2 }
 0x307   :  { %v1054_v58 = vmul.f32 1.442695, %v1008_v25  ;;  %v1056_v26 = vmul.f32 1.442695, %v1009_v59  ;;  %v951_v0 = vmax.f32 %v949_v61, %v950_v10  ;;  %v941_v52 = vsel %vm15949_vm11, %v12128_v63, -inf }
 0x308   :  { %v1050_v44 = vmul.f32 1.442695, %v1006_v46  ;;  %v1052_v27 = vmul.f32 1.442695, %v1007_v13  ;;  %v938_v23 = vrot.slane %v937_v24, 1  ;;  %v928_v21 = vmax.f32 %v926_v55, %v927_v39 }
 0x309   :  { %11006 = vpow2.f32 %v1054_v58  ;;  %v952_v51 = vrot.slane %v951_v0, 4  ;;  %v942_v49 = vmax.f32 %v940_v14, %v941_v52  ;;  %v12147_v48 = vpop.f32.mrb[24].mxu1  ;;  %v12151_v56 = vmul.f32 %v12078_v9, %v11997_v60  ;;  %v12159_v59 = vpop.permute.xlu0 %1177 }
 0x30a   :  { %v12153_v18 = vpop.eup %10998  ;;  %11008 = vpow2.f32 %v1056_v26  ;;  %v939_v34 = vmax.f32 %v937_v24, %v938_v23  ;;  %v929_v61 = vrot.slane %v928_v21, 1  ;;  %v967_v53 = vsel %vm15949_vm11, %v12147_v48, -inf  ;;  %v12157_v25 = vpop.f32.mrb[25].mxu1  ;;  %16018 = vst [vmem:[#allocation48_spill] sm:$0xff] %v12159_v59 }
 0x30b   :  { %16017 = vst [vmem:[#allocation47_spill] sm:$0xff] %v12151_v56  ;;  %v11001_v55 = vpop.eup %11000  ;;  %11010 = vpow2.f32 %v1050_v44  ;;  %v953_v14 = vmax.f32 %v951_v0, %v952_v51  ;;  %v943_v10 = vrot.slane %v942_v49, 4  ;;  %v958_v9 = vsel %vm15949_vm11, %v12157_v25, -inf  ;;  %v12163_v46 = vpop.f32.mrb[26].mxu1 }
 0x30c   :  { %v12166_v13 = vmul.f32 %v11001_v55, %v12068_v43  ;;  %11012 = vpow2.f32 %v1052_v27  ;;  %v1012_v24 = vsub.f32 %v12070_v6, %v939_v34  ;;  %v1013_v39 = vsub.f32 %v12085_v20, %v939_v34  ;;  %v12170_v58 = vpop.f32.mrb[27].mxu1 }
 0x30d   :  { %v12172_v26 = vpop.eup %11002  ;;  %v930_v44 = vmax.f32 %v928_v21, %v929_v61  ;;  %v954_v51 = vrot.slane %v953_v14, 2  ;;  %v944_v0 = vmax.f32 %v942_v49, %v943_v10  ;;  %v968_v52 = vsel %vm15949_vm11, %v12163_v46, -inf  ;;  %v12184_v45 = vpop.permute.xlu0 %1187 }
 0x30e   :  { %v11005_v23 = vpop.eup %11004  ;;  %v1062_v60 = vmul.f32 1.442695, %v1012_v24  ;;  %v1064_v5 = vmul.f32 1.442695, %v1013_v39  ;;  %v969_v55 = vmax.f32 %v967_v53, %v968_v52  ;;  %v959_v27 = vsel %vm15949_vm11, %v12170_v58, -inf  ;;  %16019 = vst [vmem:[#allocation49_spill] sm:$0xff] %v12184_v45 }
 0x30f   :  { %v12179_v6 = vmul.f32 %v11005_v23, %v12046_v57  ;;  %v1010_v20 = vsub.f32 %v12076_v16, %v930_v44  ;;  %v1011_v43 = vsub.f32 %v12093_v8, %v930_v44  ;;  %v2612_v21 = vsel %vm2598_vm12, %v939_v34, %v930_v44 }
 0x310   :  { %11014 = vpow2.f32 %v1062_v60  ;;  %v955_v49 = vmax.f32 %v953_v14, %v954_v51  ;;  %v945_v61 = vrot.slane %v944_v0, 2  ;;  %v970_v10 = vrot.slane %v969_v55, 4 }
 0x311   :  { %11016 = vpow2.f32 %v1064_v5  ;;  %v1058_v53 = vmul.f32 1.442695, %v1010_v20  ;;  %v1060_v24 = vmul.f32 1.442695, %v1011_v43  ;;  %v960_v39 = vmax.f32 %v958_v9, %v959_v27  ;;  %v12186_v52 = vpop.f32.mrb[28].mxu1  ;;  %v12213_v40 = vpop.permute.xlu0 %1197 }
 0x312   :  { %v956_v23 = vrot.slane %v955_v49, 1  ;;  %v946_v57 = vmax.f32 %v944_v0, %v945_v61  ;;  %v971_v15 = vmax.f32 %v969_v55, %v970_v10  ;;  %v985_v16 = vsel %vm15949_vm11, %v12186_v52, -inf  ;;  %v12190_v8 = vpop.f32.mrb[29].mxu1  ;;  %16022 = vst [vmem:[#allocation52_spill] sm:$0xff] %v12213_v40 }
 0x313   :  { %v12192_v60 = vpop.eup %11006  ;;  %11018 = vpow2.f32 %v1058_v53  ;;  %v961_v34 = vrot.slane %v960_v39, 4  ;;  %v976_v5 = vsel %vm15949_vm11, %v12190_v8, -inf  ;;  %v12196_v14 = vpop.f32.mrb[30].mxu1  ;;  %v1282_v43 = vsel %vm15949_vm11, %v12151_v56, 0.0 }
 0x314   :  { %16020 = vst [vmem:[#allocation50_spill] sm:$0xff] %v12192_v60  ;;  %v11009_v9 = vpop.eup %11008  ;;  %11020 = vpow2.f32 %v1060_v24  ;;  %v957_v44 = vmax.f32 %v955_v49, %v956_v23  ;;  %v947_v51 = vrot.slane %v946_v57, 1  ;;  %v972_v0 = vrot.slane %v971_v15, 2  ;;  %v12200_v55 = vpop.f32.mrb[31].mxu1 }
 0x315   :  { %v12202_v27 = vpop.eup %11010  ;;  %v12205_v20 = vmul.f32 %v11009_v9, %v12130_v41  ;;  %v962_v61 = vmax.f32 %v960_v39, %v961_v34  ;;  %v986_v10 = vsel %vm15949_vm11, %v12196_v14, -inf  ;;  %v977_v53 = vsel %vm15949_vm11, %v12200_v55, -inf }
 0x316   :  { %v11013_v42 = vpop.eup %11012  ;;  %v1016_v24 = vsub.f32 %v12109_v50, %v957_v44  ;;  %v1017_v49 = vsub.f32 %v12124_v36, %v957_v44  ;;  %v948_v23 = vmax.f32 %v946_v57, %v947_v51  ;;  %v973_v12 = vmax.f32 %v971_v15, %v972_v0 }
 0x317   :  { %16021 = vst [vmem:[#allocation51_spill] sm:$0xff] %v12205_v20  ;;  %v12216_v56 = vmul.f32 %v11013_v42, %v12100_v19  ;;  %v963_v9 = vrot.slane %v962_v61, 2  ;;  %v987_v39 = vmax.f32 %v985_v16, %v986_v10  ;;  %v978_v34 = vmax.f32 %v976_v5, %v977_v53 }
 0x318   :  { %v1070_v41 = vmul.f32 1.442695, %v1016_v24  ;;  %v1072_v37 = vmul.f32 1.442695, %v1017_v49  ;;  %v1014_v20 = vsub.f32 %v12113_v32, %v948_v23  ;;  %v1015_v60 = vsub.f32 %v12128_v63, %v948_v23 }
 0x319   :  { %v2613_v50 = vsel %vm2600_vm13, %v948_v23, %v2612_v21  ;;  %v974_v35 = vrot.slane %v973_v12, 1  ;;  %v964_v36 = vmax.f32 %v962_v61, %v963_v9  ;;  %v988_v57 = vrot.slane %v987_v39, 4 }
 0x31a   :  { %v12221_v15 = vpop.eup %11014  ;;  %11022 = vpow2.f32 %v1070_v41  ;;  %v1066_v51 = vmul.f32 1.442695, %v1014_v20  ;;  %v1068_v42 = vmul.f32 1.442695, %v1015_v60  ;;  %v2614_v0 = vsel %vm2602_vm14, %v957_v44, %v2613_v50  ;;  %v12233_v41 = vpop.permute.xlu0 %1207 }
 0x31b   :  { %v11017_v16 = vpop.eup %11016  ;;  %11024 = vpow2.f32 %v1072_v37  ;;  %v12224_v5 = vmax.f32 %v973_v12, %v974_v35  ;;  %v965_v10 = vrot.slane %v964_v36, 1  ;;  %v989_v32 = vmax.f32 %v987_v39, %v988_v57  ;;  %16023 = vst [vmem:[#allocation53_spill] sm:$0xff] %v12233_v41 }
 0x31c   :  { %v12227_v63 = vmul.f32 %v11017_v16, %v12184_v45  ;;  %11026 = vpow2.f32 %v1066_v51  ;;  %v979_v21 = vrot.slane %v978_v34, 4  ;;  %v1283_v61 = vsel %vm15949_vm11, %v12096_v11, 0.0 }
 0x31d   :  { %v12231_v53 = vpop.eup %11018  ;;  %11028 = vpow2.f32 %v1068_v42  ;;  %v1020_v37 = vsub.f32 %v12147_v48, %v12224_v5  ;;  %v1021_v12 = vsub.f32 %v12163_v46, %v12224_v5  ;;  %v966_v35 = vmax.f32 %v964_v36, %v965_v10 }
 0x31e   :  { %v11021_v60 = vpop.eup %11020  ;;  %v990_v44 = vrot.slane %v989_v32, 2  ;;  %v980_v20 = vmax.f32 %v978_v34, %v979_v21  ;;  %v1284_v24 = vadd.f32 %v1283_v61, %v1282_v43  ;;  %v12241_v49 = vmul.f32 %v12066_v4, %v11921_v22 }
 0x31f   :  { %v12244_v23 = vmul.f32 %v11021_v60, %v12159_v59  ;;  %v1078_v9 = vmul.f32 1.442695, %v1020_v37  ;;  %v1080_v39 = vmul.f32 1.442695, %v1021_v12  ;;  %v1018_v50 = vsub.f32 %v12157_v25, %v966_v35  ;;  %v12253_v25 = vpop.permute.xlu0 %1217 }
 0x320   :  { %v1019_v48 = vsub.f32 %v12170_v58, %v966_v35  ;;  %v12249_v46 = vsel %vm2604_vm15, %v966_v35, %v2614_v0  ;;  %v991_v36 = vmax.f32 %v989_v32, %v990_v44  ;;  %v981_v34 = vrot.slane %v980_v20, 2  ;;  %16024 = vst [vmem:[#allocation54_spill] sm:$0xff] %v12253_v25 }
 0x321   :  { %11030 = vpow2.f32 %v1078_v9  ;;  %v1074_v43 = vmul.f32 1.442695, %v1018_v50  ;;  %v1285_v57 = vrot.slane %v1284_v24, 4  ;;  %v1291_v4 = vsel %vm15949_vm11, %v12241_v49, 0.0 }
 0x322   :  { %11032 = vpow2.f32 %v1080_v39  ;;  %v1076_v51 = vmul.f32 1.442695, %v1019_v48  ;;  %v992_v42 = vrot.slane %v991_v36, 1  ;;  %v982_v16 = vmax.f32 %v980_v20, %v981_v34 }
 0x323   :  { %11034 = vpow2.f32 %v1074_v43  ;;  %v1286_v58 = vadd.f32 %v1285_v57, %v1284_v24  ;;  %v1292_v0 = vsel %vm15949_vm11, %v12081_v17, 0.0  ;;  %v12259_v10 = vmul.f32 %v12115_v3, %v11924_v7 }
 0x324   :  { %v12261_v32 = vpop.eup %11022  ;;  %11036 = vpow2.f32 %v1076_v51  ;;  %v993_v21 = vmax.f32 %v991_v36, %v992_v42  ;;  %v983_v61 = vrot.slane %v982_v16, 1  ;;  %v1293_v37 = vadd.f32 %v1292_v0, %v1291_v4  ;;  %v12284_v0 = vpop.permute.xlu0 %1227 }
 0x325   :  { %v11025_v12 = vpop.eup %11024  ;;  %v1287_v35 = vrot.slane %v1286_v58, 2  ;;  %v1300_v60 = vsel %vm15949_vm11, %v12259_v10, 0.0  ;;  %v1301_v44 = vsel %vm15949_vm11, %v12133_v30, 0.0  ;;  %v12269_v20 = vmul.f32 %v12107_v31, %v11928_v28  ;;  %16025 = vst [vmem:[#allocation55_spill] sm:$0xff] %v12284_v0 }
 0x326   :  { %v12271_v3 = vpop.eup %11026  ;;  %v12274_v24 = vmul.f32 %v11025_v12, %v12233_v41  ;;  %v1024_v9 = vsub.f32 %v12186_v52, %v993_v21  ;;  %v1025_v39 = vsub.f32 %v12196_v14, %v993_v21  ;;  %v984_v50 = vmax.f32 %v982_v16, %v983_v61 }
 0x327   :  { %v11029_v48 = vpop.eup %11028  ;;  %v1288_v36 = vadd.f32 %v1287_v35, %v1286_v58  ;;  %v1294_v34 = vrot.slane %v1293_v37, 4  ;;  %v1302_v43 = vadd.f32 %v1301_v44, %v1300_v60  ;;  %v1309_v57 = vsel %vm15949_vm11, %v12269_v20, 0.0 }
 0x328   :  { %v12281_v31 = vmul.f32 %v11029_v48, %v12213_v40  ;;  %v1086_v4 = vmul.f32 1.442695, %v1024_v9  ;;  %v1088_v51 = vmul.f32 1.442695, %v1025_v39  ;;  %v1022_v42 = vsub.f32 %v12190_v8, %v984_v50 }
 0x329   :  { %v1023_v52 = vsub.f32 %v12200_v55, %v984_v50  ;;  %v1289_v14 = vrot.slane %v1288_v36, 1  ;;  %v1295_v16 = vadd.f32 %v1294_v34, %v1293_v37  ;;  %v1303_v61 = vrot.slane %v1302_v43, 4 }
 0x32a   :  { %11038 = vpow2.f32 %v1086_v4  ;;  %v1082_v58 = vmul.f32 1.442695, %v1022_v42  ;;  %v1310_v12 = vsel %vm15949_vm11, %v12118_v2, 0.0  ;;  %v2607_v35 = vsel %vm2606_vm3, %v12072_v54, %v12105_v62 }
 0x32b   :  { %v12292_v60 = vpop.eup %11030  ;;  %11040 = vpow2.f32 %v1088_v51  ;;  %v1084_v8 = vmul.f32 1.442695, %v1023_v52  ;;  %v1290_v44 = vadd.f32 %v1289_v14, %v1288_v36  ;;  %v1296_v9 = vrot.slane %v1295_v16, 2 }
 0x32c   :  { %v11033_v39 = vpop.eup %11032  ;;  %11042 = vpow2.f32 %v1082_v58  ;;  %v1304_v55 = vadd.f32 %v1303_v61, %v1302_v43  ;;  %v1311_v37 = vadd.f32 %v1310_v12, %v1309_v57  ;;  %v2609_v48 = vsel %vm2608_vm4, %v12126_v47, %v2607_v35  ;;  %v12306_v57 = vpop.permute.xlu0 %1237 }
 0x32d   :  { %v12296_v34 = vpop.eup %11034  ;;  %v12299_v4 = vmul.f32 %v11033_v39, %v12284_v0  ;;  %11044 = vpow2.f32 %v1084_v8  ;;  %v1426_v54 = vmax.f32 %v1290_v44, 1e-30  ;;  %v1297_v62 = vadd.f32 %v1296_v9, %v1295_v16  ;;  %16026 = vst [vmem:[#allocation56_spill] sm:$0xff] %v12306_v57 }
 0x32e   :  { %v11037_v42 = vpop.eup %11036  ;;  %v1305_v51 = vrot.slane %v1304_v55, 2  ;;  %v1312_v52 = vrot.slane %v1311_v37, 4  ;;  %v2611_v36 = vsel %vm15968_vm5, %v12120_v38, %v2609_v48  ;;  %v2616_v43 = vsel %vm2606_vm3, %v12224_v5, %v12249_v46 }
 0x32f   :  { %v12309_v47 = vmul.f32 %v11037_v42, %v12253_v25  ;;  %11046 = vrcp.f32 %v1426_v54  ;;  %v1298_v14 = vrot.slane %v1297_v62, 1  ;;  %v2617_v61 = vsel %vm2608_vm4, %v984_v50, %v2616_v43 }
 0x330   :  { %v1306_v16 = vadd.f32 %v1305_v51, %v1304_v55  ;;  %v1313_v58 = vadd.f32 %v1312_v52, %v1311_v37  ;;  %v2618_v12 = vsel %vm15968_vm5, %v993_v21, %v2617_v61  ;;  %v12315_v38 = vmul.f32 %v12172_v26, %v11931_v29  ;;  %v12339_v52 = vpop.permute.xlu0 %1247  ;;  %v16029_v61 = vld [vmem:[#allocation50_spill] sm:$0xff]  ;;  %v16031_v29 = vld [vmem:[#allocation31_spill] sm:$0xff] }
 0x331   :  { %v1299_v35 = vadd.f32 %v1298_v14, %v1297_v62  ;;  %v12317_v8 = vpack.c.bf16 %v2618_v12, %v2611_v36  ;;  %v1319_v5 = vsel %vm15949_vm11, %v12179_v6, 0.0  ;;  %v12323_v46 = vmul.f32 %v12153_v18, %v11935_v1  ;;  %16027 = vst [vmem:[#allocation57_spill] sm:$0xff] %v12339_v52  ;;  %v16028_v14 = vld [vmem:[#allocation30_spill] sm:$0xff] }
 0x332   :  { %v1307_v44 = vrot.slane %v1306_v16, 1  ;;  %v1314_v50 = vrot.slane %v1313_v58, 2  ;;  %v1318_v9 = vsel %vm15949_vm11, %v12315_v38, 0.0  ;;  %v1328_v21 = vsel %vm15949_vm11, %v12166_v13, 0.0 }
 0x333   :  { %v1427_v26 = vmax.f32 %v1299_v35, 1e-30  ;;  %v1320_v39 = vadd.f32 %v1319_v5, %v1318_v9  ;;  %v1327_v55 = vsel %vm15949_vm11, %v12323_v46, 0.0  ;;  %v12333_v37 = vmul.f32 %v12202_v27, %v11941_v33 }
 0x334   :  { %v12335_v48 = vpop.eup %11038  ;;  %v1308_v18 = vadd.f32 %v1307_v44, %v1306_v16  ;;  %v1315_v54 = vadd.f32 %v1314_v50, %v1313_v58  ;;  %v1329_v62 = vadd.f32 %v1328_v21, %v1327_v55  ;;  %v1337_v42 = vsel %vm15949_vm11, %v12216_v56, 0.0 }
 0x335   :  { %v11041_v51 = vpop.eup %11040  ;;  %11048 = vrcp.f32 %v1427_v26  ;;  %v1321_v36 = vrot.slane %v1320_v39, 4  ;;  %v1336_v43 = vsel %vm15949_vm11, %v12333_v37, 0.0  ;;  %v12345_v27 = vmul.f32 %v16029_v61, %v16028_v14  ;;  %v16030_v26 = vld [vmem:[#allocation51_spill] sm:$0xff] }
 0x336   :  { %v12347_v12 = vpop.eup %11042  ;;  %v12350_v16 = vmul.f32 %v11041_v51, %v12339_v52  ;;  %v1428_v58 = vmax.f32 %v1308_v18, 1e-30  ;;  %v1316_v35 = vrot.slane %v1315_v54, 1  ;;  %v1330_v5 = vrot.slane %v1329_v62, 4 }
 0x337   :  { %v11045_v44 = vpop.eup %11044  ;;  %v1322_v50 = vadd.f32 %v1321_v36, %v1320_v39  ;;  %v1338_v9 = vadd.f32 %v1337_v42, %v1336_v43  ;;  %v1345_v21 = vsel %vm15949_vm11, %v12345_v27, 0.0  ;;  %v1346_v55 = vsel %vm15949_vm11, %v16030_v26, 0.0  ;;  %v16032_v42 = vld [vmem:[#allocation47_spill] sm:$0xff] }
 0x338   :  { %v12357_v61 = vmul.f32 %v11045_v44, %v12306_v57  ;;  %11050 = vrcp.f32 %v1428_v58  ;;  %v1317_v14 = vadd.f32 %v1316_v35, %v1315_v54  ;;  %v1331_v33 = vadd.f32 %v1330_v5, %v1329_v62 }
 0x339   :  { %v12359_v51 = vpop.eup %11046  ;;  %v1323_v18 = vrot.slane %v1322_v50, 2  ;;  %v1339_v52 = vrot.slane %v1338_v9, 4  ;;  %v1347_v1 = vadd.f32 %v1346_v55, %v1345_v21  ;;  %v12363_v39 = vmul.f32 %v12231_v53, %v16031_v29  ;;  %v16033_v21 = vld [vmem:[#allocation32_spill] sm:$0xff] }
 0x33a   :  { %v1458_v36 = vmul.f32 %v12359_v51, %v16032_v42  ;;  %v1459_v43 = vmul.f32 %v12359_v51, %v12096_v11  ;;  %v1429_v44 = vmax.f32 %v1317_v14, 1e-30  ;;  %v1332_v57 = vrot.slane %v1331_v33, 2 }
 0x33b   :  { %v1324_v58 = vadd.f32 %v1323_v18, %v1322_v50  ;;  %v1340_v54 = vadd.f32 %v1339_v52, %v1338_v9  ;;  %v1348_v62 = vrot.slane %v1347_v1, 4  ;;  %v1354_v35 = vsel %vm15949_vm11, %v12363_v39, 0.0  ;;  %v16034_v9 = vld [vmem:[#allocation17_spill] sm:$0xff] }
 0x33c   :  { %10168 = vmatprep.mubr.msk.f32.mxu0 %vm15949_vm11, %v1458_v36  ;;  %11052 = vrcp.f32 %v1429_v44  ;;  %v1333_v5 = vadd.f32 %v1332_v57, %v1331_v33  ;;  %v1355_v53 = vsel %vm15949_vm11, %v12244_v23, 0.0  ;;  %v12376_v55 = vmul.f32 %v12221_v15, %v16033_v21  ;;  %v16035_v57 = vld [vmem:[#allocation33_spill] sm:$0xff] }
 0x33d   :  { %10169 = vmatmul.mubr.msk.f32.vlgmr.msra.gmra.mrb[4].mxu0 %vm15949_vm11, %v1459_v43  ;;  %v1325_v11 = vrot.slane %v1324_v58, 1  ;;  %v1341_v14 = vrot.slane %v1340_v54, 2  ;;  %v1349_v52 = vadd.f32 %v1348_v62, %v1347_v1  ;;  %v1356_v50 = vadd.f32 %v1355_v53, %v1354_v35  ;;  %v16036_v43 = vld [vmem:[#allocation18_spill] sm:$0xff] }
 0x33e   :  { %10273 = vmatpush3.bf16.msra.mxu0 %v16034_v9  ;;  %v1334_v18 = vrot.slane %v1333_v5, 1  ;;  %v1363_v42 = vsel %vm15949_vm11, %v12376_v55, 0.0  ;;  %v1364_v33 = vsel %vm15949_vm11, %v12227_v63, 0.0  ;;  %v12386_v36 = vmul.f32 %v12271_v3, %v16035_v57 }
 0x33f   :  { %v12388_v15 = vpop.eup %11048  ;;  %10274 = vmatprep.subr.bf16.mxu0 %v16036_v43  ;;  %v1326_v44 = vadd.f32 %v1325_v11, %v1324_v58  ;;  %v1342_v1 = vadd.f32 %v1341_v14, %v1340_v54  ;;  %v1350_v62 = vrot.slane %v1349_v52, 2  ;;  %v1357_v35 = vrot.slane %v1356_v50, 4 }
 0x340   :  { %v1460_v53 = vmul.f32 %v12388_v15, %v12241_v49  ;;  %v1461_v9 = vmul.f32 %v12388_v15, %v12081_v17  ;;  %v1335_v21 = vadd.f32 %v1334_v18, %v1333_v5  ;;  %v1365_v29 = vadd.f32 %v1364_v33, %v1363_v42  ;;  %v16037_v33 = vld [vmem:[#allocation34_spill] sm:$0xff] }
 0x341   :  { %v1430_v25 = vmax.f32 %v1326_v44, 1e-30  ;;  %v1343_v0 = vrot.slane %v1342_v1, 1  ;;  %v1351_v3 = vadd.f32 %v1350_v62, %v1349_v52  ;;  %v1358_v57 = vadd.f32 %v1357_v35, %v1356_v50 }
 0x342   :  { %v12395_v40 = vpop.eup %11050  ;;  %10171 = vmatprep.mubr.msk.f32.mxu0 %vm15949_vm11, %v1460_v53  ;;  %10275 = vmatpush3.bf16.msra.mxu0 %v16036_v43  ;;  %v1431_v58 = vmax.f32 %v1335_v21, 1e-30  ;;  %v1366_v54 = vrot.slane %v1365_v29, 4  ;;  %v1372_v49 = vsel %vm15949_vm11, %v12386_v36, 0.0  ;;  %v1373_v17 = vsel %vm15949_vm11, %v12281_v31, 0.0 }
 0x343   :  { %10172 = vmatmul.mubr.msk.f32.gmra.mrb[6].mxu0 %vm15949_vm11, %v1461_v9  ;;  %v1462_v5 = vmul.f32 %v12395_v40, %v12259_v10  ;;  %v1463_v11 = vmul.f32 %v12395_v40, %v12133_v30  ;;  %10832 = vmatprep.subr.bf16.mxu0 %v12317_v8  ;;  %11054 = vrcp.f32 %v1430_v25  ;;  %v1344_v14 = vadd.f32 %v1343_v0, %v1342_v1  ;;  %v16038_v1 = vld [vmem:[#allocation35_spill] sm:$0xff] }
 0x344   :  { %11056 = vrcp.f32 %v1431_v58  ;;  %v1352_v21 = vrot.slane %v1351_v3, 1  ;;  %v1359_v52 = vrot.slane %v1358_v57, 2  ;;  %v1367_v50 = vadd.f32 %v1366_v54, %v1365_v29 }
 0x345   :  { %10174 = vmatprep.mubr.msk.f32.mxu0 %vm15949_vm11, %v1462_v5  ;;  %v1432_v18 = vmax.f32 %v1344_v14, 1e-30  ;;  %v1374_v42 = vadd.f32 %v1373_v17, %v1372_v49  ;;  %v12412_v43 = vmul.f32 %v12261_v32, %v16037_v33  ;;  %v1382_v10 = vsel %vm15949_vm11, %v12274_v24, 0.0  ;;  %v16039_v14 = vld [vmem:[#allocation36_spill] sm:$0xff] }
 0x346   :  { %v12416_v30 = vpop.eup %11052  ;;  %v1353_v44 = vadd.f32 %v1352_v21, %v1351_v3  ;;  %v1360_v25 = vadd.f32 %v1359_v52, %v1358_v57  ;;  %v1368_v0 = vrot.slane %v1367_v50, 2  ;;  %v12420_v62 = vmul.f32 %v12296_v34, %v16038_v1 }
 0x347   :  { %10175 = vmatmul.mubr.msk.f32.gmra.mrb[8].mxu0 %vm15949_vm11, %v1463_v11  ;;  %v1464_v29 = vmul.f32 %v12416_v30, %v12269_v20  ;;  %v1465_v32 = vmul.f32 %v12416_v30, %v12118_v2  ;;  %11058 = vrcp.f32 %v1432_v18  ;;  %v1375_v35 = vrot.slane %v1374_v42, 4 }
 0x348   :  { %v1433_v53 = vmax.f32 %v1353_v44, 1e-30  ;;  %v1361_v9 = vrot.slane %v1360_v25, 1  ;;  %v1369_v58 = vadd.f32 %v1368_v0, %v1367_v50  ;;  %v1381_v57 = vsel %vm15949_vm11, %v12412_v43, 0.0 }
 0x349   :  { %10177 = vmatprep.mubr.msk.f32.mxu0 %vm15949_vm11, %v1464_v29  ;;  %v1376_v34 = vadd.f32 %v1375_v35, %v1374_v42  ;;  %v1383_v3 = vadd.f32 %v1382_v10, %v1381_v57  ;;  %v1390_v54 = vsel %vm15949_vm11, %v12420_v62, 0.0  ;;  %v1391_v20 = vsel %vm15949_vm11, %v12309_v47, 0.0  ;;  %v16040_v10 = vld [vmem:[#allocation37_spill] sm:$0xff] }
 0x34a   :  { %11060 = vrcp.f32 %v1433_v53  ;;  %v1362_v2 = vadd.f32 %v1361_v9, %v1360_v25  ;;  %v1370_v49 = vrot.slane %v1369_v58, 1  ;;  %v1392_v17 = vadd.f32 %v1391_v20, %v1390_v54 }
 0x34b   :  { %10178 = vmatmul.mubr.msk.f32.gmra.mrb[10].mxu0 %vm15949_vm11, %v1465_v32  ;;  %v1377_v5 = vrot.slane %v1376_v34, 2  ;;  %v1384_v11 = vrot.slane %v1383_v3, 4  ;;  %v12437_v21 = vmul.f32 %v12292_v60, %v16039_v14  ;;  %v1400_v52 = vsel %vm15949_vm11, %v12299_v4, 0.0 }
 0x34c   :  { %v1434_v50 = vmax.f32 %v1362_v2, 1e-30  ;;  %v1371_v18 = vadd.f32 %v1370_v49, %v1369_v58  ;;  %v1393_v42 = vrot.slane %v1392_v17, 4  ;;  %v12443_v44 = vmul.f32 %v12347_v12, %v16040_v10 }
 0x34d   :  { %v12445_v25 = vpop.eup %11054  ;;  %v1378_v0 = vadd.f32 %v1377_v5, %v1376_v34  ;;  %v1385_v29 = vadd.f32 %v1384_v11, %v1383_v3  ;;  %v1399_v32 = vsel %vm15949_vm11, %v12437_v21, 0.0  ;;  %v1409_v60 = vsel %vm15949_vm11, %v12357_v61, 0.0 }
 0x34e   :  { %v12451_v35 = vpop.eup %11056  ;;  %v1466_v53 = vmul.f32 %v12445_v25, %v12315_v38  ;;  %v1467_v9 = vmul.f32 %v12445_v25, %v12179_v6  ;;  %11062 = vrcp.f32 %v1434_v50  ;;  %v1435_v12 = vmax.f32 %v1371_v18, 1e-30  ;;  %v10250_v58 = vpop.f32.mrb[32].mxu1 }
 0x34f   :  { %v1468_v57 = vmul.f32 %v12451_v35, %v12323_v46  ;;  %v1469_v34 = vmul.f32 %v12451_v35, %v12166_v13  ;;  %v1379_v3 = vrot.slane %v1378_v0, 1  ;;  %v1386_v54 = vrot.slane %v1385_v29, 2  ;;  %v2326_v20 = vpop.f32.mrb[33].mxu1 }
 0x350   :  { %10180 = vmatprep.mubr.msk.f32.mxu0 %vm15949_vm11, %v1466_v53  ;;  %11064 = vrcp.f32 %v1435_v12  ;;  %v1394_v2 = vadd.f32 %v1393_v42, %v1392_v17  ;;  %v1401_v38 = vadd.f32 %v1400_v52, %v1399_v32  ;;  %v1408_v6 = vsel %vm15949_vm11, %v12443_v44, 0.0 }
 0x351   :  { %v12464_v49 = vpop.eup %11058  ;;  %10181 = vmatmul.mubr.msk.f32.gmra.mrb[12].mxu0 %vm15949_vm11, %v1467_v9  ;;  %v1380_v5 = vadd.f32 %v1379_v3, %v1378_v0  ;;  %v1387_v46 = vadd.f32 %v1386_v54, %v1385_v29  ;;  %v1410_v11 = vadd.f32 %v1409_v60, %v1408_v6  ;;  %vm2406_vm6 = vcmp.gt.f32.partialorder %v10250_v58, 0.0 }
 0x352   :  { %10183 = vmatprep.mubr.msk.f32.mxu0 %vm15949_vm11, %v1468_v57  ;;  %v1470_v13 = vmul.f32 %v12464_v49, %v12333_v37  ;;  %v1471_v17 = vmul.f32 %v12464_v49, %v12216_v56  ;;  %v1395_v52 = vrot.slane %v1394_v2, 2  ;;  %v1402_v50 = vrot.slane %v1401_v38, 4  ;;  %v10253_v18 = vpop.f32.mrb[34].mxu1 }
 0x353   :  { %v1436_v42 = vmax.f32 %v1380_v5, 1e-30  ;;  %v1388_v32 = vrot.slane %v1387_v46, 1  ;;  %v1411_v53 = vrot.slane %v1410_v11, 4  ;;  %v2422_v12 = vmul.f32 0.2, %v10250_v58 }
 0x354   :  { %v12472_v9 = vpop.eup %11060  ;;  %v1396_v0 = vadd.f32 %v1395_v52, %v1394_v2  ;;  %v1403_v29 = vadd.f32 %v1402_v50, %v1401_v38  ;;  %vm2405_vm7 = vcmp.gt.f32.partialorder %v2326_v20, 0.0  ;;  %v2421_v60 = vmul.f32 0.2, %v2326_v20  ;;  %v2336_v57 = vpop.f32.mrb[35].mxu1 }
 0x355   :  { %10184 = vmatmul.mubr.msk.f32.gmra.mrb[14].mxu0 %vm15949_vm11, %v1469_v34  ;;  %v1472_v37 = vmul.f32 %v12472_v9, %v12345_v27  ;;  %v1473_v56 = vmul.f32 %v12472_v9, %v16030_v26  ;;  %11066 = vrcp.f32 %v1436_v42  ;;  %v1389_v3 = vadd.f32 %v1388_v32, %v1387_v46  ;;  %v16041_v34 = vld [vmem:[#allocation38_spill] sm:$0xff] }
 0x356   :  { %10186 = vmatprep.mubr.msk.f32.mxu0 %vm15949_vm11, %v1470_v13  ;;  %v1397_v54 = vrot.slane %v1396_v0, 1  ;;  %v1404_v6 = vrot.slane %v1403_v29, 2  ;;  %v1412_v5 = vadd.f32 %v1411_v53, %v1410_v11  ;;  %v12481_v2 = vsel %vm2406_vm6, %v10250_v58, %v2422_v12 }
 0x357   :  { %v1437_v38 = vmax.f32 %v1389_v3, 1e-30  ;;  %v12483_v52 = vsel %vm2405_vm7, %v2326_v20, %v2421_v60  ;;  %v12487_v50 = vmul.f32 %v12335_v48, %v16041_v34  ;;  %v1418_v27 = vsel %vm15949_vm11, %v12350_v16, 0.0 }
 0x358   :  { %v11063_v26 = vpop.eup %11062  ;;  %v1398_v46 = vadd.f32 %v1397_v54, %v1396_v0  ;;  %v1405_v42 = vadd.f32 %v1404_v6, %v1403_v29  ;;  %v1413_v13 = vrot.slane %v1412_v5, 2  ;;  %v2453_v11 = vpack.c.bf16 %v12481_v2, %v12483_v52  ;;  %v12580_v2 = vld [vmem:[%s11559_s13 + $0x40] sm:$0xff]  ;;  %v12587_v52 = vld [vmem:[%s11559_s13 + $0x48] sm:$0xff] }
 0x359   :  { %10187 = vmatmul.mubr.msk.f32.gmra.mrb[16].mxu0 %vm15949_vm11, %v1471_v17  ;;  %v1474_v58 = vmul.f32 %v11063_v26, %v12363_v39  ;;  %v1475_v20 = vmul.f32 %v11063_v26, %v12244_v23  ;;  %11068 = vrcp.f32 %v1437_v38  ;;  %v1417_v48 = vsel %vm15949_vm11, %v12487_v50, 0.0 }
 0x35a   :  { %v11065_v32 = vpop.eup %11064  ;;  %10189 = vmatprep.mubr.msk.f32.mxu0 %vm15949_vm11, %v1472_v37  ;;  %v1438_v53 = vmax.f32 %v1398_v46, 1e-30  ;;  %v1406_v12 = vrot.slane %v1405_v42, 1  ;;  %v1414_v0 = vadd.f32 %v1413_v13, %v1412_v5  ;;  %v1419_v29 = vadd.f32 %v1418_v27, %v1417_v48 }
 0x35b   :  { %v1476_v60 = vmul.f32 %v11065_v32, %v12376_v55  ;;  %v1477_v3 = vmul.f32 %v11065_v32, %v12227_v63  ;;  %vm2408_vm8 = vcmp.gt.f32.partialorder %v10253_v18, 0.0  ;;  %v2424_v17 = vmul.f32 0.2, %v10253_v18 }
 0x35c   :  { %11070 = vrcp.f32 %v1438_v53  ;;  %v1407_v39 = vadd.f32 %v1406_v12, %v1405_v42  ;;  %v1415_v23 = vrot.slane %v1414_v0, 1  ;;  %v1420_v54 = vrot.slane %v1419_v29, 4 }
 0x35d   :  { %10190 = vmatmul.mubr.msk.f32.gmra.mrb[18].mxu0 %vm15949_vm11, %v1473_v56  ;;  %v2782_v37 = vsel %vm2598_vm12, %v12388_v15, %v12359_v51  ;;  %v2789_v6 = vsel %vm2598_vm12, %v11065_v32, %v11063_v26  ;;  %vm2407_vm6 = vcmp.gt.f32.partialorder %v2336_v57, 0.0  ;;  %v2440_v46 = vsel %vm2408_vm8, %v10253_v18, %v2424_v17 }
 0x35e   :  { %10192 = vmatprep.mubr.msk.f32.mxu0 %vm15949_vm11, %v1474_v58  ;;  %v1439_v55 = vmax.f32 %v1407_v39, 1e-30  ;;  %v1416_v5 = vadd.f32 %v1415_v23, %v1414_v0  ;;  %v1421_v63 = vadd.f32 %v1420_v54, %v1419_v29  ;;  %v2783_v38 = vsel %vm2600_vm13, %v12395_v40, %v2782_v37  ;;  %v12565_v37 = vld [vmem:[%s11559_s13 + $0x28] sm:$0xff] }
 0x35f   :  { %v11067_v27 = vpop.eup %11066  ;;  %v2784_v56 = vsel %vm2602_vm14, %v12416_v30, %v2783_v38  ;;  %v2423_v42 = vmul.f32 0.2, %v2336_v57  ;;  %v12610_v38 = vld [vmem:[%s11559_s13 + $0x70] sm:$0xff] }
 0x360   :  { %v1478_v51 = vmul.f32 %v11067_v27, %v12386_v36  ;;  %v1479_v15 = vmul.f32 %v11067_v27, %v12281_v31  ;;  %11072 = vrcp.f32 %v1439_v55  ;;  %v1440_v26 = vmax.f32 %v1416_v5, 1e-30  ;;  %v12597_v55 = vld [vmem:[%s11559_s13 + $0x58] sm:$0xff]  ;;  %v12600_v5 = vld [vmem:[%s11559_s13 + $0x60] sm:$0xff] }
 0x361   :  { %10193 = vmatmul.mubr.msk.f32.gmra.mrb[20].mxu0 %vm15949_vm11, %v1475_v20  ;;  %v1422_v13 = vrot.slane %v1421_v63, 2  ;;  %v2785_v58 = vsel %vm2604_vm15, %v12445_v25, %v2784_v56  ;;  %v2790_v40 = vsel %vm2600_vm13, %v11067_v27, %v2789_v6  ;;  %v2439_v18 = vsel %vm2407_vm6, %v2336_v57, %v2423_v42  ;;  %v12568_v6 = vld [vmem:[%s11559_s13 + $0x30] sm:$0xff]  ;;  %v12617_v27 = vld [vmem:[%s11559_s13 + $0x78] sm:$0xff]  ;;  %v12627_v56 = vld [vmem:[%s11559_s13 + $0x8] sm:$0xff] }
 0x362   :  { %10195 = vmatprep.mubr.msk.f32.mxu0 %vm15949_vm11, %v1476_v60  ;;  %11074 = vrcp.f32 %v1440_v26  ;;  %v2786_v36 = vsel %vm2606_vm3, %v12451_v35, %v2785_v58  ;;  %v2454_v30 = vpack.c.bf16 %v2440_v46, %v2439_v18  ;;  %v12622_v46 = vld [vmem:[%s11559_s13] sm:$0xff]  ;;  %v12632_v42 = vld [vmem:[%s11559_s13 + $0x10] sm:$0xff] }
 0x363   :  { %v11069_v31 = vpop.eup %11068  ;;  %v1423_v48 = vadd.f32 %v1422_v13, %v1421_v63  ;;  %v2787_v20 = vsel %vm2608_vm4, %v12464_v49, %v2786_v36  ;;  %v12607_v63 = vld [vmem:[%s11559_s13 + $0x68] sm:$0xff]  ;;  %v16043_v26 = vld [vmem:[#allocation20_spill] sm:$0xff] }
 0x364   :  { %v1480_v32 = vmul.f32 %v11069_v31, %v12412_v43  ;;  %v1481_v25 = vmul.f32 %v11069_v31, %v12274_v24  ;;  %v2788_v53 = vsel %vm15968_vm5, %v12472_v9, %v2787_v20  ;;  %v2791_v57 = vsel %vm2602_vm14, %v11069_v31, %v2790_v40  ;;  %v16044_v40 = vld [vmem:[#allocation19_spill] sm:$0xff] }
 0x365   :  { %10196 = vmatmul.mubr.msk.f32.gmra.mrb[22].mxu0 %vm15949_vm11, %v1477_v3  ;;  %v1424_v12 = vrot.slane %v1423_v48, 1 }
 0x366   :  { %v11071_v0 = vpop.eup %11070  ;;  %10198 = vmatprep.mubr.msk.f32.mxu0 %vm15949_vm11, %v1478_v51  ;;  %v12637_v51 = vld [vmem:[%s11559_s13 + $0x18] sm:$0xff] }
 0x367   :  { %v1482_v35 = vmul.f32 %v11071_v0, %v12420_v62  ;;  %v1483_v29 = vmul.f32 %v11071_v0, %v12309_v47  ;;  %v1425_v49 = vadd.f32 %v1424_v12, %v1423_v48  ;;  %v2792_v43 = vsel %vm2604_vm15, %v11071_v0, %v2791_v57 }
 0x369   :  { %10199 = vmatmul.mubr.msk.f32.gmra.mrb[24].mxu0 %vm15949_vm11, %v1479_v15  ;;  %v1441_v24 = vmax.f32 %v1425_v49, 1e-30 }
 0x36a   :  { %v11073_v60 = vpop.eup %11072  ;;  %10201 = vmatprep.mubr.msk.f32.mxu0 %vm15949_vm11, %v1480_v32 }
 0x36b   :  { %v1484_v9 = vmul.f32 %v11073_v60, %v12437_v21  ;;  %v1485_v3 = vmul.f32 %v11073_v60, %v12299_v4  ;;  %11076 = vrcp.f32 %v1441_v24  ;;  %v2793_v17 = vsel %vm2606_vm3, %v11073_v60, %v2792_v43 }
 0x36c   :  { %v11075_v39 = vpop.eup %11074 }
 0x36d   :  { %10202 = vmatmul.mubr.msk.f32.gmra.mrb[26].mxu0 %vm15949_vm11, %v1481_v25  ;;  %v1486_v47 = vmul.f32 %v11075_v39, %v12443_v44  ;;  %v1487_v62 = vmul.f32 %v11075_v39, %v12357_v61  ;;  %v2794_v23 = vsel %vm2608_vm4, %v11075_v39, %v2793_v17 }
 0x36e   :  { %10204 = vmatprep.mubr.msk.f32.mxu0 %vm15949_vm11, %v1482_v35 }
 0x371   :  { %10205 = vmatmul.mubr.msk.f32.gmra.mrb[28].mxu0 %vm15949_vm11, %v1483_v29 }
 0x372   :  { %10207 = vmatprep.mubr.msk.f32.mxu0 %vm15949_vm11, %v1484_v9 }
 0x375   :  { %v11077_v21 = vpop.eup %11076  ;;  %10208 = vmatmul.mubr.msk.f32.gmra.mrb[30].mxu0 %vm15949_vm11, %v1485_v3 }
 0x376   :  { %10210 = vmatprep.mubr.msk.f32.mxu0 %vm15949_vm11, %v1486_v47  ;;  %v1488_v4 = vmul.f32 %v11077_v21, %v12487_v50  ;;  %v2795_v61 = vsel %vm15968_vm5, %v11077_v21, %v2794_v23  ;;  %v1489_v44 = vmul.f32 %v11077_v21, %v12350_v16  ;;  %v16042_v16 = vmov 0.0   ;;  %v12562_v50 = vld [vmem:[%s11559_s13 + $0x20] sm:$0xff] }
 0x377   :  { %v10835_v54 = vpack.c.bf16 %v2795_v61, %v2788_v53  ;;  %10254 = vmatprep.mubr.msk.f32.mxu1 %vm2012_vm10, %v12562_v50 }
 0x378   :  { %10255 = vmatmul.mubr.msk.f32.gmra.mrb[36].mxu1 %vm2012_vm10, %v12565_v37 }
 0x379   :  { %10211 = vmatmul.mubr.msk.f32.gmra.mrb[32].mxu0 %vm15949_vm11, %v1487_v62  ;;  %10836 = vmatprep.subr.bf16.mxu1 %v10835_v54 }
 0x37a   :  { %10213 = vmatprep.mubr.msk.f32.mxu0 %vm15949_vm11, %v1488_v4  ;;  %10838 = vmatpush3.bf16.msra.mxu1 %v10835_v54 }
 0x37b   :  { %10257 = vmatprep.mubr.msk.f32.mxu1 %vm2012_vm10, %v12568_v6 }
 0x37d   :  { %10214 = vmatmul.mubr.msk.f32.gmra.mrb[34].mxu0 %vm15949_vm11, %v1489_v44 }
 0x37e   :  { %10276 = vmatprep.mubr.msk.bf16.mxu0 %vm15973_vm9, %v2453_v11  ;;  %v12590_v11 = vld [vmem:[%s11559_s13 + $0x50] sm:$0xff] }
 0x381   :  { %10277 = vmatmul.mubr.msk.bf16.vlgmr.msra.gmra.mrb[36].mxu0 %vm15973_vm9, %v2454_v30 }
 0x382   :  { %10834 = vmatpush3.bf16.msra.mxu0 %v12317_v8  ;;  %v12577_v8 = vld [vmem:[%s11559_s13 + $0x38] sm:$0xff] }
 0x383   :  { %10348 = vmatprep.subr.bf16.mxu0 %v16042_v16  ;;  %10258 = vmatmul.mubr.msk.f32.gmra.mrb[38].mxu1 %vm2012_vm10, %v12577_v8 }
 0x384   :  { %10260 = vmatprep.mubr.msk.f32.mxu1 %vm2012_vm10, %v12580_v2 }
 0x387   :  { %10261 = vmatmul.mubr.msk.f32.gmra.mrb[40].mxu1 %vm2012_vm10, %v12587_v52 }
 0x388   :  { %10263 = vmatprep.mubr.msk.f32.mxu1 %vm2012_vm10, %v12590_v11 }
 0x38b   :  { %10264 = vmatmul.mubr.msk.f32.gmra.mrb[42].mxu1 %vm2012_vm10, %v12597_v55 }
 0x38c   :  { %10266 = vmatprep.mubr.msk.f32.mxu1 %vm2012_vm10, %v12600_v5 }
 0x38f   :  { %10267 = vmatmul.mubr.msk.f32.gmra.mrb[44].mxu1 %vm2012_vm10, %v12607_v63 }
 0x390   :  { %10269 = vmatprep.mubr.msk.f32.mxu1 %vm2012_vm10, %v12610_v38 }
 0x393   :  { %10270 = vmatmul.mubr.msk.f32.gmra.mrb[46].mxu1 %vm2012_vm10, %v12617_v27 }
 0x394   :  { %10324 = vmatprep.mubr.msk.f32.mxu1 %vm2012_vm10, %v12622_v46 }
 0x397   :  { %10325 = vmatmul.mubr.msk.f32.vlgmr.msra.gmra.mrb[48].mxu1 %vm2012_vm10, %v12627_v56 }
 0x398   :  { %10327 = vmatprep.mubr.msk.f32.mxu1 %vm2012_vm10, %v12632_v42 }
 0x39b   :  { %10328 = vmatmul.mubr.msk.f32.gmra.mrb[50].mxu1 %vm2012_vm10, %v12637_v51 }
 0x39c   :  { %10330 = vmatprep.mubr.msk.f32.mxu1 %vm2012_vm10, %v12562_v50 }
 0x39f   :  { %10331 = vmatmul.mubr.msk.f32.gmra.mrb[52].mxu1 %vm2012_vm10, %v12565_v37 }
 0x3a0   :  { %10333 = vmatprep.mubr.msk.f32.mxu1 %vm2012_vm10, %v12568_v6 }
 0x3a3   :  { %10334 = vmatmul.mubr.msk.f32.gmra.mrb[54].mxu1 %vm2012_vm10, %v12577_v8 }
 0x3a4   :  { %10336 = vmatprep.mubr.msk.f32.mxu1 %vm2012_vm10, %v12580_v2 }
 0x3a7   :  { %10337 = vmatmul.mubr.msk.f32.gmra.mrb[56].mxu1 %vm2012_vm10, %v12587_v52 }
 0x3a8   :  { %10339 = vmatprep.mubr.msk.f32.mxu1 %vm2012_vm10, %v12590_v11 }
 0x3ab   :  { %10340 = vmatmul.mubr.msk.f32.gmra.mrb[58].mxu1 %vm2012_vm10, %v12597_v55 }
 0x3ac   :  { %10342 = vmatprep.mubr.msk.f32.mxu1 %vm2012_vm10, %v12600_v5 }
 0x3af   :  { %10343 = vmatmul.mubr.msk.f32.gmra.mrb[60].mxu1 %vm2012_vm10, %v12607_v63 }
 0x3b0   :  { %10345 = vmatprep.mubr.msk.f32.mxu1 %vm2012_vm10, %v12610_v38 }
 0x3b3   :  { %10346 = vmatmul.mubr.msk.f32.gmra.mrb[62].mxu1 %vm2012_vm10, %v12617_v27 }
 0x410   :  { %v10170_v15 = vpop.f32.mrb[4].mxu0 }
 0x411   :  { %v1815_v13 = vmul.f32 %v10170_v15, %v16043_v26  ;;  %v1655_v58 = vpop.f32.mrb[5].mxu0 }
 0x412   :  { %v1814_v18 = vmul.f32 %v1655_v58, %v16044_v40 }
 0x413   :  { %v1847_v36 = vsel %vm15973_vm9, %v1815_v13, 0.0 }
 0x414   :  { %v1846_v30 = vsel %vm15973_vm9, %v1814_v18, 0.0 }
 0x415   :  { %v1848_v31 = vadd.f32 %v1847_v36, %v1846_v30 }
 0x416   :  { %v10173_v48 = vpop.f32.mrb[6].mxu0 }
 0x417   :  { %v1817_v20 = vmul.f32 %v10173_v48, %v16043_v26  ;;  %v1665_v32 = vpop.f32.mrb[7].mxu0  ;;  %v1849_v58 = vrot.slane %v1848_v31, 4 }
 0x418   :  { %v1816_v25 = vmul.f32 %v1665_v32, %v16044_v40 }
 0x419   :  { %v1856_v53 = vsel %vm15973_vm9, %v1817_v20, 0.0 }
 0x41a   :  { %v1855_v57 = vsel %vm15973_vm9, %v1816_v25, 0.0  ;;  %v10176_v12 = vpop.f32.mrb[8].mxu0 }
 0x41b   :  { %v1857_v0 = vadd.f32 %v1856_v53, %v1855_v57  ;;  %v1819_v35 = vmul.f32 %v10176_v12, %v16043_v26  ;;  %v1675_v29 = vpop.f32.mrb[9].mxu0  ;;  %v1850_v12 = vadd.f32 %v1849_v58, %v1848_v31 }
 0x41c   :  { %v1818_v49 = vmul.f32 %v1675_v29, %v16044_v40 }
 0x41d   :  { %v1865_v43 = vsel %vm15973_vm9, %v1819_v35, 0.0  ;;  %v1858_v39 = vrot.slane %v1857_v0, 4 }
 0x41e   :  { %v1864_v24 = vsel %vm15973_vm9, %v1818_v49, 0.0  ;;  %v10179_v60 = vpop.f32.mrb[10].mxu0 }
 0x41f   :  { %v1866_v9 = vadd.f32 %v1865_v43, %v1864_v24  ;;  %v1821_v3 = vmul.f32 %v10179_v60, %v16043_v26  ;;  %v1685_v17 = vpop.f32.mrb[11].mxu0  ;;  %v1859_v61 = vadd.f32 %v1858_v39, %v1857_v0 }
 0x420   :  { %v1820_v47 = vmul.f32 %v1685_v17, %v16044_v40 }
 0x421   :  { %v1874_v62 = vsel %vm15973_vm9, %v1821_v3, 0.0  ;;  %v1867_v23 = vrot.slane %v1866_v9, 4  ;;  %v1860_v20 = vrot.slane %v1859_v61, 2 }
 0x422   :  { %v1873_v21 = vsel %vm15973_vm9, %v1820_v47, 0.0 }
 0x423   :  { %v1875_v4 = vadd.f32 %v1874_v62, %v1873_v21  ;;  %v1868_v18 = vadd.f32 %v1867_v23, %v1866_v9  ;;  %v1861_v24 = vadd.f32 %v1860_v20, %v1859_v61  ;;  %v1851_v62 = vrot.slane %v1850_v12, 2 }
 0x424   :  { %v10182_v44 = vpop.f32.mrb[12].mxu0 }
 0x425   :  { %v1876_v54 = vrot.slane %v1875_v4, 4  ;;  %v1823_v15 = vmul.f32 %v10182_v44, %v16043_v26  ;;  %v1695_v13 = vpop.f32.mrb[13].mxu0  ;;  %v1869_v0 = vrot.slane %v1868_v18, 2 }
 0x426   :  { %v1822_v36 = vmul.f32 %v1695_v13, %v16044_v40 }
 0x427   :  { %v1877_v30 = vadd.f32 %v1876_v54, %v1875_v4  ;;  %v1883_v48 = vsel %vm15973_vm9, %v1823_v15, 0.0  ;;  %v1870_v23 = vadd.f32 %v1869_v0, %v1868_v18  ;;  %v1862_v15 = vrot.slane %v1861_v24, 1 }
 0x428   :  { %v1882_v32 = vsel %vm15973_vm9, %v1822_v36, 0.0  ;;  %v10185_v25 = vpop.f32.mrb[14].mxu0 }
 0x429   :  { %v1884_v53 = vadd.f32 %v1883_v48, %v1882_v32  ;;  %v1705_v57 = vpop.f32.mrb[15].mxu0  ;;  %v1825_v35 = vmul.f32 %v10185_v25, %v16043_v26  ;;  %v1878_v49 = vrot.slane %v1877_v30, 2  ;;  %v1852_v25 = vadd.f32 %v1851_v62, %v1850_v12 }
 0x42a   :  { %v1824_v29 = vmul.f32 %v1705_v57, %v16044_v40 }
 0x42b   :  { %v1885_v43 = vrot.slane %v1884_v53, 4  ;;  %v1892_v60 = vsel %vm15973_vm9, %v1825_v35, 0.0  ;;  %v1879_v4 = vadd.f32 %v1878_v49, %v1877_v30 }
 0x42c   :  { %v1891_v9 = vsel %vm15973_vm9, %v1824_v29, 0.0  ;;  %v10188_v3 = vpop.f32.mrb[16].mxu0  ;;  %v1863_v29 = vadd.f32 %v1862_v15, %v1861_v24 }
 0x42d   :  { %v1886_v17 = vadd.f32 %v1885_v43, %v1884_v53  ;;  %v1893_v39 = vadd.f32 %v1892_v60, %v1891_v9  ;;  %v1715_v47 = vpop.f32.mrb[17].mxu0  ;;  %v1827_v31 = vmul.f32 %v10188_v3, %v16043_v26  ;;  %v1871_v53 = vrot.slane %v1870_v23, 1 }
 0x42e   :  { %v1826_v21 = vmul.f32 %v1715_v47, %v16044_v40  ;;  %v1880_v0 = vrot.slane %v1879_v4, 1  ;;  %v1853_v47 = vrot.slane %v1852_v25, 1 }
 0x42f   :  { %v1887_v44 = vrot.slane %v1886_v17, 2  ;;  %v1894_v54 = vrot.slane %v1893_v39, 4  ;;  %v1901_v61 = vsel %vm15973_vm9, %v1827_v31, 0.0  ;;  %v1872_v62 = vadd.f32 %v1871_v53, %v1870_v23 }
 0x430   :  { %v1900_v13 = vsel %vm15973_vm9, %v1826_v21, 0.0  ;;  %v10191_v58 = vpop.f32.mrb[18].mxu0 }
 0x431   :  { %v1888_v36 = vadd.f32 %v1887_v44, %v1886_v17  ;;  %v1895_v48 = vadd.f32 %v1894_v54, %v1893_v39  ;;  %v1902_v20 = vadd.f32 %v1901_v61, %v1900_v13  ;;  %v1725_v32 = vpop.f32.mrb[19].mxu0  ;;  %v1829_v18 = vmul.f32 %v10191_v58, %v16043_v26  ;;  %v12700_v44 = vld [vmem:[%s11594_s14] ss:$0 sm:$0xff]  ;;  %s16210_s14 = sld [smem:[#allocation9_spill]] }
 0x432   :  { %v1828_v57 = vmul.f32 %v1725_v32, %v16044_v40  ;;  %v1881_v54 = vadd.f32 %v1880_v0, %v1879_v4  ;;  %v12703_v13 = vadd.f32 %v12700_v44, %v1863_v29  ;;  %v12710_v4 = vadd.f32 %v12700_v44, %v1872_v62 }
 0x433   :  { %v1896_v30 = vrot.slane %v1895_v48, 2  ;;  %v1903_v35 = vrot.slane %v1902_v20, 4  ;;  %v1889_v49 = vrot.slane %v1888_v36, 1  ;;  %v1910_v43 = vsel %vm15973_vm9, %v1829_v18, 0.0 }
 0x434   :  { %v1909_v60 = vsel %vm15973_vm9, %v1828_v57, 0.0  ;;  %v10194_v9 = vpop.f32.mrb[20].mxu0 }
 0x435   :  { %v1897_v3 = vadd.f32 %v1896_v30, %v1895_v48  ;;  %v1904_v17 = vadd.f32 %v1903_v35, %v1902_v20  ;;  %v1911_v39 = vadd.f32 %v1910_v43, %v1909_v60  ;;  %v1735_v12 = vpop.f32.mrb[21].mxu0  ;;  %v1831_v31 = vmul.f32 %v10194_v9, %v16043_v26 }
 0x436   :  { %v1830_v21 = vmul.f32 %v1735_v12, %v16044_v40  ;;  %v1890_v58 = vadd.f32 %v1889_v49, %v1888_v36  ;;  %v1854_v35 = vadd.f32 %v1853_v47, %v1852_v25  ;;  %v12715_v36 = vadd.f32 %v12700_v44, %v1881_v54 }
 0x437   :  { %v1898_v24 = vrot.slane %v1897_v3, 1  ;;  %v1905_v15 = vrot.slane %v1904_v17, 2  ;;  %v1912_v61 = vrot.slane %v1911_v39, 4  ;;  %v1919_v48 = vsel %vm15973_vm9, %v1831_v31, 0.0 }
 0x438   :  { %v1918_v20 = vsel %vm15973_vm9, %v1830_v21, 0.0  ;;  %v10197_v32 = vpop.f32.mrb[22].mxu0  ;;  %v3023_v60 = vrot.slane %v12703_v13, 7  ;;  %v12719_v9 = vadd.f32 %v12700_v44, %v1890_v58  ;;  %v12727_v21 = vadd.f32 %v12700_v44, %v1854_v35 }
 0x439   :  { %v1899_v23 = vadd.f32 %v1898_v24, %v1897_v3  ;;  %v1906_v53 = vadd.f32 %v1905_v15, %v1904_v17  ;;  %v1913_v18 = vadd.f32 %v1912_v61, %v1911_v39  ;;  %v12707_v57 = vadd.f32 %v1919_v48, %v1918_v20  ;;  %v1745_v30 = vpop.f32.mrb[23].mxu0 }
 0x43a   :  { %v1833_v0 = vmul.f32 %v10197_v32, %v16043_v26  ;;  %v1832_v29 = vmul.f32 %v1745_v30, %v16044_v40  ;;  %v3025_v54 = vrot.slane %v12710_v4, 6  ;;  %v3027_v61 = vrot.slane %v12715_v36, 5 }
 0x43b   :  { %v1907_v49 = vrot.slane %v1906_v53, 1  ;;  %v1914_v43 = vrot.slane %v1913_v18, 2  ;;  %v12724_v39 = vadd.f32 %v12700_v44, %v1899_v23 }
 0x43c   :  { %v1928_v3 = vsel %vm15973_vm9, %v1833_v0, 0.0  ;;  %v1927_v25 = vsel %vm15973_vm9, %v1832_v29, 0.0  ;;  %v10200_v17 = vpop.f32.mrb[24].mxu0 }
 0x43d   :  { %v1908_v12 = vadd.f32 %v1907_v49, %v1906_v53  ;;  %v1915_v47 = vadd.f32 %v1914_v43, %v1913_v18  ;;  %v1929_v62 = vadd.f32 %v1928_v3, %v1927_v25  ;;  %v1755_v31 = vpop.f32.mrb[25].mxu0  ;;  %v1835_v24 = vmul.f32 %v10200_v17, %v16043_v26 }
 0x43e   :  { %v1834_v15 = vmul.f32 %v1755_v31, %v16044_v40  ;;  %v3024_v53 = vsel %vm2598_vm12, %v3023_v60, %v12727_v21  ;;  %v3029_v18 = vrot.slane %v12719_v9, 4  ;;  %v3031_v49 = vrot.slane %v12724_v39, 3 }
 0x43f   :  { %v1916_v58 = vrot.slane %v1915_v47, 1  ;;  %v12734_v48 = vadd.f32 %v12700_v44, %v1908_v12  ;;  %v1937_v20 = vsel %vm15973_vm9, %v1835_v24, 0.0  ;;  %v1930_v35 = vrot.slane %v1929_v62, 4 }
 0x440   :  { %v1936_v32 = vsel %vm15973_vm9, %v1834_v15, 0.0  ;;  %v10203_v23 = vpop.f32.mrb[26].mxu0  ;;  %v3026_v25 = vsel %vm2600_vm13, %v3025_v54, %v3024_v53 }
 0x441   :  { %v1917_v30 = vadd.f32 %v1916_v58, %v1915_v47  ;;  %v1938_v0 = vadd.f32 %v1937_v20, %v1936_v32  ;;  %v1765_v29 = vpop.f32.mrb[27].mxu0  ;;  %v1837_v43 = vmul.f32 %v10203_v23, %v16043_v26  ;;  %v3028_v60 = vsel %vm2602_vm14, %v3027_v61, %v3026_v25 }
 0x442   :  { %v1836_v3 = vmul.f32 %v1765_v29, %v16044_v40  ;;  %v3033_v31 = vrot.slane %v12734_v48, 2  ;;  %v3030_v58 = vsel %vm2604_vm15, %v3029_v18, %v3028_v60  ;;  %v1931_v20 = vadd.f32 %v1930_v35, %v1929_v62 }
 0x443   :  { %v1939_v17 = vrot.slane %v1938_v0, 4  ;;  %v12746_v12 = vadd.f32 %v12700_v44, %v1917_v30  ;;  %v1946_v47 = vsel %vm15973_vm9, %v1837_v43, 0.0  ;;  %v3032_v54 = vsel %vm2606_vm3, %v3031_v49, %v3030_v58 }
 0x444   :  { %v1945_v24 = vsel %vm15973_vm9, %v1836_v3, 0.0  ;;  %v10206_v15 = vpop.f32.mrb[28].mxu0  ;;  %v1921_v25 = vrot.slane %v12707_v57, 4  ;;  %v3034_v3 = vsel %vm2608_vm4, %v3033_v31, %v3032_v54  ;;  %v1932_v49 = vrot.slane %v1931_v20, 2 }
 0x445   :  { %v1947_v32 = vadd.f32 %v1946_v47, %v1945_v24  ;;  %v1775_v23 = vpop.f32.mrb[29].mxu0  ;;  %v1940_v53 = vadd.f32 %v1939_v17, %v1938_v0  ;;  %v1839_v30 = vmul.f32 %v10206_v15, %v16043_v26  ;;  %v3035_v61 = vrot.slane %v12746_v12, 1 }
 0x446   :  { %v1838_v29 = vmul.f32 %v1775_v23, %v16044_v40  ;;  %v1922_v31 = vadd.f32 %v1921_v25, %v12707_v57 }
 0x447   :  { %v1948_v43 = vrot.slane %v1947_v32, 4  ;;  %v1955_v34 = vsel %vm15973_vm9, %v1839_v30, 0.0  ;;  %v3036_v35 = vsel %vm15968_vm5, %v3035_v61, %v3034_v3  ;;  %v1941_v47 = vrot.slane %v1940_v53, 2 }
 0x448   :  { %v1954_v62 = vsel %vm15973_vm9, %v1838_v29, 0.0  ;;  %v10209_v18 = vpop.f32.mrb[30].mxu0  ;;  %v3053_v15 = vsel %vm15973_vm9, %v3036_v35, 0.0 }
 0x449   :  { %v1949_v0 = vadd.f32 %v1948_v43, %v1947_v32  ;;  %v1956_v17 = vadd.f32 %v1955_v34, %v1954_v62  ;;  %v1785_v60 = vpop.f32.mrb[31].mxu0  ;;  %v1841_v24 = vmul.f32 %v10209_v18, %v16043_v26  ;;  %3054 = vadd.xlane.f32.xlu0 %v3053_v15  ;;  %v1933_v32 = vadd.f32 %v1932_v49, %v1931_v20 }
 0x44a   :  { %v1840_v58 = vmul.f32 %v1785_v60, %v16044_v40  ;;  %v1942_v3 = vadd.f32 %v1941_v47, %v1940_v53  ;;  %v1923_v60 = vrot.slane %v1922_v31, 2 }
 0x44b   :  { %v1950_v23 = vrot.slane %v1949_v0, 2  ;;  %v1957_v54 = vrot.slane %v1956_v17, 4  ;;  %v1964_v30 = vsel %vm15973_vm9, %v1841_v24, 0.0 }
 0x44c   :  { %v1963_v29 = vsel %vm15973_vm9, %v1840_v58, 0.0  ;;  %v10212_v61 = vpop.f32.mrb[32].mxu0  ;;  %v1934_v58 = vrot.slane %v1933_v32, 1 }
 0x44d   :  { %v1958_v34 = vadd.f32 %v1957_v54, %v1956_v17  ;;  %v1795_v43 = vpop.f32.mrb[33].mxu0  ;;  %v1965_v62 = vadd.f32 %v1964_v30, %v1963_v29  ;;  %v1843_v18 = vmul.f32 %v10212_v61, %v16043_v26  ;;  %v1951_v10 = vadd.f32 %v1950_v23, %v1949_v0 }
 0x44e   :  { %v1842_v35 = vmul.f32 %v1795_v43, %v16044_v40  ;;  %v1943_v17 = vrot.slane %v1942_v3, 1  ;;  %v1924_v30 = vadd.f32 %v1923_v60, %v1922_v31 }
 0x44f   :  { %v1959_v57 = vrot.slane %v1958_v34, 2  ;;  %v1966_v25 = vrot.slane %v1965_v62, 4  ;;  %v1973_v15 = vsel %vm15973_vm9, %v1843_v18, 0.0  ;;  %v1952_v29 = vrot.slane %v1951_v10, 1 }
 0x450   :  { %v1972_v24 = vsel %vm15973_vm9, %v1842_v35, 0.0  ;;  %v10215_v14 = vpop.f32.mrb[34].mxu0  ;;  %v1935_v35 = vadd.f32 %v1934_v58, %v1933_v32 }
 0x451   :  { %v1960_v1 = vadd.f32 %v1959_v57, %v1958_v34  ;;  %v1974_v20 = vadd.f32 %v1973_v15, %v1972_v24  ;;  %v1805_v49 = vpop.f32.mrb[35].mxu0  ;;  %v1967_v53 = vadd.f32 %v1966_v25, %v1965_v62  ;;  %v1845_v47 = vmul.f32 %v10215_v14, %v16043_v26 }
 0x452   :  { %v1844_v54 = vmul.f32 %v1805_v49, %v16044_v40  ;;  %v1944_v57 = vadd.f32 %v1943_v17, %v1942_v3  ;;  %v1925_v24 = vrot.slane %v1924_v30, 1  ;;  %v1953_v62 = vadd.f32 %v1952_v29, %v1951_v10 }
 0x453   :  { %v1975_v0 = vrot.slane %v1974_v20, 4  ;;  %v1961_v23 = vrot.slane %v1960_v1, 1  ;;  %v1968_v61 = vrot.slane %v1967_v53, 2  ;;  %v1982_v43 = vsel %vm15973_vm9, %v1845_v47, 0.0 }
 0x454   :  { %v1981_v18 = vsel %vm15973_vm9, %v1844_v54, 0.0  ;;  %v12777_v31 = vadd.f32 %v12700_v44, %v1935_v35  ;;  %v12780_v47 = vadd.f32 %v12700_v44, %v1944_v57  ;;  %v1926_v32 = vadd.f32 %v1925_v24, %v1924_v30 }
 0x455   :  { %v1976_v33 = vadd.f32 %v1975_v0, %v1974_v20  ;;  %v1983_v34 = vadd.f32 %v1982_v43, %v1981_v18  ;;  %v1969_v15 = vadd.f32 %v1968_v61, %v1967_v53  ;;  %v1962_v26 = vadd.f32 %v1961_v23, %v1960_v1 }
 0x456   :  { %v12783_v58 = vadd.f32 %v12700_v44, %v1953_v62  ;;  %v3037_v1 = vrot.slane %v12777_v31, 7  ;;  %v3039_v29 = vrot.slane %v12780_v47, 6  ;;  %v12794_v0 = vadd.f32 %v12700_v44, %v1926_v32 }
 0x457   :  { %v1977_v25 = vrot.slane %v1976_v33, 2  ;;  %v1984_v14 = vrot.slane %v1983_v34, 4  ;;  %v1970_v40 = vrot.slane %v1969_v15, 1  ;;  %v12786_v10 = vadd.f32 %v12700_v44, %v1962_v26 }
 0x458   :  { %v3041_v30 = vrot.slane %v12783_v58, 5  ;;  %v3038_v35 = vsel %vm2598_vm12, %v3037_v1, %v12794_v0 }
 0x459   :  { %v1978_v60 = vadd.f32 %v1977_v25, %v1976_v33  ;;  %v1985_v49 = vadd.f32 %v1984_v14, %v1983_v34  ;;  %v1971_v54 = vadd.f32 %v1970_v40, %v1969_v15  ;;  %v3043_v43 = vrot.slane %v12786_v10, 4 }
 0x45a   :  { %v3040_v57 = vsel %vm2600_vm13, %v3039_v29, %v3038_v35 }
 0x45b   :  { %v1979_v3 = vrot.slane %v1978_v60, 1  ;;  %v1986_v20 = vrot.slane %v1985_v49, 2  ;;  %v12790_v17 = vadd.f32 %v12700_v44, %v1971_v54  ;;  %v3042_v62 = vsel %vm2602_vm14, %v3041_v30, %v3040_v57  ;;  %v10256_v54 = vpop.f32.mrb[36].mxu1 }
 0x45c   :  { %v3044_v25 = vsel %vm2604_vm15, %v3043_v43, %v3042_v62  ;;  %vm2410_vm7 = vcmp.gt.f32.partialorder %v10256_v54, 0.0  ;;  %v2426_v32 = vmul.f32 0.2, %v10256_v54 }
 0x45d   :  { %v1980_v33 = vadd.f32 %v1979_v3, %v1978_v60  ;;  %v1987_v53 = vadd.f32 %v1986_v20, %v1985_v49  ;;  %v3045_v34 = vrot.slane %v12790_v17, 3 }
 0x45e   :  { %v2442_v20 = vsel %vm2410_vm7, %v10256_v54, %v2426_v32 }
 0x45f   :  { %v1988_v23 = vrot.slane %v1987_v53, 1  ;;  %v12798_v61 = vadd.f32 %v12700_v44, %v1980_v33  ;;  %v3046_v14 = vsel %vm2606_vm3, %v3045_v34, %v3044_v25 }
 0x461   :  { %v1989_v18 = vadd.f32 %v1988_v23, %v1987_v53  ;;  %v3047_v15 = vrot.slane %v12798_v61, 2 }
 0x463   :  { %v12807_v24 = vadd.f32 %v12700_v44, %v1989_v18  ;;  %v3048_v40 = vsel %vm2608_vm4, %v3047_v15, %v3046_v14  ;;  %v2346_v44 = vpop.f32.mrb[37].mxu1 }
 0x464   :  { %vm2409_vm8 = vcmp.gt.f32.partialorder %v2346_v44, 0.0  ;;  %v2425_v3 = vmul.f32 0.2, %v2346_v44  ;;  %v10259_v33 = vpop.f32.mrb[38].mxu1 }
 0x465   :  { %v3049_v26 = vrot.slane %v12807_v24, 1  ;;  %vm2412_vm6 = vcmp.gt.f32.partialorder %v10259_v33, 0.0  ;;  %v2428_v29 = vmul.f32 0.2, %v10259_v33  ;;  %v2356_v30 = vpop.f32.mrb[39].mxu1 }
 0x466   :  { %v2441_v1 = vsel %vm2409_vm8, %v2346_v44, %v2425_v3  ;;  %vm2411_vm2 = vcmp.gt.f32.partialorder %v2356_v30, 0.0  ;;  %v2427_v23 = vmul.f32 0.2, %v2356_v30  ;;  %v10262_v35 = vpop.f32.mrb[40].mxu1 }
 0x467   :  { %v3050_v60 = vsel %vm15968_vm5, %v3049_v26, %v3048_v40  ;;  %v2455_v53 = vpack.c.bf16 %v2442_v20, %v2441_v1  ;;  %v2444_v43 = vsel %vm2412_vm6, %v10259_v33, %v2428_v29  ;;  %vm2414_vm11 = vcmp.gt.f32.partialorder %v10262_v35, 0.0  ;;  %v2366_v15 = vpop.f32.mrb[41].mxu1 }
 0x468   :  { %v3056_v49 = vsel %vm15973_vm9, %v3050_v60, 0.0  ;;  %v2443_v18 = vsel %vm2411_vm2, %v2356_v30, %v2427_v23  ;;  %v2430_v57 = vmul.f32 0.2, %v10262_v35  ;;  %vm2413_vm0 = vcmp.gt.f32.partialorder %v2366_v15, 0.0  ;;  %v10265_v26 = vpop.f32.mrb[42].mxu1 }
 0x469   :  { %3057 = vadd.xlane.f32.xlu1 %v3056_v49  ;;  %10280 = vmatprep.mubr.msk.bf16.mxu0 %vm15973_vm9, %v2455_v53  ;;  %v2456_v34 = vpack.c.bf16 %v2444_v43, %v2443_v18  ;;  %v2429_v62 = vmul.f32 0.2, %v2366_v15  ;;  %vm2416_vm7 = vcmp.gt.f32.partialorder %v10265_v26, 0.0  ;;  %v2432_v60 = vmul.f32 0.2, %v10265_v26  ;;  %v2376_v49 = vpop.f32.mrb[43].mxu1 }
 0x46a   :  { %v2446_v25 = vsel %vm2414_vm11, %v10262_v35, %v2430_v57  ;;  %vm2415_vm8 = vcmp.gt.f32.partialorder %v2376_v49, 0.0  ;;  %v2431_v54 = vmul.f32 0.2, %v2376_v49  ;;  %v10268_v3 = vpop.f32.mrb[44].mxu1 }
 0x46b   :  { %10281 = vmatmul.mubr.msk.bf16.gmra.mrb[40].mxu0 %vm15973_vm9, %v2456_v34  ;;  %v2445_v14 = vsel %vm2413_vm0, %v2366_v15, %v2429_v62  ;;  %v2448_v32 = vsel %vm2416_vm7, %v10265_v26, %v2432_v60  ;;  %vm2418_vm2 = vcmp.gt.f32.partialorder %v10268_v3, 0.0  ;;  %v2434_v1 = vmul.f32 0.2, %v10268_v3  ;;  %v2386_v33 = vpop.f32.mrb[45].mxu1 }
 0x46c   :  { %v2457_v40 = vpack.c.bf16 %v2446_v25, %v2445_v14  ;;  %v2447_v44 = vsel %vm2415_vm8, %v2376_v49, %v2431_v54  ;;  %vm2417_vm11 = vcmp.gt.f32.partialorder %v2386_v33, 0.0  ;;  %v2433_v53 = vmul.f32 0.2, %v2386_v33  ;;  %v10271_v23 = vpop.f32.mrb[46].mxu1 }
 0x46d   :  { %v2458_v20 = vpack.c.bf16 %v2448_v32, %v2447_v44  ;;  %v2450_v29 = vsel %vm2418_vm2, %v10268_v3, %v2434_v1  ;;  %vm2420_vm0 = vcmp.gt.f32.partialorder %v10271_v23, 0.0  ;;  %v2436_v18 = vmul.f32 0.2, %v10271_v23  ;;  %v2396_v35 = vpop.f32.mrb[47].mxu1 }
 0x46e   :  { %10284 = vmatprep.mubr.msk.bf16.mxu0 %vm15973_vm9, %v2457_v40  ;;  %v2449_v30 = vsel %vm2417_vm11, %v2386_v33, %v2433_v53  ;;  %vm2419_vm6 = vcmp.gt.f32.partialorder %v2396_v35, 0.0  ;;  %v2435_v34 = vmul.f32 0.2, %v2396_v35 }
 0x46f   :  { %v2459_v43 = vpack.c.bf16 %v2450_v29, %v2449_v30  ;;  %v2452_v57 = vsel %vm2420_vm0, %v10271_v23, %v2436_v18 }
 0x470   :  { %v2451_v15 = vsel %vm2419_vm6, %v2396_v35, %v2435_v34 }
 0x471   :  { %v2460_v62 = vpack.c.bf16 %v2452_v57, %v2451_v15 }
 0x473   :  { %10285 = vmatmul.mubr.msk.bf16.gmra.mrb[44].mxu0 %vm15973_vm9, %v2458_v20 }
 0x474   :  { %10288 = vmatprep.mubr.msk.bf16.mxu0 %vm15973_vm9, %v2459_v43 }
 0x47b   :  { %10289 = vmatmul.mubr.msk.bf16.gmra.mrb[48].mxu0 %vm15973_vm9, %v2460_v62 }
 0x47c   :  { %10296 = vmatprep.mubr.msk.f32.mxu0 %vm2012_vm10, %v12622_v46 }
 0x483   :  { %10297 = vmatmul.mubr.msk.f32.vlgmr.msra.gmra.mrb[52].mxu0 %vm2012_vm10, %v12627_v56 }
 0x484   :  { %10299 = vmatprep.mubr.msk.f32.mxu0 %vm2012_vm10, %v12632_v42 }
 0x487   :  { %10300 = vmatmul.mubr.msk.f32.gmra.mrb[54].mxu0 %vm2012_vm10, %v12637_v51 }
 0x488   :  { %10302 = vmatprep.mubr.msk.f32.mxu0 %vm2012_vm10, %v12562_v50 }
 0x48b   :  { %10303 = vmatmul.mubr.msk.f32.gmra.mrb[56].mxu0 %vm2012_vm10, %v12565_v37 }
 0x48c   :  { %10305 = vmatprep.mubr.msk.f32.mxu0 %vm2012_vm10, %v12568_v6 }
 0x48f   :  { %10306 = vmatmul.mubr.msk.f32.gmra.mrb[58].mxu0 %vm2012_vm10, %v12577_v8 }
 0x490   :  { %10308 = vmatprep.mubr.msk.f32.mxu0 %vm2012_vm10, %v12580_v2 }
 0x493   :  { %10309 = vmatmul.mubr.msk.f32.gmra.mrb[60].mxu0 %vm2012_vm10, %v12587_v52 }
 0x494   :  { %10311 = vmatprep.mubr.msk.f32.mxu0 %vm2012_vm10, %v12590_v11 }
 0x497   :  { %10312 = vmatmul.mubr.msk.f32.gmra.mrb[62].mxu0 %vm2012_vm10, %v12597_v55 }
 0x498   :  { %10314 = vmatprep.mubr.msk.f32.mxu0 %vm2012_vm10, %v12600_v5 }
 0x49b   :  { %10315 = vmatmul.mubr.msk.f32.gmra.mrb[64].mxu0 %vm2012_vm10, %v12607_v63 }
 0x49c   :  { %10317 = vmatprep.mubr.msk.f32.mxu0 %vm2012_vm10, %v12610_v38 }
 0x49f   :  { %10318 = vmatmul.mubr.msk.f32.gmra.mrb[66].mxu0 %vm2012_vm10, %v12617_v27 }
 0x4a0   :  { %10352 = vmatprep.mubr.msk.bf16.mxu0 %vm15966_vm1, %v16042_v16 }
 0x4d6   :  { %v3055_v25 = vpop.xlane.xlu0 %3054 }
 0x4d7   :  { %v3060_v14 = vmul.f32 0.03125, %v3055_v25 }
 0x4d9   :  { %v3064_v26 = vrot.slane %v3060_v14, 1  ;;  %v3065_v40 = vrot.slane %v3060_v14, 2  ;;  %v3066_v60 = vrot.slane %v3060_v14, 3  ;;  %v3067_v49 = vrot.slane %v3060_v14, 4 }
 0x4da   :  { %v3068_v54 = vrot.slane %v3060_v14, 5  ;;  %v3069_v32 = vrot.slane %v3060_v14, 6  ;;  %v3070_v44 = vrot.slane %v3060_v14, 7  ;;  %v12829_v3 = vsub.f32 %v12727_v21, %v3060_v14 }
 0x4db   :  { %v12832_v46 = vsub.f32 %v12703_v13, %v3064_v26  ;;  %v12835_v20 = vsub.f32 %v12710_v4, %v3065_v40  ;;  %v12838_v56 = vsub.f32 %v12715_v36, %v3066_v60  ;;  %v12841_v42 = vsub.f32 %v12719_v9, %v3067_v49 }
 0x4dc   :  { %v12846_v1 = vsub.f32 %v12724_v39, %v3068_v54  ;;  %v12849_v21 = vsub.f32 %v12734_v48, %v3069_v32  ;;  %v12854_v13 = vsub.f32 %v12746_v12, %v3070_v44  ;;  %v3110_v39 = vmul.f32 %v12829_v3, %v12829_v3 }
 0x4dd   :  { %v3111_v4 = vmul.f32 %v12832_v46, %v12832_v46  ;;  %v3112_v36 = vmul.f32 %v12835_v20, %v12835_v20  ;;  %v3113_v51 = vmul.f32 %v12838_v56, %v12838_v56  ;;  %v3114_v9 = vmul.f32 %v12841_v42, %v12841_v42 }
 0x4de   :  { %v3115_v50 = vmul.f32 %v12846_v1, %v12846_v1  ;;  %v3116_v33 = vmul.f32 %v12849_v21, %v12849_v21  ;;  %v3117_v53 = vmul.f32 %v12854_v13, %v12854_v13 }
 0x4df   :  { %v3142_v48 = vrot.slane %v3111_v4, 7  ;;  %v3144_v12 = vrot.slane %v3112_v36, 6  ;;  %v3146_v30 = vrot.slane %v3113_v51, 5  ;;  %v3148_v43 = vrot.slane %v3114_v9, 4 }
 0x4e0   :  { %v3150_v35 = vrot.slane %v3115_v50, 3  ;;  %v3152_v34 = vrot.slane %v3116_v33, 2  ;;  %v3154_v57 = vrot.slane %v3117_v53, 1 }
 0x4e1   :  { %v3143_v29 = vsel %vm2598_vm12, %v3142_v48, %v3110_v39 }
 0x4e2   :  { %v3145_v23 = vsel %vm2600_vm13, %v3144_v12, %v3143_v29 }
 0x4e3   :  { %v3147_v18 = vsel %vm2602_vm14, %v3146_v30, %v3145_v23 }
 0x4e4   :  { %v3149_v37 = vsel %vm2604_vm15, %v3148_v43, %v3147_v18 }
 0x4e5   :  { %v3151_v6 = vsel %vm2606_vm3, %v3150_v35, %v3149_v37  ;;  %v3292_v35 = vld [vmem:[%s11609_s30] sm:$0xff]  ;;  %v3293_v37 = vld [vmem:[%s11609_s30 + $0x8] sm:$0xff] }
 0x4e6   :  { %v3153_v15 = vsel %vm2608_vm4, %v3152_v34, %v3151_v6  ;;  %v3294_v34 = vld [vmem:[%s11609_s30 + $0x10] sm:$0xff]  ;;  %v3321_v6 = vpack.c.bf16 %v3293_v37, %v3292_v35 }
 0x4e7   :  { %v3155_v62 = vsel %vm15968_vm5, %v3154_v57, %v3153_v15  ;;  %v3295_v57 = vld [vmem:[%s11609_s30 + $0x18] sm:$0xff]  ;;  %s11535_s30 = smov 24  }
 0x4e8   :  { %v3172_v25 = vsel %vm15973_vm9, %v3155_v62, 0.0  ;;  %10349 = vmatpush3.bf16.msra.mxu0 %v3321_v6  ;;  %v3322_v15 = vpack.c.bf16 %v3295_v57, %v3294_v34  ;;  %v12957_v62 = vpop.f32.mrb[36].mxu0 }
 0x4e9   :  { %3173 = vadd.xlane.f32.xlu0 %v3172_v25  ;;  %10350 = vmatprep.subr.bf16.mxu0 %v16042_v16  ;;  %v12959_v25 = vpop.f32.mrb[37].mxu0 }
 0x4ec   :  { %10351 = vmatpush3.bf16.msra.mxu0 %v3322_v15 }
 0x4f6   :  { %v3058_v8 = vpop.xlane.xlu1 %3057 }
 0x4f7   :  { %v3061_v2 = vmul.f32 0.03125, %v3058_v8  ;;  %v12961_v8 = vpop.f32.mrb[48].mxu1 }
 0x4f9   :  { %v3071_v52 = vrot.slane %v3061_v2, 1  ;;  %v3072_v11 = vrot.slane %v3061_v2, 2  ;;  %v3073_v55 = vrot.slane %v3061_v2, 3  ;;  %v3074_v14 = vrot.slane %v3061_v2, 4 }
 0x4fa   :  { %v3075_v26 = vrot.slane %v3061_v2, 5  ;;  %v3076_v5 = vrot.slane %v3061_v2, 6  ;;  %v3077_v40 = vrot.slane %v3061_v2, 7  ;;  %v12905_v63 = vsub.f32 %v12794_v0, %v3061_v2  ;;  %v12963_v2 = vpop.f32.mrb[38].mxu0 }
 0x4fb   :  { %v12908_v38 = vsub.f32 %v12777_v31, %v3071_v52  ;;  %v12911_v27 = vsub.f32 %v12780_v47, %v3072_v11  ;;  %v12914_v60 = vsub.f32 %v12783_v58, %v3073_v55  ;;  %v12917_v49 = vsub.f32 %v12786_v10, %v3074_v14  ;;  %v12965_v52 = vpop.f32.mrb[39].mxu0  ;;  %v12967_v11 = vpop.f32.mrb[49].mxu1 }
 0x4fc   :  { %v12920_v54 = vsub.f32 %v12790_v17, %v3075_v26  ;;  %v12923_v32 = vsub.f32 %v12798_v61, %v3076_v5  ;;  %v12926_v0 = vsub.f32 %v12807_v24, %v3077_v40  ;;  %v3118_v17 = vmul.f32 %v12905_v63, %v12905_v63  ;;  %v12969_v55 = vpop.f32.mrb[50].mxu1 }
 0x4fd   :  { %v3119_v31 = vmul.f32 %v12908_v38, %v12908_v38  ;;  %v3120_v47 = vmul.f32 %v12911_v27, %v12911_v27  ;;  %v3121_v58 = vmul.f32 %v12914_v60, %v12914_v60  ;;  %v3122_v10 = vmul.f32 %v12917_v49, %v12917_v49  ;;  %v12971_v14 = vpop.f32.mrb[51].mxu1 }
 0x4fe   :  { %v3123_v61 = vmul.f32 %v12920_v54, %v12920_v54  ;;  %v3124_v4 = vmul.f32 %v12923_v32, %v12923_v32  ;;  %v3125_v36 = vmul.f32 %v12926_v0, %v12926_v0  ;;  %v12973_v26 = vpop.f32.mrb[52].mxu1 }
 0x4ff   :  { %v3156_v24 = vrot.slane %v3119_v31, 7  ;;  %v3158_v44 = vrot.slane %v3120_v47, 6  ;;  %v3160_v9 = vrot.slane %v3121_v58, 5  ;;  %v3162_v50 = vrot.slane %v3122_v10, 4  ;;  %v12975_v5 = vpop.f32.mrb[53].mxu1 }
 0x500   :  { %v3164_v12 = vrot.slane %v3123_v61, 3  ;;  %v3166_v53 = vrot.slane %v3124_v4, 2  ;;  %v3168_v30 = vrot.slane %v3125_v36, 1  ;;  %v12977_v40 = vpop.f32.mrb[54].mxu1 }
 0x501   :  { %v3157_v51 = vsel %vm2598_vm12, %v3156_v24, %v3118_v17  ;;  %v12979_v31 = vpop.f32.mrb[55].mxu1 }
 0x502   :  { %v3159_v39 = vsel %vm2600_vm13, %v3158_v44, %v3157_v51  ;;  %v12981_v47 = vpop.f32.mrb[56].mxu1 }
 0x503   :  { %v3161_v48 = vsel %vm2602_vm14, %v3160_v9, %v3159_v39  ;;  %v12983_v58 = vpop.f32.mrb[57].mxu1 }
 0x504   :  { %v3163_v33 = vsel %vm2604_vm15, %v3162_v50, %v3161_v48  ;;  %v12985_v10 = vpop.f32.mrb[58].mxu1  ;;  %v12998_v50 = vld [vmem:[%s11599_s19] ss:$0 sm:$0xff]  ;;  %s16220_s19 = sld [smem:[#allocation12_spill]] }
 0x505   :  { %v3165_v29 = vsel %vm2606_vm3, %v3164_v12, %v3163_v33  ;;  %v12987_v17 = vpop.f32.mrb[59].mxu1 }
 0x506   :  { %v3167_v23 = vsel %vm2608_vm4, %v3166_v53, %v3165_v29  ;;  %v12989_v61 = vpop.f32.mrb[60].mxu1 }
 0x507   :  { %v3169_v43 = vsel %vm15968_vm5, %v3168_v30, %v3167_v23  ;;  %v12991_v24 = vpop.f32.mrb[61].mxu1 }
 0x508   :  { %v3175_v18 = vsel %vm15973_vm9, %v3169_v43, 0.0  ;;  %v12993_v44 = vpop.f32.mrb[62].mxu1  ;;  %v13002_v43 = vld [vmem:[%s11604_s24] ss:$0 sm:$0xff]  ;;  %s16223_s24 = sld [smem:[#allocation11_spill]] }
 0x509   :  { %3176 = vadd.xlane.f32.xlu0 %v3175_v18  ;;  %v12995_v4 = vpop.f32.mrb[63].mxu1 }
 0x50a   :  { %16045 = vst [vmem:[#allocation50_spill] sm:$0xff] %v12995_v4 }
 0x576   :  { %v3174_v36 = vpop.xlane.xlu0 %3173 }
 0x577   :  { %v3178_v51 = vmul.f32 0.03125, %v3174_v36 }
 0x579   :  { %v3180_v9 = vadd.f32 1e-05, %v3178_v51 }
 0x57b   :  { %11078 = vrsqrt.f32 %v3180_v9 }
 0x585   :  { %v11079_v39 = vpop.eup %11078 }
 0x586   :  { %v3186_v48 = vrot.slane %v11079_v39, 1  ;;  %v3187_v12 = vrot.slane %v11079_v39, 2  ;;  %v3188_v33 = vrot.slane %v11079_v39, 3  ;;  %v3189_v53 = vrot.slane %v11079_v39, 4 }
 0x587   :  { %v3190_v29 = vrot.slane %v11079_v39, 5  ;;  %v3191_v30 = vrot.slane %v11079_v39, 6  ;;  %v3216_v23 = vmul.f32 %v11079_v39, %v12829_v3  ;;  %v3192_v6 = vrot.slane %v11079_v39, 7 }
 0x588   :  { %v3217_v18 = vmul.f32 %v3186_v48, %v12832_v46  ;;  %v3218_v35 = vmul.f32 %v3187_v12, %v12835_v20  ;;  %v3219_v37 = vmul.f32 %v3188_v33, %v12838_v56  ;;  %v3220_v34 = vmul.f32 %v3189_v53, %v12841_v42 }
 0x589   :  { %v3221_v57 = vmul.f32 %v3190_v29, %v12846_v1  ;;  %v3238_v15 = vmul.f32 %v12998_v50, %v3216_v23  ;;  %v3222_v46 = vmul.f32 %v3191_v30, %v12849_v21  ;;  %v3223_v12 = vmul.f32 %v3192_v6, %v12854_v13 }
 0x58a   :  { %v3239_v36 = vmul.f32 %v12998_v50, %v3217_v18  ;;  %v3240_v51 = vmul.f32 %v12998_v50, %v3218_v35  ;;  %v3241_v3 = vmul.f32 %v12998_v50, %v3219_v37  ;;  %v3242_v9 = vmul.f32 %v12998_v50, %v3220_v34 }
 0x58b   :  { %v3260_v20 = vadd.f32 %v13002_v43, %v3238_v15  ;;  %v3243_v39 = vmul.f32 %v12998_v50, %v3221_v57  ;;  %v3244_v23 = vmul.f32 %v12998_v50, %v3222_v46  ;;  %v3245_v34 = vmul.f32 %v12998_v50, %v3223_v12 }
 0x58c   :  { %v3261_v56 = vadd.f32 %v13002_v43, %v3239_v36  ;;  %v3262_v42 = vadd.f32 %v13002_v43, %v3240_v51  ;;  %v3263_v1 = vadd.f32 %v13002_v43, %v3241_v3  ;;  %v3264_v33 = vadd.f32 %v13002_v43, %v3242_v9  ;;  %v13025_v51 = vpop.f32.mrb[40].mxu0 }
 0x58d   :  { %v3276_v48 = vmax.f32 %v3260_v20, 0.0  ;;  %v3265_v35 = vadd.f32 %v13002_v43, %v3243_v39  ;;  %v3266_v13 = vadd.f32 %v13002_v43, %v3244_v23  ;;  %v13028_v3 = vpop.f32.mrb[41].mxu0 }
 0x58e   :  { %v3277_v53 = vmax.f32 %v3261_v56, 0.0  ;;  %v3278_v29 = vmax.f32 %v3262_v42, 0.0  ;;  %v3279_v21 = vmax.f32 %v3263_v1, 0.0  ;;  %v3280_v15 = vmax.f32 %v3264_v33, 0.0  ;;  %v13030_v20 = vpop.f32.mrb[42].mxu0 }
 0x58f   :  { %v3305_v37 = vpack.c.bf16 %v3276_v48, %v3276_v48  ;;  %v3281_v42 = vmax.f32 %v3265_v35, 0.0  ;;  %v13032_v39 = vpop.f32.mrb[43].mxu0  ;;  %v3267_v48 = vadd.f32 %v13002_v43, %v3245_v34 }
 0x590   :  { %v3306_v30 = vpack.c.bf16 %v3277_v53, %v3277_v53  ;;  %v3307_v18 = vpack.c.bf16 %v3278_v29, %v3278_v29  ;;  %v3308_v6 = vpack.c.bf16 %v3279_v21, %v3279_v21  ;;  %v3309_v12 = vpack.c.bf16 %v3280_v15, %v3280_v15  ;;  %v13037_v16 = vpop.f32.mrb[44].mxu0 }
 0x591   :  { %v3345_v1 = vunpack.c.l.b16 %v3305_v37  ;;  %v3282_v29 = vmax.f32 %v3266_v13, 0.0  ;;  %v3310_v21 = vpack.c.bf16 %v3281_v42, %v3281_v42  ;;  %v3283_v35 = vmax.f32 %v3267_v48, 0.0  ;;  %v13039_v41 = vpop.f32.mrb[45].mxu0 }
 0x592   :  { %v3346_v36 = vunpack.c.l.b16 %v3306_v30  ;;  %v3347_v57 = vunpack.c.l.b16 %v3307_v18  ;;  %v3348_v30 = vunpack.c.l.b16 %v3308_v6  ;;  %v3349_v18 = vunpack.c.l.b16 %v3309_v12  ;;  %v13041_v34 = vpop.f32.mrb[46].mxu0 }
 0x593   :  { %v3311_v37 = vpack.c.bf16 %v3282_v29, %v3282_v29  ;;  %v3350_v15 = vunpack.c.l.b16 %v3310_v21  ;;  %v13044_v13 = vpop.f32.mrb[47].mxu0 }
 0x594   :  { %v3361_v46 = vrot.slane %v3346_v36, 7  ;;  %v3363_v33 = vrot.slane %v3347_v57, 6  ;;  %v3367_v6 = vrot.slane %v3349_v18, 4  ;;  %v13047_v12 = vpop.f32.mrb[48].mxu0 }
 0x596   :  { %v3177_v9 = vpop.xlane.xlu0 %3176  ;;  %v3362_v23 = vsel %vm2598_vm12, %v3361_v46, %v3345_v1  ;;  %v3312_v46 = vpack.c.bf16 %v3283_v35, %v3283_v35  ;;  %v3369_v1 = vrot.slane %v3350_v15, 3 }
 0x597   :  { %v3179_v56 = vmul.f32 0.03125, %v3177_v9  ;;  %v3364_v36 = vsel %vm2600_vm13, %v3363_v33, %v3362_v23  ;;  %v3365_v9 = vrot.slane %v3348_v30, 5  ;;  %v13054_v30 = vpop.f32.mrb[49].mxu0 }
 0x598   :  { %v3352_v33 = vunpack.c.l.b16 %v3312_v46  ;;  %v13056_v35 = vpop.f32.mrb[50].mxu0 }
 0x599   :  { %v3181_v53 = vadd.f32 1e-05, %v3179_v56  ;;  %v3366_v57 = vsel %vm2602_vm14, %v3365_v9, %v3364_v36  ;;  %v3351_v56 = vunpack.c.l.b16 %v3311_v37 }
 0x59a   :  { %v3368_v42 = vsel %vm2604_vm15, %v3367_v6, %v3366_v57  ;;  %v13059_v6 = vpop.f32.mrb[51].mxu0  ;;  %v3373_v4 = vrot.slane %v3352_v33, 1 }
 0x59b   :  { %11080 = vrsqrt.f32 %v3181_v53  ;;  %v13050_v53 = vsel %vm2606_vm3, %v3369_v1, %v3368_v42  ;;  %v13052_v29 = vrot.slane %v3351_v56, 2 }
 0x5a5   :  { %v11081_v48 = vpop.eup %11080 }
 0x5a6   :  { %v3193_v23 = vrot.slane %v11081_v48, 1  ;;  %v3194_v21 = vrot.slane %v11081_v48, 2  ;;  %v3195_v36 = vrot.slane %v11081_v48, 3  ;;  %v3196_v18 = vrot.slane %v11081_v48, 4 }
 0x5a7   :  { %v3197_v37 = vrot.slane %v11081_v48, 5  ;;  %v3198_v9 = vrot.slane %v11081_v48, 6  ;;  %v3199_v15 = vrot.slane %v11081_v48, 7  ;;  %v3224_v57 = vmul.f32 %v11081_v48, %v12905_v63 }
 0x5a8   :  { %v3225_v46 = vmul.f32 %v3193_v23, %v12908_v38  ;;  %v3226_v56 = vmul.f32 %v3194_v21, %v12911_v27  ;;  %v3227_v42 = vmul.f32 %v3195_v36, %v12914_v60  ;;  %v3228_v1 = vmul.f32 %v3196_v18, %v12917_v49  ;;  %v10298_v18 = vpop.f32.mrb[52].mxu0 }
 0x5a9   :  { %v3229_v28 = vmul.f32 %v3197_v37, %v12920_v54  ;;  %v3230_v7 = vmul.f32 %v3198_v9, %v12923_v32  ;;  %v3231_v59 = vmul.f32 %v3199_v15, %v12926_v0  ;;  %v3246_v22 = vmul.f32 %v12998_v50, %v3224_v57  ;;  %v2687_v15 = vpop.f32.mrb[53].mxu0 }
 0x5aa   :  { %v3247_v63 = vmul.f32 %v12998_v50, %v3225_v46  ;;  %v3248_v48 = vmul.f32 %v12998_v50, %v3226_v56  ;;  %v3249_v38 = vmul.f32 %v12998_v50, %v3227_v42  ;;  %v3250_v27 = vmul.f32 %v12998_v50, %v3228_v1  ;;  %v10301_v45 = vpop.f32.mrb[54].mxu0 }
 0x5ab   :  { %v3251_v60 = vmul.f32 %v12998_v50, %v3229_v28  ;;  %v3252_v49 = vmul.f32 %v12998_v50, %v3230_v7  ;;  %v3253_v54 = vmul.f32 %v12998_v50, %v3231_v59  ;;  %v3268_v32 = vadd.f32 %v13002_v43, %v3246_v22 }
 0x5ac   :  { %v3269_v0 = vadd.f32 %v13002_v43, %v3247_v63  ;;  %v3270_v23 = vadd.f32 %v13002_v43, %v3248_v48  ;;  %v3271_v21 = vadd.f32 %v13002_v43, %v3249_v38  ;;  %v3272_v36 = vadd.f32 %v13002_v43, %v3250_v27 }
 0x5ad   :  { %v3273_v37 = vadd.f32 %v13002_v43, %v3251_v60  ;;  %v3274_v9 = vadd.f32 %v13002_v43, %v3252_v49  ;;  %v3275_v28 = vadd.f32 %v13002_v43, %v3253_v54  ;;  %v3284_v7 = vmax.f32 %v3268_v32, 0.0  ;;  %v2697_v43 = vpop.f32.mrb[55].mxu0 }
 0x5ae   :  { %v3285_v59 = vmax.f32 %v3269_v0, 0.0  ;;  %v3286_v50 = vmax.f32 %v3270_v23, 0.0  ;;  %v3287_v22 = vmax.f32 %v3271_v21, 0.0  ;;  %v3288_v57 = vmax.f32 %v3272_v36, 0.0 }
 0x5af   :  { %v3289_v46 = vmax.f32 %v3273_v37, 0.0  ;;  %v3290_v56 = vmax.f32 %v3274_v9, 0.0  ;;  %v3291_v42 = vmax.f32 %v3275_v28, 0.0  ;;  %v3313_v1 = vpack.c.bf16 %v3284_v7, %v3284_v7 }
 0x5b0   :  { %v3314_v63 = vpack.c.bf16 %v3285_v59, %v3285_v59  ;;  %v3315_v48 = vpack.c.bf16 %v3286_v50, %v3286_v50  ;;  %v3316_v38 = vpack.c.bf16 %v3287_v22, %v3287_v22  ;;  %v3317_v27 = vpack.c.bf16 %v3288_v57, %v3288_v57  ;;  %v10304_v22 = vpop.f32.mrb[56].mxu0 }
 0x5b1   :  { %v3318_v60 = vpack.c.bf16 %v3289_v46, %v3289_v46  ;;  %v3319_v19 = vpack.c.bf16 %v3290_v56, %v3290_v56  ;;  %v3320_v49 = vpack.c.bf16 %v3291_v42, %v3291_v42  ;;  %v3353_v21 = vunpack.c.l.b16 %v3313_v1  ;;  %v2707_v42 = vpop.f32.mrb[57].mxu0 }
 0x5b2   :  { %v3354_v54 = vunpack.c.l.b16 %v3314_v63  ;;  %v3355_v32 = vunpack.c.l.b16 %v3315_v48  ;;  %v3356_v0 = vunpack.c.l.b16 %v3316_v38  ;;  %v3357_v23 = vunpack.c.l.b16 %v3317_v27 }
 0x5b3   :  { %v3358_v36 = vunpack.c.l.b16 %v3318_v60  ;;  %v3372_v37 = vsel %vm2608_vm4, %v13052_v29, %v13050_v53  ;;  %v2944_v9 = vsub.f32 %v12965_v52, %v10298_v18  ;;  %v3359_v28 = vunpack.c.l.b16 %v3319_v19 }
 0x5b4   :  { %v3360_v7 = vunpack.c.l.b16 %v3320_v49  ;;  %v3375_v59 = vrot.slane %v3354_v54, 7  ;;  %v3377_v50 = vrot.slane %v3355_v32, 6  ;;  %v3379_v57 = vrot.slane %v3356_v0, 5 }
 0x5b5   :  { %v3381_v33 = vrot.slane %v3357_v23, 4  ;;  %v3383_v46 = vrot.slane %v3358_v36, 3  ;;  %v2961_v56 = vmul.f32 1.442695, %v2944_v9  ;;  %v2943_v1 = vsub.f32 %v12959_v25, %v2687_v15 }
 0x5b6   :  { %v3376_v63 = vsel %vm2598_vm12, %v3375_v59, %v3353_v21  ;;  %v2946_v48 = vsub.f32 %v12963_v2, %v10301_v45  ;;  %v2945_v53 = vsub.f32 %v12957_v62, %v2697_v43  ;;  %v2948_v19 = vsub.f32 %v13032_v39, %v10304_v22  ;;  %v10307_v45 = vpop.f32.mrb[58].mxu0 }
 0x5b7   :  { %v3378_v52 = vsel %vm2600_vm13, %v3377_v50, %v3376_v63  ;;  %11082 = vpow2.f32 %v2961_v56  ;;  %v2947_v29 = vsub.f32 %v13028_v3, %v2707_v42  ;;  %v2959_v38 = vmul.f32 1.442695, %v2943_v1  ;;  %v2717_v39 = vpop.f32.mrb[59].mxu0 }
 0x5b8   :  { %v3380_v18 = vsel %vm2602_vm14, %v3379_v57, %v3378_v52  ;;  %v2965_v27 = vmul.f32 1.442695, %v2946_v48  ;;  %v2963_v60 = vmul.f32 1.442695, %v2945_v53  ;;  %v3385_v54 = vrot.slane %v3359_v28, 2  ;;  %v10310_v36 = vpop.f32.mrb[60].mxu0 }
 0x5b9   :  { %v3382_v49 = vsel %vm2604_vm15, %v3381_v33, %v3380_v18  ;;  %v3387_v25 = vrot.slane %v3360_v7, 1  ;;  %v2969_v15 = vmul.f32 1.442695, %v2948_v19  ;;  %11084 = vpow2.f32 %v2959_v38  ;;  %v2727_v59 = vpop.f32.mrb[61].mxu0 }
 0x5ba   :  { %v3384_v62 = vsel %vm2606_vm3, %v3383_v46, %v3382_v49  ;;  %v2967_v2 = vmul.f32 1.442695, %v2947_v29  ;;  %v2950_v43 = vsub.f32 %v13030_v20, %v10307_v45  ;;  %11086 = vpow2.f32 %v2965_v27 }
 0x5bb   :  { %v3386_v3 = vsel %vm2608_vm4, %v3385_v54, %v3384_v62  ;;  %v2949_v32 = vsub.f32 %v13025_v51, %v2717_v39  ;;  %v3374_v0 = vsel %vm15968_vm5, %v3373_v4, %v3372_v37  ;;  %11088 = vpow2.f32 %v2963_v60  ;;  %v10313_v37 = vpop.f32.mrb[62].mxu0 }
 0x5bc   :  { %v3388_v23 = vsel %vm15968_vm5, %v3387_v25, %v3386_v3  ;;  %v2973_v21 = vmul.f32 1.442695, %v2950_v43  ;;  %11090 = vpow2.f32 %v2969_v15  ;;  %v2952_v7 = vsub.f32 %v13044_v13, %v10310_v36  ;;  %v2737_v57 = vpop.f32.mrb[63].mxu0 }
 0x5bd   :  { %v3389_v9 = vpack.c.b16 %v3388_v23, %v3374_v0  ;;  %v2971_v28 = vmul.f32 1.442695, %v2949_v32  ;;  %11092 = vpow2.f32 %v2967_v2  ;;  %v2951_v20 = vsub.f32 %v13039_v41, %v2727_v59  ;;  %v10316_v42 = vpop.f32.mrb[64].mxu0  ;;  %v16061_v23 = vld [vmem:[#allocation50_spill] sm:$0xff] }
 0x5be   :  { %11094 = vpow2.f32 %v2973_v21  ;;  %v2977_v51 = vmul.f32 1.442695, %v2952_v7  ;;  %v2954_v22 = vsub.f32 %v13041_v34, %v10313_v37  ;;  %v2953_v13 = vsub.f32 %v13037_v16, %v2737_v57  ;;  %v2747_v53 = vpop.f32.mrb[65].mxu0  ;;  %v3297_v21 = vld [vmem:[%s11619_s12] sm:$0xff] }
 0x5bf   :  { %10353 = vmatmul.mubr.msk.bf16.vlgmr.msra.gmra.mrb[68].mxu0 %vm15973_vm9, %v3389_v9  ;;  %11096 = vpow2.f32 %v2971_v28  ;;  %v2975_v4 = vmul.f32 1.442695, %v2951_v20  ;;  %v2956_v48 = vsub.f32 %v13059_v6, %v10316_v42  ;;  %v10319_v27 = vpop.f32.mrb[66].mxu0  ;;  %v3299_v9 = vld [vmem:[%s11619_s12 + $0x10] sm:$0xff]  ;;  %v3300_v28 = vld [vmem:[%s11619_s12 + $0x18] sm:$0xff] }
 0x5c0   :  { %11098 = vpow2.f32 %v2977_v51  ;;  %v2981_v46 = vmul.f32 1.442695, %v2954_v22  ;;  %v2979_v56 = vmul.f32 1.442695, %v2953_v13  ;;  %v2757_v49 = vpop.f32.mrb[67].mxu0  ;;  %v16063_v22 = vld [vmem:[#allocation21_spill] sm:$0xff] }
 0x5c1   :  { %v11083_v50 = vpop.eup %11082  ;;  %11100 = vpow2.f32 %v2975_v4  ;;  %v2985_v29 = vmul.f32 1.442695, %v2956_v48  ;;  %v2957_v54 = vsub.f32 %v13047_v12, %v2757_v49 }
 0x5c2   :  { %v13108_v33 = vmul.f32 %v11083_v50, %v12961_v8  ;;  %11102 = vpow2.f32 %v2981_v46  ;;  %v2955_v8 = vsub.f32 %v13054_v30, %v2747_v53 }
 0x5c3   :  { %v11085_v41 = vpop.eup %11084  ;;  %11104 = vpow2.f32 %v2979_v56  ;;  %v2987_v62 = vmul.f32 1.442695, %v2957_v54 }
 0x5c4   :  { %16046 = vst [vmem:[#allocation51_spill] sm:$0xff] %v13108_v33  ;;  %v11087_v63 = vpop.eup %11086  ;;  %v13112_v1 = vmul.f32 %v11085_v41, %v12967_v11  ;;  %v2983_v38 = vmul.f32 1.442695, %v2955_v8  ;;  %11106 = vpow2.f32 %v2985_v29 }
 0x5c5   :  { %v11089_v34 = vpop.eup %11088  ;;  %v13116_v52 = vmul.f32 %v11087_v63, %v12969_v55  ;;  %v2958_v55 = vsub.f32 %v13056_v35, %v10319_v27 }
 0x5c6   :  { %16047 = vst [vmem:[#allocation47_spill] sm:$0xff] %v13112_v1  ;;  %v11091_v16 = vpop.eup %11090  ;;  %v13120_v19 = vmul.f32 %v11089_v34, %v12971_v14  ;;  %11108 = vpow2.f32 %v2983_v38 }
 0x5c7   :  { %16048 = vst [vmem:[#allocation17_spill] sm:$0xff] %v13116_v52  ;;  %v11093_v18 = vpop.eup %11092  ;;  %v13123_v11 = vmul.f32 %v11091_v16, %v12973_v26  ;;  %v2989_v26 = vmul.f32 1.442695, %v2958_v55 }
 0x5c8   :  { %16049 = vst [vmem:[#allocation18_spill] sm:$0xff] %v13120_v19  ;;  %v11095_v6 = vpop.eup %11094  ;;  %v13126_v60 = vmul.f32 %v11093_v18, %v12975_v5 }
 0x5c9   :  { %16050 = vst [vmem:[#allocation20_spill] sm:$0xff] %v13123_v11  ;;  %v11097_v30 = vpop.eup %11096  ;;  %v13130_v14 = vmul.f32 %v11095_v6, %v12977_v40  ;;  %11110 = vpow2.f32 %v2989_v26 }
 0x5ca   :  { %16051 = vst [vmem:[#allocation19_spill] sm:$0xff] %v13126_v60  ;;  %v11099_v25 = vpop.eup %11098  ;;  %v13134_v15 = vmul.f32 %v11097_v30, %v12979_v31  ;;  %11112 = vpow2.f32 %v2987_v62  ;;  %v16064_v62 = vld [vmem:[#allocation22_spill] sm:$0xff] }
 0x5cb   :  { %16052 = vst [vmem:[#allocation58_spill] sm:$0xff] %v13130_v14  ;;  %v11101_v45 = vpop.eup %11100  ;;  %v13137_v5 = vmul.f32 %v11099_v25, %v12981_v47 }
 0x5cc   :  { %16053 = vst [vmem:[#allocation59_spill] sm:$0xff] %v13134_v15  ;;  %v13140_v35 = vmul.f32 %v11101_v45, %v12983_v58  ;;  %v11103_v40 = vpop.eup %11102 }
 0x5cd   :  { %16054 = vst [vmem:[#allocation60_spill] sm:$0xff] %v13137_v5  ;;  %v11105_v12 = vpop.eup %11104  ;;  %v13143_v2 = vmul.f32 %v11103_v40, %v12985_v10 }
 0x5ce   :  { %16055 = vst [vmem:[#allocation61_spill] sm:$0xff] %v13140_v35  ;;  %v13146_v31 = vmul.f32 %v11105_v12, %v12987_v17  ;;  %v11107_v43 = vpop.eup %11106  ;;  %v3298_v17 = vld [vmem:[%s11619_s12 + $0x8] sm:$0xff]  ;;  %s11537_s12 = smov 4  }
 0x5cf   :  { %16056 = vst [vmem:[#allocation62_spill] sm:$0xff] %v13143_v2  ;;  %v13149_v39 = vmul.f32 %v11107_v43, %v12989_v61  ;;  %v13162_v36 = vpack.c.bf16 %v3298_v17, %v3297_v21  ;;  %v13167_v61 = vpack.c.bf16 %v3300_v28, %v3299_v9 }
 0x5d0   :  { %16057 = vst [vmem:[#allocation63_spill] sm:$0xff] %v13146_v31  ;;  %v11109_v47 = vpop.eup %11108 }
 0x5d1   :  { %16058 = vst [vmem:[#allocation64_spill] sm:$0xff] %v13149_v39  ;;  %v13152_v58 = vmul.f32 %v11109_v47, %v12991_v24  ;;  %10356 = vmatprep.subr.bf16.mxu0 %v13162_v36  ;;  %v9450_v24 = vld [vmem:[%s11614_s6] ss:$0 sm:$0xff]  ;;  %s11536_s6 = smov 104  }
 0x5d2   :  { %10357 = vmatpush3.bf16.msra.mxu0 %v13162_v36 }
 0x5d3   :  { %16059 = vst [vmem:[#allocation65_spill] sm:$0xff] %v13152_v58  ;;  %v11111_v3 = vpop.eup %11110  ;;  %10358 = vmatprep.subr.bf16.mxu0 %v13167_v61 }
 0x5d4   :  { %v11113_v32 = vpop.eup %11112  ;;  %v13155_v0 = vmul.f32 %v11111_v3, %v12993_v44 }
 0x5d5   :  { %v13158_v10 = vmul.f32 %v11113_v32, %v16061_v23 }
 0x5d6   :  { %16060 = vst [vmem:[#allocation66_spill] sm:$0xff] %v13155_v0  ;;  %10359 = vmatpush3.bf16.msra.mxu0 %v13167_v61 }
 0x5d7   :  { %16062 = vst [vmem:[#allocation50_spill] sm:$0xff] %v13158_v10 }
 0x692   :  { %v3427_v44 = vpop.f32.mrb[68].mxu0 }
 0x693   :  { %v13173_v7 = vadd.f32 %v9450_v24, %v3427_v44  ;;  %v10354_v59 = vpop.f32.mrb[69].mxu0 }
 0x694   :  { %v3430_v20 = vpop.f32.mrb[70].mxu0 }
 0x695   :  { %v13175_v51 = vadd.f32 %v9450_v24, %v3430_v20  ;;  %3614 = vrot.lane.b32.xlu1 %v13173_v7, %s11531_s0  ;;  %v10355_v4 = vpop.f32.mrb[71].mxu0  ;;  %v3436_v50 = vcombine.high %v13173_v7, %v13173_v7  ;;  %v3443_v57 = vrot.slane %v13173_v7, %v16063_v22 }
 0x697   :  { %3616 = vrot.lane.b32.xlu0 %v13175_v51, %s11531_s0  ;;  %v13183_v37 = vpack.c.bf16 %v13175_v51, %v13173_v7  ;;  %v3450_v13 = vrot.slane %v3436_v50, %v16063_v22  ;;  %v3492_v46 = vrot.slane %v13175_v51, %v16063_v22  ;;  %v3485_v41 = vcombine.high %v13175_v51, %v13175_v51 }
 0x698   :  { %v3451_v56 = vcombine.high %v3443_v57, %v3443_v57  ;;  %v3459_v53 = vrot.slane %v3443_v57, %v16063_v22 }
 0x699   :  { %10840 = vmatprep.subr.bf16.mxu0 %v13183_v37  ;;  %v3452_v42 = vcombine.high %v3450_v13, %v3450_v13  ;;  %v3500_v63 = vcombine.high %v3492_v46, %v3492_v46  ;;  %v3499_v48 = vrot.slane %v3485_v41, %v16063_v22  ;;  %v3466_v34 = vrot.slane %v3450_v13, %v16063_v22 }
 0x69a   :  { %v3473_v8 = vrot.slane %v3451_v56, %v16063_v22  ;;  %v3508_v29 = vrot.slane %v3492_v46, %v16063_v22  ;;  %v3481_v6 = vcombine.high %v3459_v53, %v3459_v53  ;;  %v3537_v12 = vrot.slane %v3459_v53, %v16064_v62 }
 0x69b   :  { %v3480_v16 = vrot.slane %v3452_v42, %v16063_v22  ;;  %v3522_v18 = vrot.slane %v3500_v63, %v16063_v22  ;;  %v3515_v38 = vrot.slane %v3499_v48, %v16063_v22  ;;  %v3501_v27 = vcombine.high %v3499_v48, %v3499_v48 }
 0x69c   :  { %v3482_v55 = vcombine.high %v3466_v34, %v3466_v34  ;;  %v3483_v49 = vcombine.high %v3473_v8, %v3473_v8  ;;  %v3530_v54 = vcombine.high %v3508_v29, %v3508_v29  ;;  %v3545_v40 = vrot.slane %v3481_v6, %v16064_v62 }
 0x69d   :  { %v3484_v30 = vcombine.high %v3480_v16, %v3480_v16  ;;  %v3532_v25 = vcombine.high %v3522_v18, %v3522_v18  ;;  %v3531_v26 = vcombine.high %v3515_v38, %v3515_v38  ;;  %v13204_v45 = vrot.slane %v3501_v27, %v16063_v22 }
 0x69e   :  { %v3553_v43 = vrot.slane %v3466_v34, %v16064_v62  ;;  %v3541_v47 = vrot.slane %v3473_v8, %v16064_v62  ;;  %v3561_v3 = vrot.slane %v3482_v55, %v16064_v62  ;;  %v3549_v32 = vrot.slane %v3483_v49, %v16064_v62 }
 0x69f   :  { %v13213_v23 = vrot.slane %v3480_v16, %v16064_v62  ;;  %v13216_v21 = vrot.slane %v3508_v29, %v16064_v62  ;;  %v13219_v17 = vrot.slane %v3484_v30, %v16064_v62  ;;  %v13222_v9 = vrot.slane %v3530_v54, %v16064_v62 }
 0x6a0   :  { %v13225_v28 = vrot.slane %v3522_v18, %v16064_v62  ;;  %v13228_v24 = vrot.slane %v3515_v38, %v16064_v62  ;;  %v13233_v59 = vrot.slane %v3532_v25, %v16064_v62  ;;  %v13236_v20 = vrot.slane %v3531_v26, %v16064_v62 }
 0x6a1   :  { %v13240_v4 = vrot.slane %v13204_v45, %v16064_v62 }
 0x707   :  { %v13230_v44 = vpop.permute.xlu1 %3614 }
 0x708   :  { %v3624_v57 = vadd.f32 %v13230_v44, %v3545_v40  ;;  %v3620_v13 = vadd.f32 %v13230_v44, %v3537_v12  ;;  %v3628_v46 = vadd.f32 %v13230_v44, %v3553_v43  ;;  %v3622_v41 = vadd.f32 %v13230_v44, %v3541_v47 }
 0x709   :  { %v13248_v56 = vpop.permute.xlu0 %3616  ;;  %v3632_v42 = vadd.f32 %v13230_v44, %v3561_v3  ;;  %v3626_v63 = vadd.f32 %v13230_v44, %v3549_v32  ;;  %v3630_v48 = vadd.f32 %v13230_v44, %v13213_v23  ;;  %v13256_v53 = vadd.f32 %v13230_v44, %v13216_v21 }
 0x70a   :  { %v3625_v34 = vadd.f32 %v13248_v56, %v3545_v40  ;;  %vm3656_vm7 = vcmp.gt.f32.partialorder %v3624_v57, 0.0  ;;  %v3688_v8 = vmul.f32 0.2, %v3624_v57  ;;  %v3621_v16 = vadd.f32 %v13248_v56, %v3537_v12 }
 0x70b   :  { %vm3652_vm8 = vcmp.gt.f32.partialorder %v3620_v13, 0.0  ;;  %v3684_v29 = vmul.f32 0.2, %v3620_v13  ;;  %v3629_v18 = vadd.f32 %v13248_v56, %v3553_v43  ;;  %vm3660_vm2 = vcmp.gt.f32.partialorder %v3628_v46, 0.0 }
 0x70c   :  { %vm3657_vm11 = vcmp.gt.f32.partialorder %v3625_v34, 0.0  ;;  %v3689_v38 = vmul.f32 0.2, %v3625_v34  ;;  %v3720_v27 = vsel %vm3656_vm7, %v3624_v57, %v3688_v8  ;;  %vm3653_vm0 = vcmp.gt.f32.partialorder %v3621_v16, 0.0 }
 0x70d   :  { %v3685_v6 = vmul.f32 0.2, %v3621_v16  ;;  %v3716_v55 = vsel %vm3652_vm8, %v3620_v13, %v3684_v29  ;;  %vm3661_vm6 = vcmp.gt.f32.partialorder %v3629_v18, 0.0  ;;  %v3692_v49 = vmul.f32 0.2, %v3628_v46 }
 0x70e   :  { %v3721_v30 = vsel %vm3657_vm11, %v3625_v34, %v3689_v38  ;;  %v3693_v54 = vmul.f32 0.2, %v3629_v18  ;;  %v3623_v25 = vadd.f32 %v13248_v56, %v3541_v47  ;;  %vm3654_vm1 = vcmp.gt.f32.partialorder %v3622_v41, 0.0 }
 0x70f   :  { %v3750_v26 = vpack.c.bf16 %v3721_v30, %v3720_v27  ;;  %v3717_v40 = vsel %vm3653_vm0, %v3621_v16, %v3685_v6  ;;  %v3724_v12 = vsel %vm3660_vm2, %v3628_v46, %v3692_v49  ;;  %v3686_v50 = vmul.f32 0.2, %v3622_v41 }
 0x710   :  { %v3748_v10 = vpack.c.bf16 %v3717_v40, %v3716_v55  ;;  %v3725_v43 = vsel %vm3661_vm6, %v3629_v18, %v3693_v54  ;;  %vm3655_vm5 = vcmp.gt.f32.partialorder %v3623_v25, 0.0  ;;  %v3687_v0 = vmul.f32 0.2, %v3623_v25 }
 0x711   :  { %3786 = vrot.lane.b32.xlu0 %v3750_v26, %s11534_s25  ;;  %v3752_v57 = vpack.c.bf16 %v3725_v43, %v3724_v12  ;;  %v3718_v8 = vsel %vm3654_vm1, %v3622_v41, %v3686_v50  ;;  %v3633_v13 = vadd.f32 %v13248_v56, %v3561_v3  ;;  %vm3664_vm7 = vcmp.gt.f32.partialorder %v3632_v42, 0.0 }
 0x712   :  { %3782 = vrot.lane.b32.xlu1 %v3748_v10, %s11534_s25  ;;  %v3719_v34 = vsel %vm3655_vm5, %v3623_v25, %v3687_v0  ;;  %v3696_v47 = vmul.f32 0.2, %v3632_v42  ;;  %v3627_v29 = vadd.f32 %v13248_v56, %v3549_v32  ;;  %vm3658_vm8 = vcmp.gt.f32.partialorder %v3626_v63, 0.0 }
 0x713   :  { %v3749_v46 = vpack.c.bf16 %v3719_v34, %v3718_v8  ;;  %vm3665_vm2 = vcmp.gt.f32.partialorder %v3633_v13, 0.0  ;;  %v3697_v16 = vmul.f32 0.2, %v3633_v13  ;;  %v3690_v18 = vmul.f32 0.2, %v3626_v63 }
 0x714   :  { %v3728_v38 = vsel %vm3664_vm7, %v3632_v42, %v3696_v47  ;;  %vm3659_vm11 = vcmp.gt.f32.partialorder %v3627_v29, 0.0  ;;  %v3691_v27 = vmul.f32 0.2, %v3627_v29  ;;  %v3631_v50 = vadd.f32 %v13248_v56, %v13213_v23 }
 0x715   :  { %3790 = vrot.lane.b32.xlu0 %v3752_v57, %s11534_s25  ;;  %v3729_v3 = vsel %vm3665_vm2, %v3633_v13, %v3697_v16  ;;  %v3722_v41 = vsel %vm3658_vm8, %v3626_v63, %v3690_v18  ;;  %vm3662_vm1 = vcmp.gt.f32.partialorder %v3630_v48, 0.0  ;;  %v3694_v0 = vmul.f32 0.2, %v3630_v48 }
 0x716   :  { %3784 = vrot.lane.b32.xlu1 %v3749_v46, %s11534_s25  ;;  %v3754_v10 = vpack.c.bf16 %v3729_v3, %v3728_v38  ;;  %v3723_v32 = vsel %vm3659_vm11, %v3627_v29, %v3691_v27  ;;  %vm3663_vm5 = vcmp.gt.f32.partialorder %v3631_v50, 0.0  ;;  %v3695_v6 = vmul.f32 0.2, %v3631_v50 }
 0x717   :  { %v3751_v55 = vpack.c.bf16 %v3723_v32, %v3722_v41  ;;  %v3726_v49 = vsel %vm3662_vm1, %v3630_v48, %v3694_v0  ;;  %v3637_v42 = vadd.f32 %v13248_v56, %v13216_v21  ;;  %vm3668_vm0 = vcmp.gt.f32.partialorder %v13256_v53, 0.0 }
 0x718   :  { %v3727_v23 = vsel %vm3663_vm5, %v3631_v50, %v3695_v6  ;;  %v3700_v30 = vmul.f32 0.2, %v13256_v53  ;;  %v3634_v63 = vadd.f32 %v13230_v44, %v13219_v17  ;;  %v3635_v54 = vadd.f32 %v13248_v56, %v13219_v17 }
 0x719   :  { %3794 = vrot.lane.b32.xlu0 %v3754_v10, %s11534_s25  ;;  %v3753_v25 = vpack.c.bf16 %v3727_v23, %v3726_v49  ;;  %vm3669_vm6 = vcmp.gt.f32.partialorder %v3637_v42, 0.0  ;;  %v3701_v26 = vmul.f32 0.2, %v3637_v42  ;;  %v3640_v48 = vadd.f32 %v13230_v44, %v13222_v9 }
 0x71a   :  { %3788 = vrot.lane.b32.xlu1 %v3751_v55, %s11534_s25  ;;  %v3732_v21 = vsel %vm3668_vm0, %v13256_v53, %v3700_v30  ;;  %vm3666_vm7 = vcmp.gt.f32.partialorder %v3634_v63, 0.0  ;;  %vm3667_vm8 = vcmp.gt.f32.partialorder %v3635_v54, 0.0  ;;  %v3698_v40 = vmul.f32 0.2, %v3634_v63 }
 0x71b   :  { %v3733_v12 = vsel %vm3669_vm6, %v3637_v42, %v3701_v26  ;;  %v3699_v43 = vmul.f32 0.2, %v3635_v54  ;;  %v3641_v17 = vadd.f32 %v13248_v56, %v13222_v9  ;;  %vm3672_vm2 = vcmp.gt.f32.partialorder %v3640_v48, 0.0 }
 0x71c   :  { %v3756_v57 = vpack.c.bf16 %v3733_v12, %v3732_v21  ;;  %v3730_v8 = vsel %vm3666_vm7, %v3634_v63, %v3698_v40  ;;  %v3704_v13 = vmul.f32 0.2, %v3640_v48  ;;  %v3638_v34 = vadd.f32 %v13230_v44, %v13225_v28 }
 0x71d   :  { %v3731_v47 = vsel %vm3667_vm8, %v3635_v54, %v3699_v43  ;;  %vm3673_vm11 = vcmp.gt.f32.partialorder %v3641_v17, 0.0  ;;  %v3705_v29 = vmul.f32 0.2, %v3641_v17  ;;  %v3639_v53 = vadd.f32 %v13248_v56, %v13225_v28 }
 0x71e   :  { %3792 = vrot.lane.b32.xlu1 %v3753_v25, %s11534_s25  ;;  %3798 = vrot.lane.b32.xlu0 %v3756_v57, %s11534_s25  ;;  %v3755_v46 = vpack.c.bf16 %v3731_v47, %v3730_v8  ;;  %v3736_v16 = vsel %vm3672_vm2, %v3640_v48, %v3704_v13  ;;  %vm3670_vm1 = vcmp.gt.f32.partialorder %v3638_v34, 0.0  ;;  %v3702_v9 = vmul.f32 0.2, %v3638_v34 }
 0x71f   :  { %v3737_v18 = vsel %vm3673_vm11, %v3641_v17, %v3705_v29  ;;  %vm3671_vm5 = vcmp.gt.f32.partialorder %v3639_v53, 0.0  ;;  %v3703_v38 = vmul.f32 0.2, %v3639_v53  ;;  %v3644_v27 = vadd.f32 %v13230_v44, %v13228_v24 }
 0x720   :  { %v3758_v50 = vpack.c.bf16 %v3737_v18, %v3736_v16  ;;  %v3734_v3 = vsel %vm3670_vm1, %v3638_v34, %v3702_v9  ;;  %v3645_v41 = vadd.f32 %v13248_v56, %v13228_v24  ;;  %v3642_v28 = vadd.f32 %v13230_v44, %v13233_v59 }
 0x721   :  { %v3735_v0 = vsel %vm3671_vm5, %v3639_v53, %v3703_v38  ;;  %vm3676_vm0 = vcmp.gt.f32.partialorder %v3644_v27, 0.0  ;;  %v3708_v10 = vmul.f32 0.2, %v3644_v27  ;;  %v3643_v32 = vadd.f32 %v13248_v56, %v13233_v59 }
 0x722   :  { %3796 = vrot.lane.b32.xlu1 %v3755_v46, %s11534_s25  ;;  %3802 = vrot.lane.b32.xlu0 %v3758_v50, %s11534_s25  ;;  %v3757_v6 = vpack.c.bf16 %v3735_v0, %v3734_v3  ;;  %vm3677_vm6 = vcmp.gt.f32.partialorder %v3645_v41, 0.0  ;;  %v3709_v55 = vmul.f32 0.2, %v3645_v41  ;;  %vm3674_vm7 = vcmp.gt.f32.partialorder %v3642_v28, 0.0 }
 0x723   :  { %v3740_v49 = vsel %vm3676_vm0, %v3644_v27, %v3708_v10  ;;  %vm3675_vm8 = vcmp.gt.f32.partialorder %v3643_v32, 0.0  ;;  %v3706_v24 = vmul.f32 0.2, %v3642_v28  ;;  %v3707_v42 = vmul.f32 0.2, %v3643_v32 }
 0x724   :  { %v3741_v23 = vsel %vm3677_vm6, %v3645_v41, %v3709_v55  ;;  %v3648_v30 = vadd.f32 %v13230_v44, %v13236_v20  ;;  %v3649_v63 = vadd.f32 %v13248_v56, %v13236_v20  ;;  %v3646_v59 = vadd.f32 %v13230_v44, %v13240_v4 }
 0x725   :  { %v3760_v54 = vpack.c.bf16 %v3741_v23, %v3740_v49  ;;  %v3739_v25 = vsel %vm3675_vm8, %v3643_v32, %v3707_v42  ;;  %v3647_v26 = vadd.f32 %v13248_v56, %v13240_v4  ;;  %v16065_v48 = vcombine.high %v13204_v45, %v13204_v45 }
 0x726   :  { %3800 = vrot.lane.b32.xlu1 %v3757_v6, %s11534_s25  ;;  %v3738_v40 = vsel %vm3674_vm7, %v3642_v28, %v3706_v24  ;;  %vm3680_vm2 = vcmp.gt.f32.partialorder %v3648_v30, 0.0  ;;  %vm3681_vm11 = vcmp.gt.f32.partialorder %v3649_v63, 0.0  ;;  %v3712_v12 = vmul.f32 0.2, %v3648_v30 }
 0x727   :  { %v3597_v21 = vrot.slane %v16065_v48, %v16064_v62  ;;  %3806 = vrot.lane.b32.xlu0 %v3760_v54, %s11534_s25  ;;  %v3759_v20 = vpack.c.bf16 %v3739_v25, %v3738_v40  ;;  %v3713_v43 = vmul.f32 0.2, %v3649_v63  ;;  %vm3679_vm1 = vcmp.gt.f32.partialorder %v3647_v26, 0.0  ;;  %v11378_v25 = vld [vmem:[%s11564_s17] sm:$0xff]  ;;  %v11380_v48 = vld [vmem:[%s11564_s17 + $0x10] sm:$0xff] }
 0x728   :  { %v3710_v17 = vmul.f32 0.2, %v3646_v59  ;;  %vm3678_vm5 = vcmp.gt.f32.partialorder %v3646_v59, 0.0  ;;  %v3711_v57 = vmul.f32 0.2, %v3647_v26  ;;  %v3744_v45 = vsel %vm3680_vm2, %v3648_v30, %v3712_v12  ;;  %v11382_v40 = vld [vmem:[%s11564_s17 + $0x20] sm:$0xff] }
 0x729   :  { %v3650_v4 = vadd.f32 %v13230_v44, %v3597_v21  ;;  %v3651_v8 = vadd.f32 %v13248_v56, %v3597_v21  ;;  %v3745_v13 = vsel %vm3681_vm11, %v3649_v63, %v3713_v43  ;;  %v10972_v44 = vpack.i.bf16 %v13175_v51, %v13173_v7  ;;  %v11381_v21 = vld [vmem:[%s11564_s17 + $0x18] sm:$0xff]  ;;  %v11383_v12 = vld [vmem:[%s11564_s17 + $0x28] sm:$0xff] }
 0x72a   :  { %3804 = vrot.lane.b32.xlu1 %v3759_v20, %s11534_s25  ;;  %v3762_v34 = vpack.c.bf16 %v3745_v13, %v3744_v45  ;;  %v3743_v47 = vsel %vm3679_vm1, %v3647_v26, %v3711_v57  ;;  %v3742_v29 = vsel %vm3678_vm5, %v3646_v59, %v3710_v17  ;;  %v11379_v26 = vld [vmem:[%s11564_s17 + $0x8] sm:$0xff]  ;;  %v11384_v20 = vld [vmem:[%s11564_s17 + $0x30] sm:$0xff]  ;;  %v11385_v43 = vld [vmem:[%s11564_s17 + $0x38] sm:$0xff]  ;;  %vm16067_vm7 = vcmask 1043456  }
 0x72b   :  { %vm3683_vm0 = vcmp.gt.f32.partialorder %v3651_v8, 0.0  ;;  %v3714_v53 = vmul.f32 0.2, %v3650_v4  ;;  %v3715_v46 = vmul.f32 0.2, %v3651_v8  ;;  %v3761_v16 = vpack.c.bf16 %v3743_v47, %v3742_v29  ;;  %v11386_v17 = vld [vmem:[%s11564_s17 + $0x40] sm:$0xff]  ;;  %vm16068_vm8 = vmmov %vm16067_vm7 }
 0x72c   :  { %3810 = vrot.lane.b32.xlu0 %v3762_v34, %s11534_s25  ;;  %vm3682_vm6 = vcmp.gt.f32.partialorder %v3650_v4, 0.0  ;;  %v11387_v57 = vld [vmem:[%s11564_s17 + $0x48] sm:$0xff]  ;;  %v11390_v45 = vld [vmem:[%s11564_s17 + $0x60] sm:$0xff]  ;;  %v11392_v34 = vld [vmem:[%s11564_s17 + $0x70] sm:$0xff]  ;;  %vm16069_vm2 = vcmask 31744  }
 0x72d   :  { %v3747_v9 = vsel %vm3683_vm0, %v3651_v8, %v3715_v46  ;;  %v3746_v56 = vsel %vm3682_vm6, %v3650_v4, %v3714_v53  ;;  %v11388_v4 = vld [vmem:[%s11564_s17 + $0x50] sm:$0xff]  ;;  %v11389_v8 = vld [vmem:[%s11564_s17 + $0x58] sm:$0xff]  ;;  %v11391_v13 = vld [vmem:[%s11564_s17 + $0x68] sm:$0xff] }
 0x72e   :  { %3808 = vrot.lane.b32.xlu1 %v3761_v16, %s11534_s25  ;;  %v3763_v18 = vpack.c.bf16 %v3747_v9, %v3746_v56  ;;  %v11393_v47 = vld [vmem:[%s11564_s17 + $0x78] sm:$0xff]  ;;  %v11394_v29 = vld [vmem:[%s11559_s13] sm:$0xff]  ;;  %v11395_v53 = vld [vmem:[%s11559_s13 + $0x8] sm:$0xff] }
 0x72f   :  { %v11396_v46 = vld [vmem:[%s11559_s13 + $0x10] sm:$0xff]  ;;  %v11397_v16 = vld [vmem:[%s11559_s13 + $0x18] sm:$0xff]  ;;  %v11398_v9 = vld [vmem:[%s11559_s13 + $0x20] sm:$0xff] }
 0x730   :  { %10973 = vrot.lane.b32.xlu0 %v10972_v44, %s11534_s25  ;;  %v11399_v44 = vld [vmem:[%s11559_s13 + $0x28] sm:$0xff]  ;;  %v11400_v56 = vld [vmem:[%s11559_s13 + $0x30] sm:$0xff]  ;;  %vm16070_vm11 = vmmov %vm16069_vm2 }
 0x731   :  { %vm16071_vm1 = vmmov %vm16069_vm2 }
 0x732   :  { %3812 = vrot.lane.b32.xlu1 %v3763_v18, %s11534_s25  ;;  %v11401_v18 = vld [vmem:[%s11559_s13 + $0x38] sm:$0xff]  ;;  %vm16072_vm5 = vmmov %vm16071_vm1 }
 0x733   :  { %vm16073_vm0 = vmmov %vm16071_vm1 }
 0x734   :  { %vm16074_vm6 = vmmov %vm16073_vm0 }
 0x783   :  { %v3787_v38 = vpop.permute.xlu0 %3786 }
 0x784   :  { %v3783_v27 = vpop.permute.xlu1 %3782 }
 0x785   :  { %10360 = vmatprep.mubr.msk.bf16.mxu0 %vm15973_vm9, %v3783_v27  ;;  %v11403_v27 = vld [vmem:[%s11559_s13 + $0x48] sm:$0xff] }
 0x787   :  { %v3791_v50 = vpop.permute.xlu0 %3790 }
 0x788   :  { %v3785_v3 = vpop.permute.xlu1 %3784 }
 0x789   :  { %10361 = vmatmul.mubr.msk.bf16.vlgmr.msra.gmra.mrb[72].mxu0 %vm15973_vm9, %v3785_v3  ;;  %v11405_v3 = vld [vmem:[%s11559_s13 + $0x58] sm:$0xff] }
 0x78a   :  { %10842 = vmatpush3.bf16.msra.mxu0 %v13183_v37  ;;  %10364 = vmatprep.mubr.msk.bf16.mxu0 %vm15973_vm9, %v3787_v38  ;;  %v11402_v38 = vld [vmem:[%s11559_s13 + $0x40] sm:$0xff] }
 0x78b   :  { %v3795_v41 = vpop.permute.xlu0 %3794 }
 0x78c   :  { %v3789_v28 = vpop.permute.xlu1 %3788 }
 0x790   :  { %v3799_v0 = vpop.permute.xlu0 %3798  ;;  %v3793_v32 = vpop.permute.xlu1 %3792 }
 0x791   :  { %10365 = vmatmul.mubr.msk.bf16.gmra.mrb[76].mxu0 %vm15973_vm9, %v3789_v28  ;;  %v11407_v28 = vld [vmem:[%s11559_s13 + $0x68] sm:$0xff] }
 0x792   :  { %10368 = vmatprep.mubr.msk.bf16.mxu0 %vm15973_vm9, %v3791_v50  ;;  %v11404_v50 = vld [vmem:[%s11559_s13 + $0x50] sm:$0xff] }
 0x794   :  { %v3803_v10 = vpop.permute.xlu0 %3802  ;;  %v3797_v49 = vpop.permute.xlu1 %3796 }
 0x798   :  { %v3801_v30 = vpop.permute.xlu1 %3800 }
 0x799   :  { %v3807_v6 = vpop.permute.xlu0 %3806  ;;  %10369 = vmatmul.mubr.msk.bf16.gmra.mrb[80].mxu0 %vm15973_vm9, %v3793_v32  ;;  %v3301_v32 = vld [vmem:[%s16066_s9] sm:$0xf] }
 0x79a   :  { %10372 = vmatprep.mubr.msk.bf16.mxu0 %vm15973_vm9, %v3795_v41  ;;  %v11406_v41 = vld [vmem:[%s11559_s13 + $0x60] sm:$0xff]  ;;  %10392 = vmatprep.subr.msk.mxu1 %vm16067_vm7, %v3301_v32  ;;  %vm16075_vm7 = vmmov %vm16073_vm0 }
 0x79b   :  { %10393 = vmatpush3.msk.msra.mxu1 %vm16068_vm8, %v3301_v32  ;;  %vm16076_vm8 = vmmov %vm16073_vm0 }
 0x79c   :  { %v3805_v63 = vpop.permute.xlu1 %3804  ;;  %10498 = vmatprep.subr.bf16.mxu1 %v13162_v36 }
 0x79e   :  { %v3811_v55 = vpop.permute.xlu0 %3810 }
 0x7a0   :  { %v3809_v59 = vpop.permute.xlu1 %3808 }
 0x7a1   :  { %10373 = vmatmul.mubr.msk.bf16.gmra.mrb[84].mxu0 %vm15973_vm9, %v3797_v49 }
 0x7a2   :  { %v10974_v37 = vpop.permute.xlu0 %10973  ;;  %10376 = vmatprep.mubr.msk.bf16.mxu0 %vm15973_vm9, %v3799_v0  ;;  %v11408_v0 = vld [vmem:[%s11559_s13 + $0x70] sm:$0xff] }
 0x7a3   :  { %v10976_v24 = vunpack.i.h.bf16 %v10974_v37  ;;  %v10975_v42 = vunpack.i.l.bf16 %v10974_v37 }
 0x7a4   :  { %v3813_v54 = vpop.permute.xlu1 %3812 }
 0x7a5   :  { %v10843_v23 = vpack.c.bf16 %v10976_v24, %v10975_v42 }
 0x7a7   :  { %10844 = vmatprep.subr.bf16.mxu0 %v10843_v23 }
 0x7a9   :  { %10377 = vmatmul.mubr.msk.bf16.gmra.mrb[88].mxu0 %vm15973_vm9, %v3801_v30 }
 0x7aa   :  { %10380 = vmatprep.mubr.msk.bf16.mxu0 %vm15973_vm9, %v3803_v10  ;;  %v11409_v10 = vld [vmem:[%s11559_s13 + $0x78] sm:$0xff] }
 0x7b1   :  { %10381 = vmatmul.mubr.msk.bf16.gmra.mrb[92].mxu0 %vm15973_vm9, %v3805_v63 }
 0x7b2   :  { %10384 = vmatprep.mubr.msk.bf16.mxu0 %vm15973_vm9, %v3807_v6 }
 0x7b9   :  { %10385 = vmatmul.mubr.msk.bf16.gmra.mrb[96].mxu0 %vm15973_vm9, %v3809_v59 }
 0x7ba   :  { %10388 = vmatprep.mubr.msk.bf16.mxu0 %vm15973_vm9, %v3811_v55 }
 0x7c1   :  { %10389 = vmatmul.mubr.msk.bf16.gmra.mrb[100].mxu0 %vm15973_vm9, %v3813_v54 }
 0x7c2   :  { %10446 = vmatprep.mubr.msk.f32.mxu0 %vm2012_vm10, %v11378_v25 }
 0x7c9   :  { %10447 = vmatmul.mubr.msk.f32.vlgmr.msra.gmra.mrb[104].mxu0 %vm2012_vm10, %v11379_v26 }
 0x7ca   :  { %10846 = vmatpush3.bf16.msra.mxu0 %v10843_v23  ;;  %10449 = vmatprep.mubr.msk.f32.mxu0 %vm2012_vm10, %v11380_v48 }
 0x7cd   :  { %10450 = vmatmul.mubr.msk.f32.gmra.mrb[106].mxu0 %vm2012_vm10, %v11381_v21 }
 0x7ce   :  { %10452 = vmatprep.mubr.msk.f32.mxu0 %vm2012_vm10, %v11382_v40 }
 0x7d1   :  { %10453 = vmatmul.mubr.msk.f32.gmra.mrb[108].mxu0 %vm2012_vm10, %v11383_v12 }
 0x7d2   :  { %10455 = vmatprep.mubr.msk.f32.mxu0 %vm2012_vm10, %v11384_v20 }
 0x7d5   :  { %10456 = vmatmul.mubr.msk.f32.gmra.mrb[110].mxu0 %vm2012_vm10, %v11385_v43 }
 0x7d6   :  { %10458 = vmatprep.mubr.msk.f32.mxu0 %vm2012_vm10, %v11386_v17 }
 0x7d9   :  { %10459 = vmatmul.mubr.msk.f32.gmra.mrb[112].mxu0 %vm2012_vm10, %v11387_v57 }
 0x7da   :  { %10461 = vmatprep.mubr.msk.f32.mxu0 %vm2012_vm10, %v11388_v4 }
 0x7dd   :  { %10462 = vmatmul.mubr.msk.f32.gmra.mrb[114].mxu0 %vm2012_vm10, %v11389_v8 }
 0x7de   :  { %10464 = vmatprep.mubr.msk.f32.mxu0 %vm2012_vm10, %v11390_v45 }
 0x7e1   :  { %10465 = vmatmul.mubr.msk.f32.gmra.mrb[116].mxu0 %vm2012_vm10, %v11391_v13 }
 0x7e2   :  { %10467 = vmatprep.mubr.msk.f32.mxu0 %vm2012_vm10, %v11392_v34 }
 0x7e5   :  { %10468 = vmatmul.mubr.msk.f32.gmra.mrb[118].mxu0 %vm2012_vm10, %v11393_v47 }
 0x7e6   :  { %10474 = vmatprep.mubr.msk.f32.mxu0 %vm2012_vm10, %v11394_v29 }
 0x7e9   :  { %10475 = vmatmul.mubr.msk.f32.vlgmr.msra.gmra.mrb[104].mxu0 %vm2012_vm10, %v11395_v53 }
 0x7ea   :  { %10477 = vmatprep.mubr.msk.f32.mxu0 %vm2012_vm10, %v11396_v46 }
 0x7ed   :  { %10478 = vmatmul.mubr.msk.f32.gmra.mrb[106].mxu0 %vm2012_vm10, %v11397_v16 }
 0x7ee   :  { %10480 = vmatprep.mubr.msk.f32.mxu0 %vm2012_vm10, %v11398_v9 }
 0x7f1   :  { %10481 = vmatmul.mubr.msk.f32.gmra.mrb[108].mxu0 %vm2012_vm10, %v11399_v44 }
 0x7f2   :  { %10483 = vmatprep.mubr.msk.f32.mxu0 %vm2012_vm10, %v11400_v56 }
 0x7f5   :  { %10484 = vmatmul.mubr.msk.f32.gmra.mrb[110].mxu0 %vm2012_vm10, %v11401_v18 }
 0x7f6   :  { %10486 = vmatprep.mubr.msk.f32.mxu0 %vm2012_vm10, %v11402_v38 }
 0x7f9   :  { %10487 = vmatmul.mubr.msk.f32.gmra.mrb[112].mxu0 %vm2012_vm10, %v11403_v27 }
 0x7fa   :  { %10489 = vmatprep.mubr.msk.f32.mxu0 %vm2012_vm10, %v11404_v50 }
 0x7fd   :  { %10490 = vmatmul.mubr.msk.f32.gmra.mrb[114].mxu0 %vm2012_vm10, %v11405_v3 }
 0x7fe   :  { %10492 = vmatprep.mubr.msk.f32.mxu0 %vm2012_vm10, %v11406_v41 }
 0x801   :  { %10493 = vmatmul.mubr.msk.f32.gmra.mrb[116].mxu0 %vm2012_vm10, %v11407_v28 }
 0x802   :  { %10495 = vmatprep.mubr.msk.f32.mxu0 %vm2012_vm10, %v11408_v0 }
 0x805   :  { %10496 = vmatmul.mubr.msk.f32.gmra.mrb[118].mxu0 %vm2012_vm10, %v11409_v10 }
 0x806   :  { %10550 = vmatprep.mubr.msk.f32.mxu0 %vm2012_vm10, %v11394_v29 }
 0x85c   :  { %v10362_v6 = vpop.f32.mrb[72].mxu0 }
 0x85d   :  { %v3896_v55 = vpop.f32.mrb[73].mxu0  ;;  %v4032_v37 = vsel %vm16069_vm2, %v10362_v6, -inf  ;;  %vm16077_vm2 = vmmov %vm16073_vm0 }
 0x85e   :  { %v10363_v49 = vpop.f32.mrb[74].mxu0  ;;  %v4023_v23 = vsel %vm16071_vm1, %v3896_v55, -inf  ;;  %vm16079_vm1 = vmmov %vm16073_vm0 }
 0x85f   :  { %v4033_v24 = vsel %vm16070_vm11, %v10363_v49, -inf  ;;  %v3899_v42 = vpop.f32.mrb[75].mxu0  ;;  %vm16078_vm11 = vmmov %vm16073_vm0 }
 0x860   :  { %v4034_v30 = vmax.f32 %v4032_v37, %v4033_v24  ;;  %v4024_v63 = vsel %vm16072_vm5, %v3899_v42, -inf  ;;  %vm16080_vm5 = vmmov %vm16073_vm0 }
 0x861   :  { %v4025_v59 = vmax.f32 %v4023_v23, %v4024_v63 }
 0x862   :  { %v4035_v54 = vrot.slane %v4034_v30, 4 }
 0x863   :  { %v4026_v25 = vrot.slane %v4025_v59, 4 }
 0x864   :  { %v4036_v26 = vmax.f32 %v4034_v30, %v4035_v54  ;;  %v13414_v48 = vpop.f32.mrb[76].mxu0 }
 0x865   :  { %v4027_v21 = vmax.f32 %v4025_v59, %v4026_v25  ;;  %v13416_v40 = vpop.f32.mrb[77].mxu0  ;;  %v4050_v17 = vsel %vm16073_vm0, %v13414_v48, -inf }
 0x866   :  { %v4037_v12 = vrot.slane %v4036_v26, 2  ;;  %v13418_v20 = vpop.f32.mrb[78].mxu0  ;;  %v4041_v45 = vsel %vm16075_vm7, %v13416_v40, -inf  ;;  %vm16082_vm7 = vmmov %vm16073_vm0 }
 0x867   :  { %v4028_v43 = vrot.slane %v4027_v21, 2  ;;  %v4051_v57 = vsel %vm16074_vm6, %v13418_v20, -inf  ;;  %v13424_v4 = vpop.f32.mrb[79].mxu0  ;;  %vm16081_vm6 = vmmov %vm16073_vm0 }
 0x868   :  { %v4038_v8 = vmax.f32 %v4036_v26, %v4037_v12  ;;  %v4052_v13 = vmax.f32 %v4050_v17, %v4051_v57  ;;  %v4042_v34 = vsel %vm16076_vm8, %v13424_v4, -inf  ;;  %vm16083_vm8 = vmmov %vm16073_vm0 }
 0x869   :  { %v4029_v47 = vmax.f32 %v4027_v21, %v4028_v43  ;;  %v4043_v29 = vmax.f32 %v4041_v45, %v4042_v34 }
 0x86a   :  { %v4039_v53 = vrot.slane %v4038_v8, 1  ;;  %v4053_v46 = vrot.slane %v4052_v13, 4 }
 0x86b   :  { %v4030_v16 = vrot.slane %v4029_v47, 1  ;;  %v4044_v9 = vrot.slane %v4043_v29, 4 }
 0x86c   :  { %v4040_v44 = vmax.f32 %v4038_v8, %v4039_v53  ;;  %v4054_v56 = vmax.f32 %v4052_v13, %v4053_v46  ;;  %v13430_v18 = vpop.f32.mrb[80].mxu0 }
 0x86d   :  { %v4031_v38 = vmax.f32 %v4029_v47, %v4030_v16  ;;  %v4045_v27 = vmax.f32 %v4043_v29, %v4044_v9  ;;  %v13432_v50 = vpop.f32.mrb[81].mxu0  ;;  %v4068_v0 = vsel %vm16077_vm2, %v13430_v18, -inf  ;;  %vm16084_vm2 = vmmov %vm16073_vm0 }
 0x86e   :  { %v4169_v3 = vsub.f32 %v10362_v6, %v4040_v44  ;;  %v4170_v41 = vsub.f32 %v10363_v49, %v4040_v44  ;;  %v4055_v28 = vrot.slane %v4054_v56, 2  ;;  %v13436_v10 = vpop.f32.mrb[82].mxu0 }
 0x86f   :  { %v4167_v32 = vsub.f32 %v3896_v55, %v4031_v38  ;;  %v4168_v37 = vsub.f32 %v3899_v42, %v4031_v38  ;;  %v5514_v24 = vsel %vm2598_vm12, %v4040_v44, %v4031_v38  ;;  %v4046_v23 = vrot.slane %v4045_v27, 2  ;;  %v13439_v30 = vpop.f32.mrb[83].mxu0 }
 0x870   :  { %v4203_v63 = vmul.f32 1.442695, %v4169_v3  ;;  %v4205_v59 = vmul.f32 1.442695, %v4170_v41  ;;  %v4056_v54 = vmax.f32 %v4054_v56, %v4055_v28  ;;  %v4069_v6 = vsel %vm16078_vm11, %v13436_v10, -inf  ;;  %vm16086_vm11 = vmmov %vm16073_vm0 }
 0x871   :  { %v4199_v49 = vmul.f32 1.442695, %v4167_v32  ;;  %v4201_v25 = vmul.f32 1.442695, %v4168_v37  ;;  %v4047_v26 = vmax.f32 %v4045_v27, %v4046_v23  ;;  %v4070_v21 = vmax.f32 %v4068_v0, %v4069_v6 }
 0x872   :  { %11114 = vpow2.f32 %v4203_v63  ;;  %v4057_v12 = vrot.slane %v4056_v54, 1  ;;  %v4059_v55 = vsel %vm16079_vm1, %v13432_v50, -inf  ;;  %v4060_v42 = vsel %vm16080_vm5, %v13439_v30, -inf  ;;  %vm16087_vm1 = vmmov %vm16073_vm0 }
 0x873   :  { %11116 = vpow2.f32 %v4205_v59  ;;  %v4048_v43 = vrot.slane %v4047_v26, 1  ;;  %v4071_v17 = vrot.slane %v4070_v21, 4  ;;  %v4061_v57 = vmax.f32 %v4059_v55, %v4060_v42  ;;  %vm16089_vm5 = vmmov %vm16073_vm0 }
 0x874   :  { %11118 = vpow2.f32 %v4199_v49  ;;  %v4058_v8 = vmax.f32 %v4056_v54, %v4057_v12  ;;  %v13447_v45 = vpop.f32.mrb[84].mxu0 }
 0x875   :  { %11120 = vpow2.f32 %v4201_v25  ;;  %v4049_v13 = vmax.f32 %v4047_v26, %v4048_v43  ;;  %v4072_v34 = vmax.f32 %v4070_v21, %v4071_v17  ;;  %v4062_v47 = vrot.slane %v4061_v57, 4  ;;  %v13449_v29 = vpop.f32.mrb[85].mxu0 }
 0x876   :  { %v4173_v53 = vsub.f32 %v13414_v48, %v4058_v8  ;;  %v4174_v46 = vsub.f32 %v13418_v20, %v4058_v8  ;;  %v4086_v16 = vsel %vm16073_vm0, %v13447_v45, -inf  ;;  %v4077_v9 = vsel %vm16081_vm6, %v13449_v29, -inf  ;;  %v13457_v44 = vpop.f32.mrb[86].mxu0  ;;  %vm16091_vm6 = vmmov %vm16073_vm0 }
 0x877   :  { %v4171_v56 = vsub.f32 %v13416_v40, %v4049_v13  ;;  %v4172_v38 = vsub.f32 %v13424_v4, %v4049_v13  ;;  %v5515_v27 = vsel %vm2600_vm13, %v4049_v13, %v5514_v24  ;;  %v4073_v3 = vrot.slane %v4072_v34, 2  ;;  %v13462_v41 = vpop.f32.mrb[87].mxu0 }
 0x878   :  { %v4211_v48 = vmul.f32 1.442695, %v4173_v53  ;;  %v4213_v28 = vmul.f32 1.442695, %v4174_v46  ;;  %v4063_v20 = vmax.f32 %v4061_v57, %v4062_v47  ;;  %v5516_v0 = vsel %vm2602_vm14, %v4058_v8, %v5515_v27  ;;  %v16085_v57 = vld [vmem:[#allocation40_spill] sm:$0xff] }
 0x879   :  { %v4207_v32 = vmul.f32 1.442695, %v4171_v56  ;;  %v4209_v37 = vmul.f32 1.442695, %v4172_v38  ;;  %v4074_v23 = vmax.f32 %v4072_v34, %v4073_v3  ;;  %v4087_v63 = vsel %vm16082_vm7, %v13457_v44, -inf  ;;  %v16088_v3 = vld [vmem:[#allocation23_spill] sm:$0xff]  ;;  %vm16093_vm7 = vmmov %vm16073_vm0 }
 0x87a   :  { %11122 = vpow2.f32 %v4211_v48  ;;  %v4064_v40 = vrot.slane %v4063_v20, 2  ;;  %v4088_v59 = vmax.f32 %v4086_v16, %v4087_v63  ;;  %v4078_v4 = vsel %vm16083_vm8, %v13462_v41, -inf  ;;  %vm16094_vm8 = vmmov %vm16073_vm0 }
 0x87b   :  { %11124 = vpow2.f32 %v4213_v28  ;;  %v4075_v24 = vrot.slane %v4074_v23, 1  ;;  %v4079_v54 = vmax.f32 %v4077_v9, %v4078_v4 }
 0x87c   :  { %v13469_v6 = vpop.eup %11114  ;;  %11126 = vpow2.f32 %v4207_v32  ;;  %v4065_v49 = vmax.f32 %v4063_v20, %v4064_v40  ;;  %v4089_v25 = vrot.slane %v4088_v59, 4  ;;  %v13471_v26 = vpop.f32.mrb[88].mxu0 }
 0x87d   :  { %v11117_v21 = vpop.eup %11116  ;;  %11128 = vpow2.f32 %v4209_v37  ;;  %v13473_v12 = vmax.f32 %v4074_v23, %v4075_v24  ;;  %v4080_v55 = vrot.slane %v4079_v54, 4  ;;  %v4104_v42 = vsel %vm16084_vm2, %v13471_v26, -inf  ;;  %v13477_v43 = vpop.f32.mrb[89].mxu0  ;;  %vm16096_vm2 = vmmov %vm16073_vm0 }
 0x87e   :  { %v13479_v17 = vpop.eup %11118  ;;  %v13482_v8 = vmul.f32 %v11117_v21, %v16085_v57  ;;  %v4066_v13 = vrot.slane %v4065_v49, 1  ;;  %v4090_v34 = vmax.f32 %v4088_v59, %v4089_v25  ;;  %v4095_v47 = vsel %vm16086_vm11, %v13477_v43, -inf  ;;  %v13486_v53 = vpop.f32.mrb[90].mxu0  ;;  %vm16097_vm11 = vmmov %vm16073_vm0 }
 0x87f   :  { %v11121_v46 = vpop.eup %11120  ;;  %v4177_v16 = vsub.f32 %v13430_v18, %v13473_v12  ;;  %v4178_v9 = vsub.f32 %v13436_v10, %v13473_v12  ;;  %v4081_v56 = vmax.f32 %v4079_v54, %v4080_v55  ;;  %v4105_v38 = vsel %vm16087_vm1, %v13486_v53, -inf  ;;  %v13494_v27 = vpop.f32.mrb[91].mxu0  ;;  %vm16099_vm1 = vmmov %vm16073_vm0 }
 0x880   :  { %v13497_v48 = vmul.f32 %v11121_v46, %v16088_v3  ;;  %v4067_v28 = vmax.f32 %v4065_v49, %v4066_v13  ;;  %v4091_v20 = vrot.slane %v4090_v34, 2  ;;  %v4106_v32 = vmax.f32 %v4104_v42, %v4105_v38 }
 0x881   :  { %v4219_v37 = vmul.f32 1.442695, %v4177_v16  ;;  %v4221_v23 = vmul.f32 1.442695, %v4178_v9  ;;  %v4082_v63 = vrot.slane %v4081_v56, 2  ;;  %v4096_v18 = vsel %vm16089_vm5, %v13494_v27, -inf  ;;  %vm16100_vm5 = vmmov %vm16073_vm0 }
 0x882   :  { %v4175_v10 = vsub.f32 %v13432_v50, %v4067_v28  ;;  %v4176_v40 = vsub.f32 %v13439_v30, %v4067_v28  ;;  %v13504_v59 = vsel %vm2604_vm15, %v4067_v28, %v5516_v0  ;;  %v4092_v4 = vmax.f32 %v4090_v34, %v4091_v20 }
 0x883   :  { %11130 = vpow2.f32 %v4219_v37  ;;  %v4083_v24 = vmax.f32 %v4081_v56, %v4082_v63  ;;  %v4107_v54 = vrot.slane %v4106_v32, 4  ;;  %v4097_v49 = vmax.f32 %v4095_v47, %v4096_v18  ;;  %v16090_v47 = vld [vmem:[#allocation42_spill] sm:$0xff] }
 0x884   :  { %v13506_v25 = vpop.eup %11122  ;;  %11132 = vpow2.f32 %v4221_v23  ;;  %v4215_v21 = vmul.f32 1.442695, %v4175_v10  ;;  %v4217_v55 = vmul.f32 1.442695, %v4176_v40  ;;  %v4093_v42 = vrot.slane %v4092_v4, 1  ;;  %v13508_v13 = vpop.f32.mrb[92].mxu0 }
 0x885   :  { %v11125_v46 = vpop.eup %11124  ;;  %v4084_v50 = vrot.slane %v4083_v24, 1  ;;  %v4108_v16 = vmax.f32 %v4106_v32, %v4107_v54  ;;  %v4098_v30 = vrot.slane %v4097_v49, 4  ;;  %v4122_v0 = vsel %vm16073_vm0, %v13508_v13, -inf  ;;  %v13512_v34 = vpop.f32.mrb[93].mxu0  ;;  %v16092_v10 = vld [vmem:[#allocation41_spill] sm:$0xff] }
 0x886   :  { %v13514_v9 = vpop.eup %11126  ;;  %v13517_v56 = vmul.f32 %v11125_v46, %v16090_v47  ;;  %11134 = vpow2.f32 %v4215_v21  ;;  %v13519_v38 = vmax.f32 %v4092_v4, %v4093_v42  ;;  %v4113_v28 = vsel %vm16091_vm6, %v13512_v34, -inf  ;;  %v13523_v20 = vpop.f32.mrb[94].mxu0  ;;  %vm16102_vm6 = vmmov %vm16073_vm0 }
 0x887   :  { %v11129_v32 = vpop.eup %11128  ;;  %11136 = vpow2.f32 %v4217_v55  ;;  %v13525_v37 = vmax.f32 %v4083_v24, %v4084_v50  ;;  %v4109_v23 = vrot.slane %v4108_v16, 2  ;;  %v4099_v63 = vmax.f32 %v4097_v49, %v4098_v30  ;;  %v13527_v18 = vpop.f32.mrb[95].mxu0 }
 0x888   :  { %v13530_v40 = vmul.f32 %v11129_v32, %v16092_v10  ;;  %v4181_v4 = vsub.f32 %v13447_v45, %v13519_v38  ;;  %v4182_v54 = vsub.f32 %v13457_v44, %v13519_v38  ;;  %v4123_v21 = vsel %vm16093_vm7, %v13523_v20, -inf  ;;  %vm16103_vm7 = vmmov %vm16073_vm0 }
 0x889   :  { %v4179_v24 = vsub.f32 %v13449_v29, %v13525_v37  ;;  %v4180_v49 = vsub.f32 %v13462_v41, %v13525_v37  ;;  %v4110_v55 = vmax.f32 %v4108_v16, %v4109_v23  ;;  %v4100_v42 = vrot.slane %v4099_v63, 2  ;;  %v16095_v29 = vld [vmem:[#allocation39_spill] sm:$0xff] }
 0x88a   :  { %v4227_v46 = vmul.f32 1.442695, %v4181_v4  ;;  %v4229_v50 = vmul.f32 1.442695, %v4182_v54  ;;  %v4124_v30 = vmax.f32 %v4122_v0, %v4123_v21  ;;  %v4114_v45 = vsel %vm16094_vm8, %v13527_v18, -inf  ;;  %vm16105_vm8 = vmmov %vm16073_vm0 }
 0x88b   :  { %v4223_v32 = vmul.f32 1.442695, %v4179_v24  ;;  %v4225_v58 = vmul.f32 1.442695, %v4180_v49  ;;  %v4111_v44 = vrot.slane %v4110_v55, 1  ;;  %v4101_v39 = vmax.f32 %v4099_v63, %v4100_v42 }
 0x88c   :  { %11138 = vpow2.f32 %v4227_v46  ;;  %v4125_v31 = vrot.slane %v4124_v30, 4  ;;  %v4115_v2 = vmax.f32 %v4113_v28, %v4114_v45  ;;  %v13544_v35 = vpop.f32.mrb[96].mxu0  ;;  %v13548_v41 = vmul.f32 %v13479_v17, %v16095_v29  ;;  %v16098_v17 = vld [vmem:[#allocation44_spill] sm:$0xff] }
 0x88d   :  { %v13550_v16 = vpop.eup %11130  ;;  %11140 = vpow2.f32 %v4229_v50  ;;  %v4112_v0 = vmax.f32 %v4110_v55, %v4111_v44  ;;  %v4102_v23 = vrot.slane %v4101_v39, 1  ;;  %v4140_v4 = vsel %vm16096_vm2, %v13544_v35, -inf  ;;  %v13554_v54 = vpop.f32.mrb[97].mxu0  ;;  %vm16106_vm2 = vmmov %vm16073_vm0 }
 0x88e   :  { %v11133_v63 = vpop.eup %11132  ;;  %11142 = vpow2.f32 %v4223_v32  ;;  %v4126_v21 = vmax.f32 %v4124_v30, %v4125_v31  ;;  %v4116_v28 = vrot.slane %v4115_v2, 4  ;;  %v4131_v24 = vsel %vm16097_vm11, %v13554_v54, -inf  ;;  %v13558_v49 = vpop.f32.mrb[98].mxu0  ;;  %vm16109_vm11 = vmmov %vm16073_vm0 }
 0x88f   :  { %v13561_v42 = vmul.f32 %v11133_v63, %v16098_v17  ;;  %11144 = vpow2.f32 %v4225_v58  ;;  %v4185_v55 = vsub.f32 %v13471_v26, %v4112_v0  ;;  %v4186_v46 = vsub.f32 %v13486_v53, %v4112_v0  ;;  %v13565_v50 = vpop.f32.mrb[99].mxu0  ;;  %v16101_v26 = vld [vmem:[#allocation43_spill] sm:$0xff]  ;;  %v16107_v17 = vld [vmem:[#allocation45_spill] sm:$0xff] }
 0x890   :  { %v13567_v45 = vpop.eup %11134  ;;  %v4103_v32 = vmax.f32 %v4101_v39, %v4102_v23  ;;  %v4127_v31 = vrot.slane %v4126_v21, 2  ;;  %v4117_v30 = vmax.f32 %v4115_v2, %v4116_v28  ;;  %v4141_v44 = vsel %vm16099_vm1, %v13558_v49, -inf  ;;  %vm16112_vm1 = vmmov %vm16073_vm0 }
 0x891   :  { %v11137_v5 = vpop.eup %11136  ;;  %v4235_v15 = vmul.f32 1.442695, %v4185_v55  ;;  %v4237_v14 = vmul.f32 1.442695, %v4186_v46  ;;  %v4142_v63 = vmax.f32 %v4140_v4, %v4141_v44  ;;  %v4132_v58 = vsel %vm16100_vm5, %v13565_v50, -inf  ;;  %vm16113_vm5 = vmmov %vm16073_vm0 }
 0x892   :  { %v13574_v60 = vmul.f32 %v11137_v5, %v16101_v26  ;;  %v4183_v53 = vsub.f32 %v13477_v43, %v4103_v32  ;;  %v4184_v11 = vsub.f32 %v13494_v27, %v4103_v32  ;;  %v5521_v39 = vsel %vm2598_vm12, %v4112_v0, %v4103_v32 }
 0x893   :  { %11146 = vpow2.f32 %v4235_v15  ;;  %v4128_v2 = vmax.f32 %v4126_v21, %v4127_v31  ;;  %v4118_v23 = vrot.slane %v4117_v30, 2  ;;  %v4143_v28 = vrot.slane %v4142_v63, 4 }
 0x894   :  { %11148 = vpow2.f32 %v4237_v14  ;;  %v4231_v55 = vmul.f32 1.442695, %v4183_v53  ;;  %v4233_v46 = vmul.f32 1.442695, %v4184_v11  ;;  %v4133_v4 = vmax.f32 %v4131_v24, %v4132_v58  ;;  %v13579_v44 = vpop.f32.mrb[100].mxu0  ;;  %v16104_v58 = vld [vmem:[#allocation46_spill] sm:$0xff] }
 0x895   :  { %v4129_v19 = vrot.slane %v4128_v2, 1  ;;  %v4119_v52 = vmax.f32 %v4117_v30, %v4118_v23  ;;  %v4144_v5 = vmax.f32 %v4142_v63, %v4143_v28  ;;  %v4158_v43 = vsel %vm16073_vm0, %v13579_v44, -inf  ;;  %v13583_v1 = vpop.f32.mrb[101].mxu0 }
 0x896   :  { %v13585_v27 = vpop.eup %11138  ;;  %11150 = vpow2.f32 %v4231_v55  ;;  %v4134_v15 = vrot.slane %v4133_v4, 4  ;;  %v4149_v14 = vsel %vm16102_vm6, %v13583_v1, -inf  ;;  %v13589_v0 = vpop.f32.mrb[102].mxu0  ;;  %v4295_v11 = vsel %vm16103_vm7, %v13548_v41, 0.0  ;;  %vm16115_vm6 = vmmov %vm16073_vm0 }
 0x897   :  { %v11141_v21 = vpop.eup %11140  ;;  %11152 = vpow2.f32 %v4233_v46  ;;  %v4130_v24 = vmax.f32 %v4128_v2, %v4129_v19  ;;  %v4120_v32 = vrot.slane %v4119_v52, 1  ;;  %v4145_v31 = vrot.slane %v4144_v5, 2  ;;  %v13593_v30 = vpop.f32.mrb[103].mxu0  ;;  %vm16118_vm7 = vmmov %vm16073_vm0 }
 0x898   :  { %v13595_v63 = vpop.eup %11142  ;;  %v13598_v53 = vmul.f32 %v11141_v21, %v16104_v58  ;;  %v4135_v23 = vmax.f32 %v4133_v4, %v4134_v15  ;;  %v4159_v28 = vsel %vm16105_vm8, %v13589_v0, -inf  ;;  %v4150_v55 = vsel %vm16106_vm2, %v13593_v30, -inf  ;;  %vm16120_vm8 = vmmov %vm16073_vm0 }
 0x899   :  { %v11145_v33 = vpop.eup %11144  ;;  %v4189_v46 = vsub.f32 %v13508_v13, %v4130_v24  ;;  %v4190_v19 = vsub.f32 %v13523_v20, %v4130_v24  ;;  %v4121_v2 = vmax.f32 %v4119_v52, %v4120_v32  ;;  %v4146_v26 = vmax.f32 %v4144_v5, %v4145_v31  ;;  %v16108_v31 = vld [vmem:[#allocation49_spill] sm:$0xff] }
 0x89a   :  { %v13607_v29 = vmul.f32 %v11145_v33, %v16107_v17  ;;  %v4136_v10 = vrot.slane %v4135_v23, 2  ;;  %v4160_v21 = vmax.f32 %v4158_v43, %v4159_v28  ;;  %v4151_v58 = vmax.f32 %v4149_v14, %v4150_v55  ;;  %v16110_v28 = vld [vmem:[#allocation24_spill] sm:$0xff] }
 0x89b   :  { %v4243_v4 = vmul.f32 1.442695, %v4189_v46  ;;  %v4245_v15 = vmul.f32 1.442695, %v4190_v19  ;;  %v4187_v47 = vsub.f32 %v13512_v34, %v4121_v2  ;;  %v4188_v3 = vsub.f32 %v13527_v18, %v4121_v2  ;;  %v16111_v46 = vld [vmem:[#allocation48_spill] sm:$0xff] }
 0x89c   :  { %v5522_v57 = vsel %vm2600_vm13, %v4121_v2, %v5521_v39  ;;  %v4147_v62 = vrot.slane %v4146_v26, 1  ;;  %v4137_v13 = vmax.f32 %v4135_v23, %v4136_v10  ;;  %v4161_v22 = vrot.slane %v4160_v21, 4 }
 0x89d   :  { %v13612_v20 = vpop.eup %11146  ;;  %11154 = vpow2.f32 %v4243_v4  ;;  %v4239_v52 = vmul.f32 1.442695, %v4187_v47  ;;  %v4241_v33 = vmul.f32 1.442695, %v4188_v3  ;;  %v5523_v5 = vsel %vm2602_vm14, %v4130_v24, %v5522_v57 }
 0x89e   :  { %v11149_v43 = vpop.eup %11148  ;;  %11156 = vpow2.f32 %v4245_v15  ;;  %v13615_v14 = vmax.f32 %v4146_v26, %v4147_v62  ;;  %v4138_v32 = vrot.slane %v4137_v13, 1  ;;  %v4162_v34 = vmax.f32 %v4160_v21, %v4161_v22 }
 0x89f   :  { %v13618_v18 = vmul.f32 %v11149_v43, %v16108_v31  ;;  %11158 = vpow2.f32 %v4239_v52  ;;  %v4152_v39 = vrot.slane %v4151_v58, 4  ;;  %v4296_v10 = vsel %vm16109_vm11, %v13497_v48, 0.0 }
 0x8a0   :  { %v13622_v23 = vpop.eup %11150  ;;  %11160 = vpow2.f32 %v4241_v33  ;;  %v4193_v57 = vsub.f32 %v13544_v35, %v13615_v14  ;;  %v4194_v62 = vsub.f32 %v13558_v49, %v13615_v14  ;;  %v4139_v3 = vmax.f32 %v4137_v13, %v4138_v32 }
 0x8a1   :  { %v11153_v47 = vpop.eup %11152  ;;  %v4163_v22 = vrot.slane %v4162_v34, 2  ;;  %v4153_v26 = vmax.f32 %v4151_v58, %v4152_v39  ;;  %v4297_v24 = vadd.f32 %v4296_v10, %v4295_v11  ;;  %v13630_v55 = vmul.f32 %v13469_v6, %v16110_v28 }
 0x8a2   :  { %v13633_v19 = vmul.f32 %v11153_v47, %v16111_v46  ;;  %v4251_v2 = vmul.f32 1.442695, %v4193_v57  ;;  %v4253_v21 = vmul.f32 1.442695, %v4194_v62  ;;  %v4191_v4 = vsub.f32 %v13554_v54, %v4139_v3 }
 0x8a3   :  { %v4192_v35 = vsub.f32 %v13565_v50, %v4139_v3  ;;  %v13638_v49 = vsel %vm2604_vm15, %v4139_v3, %v5523_v5  ;;  %v4164_v15 = vmax.f32 %v4162_v34, %v4163_v22  ;;  %v4154_v13 = vrot.slane %v4153_v26, 2  ;;  %v16114_v50 = vld [vmem:[#allocation25_spill] sm:$0xff] }
 0x8a4   :  { %11162 = vpow2.f32 %v4251_v2  ;;  %v4247_v11 = vmul.f32 1.442695, %v4191_v4  ;;  %v4298_v58 = vrot.slane %v4297_v24, 4  ;;  %v4304_v6 = vsel %vm16112_vm1, %v13630_v55, 0.0  ;;  %v16117_v2 = vld [vmem:[#allocation53_spill] sm:$0xff]  ;;  %vm16126_vm1 = vmmov %vm16073_vm0 }
 0x8a5   :  { %11164 = vpow2.f32 %v4253_v21  ;;  %v4249_v52 = vmul.f32 1.442695, %v4192_v35  ;;  %v4165_v33 = vrot.slane %v4164_v15, 1  ;;  %v4155_v43 = vmax.f32 %v4153_v26, %v4154_v13  ;;  %v16116_v26 = vld [vmem:[#allocation26_spill] sm:$0xff] }
 0x8a6   :  { %11166 = vpow2.f32 %v4247_v11  ;;  %v4299_v32 = vadd.f32 %v4298_v58, %v4297_v24  ;;  %v4305_v54 = vsel %vm16113_vm5, %v13482_v8, 0.0  ;;  %v13646_v5 = vmul.f32 %v13514_v9, %v16114_v50  ;;  %vm16128_vm5 = vmmov %vm16073_vm0 }
 0x8a7   :  { %v13648_v34 = vpop.eup %11154  ;;  %11168 = vpow2.f32 %v4249_v52  ;;  %v4166_v39 = vmax.f32 %v4164_v15, %v4165_v33  ;;  %v4156_v10 = vrot.slane %v4155_v43, 1  ;;  %v4306_v57 = vadd.f32 %v4305_v54, %v4304_v6  ;;  %v16119_v33 = vld [vmem:[#allocation52_spill] sm:$0xff] }
 0x8a8   :  { %v11157_v62 = vpop.eup %11156  ;;  %v4300_v3 = vrot.slane %v4299_v32, 2  ;;  %v4313_v47 = vsel %vm16073_vm0, %v13646_v5, 0.0  ;;  %v4314_v22 = vsel %vm16115_vm6, %v13530_v40, 0.0  ;;  %v13656_v24 = vmul.f32 %v13506_v25, %v16116_v26  ;;  %vm16129_vm6 = vmmov %vm16073_vm0 }
 0x8a9   :  { %v13658_v9 = vpop.eup %11158  ;;  %v13661_v21 = vmul.f32 %v11157_v62, %v16117_v2  ;;  %v4197_v4 = vsub.f32 %v13579_v44, %v4166_v39  ;;  %v4198_v35 = vsub.f32 %v13589_v0, %v4166_v39  ;;  %v4157_v15 = vmax.f32 %v4155_v43, %v4156_v10 }
 0x8aa   :  { %v11161_v13 = vpop.eup %11160  ;;  %v4301_v11 = vadd.f32 %v4300_v3, %v4299_v32  ;;  %v4307_v58 = vrot.slane %v4306_v57, 4  ;;  %v4315_v6 = vadd.f32 %v4314_v22, %v4313_v47  ;;  %v4322_v52 = vsel %vm16118_vm7, %v13656_v24, 0.0  ;;  %vm16131_vm7 = vmmov %vm16073_vm0 }
 0x8ab   :  { %v13668_v25 = vmul.f32 %v11161_v13, %v16119_v33  ;;  %v4259_v54 = vmul.f32 1.442695, %v4197_v4  ;;  %v4261_v26 = vmul.f32 1.442695, %v4198_v35  ;;  %v4195_v62 = vsub.f32 %v13583_v1, %v4157_v15 }
 0x8ac   :  { %v4196_v2 = vsub.f32 %v13593_v30, %v4157_v15  ;;  %v4302_v44 = vrot.slane %v4301_v11, 1  ;;  %v4308_v50 = vadd.f32 %v4307_v58, %v4306_v57  ;;  %v4316_v0 = vrot.slane %v4315_v6, 4  ;;  %v16121_v58 = vld [vmem:[#allocation55_spill] sm:$0xff] }
 0x8ad   :  { %11170 = vpow2.f32 %v4259_v54  ;;  %v4255_v43 = vmul.f32 1.442695, %v4195_v62  ;;  %v4323_v32 = vsel %vm16120_vm8, %v13517_v56, 0.0  ;;  %v5518_v10 = vsel %vm2606_vm3, %v13473_v12, %v13504_v59  ;;  %vm16132_vm8 = vmmov %vm16073_vm0 }
 0x8ae   :  { %v13677_v3 = vpop.eup %11162  ;;  %11172 = vpow2.f32 %v4261_v26  ;;  %v4257_v47 = vmul.f32 1.442695, %v4196_v2  ;;  %v4303_v22 = vadd.f32 %v4302_v44, %v4301_v11  ;;  %v4309_v1 = vrot.slane %v4308_v50, 2 }
 0x8af   :  { %v11165_v4 = vpop.eup %11164  ;;  %11174 = vpow2.f32 %v4255_v43  ;;  %v4317_v30 = vadd.f32 %v4316_v0, %v4315_v6  ;;  %v4324_v57 = vadd.f32 %v4323_v32, %v4322_v52  ;;  %v5519_v35 = vsel %vm2608_vm4, %v13525_v37, %v5518_v10  ;;  %v16123_v52 = vld [vmem:[#allocation54_spill] sm:$0xff]  ;;  %v16125_v10 = vld [vmem:[#allocation27_spill] sm:$0xff] }
 0x8b0   :  { %v13681_v13 = vpop.eup %11166  ;;  %v13684_v54 = vmul.f32 %v11165_v4, %v16121_v58  ;;  %11176 = vpow2.f32 %v4257_v47  ;;  %v4439_v12 = vmax.f32 %v4303_v22, 1e-30  ;;  %v4310_v59 = vadd.f32 %v4309_v1, %v4308_v50  ;;  %v16138_v58 = vld [vmem:[#allocation31_spill] sm:$0xff] }
 0x8b1   :  { %v11169_v62 = vpop.eup %11168  ;;  %v4318_v26 = vrot.slane %v4317_v30, 2  ;;  %v4325_v2 = vrot.slane %v4324_v57, 4  ;;  %vm16122_vm2 = vcmask 1047559   ;;  %v5525_v6 = vsel %vm2606_vm3, %v13615_v14, %v13638_v49  ;;  %v16127_v49 = vld [vmem:[#allocation28_spill] sm:$0xff] }
 0x8b2   :  { %v5520_v11 = vsel %vm16122_vm2, %v13519_v38, %v5519_v35  ;;  %v13692_v37 = vmul.f32 %v11169_v62, %v16123_v52  ;;  %11178 = vrcp.f32 %v4439_v12  ;;  %v4311_v44 = vrot.slane %v4310_v59, 1  ;;  %vm16124_vm11 = vmmov %vm16122_vm2  ;;  %v16130_v12 = vld [vmem:[#allocation29_spill] sm:$0xff] }
 0x8b3   :  { %v5526_v0 = vsel %vm2608_vm4, %v4157_v15, %v5525_v6  ;;  %v4319_v43 = vadd.f32 %v4318_v26, %v4317_v30  ;;  %v4326_v32 = vadd.f32 %v4325_v2, %v4324_v57  ;;  %v13698_v47 = vmul.f32 %v13567_v45, %v16125_v10  ;;  %vm16135_vm2 = vmmov %vm16073_vm0 }
 0x8b4   :  { %v5527_v50 = vsel %vm16124_vm11, %v4166_v39, %v5526_v0  ;;  %v4312_v38 = vadd.f32 %v4311_v44, %v4310_v59  ;;  %v4332_v14 = vsel %vm16126_vm1, %v13574_v60, 0.0  ;;  %v13706_v1 = vmul.f32 %v13550_v16, %v16127_v49  ;;  %vm16136_vm11 = vmmov %vm16073_vm0  ;;  %v16137_v49 = vld [vmem:[#allocation56_spill] sm:$0xff] }
 0x8b5   :  { %v13700_v22 = vpack.c.bf16 %v5527_v50, %v5520_v11  ;;  %v4320_v4 = vrot.slane %v4319_v43, 1  ;;  %v4327_v15 = vrot.slane %v4326_v32, 2  ;;  %v4331_v30 = vsel %vm16128_vm5, %v13698_v47, 0.0  ;;  %v16133_v50 = vld [vmem:[#allocation30_spill] sm:$0xff]  ;;  %vm16139_vm1 = vmmov %vm16073_vm0 }
 0x8b6   :  { %v4341_v39 = vsel %vm16073_vm0, %v13561_v42, 0.0  ;;  %v4440_v45 = vmax.f32 %v4312_v38, 1e-30  ;;  %v4333_v57 = vadd.f32 %v4332_v14, %v4331_v30  ;;  %v4340_v35 = vsel %vm16129_vm6, %v13706_v1, 0.0  ;;  %v16134_v14 = vld [vmem:[#allocation57_spill] sm:$0xff]  ;;  %vm16140_vm5 = vmmov %vm16073_vm0 }
 0x8b7   :  { %v13716_v59 = vmul.f32 %v13595_v63, %v16130_v12  ;;  %v13718_v62 = vpop.eup %11170  ;;  %v4321_v16 = vadd.f32 %v4320_v4, %v4319_v43  ;;  %v4328_v26 = vadd.f32 %v4327_v15, %v4326_v32  ;;  %v4342_v2 = vadd.f32 %v4341_v39, %v4340_v35  ;;  %vm16142_vm6 = vmmov %vm16073_vm0 }
 0x8b8   :  { %v4350_v11 = vsel %vm16131_vm7, %v13607_v29, 0.0  ;;  %v11173_v6 = vpop.eup %11172  ;;  %11180 = vrcp.f32 %v4440_v45  ;;  %v4334_v44 = vrot.slane %v4333_v57, 4  ;;  %v13726_v38 = vmul.f32 %v13585_v27, %v16133_v50  ;;  %vm16143_vm7 = vmmov %vm16073_vm0 }
 0x8b9   :  { %v4349_v0 = vsel %vm16132_vm8, %v13716_v59, 0.0  ;;  %v13728_v63 = vpop.eup %11174  ;;  %v13731_v30 = vmul.f32 %v11173_v6, %v16134_v14  ;;  %v4441_v43 = vmax.f32 %v4321_v16, 1e-30  ;;  %v4329_v32 = vrot.slane %v4328_v26, 1  ;;  %vm16144_vm8 = vmmov %vm16073_vm0 }
 0x8ba   :  { %v4343_v4 = vrot.slane %v4342_v2, 4  ;;  %v11177_v15 = vpop.eup %11176  ;;  %v4335_v39 = vadd.f32 %v4334_v44, %v4333_v57  ;;  %v4351_v35 = vadd.f32 %v4350_v11, %v4349_v0  ;;  %v4358_v45 = vsel %vm16135_vm2, %v13726_v38, 0.0  ;;  %vm16146_vm2 = vmmov %vm16073_vm0 }
 0x8bb   :  { %v4359_v12 = vsel %vm16136_vm11, %v13598_v53, 0.0  ;;  %v13738_v27 = vmul.f32 %v11177_v15, %v16137_v49  ;;  %11182 = vrcp.f32 %v4441_v43  ;;  %v4330_v50 = vadd.f32 %v4329_v32, %v4328_v26  ;;  %vm16147_vm11 = vmmov %vm16073_vm0 }
 0x8bc   :  { %v4344_v10 = vadd.f32 %v4343_v4, %v4342_v2  ;;  %v13740_v6 = vpop.eup %11178  ;;  %v4336_v16 = vrot.slane %v4335_v39, 2  ;;  %v4352_v14 = vrot.slane %v4351_v35, 4  ;;  %v4360_v52 = vadd.f32 %v4359_v12, %v4358_v45  ;;  %v13746_v11 = vpop.f32.mrb[104].mxu0  ;;  %v16141_v45 = vld [vmem:[#allocation32_spill] sm:$0xff] }
 0x8bd   :  { %v13744_v57 = vmul.f32 %v13622_v23, %v16138_v58  ;;  %v4471_v44 = vmul.f32 %v13740_v6, %v13548_v41  ;;  %v4472_v0 = vmul.f32 %v13740_v6, %v13497_v48  ;;  %v4442_v43 = vmax.f32 %v4330_v50, 1e-30  ;;  %v13752_v2 = vpop.f32.mrb[105].mxu0 }
 0x8be   :  { %v4345_v26 = vrot.slane %v4344_v10, 2  ;;  %v4337_v32 = vadd.f32 %v4336_v16, %v4335_v39  ;;  %v4353_v4 = vadd.f32 %v4352_v14, %v4351_v35  ;;  %v4361_v15 = vrot.slane %v4360_v52, 4 }
 0x8bf   :  { %v4367_v12 = vsel %vm16139_vm1, %v13744_v57, 0.0  ;;  %10394 = vmatprep.mubr.msk.f32.mxu1 %vm16140_vm5, %v4471_v44  ;;  %11184 = vrcp.f32 %v4442_v43  ;;  %v4368_v41 = vsel %vm16073_vm0, %v13633_v19, 0.0  ;;  %v13761_v48 = vmul.f32 %v13612_v20, %v16141_v45  ;;  %vm16148_vm1 = vmmov %vm16073_vm0 }
 0x8c0   :  { %v4346_v23 = vadd.f32 %v4345_v26, %v4344_v10  ;;  %10395 = vmatmul.mubr.msk.f32.vlgmr.msra.gmra.mrb[64].mxu1 %vm16142_vm6, %v4472_v0  ;;  %v4338_v50 = vrot.slane %v4337_v32, 1  ;;  %v4354_v39 = vrot.slane %v4353_v4, 2  ;;  %v4362_v14 = vadd.f32 %v4361_v15, %v4360_v52  ;;  %v13764_v16 = vpop.f32.mrb[106].mxu0  ;;  %v16145_v26 = vld [vmem:[#allocation33_spill] sm:$0xff]  ;;  %vm16149_vm5 = vmmov %vm16073_vm0 }
 0x8c1   :  { %v4369_v35 = vadd.f32 %v4368_v41, %v4367_v12  ;;  %10499 = vmatpush3.bf16.msra.mxu1 %v13162_v36  ;;  %v4376_v10 = vsel %vm16143_vm7, %v13761_v48, 0.0  ;;  %v4377_v43 = vsel %vm16144_vm8, %v13618_v18, 0.0  ;;  %v13773_v20 = vmul.f32 %v13658_v9, %v16145_v26  ;;  %v13775_v0 = vpop.f32.mrb[107].mxu0  ;;  %vm16151_vm6 = vmmov %vm16073_vm0 }
 0x8c2   :  { %v4347_v44 = vrot.slane %v4346_v23, 1  ;;  %v13777_v45 = vpop.eup %11180  ;;  %10500 = vmatprep.subr.bf16.mxu1 %v13167_v61  ;;  %v4339_v52 = vadd.f32 %v4338_v50, %v4337_v32  ;;  %v4355_v15 = vadd.f32 %v4354_v39, %v4353_v4  ;;  %v4363_v36 = vrot.slane %v4362_v14, 2  ;;  %vm16153_vm7 = vmmov %vm16073_vm0 }
 0x8c3   :  { %v4370_v12 = vrot.slane %v4369_v35, 4  ;;  %v4473_v41 = vmul.f32 %v13777_v45, %v13630_v55  ;;  %v4474_v58 = vmul.f32 %v13777_v45, %v13482_v8  ;;  %v4378_v33 = vadd.f32 %v4377_v43, %v4376_v10  ;;  %v16150_v10 = vld [vmem:[#allocation34_spill] sm:$0xff]  ;;  %vm16154_vm8 = vmmov %vm16073_vm0 }
 0x8c4   :  { %v4348_v49 = vadd.f32 %v4347_v44, %v4346_v23  ;;  %v4443_v9 = vmax.f32 %v4339_v52, 1e-30  ;;  %v4356_v26 = vrot.slane %v4355_v15, 1  ;;  %v4364_v46 = vadd.f32 %v4363_v36, %v4362_v14 }
 0x8c5   :  { %v4371_v28 = vadd.f32 %v4370_v12, %v4369_v35  ;;  %v13784_v31 = vpop.eup %11182  ;;  %10397 = vmatprep.mubr.msk.f32.mxu1 %vm16146_vm2, %v4473_v41  ;;  %10501 = vmatpush3.bf16.msra.mxu1 %v13167_v61  ;;  %v4379_v4 = vrot.slane %v4378_v33, 4  ;;  %v4385_v55 = vsel %vm16147_vm11, %v13773_v20, 0.0  ;;  %v4386_v8 = vsel %vm16148_vm1, %v13668_v25, 0.0  ;;  %vm16155_vm2 = vmmov %vm16073_vm0 }
 0x8c6   :  { %v4444_v32 = vmax.f32 %v4348_v49, 1e-30  ;;  %10398 = vmatmul.mubr.msk.f32.gmra.mrb[66].mxu1 %vm16149_vm5, %v4474_v58  ;;  %v4475_v23 = vmul.f32 %v13784_v31, %v13646_v5  ;;  %v4476_v50 = vmul.f32 %v13784_v31, %v13530_v40  ;;  %10848 = vmatprep.subr.bf16.mxu1 %v13700_v22  ;;  %11186 = vrcp.f32 %v4443_v9  ;;  %vm16156_vm11 = vmmov %vm16073_vm0 }
 0x8c7   :  { %v4357_v61 = vadd.f32 %v4356_v26, %v4355_v15  ;;  %v4365_v49 = vrot.slane %v4364_v46, 1  ;;  %v4372_v39 = vrot.slane %v4371_v28, 2  ;;  %v4380_v14 = vadd.f32 %v4379_v4, %v4378_v33  ;;  %v16152_v15 = vld [vmem:[#allocation35_spill] sm:$0xff]  ;;  %vm16157_vm1 = vmmov %vm16073_vm0 }
 0x8c8   :  { %11188 = vrcp.f32 %v4444_v32  ;;  %10400 = vmatprep.mubr.msk.f32.mxu1 %vm16073_vm0, %v4475_v23  ;;  %v4387_v44 = vadd.f32 %v4386_v8, %v4385_v55  ;;  %v13801_v58 = vmul.f32 %v13648_v34, %v16150_v10  ;;  %v4395_v5 = vsel %vm16151_vm6, %v13661_v21, 0.0  ;;  %vm16158_vm5 = vmmov %vm16073_vm0 }
 0x8c9   :  { %v4445_v35 = vmax.f32 %v4357_v61, 1e-30  ;;  %v13805_v40 = vpop.eup %11184  ;;  %v4366_v43 = vadd.f32 %v4365_v49, %v4364_v46  ;;  %v4373_v52 = vadd.f32 %v4372_v39, %v4371_v28  ;;  %v4381_v26 = vrot.slane %v4380_v14, 2  ;;  %v16159_v61 = vld [vmem:[#allocation36_spill] sm:$0xff]  ;;  %vm16161_vm6 = vmmov %vm16073_vm0 }
 0x8ca   :  { %v13809_v36 = vmul.f32 %v13681_v13, %v16152_v15  ;;  %10401 = vmatmul.mubr.msk.f32.gmra.mrb[68].mxu1 %vm16153_vm7, %v4476_v50  ;;  %v4477_v33 = vmul.f32 %v13805_v40, %v13656_v24  ;;  %v4478_v34 = vmul.f32 %v13805_v40, %v13517_v56  ;;  %v4388_v12 = vrot.slane %v4387_v44, 4  ;;  %vm16162_vm7 = vmmov %vm16073_vm0 }
 0x8cb   :  { %11190 = vrcp.f32 %v4445_v35  ;;  %v4446_v41 = vmax.f32 %v4366_v43, 1e-30  ;;  %v4374_v9 = vrot.slane %v4373_v52, 1  ;;  %v4382_v32 = vadd.f32 %v4381_v26, %v4380_v14 }
 0x8cc   :  { %v4394_v28 = vsel %vm16154_vm8, %v13801_v58, 0.0  ;;  %10403 = vmatprep.mubr.msk.f32.mxu1 %vm16155_vm2, %v4477_v33  ;;  %v4389_v46 = vadd.f32 %v4388_v12, %v4387_v44  ;;  %v4403_v4 = vsel %vm16156_vm11, %v13809_v36, 0.0  ;;  %v4404_v24 = vsel %vm16157_vm1, %v13692_v37, 0.0  ;;  %vm16163_vm8 = vmmov %vm16073_vm0 }
 0x8cd   :  { %v4396_v13 = vadd.f32 %v4395_v5, %v4394_v28  ;;  %11192 = vrcp.f32 %v4446_v41  ;;  %v4375_v56 = vadd.f32 %v4374_v9, %v4373_v52  ;;  %v4383_v55 = vrot.slane %v4382_v32, 1  ;;  %v16160_v5 = vld [vmem:[#allocation37_spill] sm:$0xff]  ;;  %vm16164_vm2 = vmmov %vm16073_vm0 }
 0x8ce   :  { %v4405_v8 = vadd.f32 %v4404_v24, %v4403_v4  ;;  %10404 = vmatmul.mubr.msk.f32.gmra.mrb[70].mxu1 %vm16158_vm5, %v4478_v34  ;;  %v4390_v23 = vrot.slane %v4389_v46, 2  ;;  %v13826_v49 = vmul.f32 %v13677_v3, %v16159_v61  ;;  %v4413_v39 = vsel %vm16073_vm0, %v13684_v54, 0.0  ;;  %vm16165_vm11 = vmmov %vm16073_vm0 }
 0x8cf   :  { %v4397_v50 = vrot.slane %v4396_v13, 4  ;;  %v4447_v14 = vmax.f32 %v4375_v56, 1e-30  ;;  %v4384_v35 = vadd.f32 %v4383_v55, %v4382_v32  ;;  %v13832_v43 = vmul.f32 %v13728_v63, %v16160_v5  ;;  %vm16166_vm5 = vmmov %vm16073_vm0 }
 0x8d0   :  { %v4406_v44 = vrot.slane %v4405_v8, 4  ;;  %v13834_v52 = vpop.eup %11186  ;;  %v4391_v26 = vadd.f32 %v4390_v23, %v4389_v46  ;;  %v4412_v34 = vsel %vm16161_vm6, %v13826_v49, 0.0  ;;  %v4422_v3 = vsel %vm16162_vm7, %v13738_v27, 0.0  ;;  %vm16167_vm6 = vmmov %vm16164_vm2 }
 0x8d1   :  { %v4398_v33 = vadd.f32 %v4397_v50, %v4396_v13  ;;  %v4479_v41 = vmul.f32 %v13834_v52, %v13698_v47  ;;  %v4480_v9 = vmul.f32 %v13834_v52, %v13574_v60  ;;  %11194 = vrcp.f32 %v4447_v14  ;;  %vm16168_vm7 = vmmov %vm16164_vm2 }
 0x8d2   :  { %v13840_v12 = vpop.eup %11188  ;;  %v4448_v63 = vmax.f32 %v4384_v35, 1e-30  ;;  %v4392_v46 = vrot.slane %v4391_v26, 1  ;;  %v4407_v4 = vadd.f32 %v4406_v44, %v4405_v8  ;;  %v4414_v24 = vadd.f32 %v4413_v39, %v4412_v34 }
 0x8d3   :  { %v4481_v32 = vmul.f32 %v13840_v12, %v13706_v1  ;;  %v4482_v28 = vmul.f32 %v13840_v12, %v13561_v42  ;;  %v4399_v13 = vrot.slane %v4398_v33, 2  ;;  %10406 = vmatprep.mubr.msk.f32.mxu1 %vm16163_vm8, %v4479_v41  ;;  %v4421_v47 = vsel %vm16164_vm2, %v13832_v43, 0.0  ;;  %vm16170_vm8 = vmmov %vm16164_vm2 }
 0x8d4   :  { %11196 = vrcp.f32 %v4448_v63  ;;  %10407 = vmatmul.mubr.msk.f32.gmra.mrb[72].mxu1 %vm16165_vm11, %v4480_v9  ;;  %v4393_v60 = vadd.f32 %v4392_v46, %v4391_v26  ;;  %v4423_v1 = vadd.f32 %v4422_v3, %v4421_v47  ;;  %vm5322_vm1 = vcmp.gt.f32.partialorder %v13746_v11, 0.0  ;;  %vm16171_vm11 = vmmov %vm16164_vm2 }
 0x8d5   :  { %v13853_v56 = vpop.eup %11190  ;;  %v4400_v55 = vadd.f32 %v4399_v13, %v4398_v33  ;;  %10409 = vmatprep.mubr.msk.f32.mxu1 %vm16166_vm5, %v4481_v32  ;;  %v4408_v23 = vrot.slane %v4407_v4, 2  ;;  %v4415_v50 = vrot.slane %v4414_v24, 4  ;;  %v5338_v44 = vmul.f32 0.2, %v13746_v11 }
 0x8d6   :  { %v4483_v42 = vmul.f32 %v13853_v56, %v13716_v59  ;;  %v4484_v8 = vmul.f32 %v13853_v56, %v13607_v29  ;;  %v4449_v39 = vmax.f32 %v4393_v60, 1e-30  ;;  %v4424_v35 = vrot.slane %v4423_v1, 4 }
 0x8d7   :  { %v4401_v14 = vrot.slane %v4400_v55, 1  ;;  %v13863_v26 = vpop.eup %11192  ;;  %v4409_v33 = vadd.f32 %v4408_v23, %v4407_v4  ;;  %v4416_v34 = vadd.f32 %v4415_v50, %v4414_v24  ;;  %vm5321_vm0 = vcmp.gt.f32.partialorder %v13752_v2, 0.0 }
 0x8d8   :  { %v5337_v3 = vmul.f32 0.2, %v13752_v2  ;;  %10410 = vmatmul.mubr.msk.f32.gmra.mrb[74].mxu1 %vm16167_vm6, %v4482_v28  ;;  %v4485_v29 = vmul.f32 %v13863_v26, %v13726_v38  ;;  %v4486_v59 = vmul.f32 %v13863_v26, %v13598_v53  ;;  %11198 = vrcp.f32 %v4449_v39  ;;  %v16169_v38 = vld [vmem:[#allocation38_spill] sm:$0xff] }
 0x8d9   :  { %v4402_v41 = vadd.f32 %v4401_v14, %v4400_v55  ;;  %10412 = vmatprep.mubr.msk.f32.mxu1 %vm16168_vm7, %v4483_v42  ;;  %v4410_v9 = vrot.slane %v4409_v33, 1  ;;  %v4417_v63 = vrot.slane %v4416_v34, 2  ;;  %v4425_v32 = vadd.f32 %v4424_v35, %v4423_v1 }
 0x8da   :  { %v13876_v46 = vsel %vm5322_vm1, %v13746_v11, %v5338_v44  ;;  %v13879_v28 = vsel %vm5321_vm0, %v13752_v2, %v5337_v3  ;;  %v13883_v4 = vmul.f32 %v13718_v62, %v16169_v38  ;;  %v4431_v53 = vsel %vm16170_vm8, %v13731_v30, 0.0  ;;  %vm16172_vm1 = vmmov %vm16164_vm2 }
 0x8db   :  { %v4450_v13 = vmax.f32 %v4402_v41, 1e-30  ;;  %v11195_v24 = vpop.eup %11194  ;;  %v4411_v47 = vadd.f32 %v4410_v9, %v4409_v33  ;;  %v4418_v60 = vadd.f32 %v4417_v63, %v4416_v34  ;;  %v4426_v55 = vrot.slane %v4425_v32, 2  ;;  %vm16173_vm0 = vmmov %vm16172_vm1 }
 0x8dc   :  { %v5369_v1 = vpack.c.bf16 %v13876_v46, %v13879_v28  ;;  %10413 = vmatmul.mubr.msk.f32.gmra.mrb[76].mxu1 %vm16164_vm2, %v4484_v8  ;;  %v4487_v11 = vmul.f32 %v11195_v24, %v13744_v57  ;;  %v4488_v2 = vmul.f32 %v11195_v24, %v13633_v19  ;;  %v4430_v62 = vsel %vm16171_vm11, %v13883_v4, 0.0  ;;  %vm16174_vm7 = vmmov %vm16173_vm0  ;;  %v13983_v46 = vld [vmem:[%s11559_s13 + $0x20] sm:$0xff] }
 0x8dd   :  { %11200 = vrcp.f32 %v4450_v13  ;;  %10415 = vmatprep.mubr.msk.f32.mxu1 %vm16172_vm1, %v4485_v29  ;;  %v4451_v23 = vmax.f32 %v4411_v47, 1e-30  ;;  %v4419_v50 = vrot.slane %v4418_v60, 1  ;;  %v4427_v39 = vadd.f32 %v4426_v55, %v4425_v32  ;;  %vm16175_vm8 = vmmov %vm16173_vm0 }
 0x8de   :  { %v11197_v42 = vpop.eup %11196  ;;  %v4432_v14 = vadd.f32 %v4431_v53, %v4430_v62  ;;  %vm5324_vm5 = vcmp.gt.f32.partialorder %v13764_v16, 0.0  ;;  %v5340_v57 = vmul.f32 0.2, %v13764_v16  ;;  %v5691_v34 = vsel %vm2598_vm12, %v13777_v45, %v13740_v6  ;;  %vm16176_vm2 = vmmov %vm16173_vm0 }
 0x8df   :  { %v4489_v35 = vmul.f32 %v11197_v42, %v13761_v48  ;;  %v4490_v44 = vmul.f32 %v11197_v42, %v13618_v18  ;;  %11202 = vrcp.f32 %v4451_v23  ;;  %v4420_v19 = vadd.f32 %v4419_v50, %v4418_v60  ;;  %vm16178_vm1 = vmmov %vm16173_vm0 }
 0x8e0   :  { %v4428_v8 = vrot.slane %v4427_v39, 1  ;;  %v4433_v33 = vrot.slane %v4432_v14, 4  ;;  %10416 = vmatmul.mubr.msk.f32.gmra.mrb[78].mxu1 %vm16173_vm0, %v4486_v59  ;;  %v5698_v3 = vsel %vm2598_vm12, %v11197_v42, %v11195_v24  ;;  %vm5323_vm6 = vcmp.gt.f32.partialorder %v13775_v0, 0.0 }
 0x8e1   :  { %10418 = vmatprep.mubr.msk.f32.mxu1 %vm16174_vm7, %v4487_v11  ;;  %v4452_v18 = vmax.f32 %v4420_v19, 1e-30  ;;  %v5692_v41 = vsel %vm2600_vm13, %v13784_v31, %v5691_v34  ;;  %v13911_v59 = vsel %vm5324_vm5, %v13764_v16, %v5340_v57  ;;  %v5339_v45 = vmul.f32 0.2, %v13775_v0  ;;  %vm16179_vm5 = vmmov %vm16173_vm0  ;;  %v13962_v57 = vld [vmem:[%s11559_s13 + $0x8] sm:$0xff]  ;;  %v13994_v19 = vld [vmem:[%s11559_s13 + $0x30] sm:$0xff] }
 0x8e2   :  { %v4429_v48 = vadd.f32 %v4428_v8, %v4427_v39  ;;  %v4434_v29 = vadd.f32 %v4433_v33, %v4432_v14  ;;  %v11199_v9 = vpop.eup %11198  ;;  %v5693_v6 = vsel %vm2602_vm14, %v13805_v40, %v5692_v41  ;;  %vm16177_vm11 = vcmask 1047559   ;;  %vm16181_vm7 = vmmov %vm16173_vm0  ;;  %v14004_v8 = vld [vmem:[%s11559_s13 + $0x40] sm:$0xff]  ;;  %v14009_v33 = vld [vmem:[%s11559_s13 + $0x48] sm:$0xff] }
 0x8e3   :  { %v4491_v63 = vmul.f32 %v11199_v9, %v13773_v20  ;;  %v4492_v32 = vmul.f32 %v11199_v9, %v13668_v25  ;;  %11204 = vrcp.f32 %v4452_v18  ;;  %v5694_v53 = vsel %vm2604_vm15, %v13834_v52, %v5693_v6  ;;  %v14014_v34 = vld [vmem:[%s11559_s13 + $0x50] sm:$0xff]  ;;  %v14024_v18 = vld [vmem:[%s11559_s13 + $0x60] sm:$0xff]  ;;  %v14039_v41 = vld [vmem:[%s11559_s13 + $0x78] sm:$0xff] }
 0x8e4   :  { %v4453_v13 = vmax.f32 %v4429_v48, 1e-30  ;;  %10419 = vmatmul.mubr.msk.f32.gmra.mrb[80].mxu1 %vm16175_vm8, %v4488_v2  ;;  %v4435_v31 = vrot.slane %v4434_v29, 2  ;;  %v5699_v16 = vsel %vm2600_vm13, %v11199_v9, %v5698_v3  ;;  %v5355_v40 = vsel %vm5323_vm6, %v13775_v0, %v5339_v45  ;;  %vm16180_vm6 = vmmov %vm16173_vm0  ;;  %v14019_v3 = vld [vmem:[%s11559_s13 + $0x58] sm:$0xff]  ;;  %v14029_v48 = vld [vmem:[%s11559_s13 + $0x68] sm:$0xff] }
 0x8e5   :  { %10421 = vmatprep.mubr.msk.f32.mxu1 %vm16176_vm2, %v4489_v35  ;;  %v5695_v25 = vsel %vm2606_vm3, %v13840_v12, %v5694_v53  ;;  %v5370_v20 = vpack.c.bf16 %v13911_v59, %v5355_v40  ;;  %vm16182_vm8 = vmmov %vm16173_vm0  ;;  %v16191_v28 = vmov 0.0  }
 0x8e6   :  { %11206 = vrcp.f32 %v4453_v13  ;;  %v4436_v47 = vadd.f32 %v4435_v31, %v4434_v29  ;;  %v5696_v60 = vsel %vm2608_vm4, %v13853_v56, %v5695_v25  ;;  %vm16183_vm2 = vmmov %vm16173_vm0  ;;  %v14034_v29 = vld [vmem:[%s11559_s13 + $0x70] sm:$0xff] }
 0x8e7   :  { %v11201_v24 = vpop.eup %11200  ;;  %v5697_v0 = vsel %vm16177_vm11, %v13863_v26, %v5696_v60  ;;  %vm16184_vm11 = vmmov %vm16173_vm0 }
 0x8e8   :  { %v4493_v52 = vmul.f32 %v11201_v24, %v13801_v58  ;;  %v4494_v55 = vmul.f32 %v11201_v24, %v13661_v21  ;;  %v5700_v11 = vsel %vm2602_vm14, %v11201_v24, %v5699_v16  ;;  %10422 = vmatmul.mubr.msk.f32.gmra.mrb[82].mxu1 %vm16178_vm1, %v4490_v44  ;;  %v4437_v2 = vrot.slane %v4436_v47, 1  ;;  %vm16185_vm1 = vmmov %vm16173_vm0 }
 0x8e9   :  { %v11203_v12 = vpop.eup %11202  ;;  %10424 = vmatprep.mubr.msk.f32.mxu1 %vm16179_vm5, %v4491_v63  ;;  %vm16186_vm5 = vmmov %vm16173_vm0 }
 0x8ea   :  { %v4495_v62 = vmul.f32 %v11203_v12, %v13809_v36  ;;  %v4496_v42 = vmul.f32 %v11203_v12, %v13692_v37  ;;  %v4438_v56 = vadd.f32 %v4437_v2, %v4436_v47  ;;  %v5701_v58 = vsel %vm2604_vm15, %v11203_v12, %v5700_v11 }
 0x8ec   :  { %10425 = vmatmul.mubr.msk.f32.gmra.mrb[84].mxu1 %vm16173_vm0, %v4492_v32  ;;  %v4454_v21 = vmax.f32 %v4438_v56, 1e-30  ;;  %vm16187_vm0 = vcmask 1047559  }
 0x8ed   :  { %v11205_v23 = vpop.eup %11204  ;;  %10427 = vmatprep.mubr.msk.f32.mxu1 %vm16180_vm6, %v4493_v52  ;;  %vm16188_vm6 = vmmov %vm16185_vm1 }
 0x8ee   :  { %v4497_v26 = vmul.f32 %v11205_v23, %v13826_v49  ;;  %v4498_v50 = vmul.f32 %v11205_v23, %v13684_v54  ;;  %11208 = vrcp.f32 %v4454_v21  ;;  %v5702_v39 = vsel %vm2606_vm3, %v11205_v23, %v5701_v58 }
 0x8f0   :  { %v11207_v14 = vpop.eup %11206  ;;  %10428 = vmatmul.mubr.msk.f32.gmra.mrb[86].mxu1 %vm16181_vm7, %v4494_v55  ;;  %vm16189_vm7 = vmmov %vm16185_vm1 }
 0x8f1   :  { %v4499_v37 = vmul.f32 %v11207_v14, %v13832_v43  ;;  %v4500_v36 = vmul.f32 %v11207_v14, %v13738_v27  ;;  %v5703_v35 = vsel %vm2608_vm4, %v11207_v14, %v5702_v39  ;;  %10430 = vmatprep.mubr.msk.f32.mxu1 %vm16182_vm8, %v4495_v62  ;;  %vm16190_vm8 = vmmov %vm16185_vm1 }
 0x8f4   :  { %10431 = vmatmul.mubr.msk.f32.gmra.mrb[88].mxu1 %vm16183_vm2, %v4496_v42  ;;  %vm16193_vm2 = vmmov %vm16187_vm0 }
 0x8f5   :  { %10433 = vmatprep.mubr.msk.f32.mxu1 %vm16184_vm11, %v4497_v26  ;;  %vm16194_vm11 = vmmov %vm16187_vm0 }
 0x8f8   :  { %v11209_v54 = vpop.eup %11208  ;;  %10434 = vmatmul.mubr.msk.f32.gmra.mrb[90].mxu1 %vm16185_vm1, %v4498_v50 }
 0x8f9   :  { %10436 = vmatprep.mubr.msk.f32.mxu1 %vm16186_vm5, %v4499_v37  ;;  %v4501_v49 = vmul.f32 %v11209_v54, %v13883_v4  ;;  %v5704_v27 = vsel %vm16187_vm0, %v11209_v54, %v5703_v35  ;;  %v4502_v43 = vmul.f32 %v11209_v54, %v13731_v30  ;;  %v13971_v30 = vld [vmem:[%s11559_s13 + $0x10] sm:$0xff]  ;;  %v13977_v4 = vld [vmem:[%s11559_s13 + $0x18] sm:$0xff] }
 0x8fa   :  { %v10851_v44 = vpack.c.bf16 %v5704_v27, %v5697_v0 }
 0x8fc   :  { %10437 = vmatmul.mubr.msk.f32.gmra.mrb[92].mxu1 %vm16188_vm6, %v4500_v36  ;;  %10852 = vmatprep.subr.bf16.mxu0 %v10851_v44 }
 0x8fd   :  { %10439 = vmatprep.mubr.msk.f32.mxu1 %vm16189_vm7, %v4501_v49  ;;  %10854 = vmatpush3.bf16.msra.mxu0 %v10851_v44 }
 0x900   :  { %10440 = vmatmul.mubr.msk.f32.gmra.mrb[94].mxu1 %vm16190_vm8, %v4502_v43  ;;  %10551 = vmatmul.mubr.msk.f32.vlgmr.msra.gmra.mrb[120].mxu0 %vm2012_vm10, %v13962_v57 }
 0x901   :  { %10502 = vmatprep.mubr.msk.bf16.mxu1 %vm15973_vm9, %v5369_v1  ;;  %10553 = vmatprep.mubr.msk.f32.mxu0 %vm2012_vm10, %v13971_v30  ;;  %v13989_v1 = vld [vmem:[%s11559_s13 + $0x28] sm:$0xff] }
 0x904   :  { %10503 = vmatmul.mubr.msk.bf16.vlgmr.msra.gmra.mrb[96].mxu1 %vm15973_vm9, %v5370_v20  ;;  %10554 = vmatmul.mubr.msk.f32.gmra.mrb[122].mxu0 %vm2012_vm10, %v13977_v4 }
 0x905   :  { %10850 = vmatpush3.bf16.msra.mxu1 %v13700_v22  ;;  %10556 = vmatprep.mubr.msk.f32.mxu0 %vm2012_vm10, %v13983_v46  ;;  %v13999_v22 = vld [vmem:[%s11559_s13 + $0x38] sm:$0xff] }
 0x906   :  { %10574 = vmatprep.subr.bf16.mxu1 %v16191_v28 }
 0x908   :  { %10557 = vmatmul.mubr.msk.f32.gmra.mrb[124].mxu0 %vm2012_vm10, %v13989_v1 }
 0x909   :  { %10559 = vmatprep.mubr.msk.f32.mxu0 %vm2012_vm10, %v13994_v19 }
 0x90c   :  { %10560 = vmatmul.mubr.msk.f32.gmra.mrb[126].mxu0 %vm2012_vm10, %v13999_v22 }
 0x90d   :  { %10562 = vmatprep.mubr.msk.f32.mxu0 %vm2012_vm10, %v14004_v8 }
 0x910   :  { %10563 = vmatmul.mubr.msk.f32.gmra.mrb[128].mxu0 %vm2012_vm10, %v14009_v33 }
 0x911   :  { %10565 = vmatprep.mubr.msk.f32.mxu0 %vm2012_vm10, %v14014_v34 }
 0x914   :  { %10566 = vmatmul.mubr.msk.f32.gmra.mrb[130].mxu0 %vm2012_vm10, %v14019_v3 }
 0x915   :  { %10568 = vmatprep.mubr.msk.f32.mxu0 %vm2012_vm10, %v14024_v18 }
 0x918   :  { %10569 = vmatmul.mubr.msk.f32.gmra.mrb[132].mxu0 %vm2012_vm10, %v14029_v48 }
 0x919   :  { %10571 = vmatprep.mubr.msk.f32.mxu0 %vm2012_vm10, %v14034_v29 }
 0x91c   :  { %10572 = vmatmul.mubr.msk.f32.gmra.mrb[134].mxu0 %vm2012_vm10, %v14039_v41 }
 0x993   :  { %v10396_v9 = vpop.f32.mrb[64].mxu1 }
 0x994   :  { %v4828_v59 = vmul.f32 %v10396_v9, %v13175_v51  ;;  %v4668_v6 = vpop.f32.mrb[65].mxu1 }
 0x995   :  { %v4827_v45 = vmul.f32 %v4668_v6, %v13173_v7 }
 0x996   :  { %v4860_v63 = vsel %vm15973_vm9, %v4828_v59, 0.0 }
 0x997   :  { %v4859_v32 = vsel %vm15973_vm9, %v4827_v45, 0.0 }
 0x998   :  { %v4861_v13 = vadd.f32 %v4860_v63, %v4859_v32 }
 0x999   :  { %v10399_v31 = vpop.f32.mrb[66].mxu1 }
 0x99a   :  { %v4830_v53 = vmul.f32 %v10399_v31, %v13175_v51  ;;  %v4678_v16 = vpop.f32.mrb[67].mxu1  ;;  %v4862_v54 = vrot.slane %v4861_v13, 4 }
 0x99b   :  { %v4829_v40 = vmul.f32 %v4678_v16, %v13173_v7 }
 0x99c   :  { %v4869_v25 = vsel %vm15973_vm9, %v4830_v53, 0.0  ;;  %v4863_v32 = vadd.f32 %v4862_v54, %v4861_v13 }
 0x99d   :  { %v4868_v20 = vsel %vm15973_vm9, %v4829_v40, 0.0  ;;  %v10402_v24 = vpop.f32.mrb[68].mxu1 }
 0x99e   :  { %v4870_v47 = vadd.f32 %v4869_v25, %v4868_v20  ;;  %v4832_v60 = vmul.f32 %v10402_v24, %v13175_v51  ;;  %v4688_v52 = vpop.f32.mrb[69].mxu1 }
 0x99f   :  { %v4831_v55 = vmul.f32 %v4688_v52, %v13173_v7 }
 0x9a0   :  { %v4878_v0 = vsel %vm15973_vm9, %v4832_v60, 0.0  ;;  %v4871_v56 = vrot.slane %v4870_v47, 4 }
 0x9a1   :  { %v4877_v11 = vsel %vm15973_vm9, %v4831_v55, 0.0  ;;  %v10405_v2 = vpop.f32.mrb[70].mxu1 }
 0x9a2   :  { %v4879_v12 = vadd.f32 %v4878_v0, %v4877_v11  ;;  %v4834_v62 = vmul.f32 %v10405_v2, %v13175_v51  ;;  %v4698_v42 = vpop.f32.mrb[71].mxu1  ;;  %v4872_v39 = vadd.f32 %v4871_v56, %v4870_v47  ;;  %v4864_v11 = vrot.slane %v4863_v32, 2 }
 0x9a3   :  { %v4833_v58 = vmul.f32 %v4698_v42, %v13173_v7 }
 0x9a4   :  { %v4887_v21 = vsel %vm15973_vm9, %v4834_v62, 0.0  ;;  %v4880_v23 = vrot.slane %v4879_v12, 4  ;;  %v4873_v9 = vrot.slane %v4872_v39, 2 }
 0x9a5   :  { %v4886_v26 = vsel %vm15973_vm9, %v4833_v58, 0.0 }
 0x9a6   :  { %v4888_v50 = vadd.f32 %v4887_v21, %v4886_v26  ;;  %v4881_v49 = vadd.f32 %v4880_v23, %v4879_v12  ;;  %v4874_v20 = vadd.f32 %v4873_v9, %v4872_v39 }
 0x9a7   :  { %v10408_v14 = vpop.f32.mrb[72].mxu1 }
 0x9a8   :  { %v4889_v37 = vrot.slane %v4888_v50, 4  ;;  %v4836_v36 = vmul.f32 %v10408_v14, %v13175_v51  ;;  %v4708_v35 = vpop.f32.mrb[73].mxu1  ;;  %v4882_v31 = vrot.slane %v4881_v49, 2  ;;  %v4875_v58 = vrot.slane %v4874_v20, 1 }
 0x9a9   :  { %v4835_v27 = vmul.f32 %v4708_v35, %v13173_v7 }
 0x9aa   :  { %v4890_v43 = vadd.f32 %v4889_v37, %v4888_v50  ;;  %v4896_v44 = vsel %vm15973_vm9, %v4836_v36, 0.0  ;;  %v4883_v2 = vadd.f32 %v4882_v31, %v4881_v49  ;;  %v4865_v36 = vadd.f32 %v4864_v11, %v4863_v32 }
 0x9ab   :  { %v4895_v59 = vsel %vm15973_vm9, %v4835_v27, 0.0  ;;  %v10411_v6 = vpop.f32.mrb[74].mxu1  ;;  %v4876_v9 = vadd.f32 %v4875_v58, %v4874_v20 }
 0x9ac   :  { %v4897_v45 = vadd.f32 %v4896_v44, %v4895_v59  ;;  %v4718_v63 = vpop.f32.mrb[75].mxu1  ;;  %v4838_v53 = vmul.f32 %v10411_v6, %v13175_v51  ;;  %v4891_v40 = vrot.slane %v4890_v43, 2  ;;  %v4884_v35 = vrot.slane %v4883_v2, 1 }
 0x9ad   :  { %v4837_v16 = vmul.f32 %v4718_v63, %v13173_v7 }
 0x9ae   :  { %v4898_v25 = vrot.slane %v4897_v45, 4  ;;  %v4905_v24 = vsel %vm15973_vm9, %v4838_v53, 0.0  ;;  %v4892_v62 = vadd.f32 %v4891_v40, %v4890_v43  ;;  %v4866_v40 = vrot.slane %v4865_v36, 1 }
 0x9af   :  { %v4904_v47 = vsel %vm15973_vm9, %v4837_v16, 0.0  ;;  %v10414_v60 = vpop.f32.mrb[76].mxu1 }
 0x9b0   :  { %v4899_v52 = vadd.f32 %v4898_v25, %v4897_v45  ;;  %v4906_v55 = vadd.f32 %v4905_v24, %v4904_v47  ;;  %v4728_v0 = vpop.f32.mrb[77].mxu1  ;;  %v4840_v13 = vmul.f32 %v10414_v60, %v13175_v51  ;;  %v4893_v27 = vrot.slane %v4892_v62, 1  ;;  %v14078_v60 = vld [vmem:[%s16192_s29] ss:$0 sm:$0xff] }
 0x9b1   :  { %v4839_v12 = vmul.f32 %v4728_v0, %v13173_v7  ;;  %v4885_v25 = vadd.f32 %v4884_v35, %v4883_v2  ;;  %v14081_v11 = vadd.f32 %v14078_v60, %v4876_v9 }
 0x9b2   :  { %v4900_v42 = vrot.slane %v4899_v52, 2  ;;  %v4907_v56 = vrot.slane %v4906_v55, 4  ;;  %v4914_v21 = vsel %vm15973_vm9, %v4840_v13, 0.0 }
 0x9b3   :  { %v4913_v23 = vsel %vm15973_vm9, %v4839_v12, 0.0  ;;  %v10417_v26 = vpop.f32.mrb[78].mxu1 }
 0x9b4   :  { %v4901_v50 = vadd.f32 %v4900_v42, %v4899_v52  ;;  %v4908_v39 = vadd.f32 %v4907_v56, %v4906_v55  ;;  %v4915_v14 = vadd.f32 %v4914_v21, %v4913_v23  ;;  %v4738_v37 = vpop.f32.mrb[79].mxu1  ;;  %v4842_v54 = vmul.f32 %v10417_v26, %v13175_v51 }
 0x9b5   :  { %v4841_v49 = vmul.f32 %v4738_v37, %v13173_v7  ;;  %v4894_v52 = vadd.f32 %v4893_v27, %v4892_v62  ;;  %v14088_v62 = vadd.f32 %v14078_v60, %v4885_v25 }
 0x9b6   :  { %v4909_v43 = vrot.slane %v4908_v39, 2  ;;  %v4916_v44 = vrot.slane %v4915_v14, 4  ;;  %v4902_v59 = vrot.slane %v4901_v50, 1  ;;  %v4923_v6 = vsel %vm15973_vm9, %v4842_v54, 0.0 }
 0x9b7   :  { %v4922_v45 = vsel %vm15973_vm9, %v4841_v49, 0.0  ;;  %v10420_v63 = vpop.f32.mrb[80].mxu1  ;;  %v5932_v49 = vrot.slane %v14081_v11, 7 }
 0x9b8   :  { %v4910_v31 = vadd.f32 %v4909_v43, %v4908_v39  ;;  %v4917_v53 = vadd.f32 %v4916_v44, %v4915_v14  ;;  %v4924_v16 = vadd.f32 %v4923_v6, %v4922_v45  ;;  %v4748_v32 = vpop.f32.mrb[81].mxu1  ;;  %v4844_v24 = vmul.f32 %v10420_v63, %v13175_v51 }
 0x9b9   :  { %v4843_v47 = vmul.f32 %v4748_v32, %v13173_v7  ;;  %v4903_v13 = vadd.f32 %v4902_v59, %v4901_v50  ;;  %v4867_v39 = vadd.f32 %v4866_v40, %v4865_v36  ;;  %v14093_v50 = vadd.f32 %v14078_v60, %v4894_v52 }
 0x9ba   :  { %v4911_v20 = vrot.slane %v4910_v31, 1  ;;  %v4918_v55 = vrot.slane %v4917_v53, 2  ;;  %v4925_v0 = vrot.slane %v4924_v16, 4  ;;  %v4932_v12 = vsel %vm15973_vm9, %v4844_v24, 0.0 }
 0x9bb   :  { %v4931_v42 = vsel %vm15973_vm9, %v4843_v47, 0.0  ;;  %v10423_v56 = vpop.f32.mrb[82].mxu1  ;;  %v14097_v27 = vadd.f32 %v14078_v60, %v4903_v13  ;;  %v5936_v40 = vrot.slane %v14093_v50, 5 }
 0x9bc   :  { %v4912_v2 = vadd.f32 %v4911_v20, %v4910_v31  ;;  %v4919_v58 = vadd.f32 %v4918_v55, %v4917_v53  ;;  %v4926_v21 = vadd.f32 %v4925_v0, %v4924_v16  ;;  %v14085_v23 = vadd.f32 %v4932_v12, %v4931_v42  ;;  %v4758_v26 = vpop.f32.mrb[83].mxu1 }
 0x9bd   :  { %v4846_v14 = vmul.f32 %v10423_v56, %v13175_v51  ;;  %v4845_v37 = vmul.f32 %v4758_v26, %v13173_v7  ;;  %v14105_v31 = vadd.f32 %v14078_v60, %v4867_v39  ;;  %v5934_v53 = vrot.slane %v14088_v62, 6 }
 0x9be   :  { %v4920_v35 = vrot.slane %v4919_v58, 1  ;;  %v4927_v54 = vrot.slane %v4926_v21, 2  ;;  %v14102_v9 = vadd.f32 %v14078_v60, %v4912_v2  ;;  %v5938_v0 = vrot.slane %v14097_v27, 4 }
 0x9bf   :  { %v4941_v43 = vsel %vm15973_vm9, %v4846_v14, 0.0  ;;  %v4940_v36 = vsel %vm15973_vm9, %v4845_v37, 0.0  ;;  %v10426_v44 = vpop.f32.mrb[84].mxu1  ;;  %v5933_v55 = vsel %vm2598_vm12, %v5932_v49, %v14105_v31 }
 0x9c0   :  { %v4921_v59 = vadd.f32 %v4920_v35, %v4919_v58  ;;  %v4928_v6 = vadd.f32 %v4927_v54, %v4926_v21  ;;  %v4942_v45 = vadd.f32 %v4941_v43, %v4940_v36  ;;  %v4768_v63 = vpop.f32.mrb[85].mxu1  ;;  %v4848_v16 = vmul.f32 %v10426_v44, %v13175_v51 }
 0x9c1   :  { %v4847_v32 = vmul.f32 %v4768_v63, %v13173_v7  ;;  %v5940_v2 = vrot.slane %v14102_v9, 3  ;;  %v5935_v26 = vsel %vm2600_vm13, %v5934_v53, %v5933_v55 }
 0x9c2   :  { %v4929_v25 = vrot.slane %v4928_v6, 1  ;;  %v14112_v24 = vadd.f32 %v14078_v60, %v4921_v59  ;;  %v4950_v47 = vsel %vm15973_vm9, %v4848_v16, 0.0  ;;  %v4943_v12 = vrot.slane %v4942_v45, 4 }
 0x9c3   :  { %v4949_v52 = vsel %vm15973_vm9, %v4847_v32, 0.0  ;;  %v10429_v20 = vpop.f32.mrb[86].mxu1  ;;  %v5937_v37 = vsel %vm2602_vm14, %v5936_v40, %v5935_v26 }
 0x9c4   :  { %v4930_v13 = vadd.f32 %v4929_v25, %v4928_v6  ;;  %v4951_v42 = vadd.f32 %v4950_v47, %v4949_v52  ;;  %v4778_v56 = vpop.f32.mrb[87].mxu1  ;;  %v4850_v58 = vmul.f32 %v10429_v20, %v13175_v51  ;;  %v5942_v35 = vrot.slane %v14112_v24, 2 }
 0x9c5   :  { %v4849_v21 = vmul.f32 %v4778_v56, %v13173_v7  ;;  %v5939_v36 = vsel %vm2604_vm15, %v5938_v0, %v5937_v37  ;;  %v4944_v44 = vadd.f32 %v4943_v12, %v4942_v45  ;;  %v4934_v25 = vrot.slane %v14085_v23, 4 }
 0x9c6   :  { %v4952_v39 = vrot.slane %v4951_v42, 4  ;;  %v14124_v14 = vadd.f32 %v14078_v60, %v4930_v13  ;;  %v4959_v54 = vsel %vm15973_vm9, %v4850_v58, 0.0  ;;  %v5941_v63 = vsel %vm2606_vm3, %v5940_v2, %v5939_v36 }
 0x9c7   :  { %v4958_v49 = vsel %vm15973_vm9, %v4849_v21, 0.0  ;;  %v10432_v43 = vpop.f32.mrb[88].mxu1  ;;  %v5943_v52 = vsel %vm2608_vm4, %v5942_v35, %v5941_v63  ;;  %v4945_v13 = vrot.slane %v4944_v44, 2 }
 0x9c8   :  { %v4960_v59 = vadd.f32 %v4959_v54, %v4958_v49  ;;  %v4788_v6 = vpop.f32.mrb[89].mxu1  ;;  %v4953_v53 = vadd.f32 %v4952_v39, %v4951_v42  ;;  %v4852_v16 = vmul.f32 %v10432_v43, %v13175_v51  ;;  %v5944_v40 = vrot.slane %v14124_v14, 1 }
 0x9c9   :  { %v4851_v32 = vmul.f32 %v4788_v6, %v13173_v7  ;;  %v4935_v39 = vadd.f32 %v4934_v25, %v14085_v23  ;;  %v4946_v36 = vadd.f32 %v4945_v13, %v4944_v44 }
 0x9ca   :  { %v4961_v47 = vrot.slane %v4960_v59, 4  ;;  %v4968_v20 = vsel %vm15973_vm9, %v4852_v16, 0.0  ;;  %v5945_v0 = vsel %vm16193_vm2, %v5944_v40, %v5943_v52  ;;  %v4954_v2 = vrot.slane %v4953_v53, 2 }
 0x9cb   :  { %v4967_v45 = vsel %vm15973_vm9, %v4851_v32, 0.0  ;;  %v10435_v55 = vpop.f32.mrb[90].mxu1  ;;  %v5962_v21 = vsel %vm15973_vm9, %v5945_v0, 0.0  ;;  %v4947_v0 = vrot.slane %v4946_v36, 1 }
 0x9cc   :  { %v4962_v12 = vadd.f32 %v4961_v47, %v4960_v59  ;;  %v4969_v42 = vadd.f32 %v4968_v20, %v4967_v45  ;;  %v4798_v56 = vpop.f32.mrb[91].mxu1  ;;  %v4854_v58 = vmul.f32 %v10435_v55, %v13175_v51  ;;  %5963 = vadd.xlane.f32.xlu1 %v5962_v21  ;;  %v4955_v63 = vadd.f32 %v4954_v2, %v4953_v53 }
 0x9cd   :  { %v4853_v26 = vmul.f32 %v4798_v56, %v13173_v7  ;;  %v4936_v47 = vrot.slane %v4935_v39, 2 }
 0x9ce   :  { %v4963_v37 = vrot.slane %v4962_v12, 2  ;;  %v4970_v35 = vrot.slane %v4969_v42, 4  ;;  %v4977_v54 = vsel %vm15973_vm9, %v4854_v58, 0.0 }
 0x9cf   :  { %v4976_v49 = vsel %vm15973_vm9, %v4853_v26, 0.0  ;;  %v10438_v43 = vpop.f32.mrb[92].mxu1  ;;  %v4937_v21 = vadd.f32 %v4936_v47, %v4935_v39 }
 0x9d0   :  { %v4971_v59 = vadd.f32 %v4970_v35, %v4969_v42  ;;  %v4808_v6 = vpop.f32.mrb[93].mxu1  ;;  %v4978_v16 = vadd.f32 %v4977_v54, %v4976_v49  ;;  %v4856_v32 = vmul.f32 %v10438_v43, %v13175_v51  ;;  %v4964_v52 = vadd.f32 %v4963_v37, %v4962_v12 }
 0x9d1   :  { %v4855_v40 = vmul.f32 %v4808_v6, %v13173_v7  ;;  %v4956_v42 = vrot.slane %v4955_v63, 1  ;;  %v4948_v43 = vadd.f32 %v4947_v0, %v4946_v36 }
 0x9d2   :  { %v4972_v23 = vrot.slane %v4971_v59, 2  ;;  %v4979_v25 = vrot.slane %v4978_v16, 4  ;;  %v4986_v20 = vsel %vm15973_vm9, %v4856_v32, 0.0  ;;  %v4965_v26 = vrot.slane %v4964_v52, 1 }
 0x9d3   :  { %v4985_v45 = vsel %vm15973_vm9, %v4855_v40, 0.0  ;;  %v10441_v55 = vpop.f32.mrb[94].mxu1  ;;  %v4957_v32 = vadd.f32 %v4956_v42, %v4955_v63  ;;  %v14155_v39 = vadd.f32 %v14078_v60, %v4948_v43 }
 0x9d4   :  { %v4973_v56 = vadd.f32 %v4972_v23, %v4971_v59  ;;  %v4987_v44 = vadd.f32 %v4986_v20, %v4985_v45  ;;  %v4818_v13 = vpop.f32.mrb[95].mxu1  ;;  %v4980_v53 = vadd.f32 %v4979_v25, %v4978_v16  ;;  %v4858_v2 = vmul.f32 %v10441_v55, %v13175_v51 }
 0x9d5   :  { %v4857_v58 = vmul.f32 %v4818_v13, %v13173_v7  ;;  %v4938_v23 = vrot.slane %v4937_v21, 1  ;;  %v4966_v16 = vadd.f32 %v4965_v26, %v4964_v52  ;;  %v14158_v55 = vadd.f32 %v14078_v60, %v4957_v32 }
 0x9d6   :  { %v4988_v12 = vrot.slane %v4987_v44, 4  ;;  %v4974_v37 = vrot.slane %v4973_v56, 1  ;;  %v4981_v35 = vrot.slane %v4980_v53, 2  ;;  %v4995_v54 = vsel %vm15973_vm9, %v4858_v2, 0.0 }
 0x9d7   :  { %v4994_v49 = vsel %vm15973_vm9, %v4857_v58, 0.0  ;;  %v4939_v36 = vadd.f32 %v4938_v23, %v4937_v21  ;;  %v14161_v0 = vadd.f32 %v14078_v60, %v4966_v16  ;;  %v5948_v58 = vrot.slane %v14158_v55, 6 }
 0x9d8   :  { %v4989_v6 = vadd.f32 %v4988_v12, %v4987_v44  ;;  %v4996_v59 = vadd.f32 %v4995_v54, %v4994_v49  ;;  %v4982_v40 = vadd.f32 %v4981_v35, %v4980_v53  ;;  %v4975_v20 = vadd.f32 %v4974_v37, %v4973_v56 }
 0x9d9   :  { %v5946_v56 = vrot.slane %v14155_v39, 7  ;;  %v14172_v26 = vadd.f32 %v14078_v60, %v4939_v36  ;;  %v5950_v21 = vrot.slane %v14161_v0, 5 }
 0x9da   :  { %v4990_v25 = vrot.slane %v4989_v6, 2  ;;  %v4997_v51 = vrot.slane %v4996_v59, 4  ;;  %v4983_v7 = vrot.slane %v4982_v40, 1  ;;  %v14164_v52 = vadd.f32 %v14078_v60, %v4975_v20 }
 0x9db   :  { %v5947_v49 = vsel %vm2598_vm12, %v5946_v56, %v14172_v26 }
 0x9dc   :  { %v4991_v47 = vadd.f32 %v4990_v25, %v4989_v6  ;;  %v4998_v45 = vadd.f32 %v4997_v51, %v4996_v59  ;;  %v4984_v13 = vadd.f32 %v4983_v7, %v4982_v40  ;;  %v5952_v35 = vrot.slane %v14164_v52, 4 }
 0x9dd   :  { %v5949_v6 = vsel %vm2600_vm13, %v5948_v58, %v5947_v49 }
 0x9de   :  { %v4992_v63 = vrot.slane %v4991_v47, 1  ;;  %v4999_v44 = vrot.slane %v4998_v45, 2  ;;  %v14168_v42 = vadd.f32 %v14078_v60, %v4984_v13  ;;  %v5951_v40 = vsel %vm2602_vm14, %v5950_v21, %v5949_v6 }
 0x9df   :  { %v5953_v23 = vsel %vm2604_vm15, %v5952_v35, %v5951_v40 }
 0x9e0   :  { %v4993_v53 = vadd.f32 %v4992_v63, %v4991_v47  ;;  %v5000_v2 = vadd.f32 %v4999_v44, %v4998_v45  ;;  %v5954_v43 = vrot.slane %v14168_v42, 3  ;;  %v10482_v47 = vpop.f32.mrb[108].mxu0 }
 0x9e1   :  { %vm5326_vm1 = vcmp.gt.f32.partialorder %v10482_v47, 0.0  ;;  %v5342_v45 = vmul.f32 0.2, %v10482_v47 }
 0x9e2   :  { %v5001_v12 = vrot.slane %v5000_v2, 1  ;;  %v14176_v37 = vadd.f32 %v14078_v60, %v4993_v53  ;;  %v5955_v16 = vsel %vm2606_vm3, %v5954_v43, %v5953_v23 }
 0x9e3   :  { %v5358_v63 = vsel %vm5326_vm1, %v10482_v47, %v5342_v45 }
 0x9e4   :  { %v5002_v54 = vadd.f32 %v5001_v12, %v5000_v2  ;;  %v5956_v59 = vrot.slane %v14176_v37, 2 }
 0x9e6   :  { %v14185_v32 = vadd.f32 %v14078_v60, %v5002_v54  ;;  %v5957_v51 = vsel %vm2608_vm4, %v5956_v59, %v5955_v16  ;;  %v5262_v60 = vpop.f32.mrb[109].mxu0 }
 0x9e7   :  { %vm5325_vm5 = vcmp.gt.f32.partialorder %v5262_v60, 0.0  ;;  %v5341_v13 = vmul.f32 0.2, %v5262_v60  ;;  %v10485_v36 = vpop.f32.mrb[110].mxu0 }
 0x9e8   :  { %v5958_v25 = vrot.slane %v14185_v32, 1  ;;  %vm5328_vm0 = vcmp.gt.f32.partialorder %v10485_v36, 0.0  ;;  %v5344_v44 = vmul.f32 0.2, %v10485_v36  ;;  %v5272_v56 = vpop.f32.mrb[111].mxu0 }
 0x9e9   :  { %v5357_v53 = vsel %vm5325_vm5, %v5262_v60, %v5341_v13  ;;  %vm5327_vm6 = vcmp.gt.f32.partialorder %v5272_v56, 0.0  ;;  %v5343_v2 = vmul.f32 0.2, %v5272_v56  ;;  %v10488_v58 = vpop.f32.mrb[112].mxu0 }
 0x9ea   :  { %v5959_v20 = vsel %vm16194_vm11, %v5958_v25, %v5957_v51  ;;  %v5371_v21 = vpack.c.bf16 %v5358_v63, %v5357_v53  ;;  %v5360_v12 = vsel %vm5328_vm0, %v10485_v36, %v5344_v44  ;;  %vm5330_vm7 = vcmp.gt.f32.partialorder %v10488_v58, 0.0  ;;  %v5282_v54 = vpop.f32.mrb[113].mxu0 }
 0x9eb   :  { %v5965_v7 = vsel %vm15973_vm9, %v5959_v20, 0.0  ;;  %v5346_v35 = vmul.f32 0.2, %v10488_v58  ;;  %v5359_v49 = vsel %vm5327_vm6, %v5272_v56, %v5343_v2  ;;  %vm5329_vm8 = vcmp.gt.f32.partialorder %v5282_v54, 0.0  ;;  %v10491_v6 = vpop.f32.mrb[114].mxu0 }
 0x9ec   :  { %5966 = vadd.xlane.f32.xlu0 %v5965_v7  ;;  %v5345_v43 = vmul.f32 0.2, %v5282_v54  ;;  %v5372_v59 = vpack.c.bf16 %v5360_v12, %v5359_v49  ;;  %10506 = vmatprep.mubr.msk.bf16.mxu1 %vm15973_vm9, %v5371_v21  ;;  %vm5332_vm2 = vcmp.gt.f32.partialorder %v10491_v6, 0.0  ;;  %v5348_v23 = vmul.f32 0.2, %v10491_v6  ;;  %v5292_v16 = vpop.f32.mrb[115].mxu0 }
 0x9ed   :  { %v5362_v40 = vsel %vm5330_vm7, %v10488_v58, %v5346_v35  ;;  %vm5331_vm11 = vcmp.gt.f32.partialorder %v5292_v16, 0.0  ;;  %v5347_v51 = vmul.f32 0.2, %v5292_v16  ;;  %v10494_v20 = vpop.f32.mrb[116].mxu0  ;;  %vm16195_vm7 = vmmov 0  }
 0x9ee   :  { %v5361_v25 = vsel %vm5329_vm8, %v5282_v54, %v5345_v43  ;;  %10507 = vmatmul.mubr.msk.bf16.gmra.mrb[100].mxu1 %vm15973_vm9, %v5372_v59  ;;  %v5364_v47 = vsel %vm5332_vm2, %v10491_v6, %v5348_v23  ;;  %vm5334_vm1 = vcmp.gt.f32.partialorder %v10494_v20, 0.0  ;;  %v5350_v45 = vmul.f32 0.2, %v10494_v20  ;;  %v5302_v60 = vpop.f32.mrb[117].mxu0  ;;  %v11425_v43 = vld [vmem:[%s11559_s13] sm:$0xff] }
 0x9ef   :  { %v5373_v7 = vpack.c.bf16 %v5362_v40, %v5361_v25  ;;  %v5363_v13 = vsel %vm5331_vm11, %v5292_v16, %v5347_v51  ;;  %vm5333_vm5 = vcmp.gt.f32.partialorder %v5302_v60, 0.0  ;;  %v5349_v36 = vmul.f32 0.2, %v5302_v60  ;;  %v10497_v63 = vpop.f32.mrb[118].mxu0 }
 0x9f0   :  { %v5374_v44 = vpack.c.bf16 %v5364_v47, %v5363_v13  ;;  %v5366_v56 = vsel %vm5334_vm1, %v10494_v20, %v5350_v45  ;;  %vm5336_vm0 = vcmp.gt.f32.partialorder %v10497_v63, 0.0  ;;  %v5352_v53 = vmul.f32 0.2, %v10497_v63  ;;  %v5312_v2 = vpop.f32.mrb[119].mxu0 }
 0x9f1   :  { %10510 = vmatprep.mubr.msk.bf16.mxu1 %vm15973_vm9, %v5373_v7  ;;  %v5365_v58 = vsel %vm5333_vm5, %v5302_v60, %v5349_v36  ;;  %vm5335_vm6 = vcmp.gt.f32.partialorder %v5312_v2, 0.0  ;;  %v5351_v21 = vmul.f32 0.2, %v5312_v2  ;;  %vm16196_vm8 = vcmask 1047559  }
 0x9f2   :  { %v5375_v12 = vpack.c.bf16 %v5366_v56, %v5365_v58  ;;  %v5368_v35 = vsel %vm5336_vm0, %v10497_v63, %v5352_v53  ;;  %vm16198_vm2 = vmmov %vm16196_vm8  ;;  %vm16227_vm5 = vcmask 1043456  }
 0x9f3   :  { %v5367_v54 = vsel %vm5335_vm6, %v5312_v2, %v5351_v21  ;;  %vm16221_vm11 = vmmov %vm16198_vm2 }
 0x9f4   :  { %v5376_v49 = vpack.c.bf16 %v5368_v35, %v5367_v54  ;;  %vm16222_vm1 = vmmov %vm16198_vm2 }
 0x9f5   :  { %vm16228_vm0 = vmmov %vm16227_vm5 }
 0x9f6   :  { %10511 = vmatmul.mubr.msk.bf16.gmra.mrb[104].mxu1 %vm15973_vm9, %v5374_v44 }
 0x9f7   :  { %10514 = vmatprep.mubr.msk.bf16.mxu1 %vm15973_vm9, %v5375_v12 }
 0x9fe   :  { %10515 = vmatmul.mubr.msk.bf16.gmra.mrb[108].mxu1 %vm15973_vm9, %v5376_v49 }
 0x9ff   :  { %10522 = vmatprep.mubr.msk.f32.mxu1 %vm2012_vm10, %v11425_v43 }
 0xa06   :  { %10523 = vmatmul.mubr.msk.f32.vlgmr.msra.gmra.mrb[112].mxu1 %vm2012_vm10, %v13962_v57 }
 0xa07   :  { %10525 = vmatprep.mubr.msk.f32.mxu1 %vm2012_vm10, %v13971_v30 }
 0xa0a   :  { %10526 = vmatmul.mubr.msk.f32.gmra.mrb[114].mxu1 %vm2012_vm10, %v13977_v4 }
 0xa0b   :  { %10528 = vmatprep.mubr.msk.f32.mxu1 %vm2012_vm10, %v13983_v46 }
 0xa0e   :  { %10529 = vmatmul.mubr.msk.f32.gmra.mrb[116].mxu1 %vm2012_vm10, %v13989_v1 }
 0xa0f   :  { %10531 = vmatprep.mubr.msk.f32.mxu1 %vm2012_vm10, %v13994_v19 }
 0xa12   :  { %10532 = vmatmul.mubr.msk.f32.gmra.mrb[118].mxu1 %vm2012_vm10, %v13999_v22 }
 0xa13   :  { %10534 = vmatprep.mubr.msk.f32.mxu1 %vm2012_vm10, %v14004_v8 }
 0xa16   :  { %10535 = vmatmul.mubr.msk.f32.gmra.mrb[120].mxu1 %vm2012_vm10, %v14009_v33 }
 0xa17   :  { %10537 = vmatprep.mubr.msk.f32.mxu1 %vm2012_vm10, %v14014_v34 }
 0xa1a   :  { %10538 = vmatmul.mubr.msk.f32.gmra.mrb[122].mxu1 %vm2012_vm10, %v14019_v3 }
 0xa1b   :  { %10540 = vmatprep.mubr.msk.f32.mxu1 %vm2012_vm10, %v14024_v18 }
 0xa1e   :  { %10541 = vmatmul.mubr.msk.f32.gmra.mrb[124].mxu1 %vm2012_vm10, %v14029_v48 }
 0xa1f   :  { %10543 = vmatprep.mubr.msk.f32.mxu1 %vm2012_vm10, %v14034_v29 }
 0xa22   :  { %10544 = vmatmul.mubr.msk.f32.gmra.mrb[126].mxu1 %vm2012_vm10, %v14039_v41 }
 0xa23   :  { %10578 = vmatprep.mubr.msk.bf16.mxu1 %vm16195_vm7, %v16191_v28 }
 0xa59   :  { %v5964_v57 = vpop.xlane.xlu1 %5963 }
 0xa5a   :  { %v5968_v30 = vmul.f32 0.03125, %v5964_v57 }
 0xa5c   :  { %v5972_v4 = vrot.slane %v5968_v30, 1  ;;  %v5973_v46 = vrot.slane %v5968_v30, 2  ;;  %v5974_v1 = vrot.slane %v5968_v30, 3  ;;  %v5975_v19 = vrot.slane %v5968_v30, 4 }
 0xa5d   :  { %v5976_v22 = vrot.slane %v5968_v30, 5  ;;  %v5977_v8 = vrot.slane %v5968_v30, 6  ;;  %v5978_v33 = vrot.slane %v5968_v30, 7  ;;  %v14235_v34 = vsub.f32 %v14105_v31, %v5968_v30 }
 0xa5e   :  { %v14238_v3 = vsub.f32 %v14081_v11, %v5972_v4  ;;  %v14241_v18 = vsub.f32 %v14088_v62, %v5973_v46  ;;  %v14244_v48 = vsub.f32 %v14093_v50, %v5974_v1  ;;  %v14247_v29 = vsub.f32 %v14097_v27, %v5975_v19 }
 0xa5f   :  { %v14250_v41 = vsub.f32 %v14102_v9, %v5976_v22  ;;  %v14253_v6 = vsub.f32 %v14112_v24, %v5977_v8  ;;  %v14256_v31 = vsub.f32 %v14124_v14, %v5978_v33  ;;  %v6018_v9 = vmul.f32 %v14235_v34, %v14235_v34 }
 0xa60   :  { %v6019_v11 = vmul.f32 %v14238_v3, %v14238_v3  ;;  %v6020_v62 = vmul.f32 %v14241_v18, %v14241_v18  ;;  %v6021_v50 = vmul.f32 %v14244_v48, %v14244_v48  ;;  %v6022_v27 = vmul.f32 %v14247_v29, %v14247_v29 }
 0xa61   :  { %v6023_v24 = vmul.f32 %v14250_v41, %v14250_v41  ;;  %v6024_v40 = vmul.f32 %v14253_v6, %v14253_v6  ;;  %v6025_v23 = vmul.f32 %v14256_v31, %v14256_v31 }
 0xa62   :  { %v6050_v14 = vrot.slane %v6019_v11, 7  ;;  %v6052_v59 = vrot.slane %v6020_v62, 6  ;;  %v6054_v25 = vrot.slane %v6021_v50, 5  ;;  %v6056_v20 = vrot.slane %v6022_v27, 4 }
 0xa63   :  { %v6058_v47 = vrot.slane %v6023_v24, 3  ;;  %v6060_v60 = vrot.slane %v6024_v40, 2  ;;  %v6062_v36 = vrot.slane %v6025_v23, 1 }
 0xa64   :  { %v6051_v16 = vsel %vm2598_vm12, %v6050_v14, %v6018_v9 }
 0xa65   :  { %v6053_v51 = vsel %vm2600_vm13, %v6052_v59, %v6051_v16 }
 0xa66   :  { %v6055_v7 = vsel %vm2602_vm14, %v6054_v25, %v6053_v51 }
 0xa67   :  { %v6057_v45 = vsel %vm2604_vm15, %v6056_v20, %v6055_v7  ;;  %v6200_v7 = vld [vmem:[%s16197_s3] sm:$0xff] }
 0xa68   :  { %v6059_v13 = vsel %vm2606_vm3, %v6058_v47, %v6057_v45  ;;  %v6201_v47 = vld [vmem:[%s16197_s3 + $0x8] sm:$0xff]  ;;  %v6202_v45 = vld [vmem:[%s16197_s3 + $0x10] sm:$0xff] }
 0xa69   :  { %v6061_v63 = vsel %vm2608_vm4, %v6060_v60, %v6059_v13  ;;  %v6226_v60 = vpack.c.bf16 %v6201_v47, %v6200_v7  ;;  %v6203_v13 = vld [vmem:[%s16197_s3 + $0x18] sm:$0xff] }
 0xa6a   :  { %v6063_v44 = vsel %vm16196_vm8, %v6062_v36, %v6061_v63  ;;  %v6227_v36 = vpack.c.bf16 %v6203_v13, %v6202_v45  ;;  %v10504_v63 = vpop.f32.mrb[96].mxu1 }
 0xa6b   :  { %v6080_v56 = vsel %vm15973_vm9, %v6063_v44, 0.0  ;;  %10575 = vmatpush3.bf16.msra.mxu1 %v6226_v60  ;;  %v14335_v44 = vpop.f32.mrb[120].mxu0 }
 0xa6c   :  { %6081 = vadd.xlane.f32.xlu0 %v6080_v56  ;;  %10576 = vmatprep.subr.bf16.mxu1 %v16191_v28  ;;  %v5435_v56 = vpop.f32.mrb[97].mxu1 }
 0xa6f   :  { %10577 = vmatpush3.bf16.msra.mxu1 %v6227_v36 }
 0xa79   :  { %v5967_v53 = vpop.xlane.xlu0 %5966 }
 0xa7a   :  { %v5969_v2 = vmul.f32 0.03125, %v5967_v53  ;;  %v14337_v53 = vpop.f32.mrb[121].mxu0 }
 0xa7c   :  { %v5979_v58 = vrot.slane %v5969_v2, 1  ;;  %v5980_v21 = vrot.slane %v5969_v2, 2  ;;  %v5981_v12 = vrot.slane %v5969_v2, 3  ;;  %v5982_v35 = vrot.slane %v5969_v2, 4 }
 0xa7d   :  { %v5983_v54 = vrot.slane %v5969_v2, 5  ;;  %v5984_v49 = vrot.slane %v5969_v2, 6  ;;  %v5985_v43 = vrot.slane %v5969_v2, 7  ;;  %v14283_v57 = vsub.f32 %v14172_v26, %v5969_v2  ;;  %v10505_v2 = vpop.f32.mrb[98].mxu1 }
 0xa7e   :  { %v14286_v30 = vsub.f32 %v14155_v39, %v5979_v58  ;;  %v14289_v4 = vsub.f32 %v14158_v55, %v5980_v21  ;;  %v14292_v46 = vsub.f32 %v14161_v0, %v5981_v12  ;;  %v14295_v1 = vsub.f32 %v14164_v52, %v5982_v35  ;;  %v14339_v58 = vpop.f32.mrb[122].mxu0  ;;  %v5438_v21 = vpop.f32.mrb[99].mxu1 }
 0xa7f   :  { %v14298_v19 = vsub.f32 %v14168_v42, %v5983_v54  ;;  %v14301_v22 = vsub.f32 %v14176_v37, %v5984_v49  ;;  %v14304_v26 = vsub.f32 %v14185_v32, %v5985_v43  ;;  %v6026_v42 = vmul.f32 %v14283_v57, %v14283_v57  ;;  %v14341_v12 = vpop.f32.mrb[123].mxu0 }
 0xa80   :  { %v6027_v39 = vmul.f32 %v14286_v30, %v14286_v30  ;;  %v6028_v55 = vmul.f32 %v14289_v4, %v14289_v4  ;;  %v6029_v0 = vmul.f32 %v14292_v46, %v14292_v46  ;;  %v6030_v52 = vmul.f32 %v14295_v1, %v14295_v1  ;;  %v14343_v35 = vpop.f32.mrb[124].mxu0 }
 0xa81   :  { %v6031_v37 = vmul.f32 %v14298_v19, %v14298_v19  ;;  %v6032_v33 = vmul.f32 %v14301_v22, %v14301_v22  ;;  %v6033_v11 = vmul.f32 %v14304_v26, %v14304_v26  ;;  %v14345_v54 = vpop.f32.mrb[125].mxu0 }
 0xa82   :  { %v6064_v32 = vrot.slane %v6027_v39, 7  ;;  %v6066_v8 = vrot.slane %v6028_v55, 6  ;;  %v6068_v50 = vrot.slane %v6029_v0, 5  ;;  %v6070_v9 = vrot.slane %v6030_v52, 4  ;;  %v14347_v49 = vpop.f32.mrb[126].mxu0 }
 0xa83   :  { %v6072_v14 = vrot.slane %v6031_v37, 3  ;;  %v6074_v40 = vrot.slane %v6032_v33, 2  ;;  %v6076_v16 = vrot.slane %v6033_v11, 1  ;;  %16199 = vst [vmem:[#allocation67_spill] sm:$0xff] %v14347_v49  ;;  %v14349_v43 = vpop.f32.mrb[127].mxu0 }
 0xa84   :  { %v6065_v62 = vsel %vm2598_vm12, %v6064_v32, %v6026_v42  ;;  %16200 = vst [vmem:[#allocation68_spill] sm:$0xff] %v14349_v43  ;;  %v14351_v39 = vpop.f32.mrb[128].mxu0 }
 0xa85   :  { %v6067_v27 = vsel %vm2600_vm13, %v6066_v8, %v6065_v62  ;;  %16201 = vst [vmem:[#allocation69_spill] sm:$0xff] %v14351_v39  ;;  %v14353_v55 = vpop.f32.mrb[129].mxu0 }
 0xa86   :  { %v6069_v24 = vsel %vm2602_vm14, %v6068_v50, %v6067_v27  ;;  %16202 = vst [vmem:[#allocation70_spill] sm:$0xff] %v14353_v55  ;;  %v14355_v0 = vpop.f32.mrb[130].mxu0 }
 0xa87   :  { %v6071_v59 = vsel %vm2604_vm15, %v6070_v9, %v6069_v24  ;;  %16203 = vst [vmem:[#allocation71_spill] sm:$0xff] %v14355_v0  ;;  %v14357_v52 = vpop.f32.mrb[131].mxu0 }
 0xa88   :  { %v6073_v23 = vsel %vm2606_vm3, %v6072_v14, %v6071_v59  ;;  %16204 = vst [vmem:[#allocation72_spill] sm:$0xff] %v14357_v52  ;;  %v14359_v42 = vpop.f32.mrb[132].mxu0 }
 0xa89   :  { %v6075_v25 = vsel %vm2608_vm4, %v6074_v40, %v6073_v23  ;;  %16205 = vst [vmem:[#allocation73_spill] sm:$0xff] %v14359_v42  ;;  %v14361_v37 = vpop.f32.mrb[133].mxu0 }
 0xa8a   :  { %v6077_v51 = vsel %vm16198_vm2, %v6076_v16, %v6075_v25  ;;  %16206 = vst [vmem:[#allocation74_spill] sm:$0xff] %v14361_v37  ;;  %v14363_v32 = vpop.f32.mrb[134].mxu0 }
 0xa8b   :  { %v6083_v20 = vsel %vm15973_vm9, %v6077_v51, 0.0  ;;  %16207 = vst [vmem:[#allocation75_spill] sm:$0xff] %v14363_v32  ;;  %v14365_v8 = vpop.f32.mrb[135].mxu0 }
 0xa8c   :  { %6084 = vadd.xlane.f32.xlu1 %v6083_v20  ;;  %16208 = vst [vmem:[#allocation76_spill] sm:$0xff] %v14365_v8 }
 0xac1   :  { %v14367_v33 = vpop.f32.mrb[100].mxu1 }
 0xac2   :  { %v14369_v11 = vpop.f32.mrb[101].mxu1 }
 0xac3   :  { %v14371_v62 = vpop.f32.mrb[102].mxu1 }
 0xac4   :  { %v14373_v50 = vpop.f32.mrb[103].mxu1 }
 0xac9   :  { %v14375_v27 = vpop.f32.mrb[104].mxu1 }
 0xaca   :  { %v14377_v9 = vpop.f32.mrb[105].mxu1 }
 0xacb   :  { %v14379_v24 = vpop.f32.mrb[106].mxu1 }
 0xacc   :  { %v14381_v14 = vpop.f32.mrb[107].mxu1 }
 0xad1   :  { %v14383_v59 = vpop.f32.mrb[108].mxu1 }
 0xad2   :  { %v14385_v40 = vpop.f32.mrb[109].mxu1 }
 0xad3   :  { %v14387_v23 = vpop.f32.mrb[110].mxu1 }
 0xad4   :  { %v14389_v25 = vpop.f32.mrb[111].mxu1 }
 0xad9   :  { %v10524_v7 = vpop.f32.mrb[112].mxu1 }
 0xada   :  { %v5853_v47 = vsub.f32 %v5438_v21, %v10524_v7  ;;  %v5596_v45 = vpop.f32.mrb[113].mxu1 }
 0xadb   :  { %v5852_v60 = vsub.f32 %v5435_v56, %v5596_v45 }
 0xadc   :  { %v5870_v36 = vmul.f32 1.442695, %v5853_v47 }
 0xadd   :  { %v10527_v13 = vpop.f32.mrb[114].mxu1  ;;  %v5868_v5 = vmul.f32 1.442695, %v5852_v60 }
 0xade   :  { %v5855_v28 = vsub.f32 %v10505_v2, %v10527_v13  ;;  %v5606_v38 = vpop.f32.mrb[115].mxu1  ;;  %v14400_v2 = vld [vmem:[%s16209_s8] ss:$0 sm:$0xff] }
 0xadf   :  { %v5854_v61 = vsub.f32 %v10504_v63, %v5606_v38 }
 0xae0   :  { %v5874_v21 = vmul.f32 1.442695, %v5855_v28 }
 0xae1   :  { %v14391_v15 = vpop.f32.mrb[116].mxu1  ;;  %v5872_v56 = vmul.f32 1.442695, %v5854_v61 }
 0xae2   :  { %v5857_v10 = vsub.f32 %v14373_v50, %v14391_v15 }
 0xae4   :  { %v5878_v55 = vmul.f32 1.442695, %v5857_v10 }
 0xaf9   :  { %v6082_v16 = vpop.xlane.xlu0 %6081 }
 0xafa   :  { %v6086_v51 = vmul.f32 0.03125, %v6082_v16  ;;  %v14395_v16 = vpop.f32.mrb[117].mxu1 }
 0xafb   :  { %v14403_v50 = vpop.f32.mrb[118].mxu1 }
 0xafc   :  { %v6088_v20 = vadd.f32 1e-05, %v6086_v51  ;;  %v14412_v17 = vpop.f32.mrb[119].mxu1  ;;  %v5859_v10 = vsub.f32 %v14371_v62, %v14403_v50 }
 0xafe   :  { %11210 = vrsqrt.f32 %v6088_v20 }
 0xaff   :  { %11212 = vpow2.f32 %v5870_v36  ;;  %v14406_v36 = vld [vmem:[%s16210_s14] ss:$0 sm:$0xff] }
 0xb00   :  { %11214 = vpow2.f32 %v5868_v5 }
 0xb01   :  { %11216 = vpow2.f32 %v5874_v21 }
 0xb02   :  { %11218 = vpow2.f32 %v5872_v56 }
 0xb03   :  { %11220 = vpow2.f32 %v5878_v55  ;;  %v5882_v55 = vmul.f32 1.442695, %v5859_v10 }
 0xb08   :  { %v11211_v51 = vpop.eup %11210 }
 0xb09   :  { %v6094_v7 = vrot.slane %v11211_v51, 1  ;;  %v6095_v38 = vrot.slane %v11211_v51, 2  ;;  %v6096_v63 = vrot.slane %v11211_v51, 3  ;;  %v6097_v47 = vrot.slane %v11211_v51, 4 }
 0xb0a   :  { %v6098_v45 = vrot.slane %v11211_v51, 5  ;;  %v6099_v60 = vrot.slane %v11211_v51, 6  ;;  %v6100_v13 = vrot.slane %v11211_v51, 7  ;;  %v6124_v15 = vmul.f32 %v11211_v51, %v14235_v34 }
 0xb0b   :  { %v6125_v61 = vmul.f32 %v6094_v7, %v14238_v3  ;;  %v6126_v5 = vmul.f32 %v6095_v38, %v14241_v18  ;;  %v6127_v28 = vmul.f32 %v6096_v63, %v14244_v48  ;;  %v6128_v20 = vmul.f32 %v6097_v47, %v14247_v29  ;;  %v10536_v38 = vpop.f32.mrb[120].mxu1 }
 0xb0c   :  { %v6129_v8 = vmul.f32 %v6098_v45, %v14250_v41  ;;  %v6130_v32 = vmul.f32 %v6099_v60, %v14253_v6  ;;  %v6131_v34 = vmul.f32 %v6100_v13, %v14256_v31  ;;  %v6146_v51 = vmul.f32 %v14400_v2, %v6124_v15  ;;  %v14430_v60 = vpop.f32.mrb[121].mxu1 }
 0xb0d   :  { %v6147_v37 = vmul.f32 %v14400_v2, %v6125_v61  ;;  %v6148_v3 = vmul.f32 %v14400_v2, %v6126_v5  ;;  %v6149_v18 = vmul.f32 %v14400_v2, %v6127_v28  ;;  %v6150_v48 = vmul.f32 %v14400_v2, %v6128_v20  ;;  %v10539_v28 = vpop.f32.mrb[122].mxu1 }
 0xb0e   :  { %v6151_v29 = vmul.f32 %v14400_v2, %v6129_v8  ;;  %v6152_v7 = vmul.f32 %v14400_v2, %v6130_v32  ;;  %v6153_v41 = vmul.f32 %v14400_v2, %v6131_v34  ;;  %v6168_v6 = vadd.f32 %v14406_v36, %v6146_v51  ;;  %v11213_v32 = vpop.eup %11212 }
 0xb0f   :  { %v6169_v31 = vadd.f32 %v14406_v36, %v6147_v37  ;;  %v6170_v63 = vadd.f32 %v14406_v36, %v6148_v3  ;;  %v6171_v47 = vadd.f32 %v14406_v36, %v6149_v18  ;;  %v6172_v45 = vadd.f32 %v14406_v36, %v6150_v48  ;;  %v11215_v5 = vpop.eup %11214  ;;  %v5646_v48 = vpop.f32.mrb[123].mxu1 }
 0xb10   :  { %v6173_v20 = vadd.f32 %v14406_v36, %v6151_v29  ;;  %v6174_v8 = vadd.f32 %v14406_v36, %v6152_v7  ;;  %v6175_v13 = vadd.f32 %v14406_v36, %v6153_v41  ;;  %v6184_v37 = vmax.f32 %v6168_v6, 0.0  ;;  %v10542_v39 = vpop.f32.mrb[124].mxu1 }
 0xb11   :  { %v6185_v15 = vmax.f32 %v6169_v31, 0.0  ;;  %v6186_v61 = vmax.f32 %v6170_v63, 0.0  ;;  %v6187_v34 = vmax.f32 %v6171_v47, 0.0  ;;  %v6188_v51 = vmax.f32 %v6172_v45, 0.0  ;;  %v5656_v43 = vpop.f32.mrb[125].mxu1 }
 0xb12   :  { %v6189_v42 = vmax.f32 %v6173_v20, 0.0  ;;  %v6190_v52 = vmax.f32 %v6174_v8, 0.0  ;;  %v6191_v29 = vmax.f32 %v6175_v13, 0.0  ;;  %v6210_v7 = vpack.c.bf16 %v6184_v37, %v6184_v37 }
 0xb13   :  { %v6211_v3 = vpack.c.bf16 %v6185_v15, %v6185_v15  ;;  %v6212_v18 = vpack.c.bf16 %v6186_v61, %v6186_v61  ;;  %v6213_v31 = vpack.c.bf16 %v6187_v34, %v6187_v34  ;;  %v6214_v63 = vpack.c.bf16 %v6188_v51, %v6188_v51 }
 0xb14   :  { %v6215_v56 = vpack.c.bf16 %v6189_v42, %v6189_v42  ;;  %v14435_v49 = vpack.c.bf16 %v6190_v52, %v6190_v52  ;;  %v14437_v45 = vpack.c.bf16 %v6191_v29, %v6191_v29  ;;  %v16211_v20 = vsub.f32 %v14369_v11, %v14395_v16  ;;  %v10545_v52 = vpop.f32.mrb[126].mxu1 }
 0xb15   :  { %v6251_v0 = vunpack.c.l.b16 %v6211_v3  ;;  %v6252_v21 = vunpack.c.l.b16 %v6212_v18  ;;  %v6250_v15 = vunpack.c.l.b16 %v6210_v7  ;;  %v5858_v61 = vsub.f32 %v14367_v33, %v14412_v17  ;;  %v14450_v11 = vpop.f32.mrb[127].mxu1 }
 0xb16   :  { %v5876_v8 = vmul.f32 1.442695, %v16211_v20  ;;  %v14447_v42 = vmul.f32 %v11213_v32, %v14335_v44  ;;  %v5861_v34 = vsub.f32 %v14381_v14, %v10536_v38  ;;  %v14454_v51 = vmul.f32 %v11215_v5, %v14337_v53 }
 0xb17   :  { %v6266_v47 = vrot.slane %v6251_v0, 7  ;;  %v11217_v0 = vpop.eup %11216  ;;  %v6268_v37 = vrot.slane %v6252_v21, 6  ;;  %v5880_v50 = vmul.f32 1.442695, %v5858_v61  ;;  %v6253_v17 = vunpack.c.l.b16 %v6213_v31 }
 0xb18   :  { %11222 = vpow2.f32 %v5876_v8  ;;  %v11219_v16 = vpop.eup %11218  ;;  %v6254_v44 = vunpack.c.l.b16 %v6214_v63  ;;  %v5886_v33 = vmul.f32 1.442695, %v5861_v34  ;;  %v5860_v32 = vsub.f32 %v14377_v9, %v14430_v60 }
 0xb19   :  { %v6085_v41 = vpop.xlane.xlu1 %6084  ;;  %v6267_v62 = vsel %vm2598_vm12, %v6266_v47, %v6250_v15  ;;  %v6255_v3 = vunpack.c.l.b16 %v6215_v56  ;;  %v14459_v14 = vmul.f32 %v11217_v0, %v14339_v58  ;;  %v5863_v38 = vsub.f32 %v14379_v24, %v10539_v28 }
 0xb1a   :  { %v6087_v6 = vmul.f32 0.03125, %v6085_v41  ;;  %v6269_v18 = vsel %vm2600_vm13, %v6268_v37, %v6267_v62  ;;  %v5884_v29 = vmul.f32 1.442695, %v5860_v32  ;;  %v14464_v53 = vmul.f32 %v11219_v16, %v14341_v12  ;;  %v11221_v12 = vpop.eup %11220 }
 0xb1b   :  { %v5890_v5 = vmul.f32 1.442695, %v5863_v38  ;;  %v5862_v7 = vsub.f32 %v14375_v27, %v5646_v48  ;;  %v5865_v41 = vsub.f32 %v14389_v25, %v10542_v39  ;;  %v5864_v9 = vsub.f32 %v14385_v40, %v5656_v43 }
 0xb1c   :  { %v6089_v13 = vadd.f32 1e-05, %v6087_v6  ;;  %v6270_v60 = vrot.slane %v6253_v17, 5  ;;  %v5867_v58 = vsub.f32 %v14387_v23, %v10545_v52  ;;  %v5866_v24 = vsub.f32 %v14383_v59, %v14450_v11 }
 0xb1d   :  { %v5888_v28 = vmul.f32 1.442695, %v5862_v7  ;;  %v5894_v31 = vmul.f32 1.442695, %v5865_v41  ;;  %v5892_v63 = vmul.f32 1.442695, %v5864_v9  ;;  %v14474_v39 = vmul.f32 %v11221_v12, %v14343_v35 }
 0xb1e   :  { %11224 = vrsqrt.f32 %v6089_v13  ;;  %v6271_v21 = vsel %vm2602_vm14, %v6270_v60, %v6269_v18  ;;  %v6272_v27 = vrot.slane %v6254_v44, 4  ;;  %v6256_v40 = vunpack.c.l.b16 %v14435_v49  ;;  %v16214_v49 = vld [vmem:[#allocation69_spill] sm:$0xff] }
 0xb1f   :  { %11226 = vpow2.f32 %v5882_v55  ;;  %v6257_v23 = vunpack.c.l.b16 %v14437_v45  ;;  %v14478_v25 = vrot.slane %v6255_v3, 3  ;;  %v14486_v47 = vmul.f32 1.442695, %v5867_v58  ;;  %v16225_v45 = vld [vmem:[#allocation76_spill] sm:$0xff] }
 0xb20   :  { %11228 = vpow2.f32 %v5880_v50  ;;  %v14481_v6 = vsel %vm2604_vm15, %v6272_v27, %v6271_v21 }
 0xb21   :  { %11230 = vpow2.f32 %v5886_v33 }
 0xb22   :  { %11232 = vpow2.f32 %v5884_v29  ;;  %v11223_v43 = vpop.eup %11222 }
 0xb23   :  { %11234 = vpow2.f32 %v5890_v5  ;;  %v14484_v56 = vmul.f32 %v11223_v43, %v14345_v54 }
 0xb24   :  { %11236 = vpow2.f32 %v5888_v28 }
 0xb25   :  { %11238 = vpow2.f32 %v5894_v31 }
 0xb26   :  { %11240 = vpow2.f32 %v5892_v63 }
 0xb27   :  { %11242 = vpow2.f32 %v14486_v47 }
 0xb28   :  { %v11225_v48 = vpop.eup %11224 }
 0xb29   :  { %v6101_v35 = vrot.slane %v11225_v48, 1  ;;  %v6102_v20 = vrot.slane %v11225_v48, 2  ;;  %v6103_v8 = vrot.slane %v11225_v48, 3  ;;  %v6104_v10 = vrot.slane %v11225_v48, 4  ;;  %v11227_v13 = vpop.eup %11226 }
 0xb2a   :  { %v6105_v15 = vrot.slane %v11225_v48, 5  ;;  %v6106_v61 = vrot.slane %v11225_v48, 6  ;;  %v6107_v52 = vrot.slane %v11225_v48, 7  ;;  %v6132_v0 = vmul.f32 %v11225_v48, %v14283_v57  ;;  %v14489_v37 = vpop.eup %11228 }
 0xb2b   :  { %v6133_v55 = vmul.f32 %v6101_v35, %v14286_v30  ;;  %v6134_v54 = vmul.f32 %v6102_v20, %v14289_v4  ;;  %v6135_v34 = vmul.f32 %v6103_v8, %v14292_v46  ;;  %v6136_v16 = vmul.f32 %v6104_v10, %v14295_v1  ;;  %v11231_v33 = vpop.eup %11230 }
 0xb2c   :  { %v6137_v62 = vmul.f32 %v6105_v15, %v14298_v19  ;;  %v6138_v50 = vmul.f32 %v6106_v61, %v14301_v22  ;;  %v6139_v17 = vmul.f32 %v6107_v52, %v14304_v26  ;;  %v6154_v44 = vmul.f32 %v14400_v2, %v6132_v0  ;;  %v11233_v46 = vpop.eup %11232 }
 0xb2d   :  { %v6155_v57 = vmul.f32 %v14400_v2, %v6133_v55  ;;  %v6156_v32 = vmul.f32 %v14400_v2, %v6134_v54  ;;  %v6157_v30 = vmul.f32 %v14400_v2, %v6135_v34  ;;  %v6158_v4 = vmul.f32 %v14400_v2, %v6136_v16  ;;  %v11235_v3 = vpop.eup %11234 }
 0xb2e   :  { %v6159_v1 = vmul.f32 %v14400_v2, %v6137_v62  ;;  %v6160_v19 = vmul.f32 %v14400_v2, %v6138_v50  ;;  %v6161_v22 = vmul.f32 %v14400_v2, %v6139_v17  ;;  %v6176_v26 = vadd.f32 %v14406_v36, %v6154_v44  ;;  %v11237_v7 = vpop.eup %11236  ;;  %v16212_v44 = vld [vmem:[#allocation67_spill] sm:$0xff] }
 0xb2f   :  { %v6177_v38 = vadd.f32 %v14406_v36, %v6155_v57  ;;  %v6178_v18 = vadd.f32 %v14406_v36, %v6156_v32  ;;  %v6179_v29 = vadd.f32 %v14406_v36, %v6157_v30  ;;  %v6180_v5 = vadd.f32 %v14406_v36, %v6158_v4  ;;  %v11239_v2 = vpop.eup %11238 }
 0xb30   :  { %v6181_v41 = vadd.f32 %v14406_v36, %v6159_v1  ;;  %v6182_v9 = vadd.f32 %v14406_v36, %v6160_v19  ;;  %v6183_v60 = vadd.f32 %v14406_v36, %v6161_v22  ;;  %v6192_v58 = vmax.f32 %v6176_v26, 0.0  ;;  %v11241_v21 = vpop.eup %11240  ;;  %v16213_v22 = vld [vmem:[#allocation68_spill] sm:$0xff] }
 0xb31   :  { %v6193_v28 = vmax.f32 %v6177_v38, 0.0  ;;  %v6194_v31 = vmax.f32 %v6178_v18, 0.0  ;;  %v6195_v63 = vmax.f32 %v6179_v29, 0.0  ;;  %v6196_v12 = vmax.f32 %v6180_v5, 0.0  ;;  %v16216_v38 = vld [vmem:[#allocation71_spill] sm:$0xff]  ;;  %v16217_v29 = vld [vmem:[#allocation72_spill] sm:$0xff] }
 0xb32   :  { %v6197_v27 = vmax.f32 %v6181_v41, 0.0  ;;  %v6198_v43 = vmax.f32 %v6182_v9, 0.0  ;;  %v6199_v48 = vmax.f32 %v6183_v60, 0.0  ;;  %v6218_v35 = vpack.c.bf16 %v6192_v58, %v6192_v58  ;;  %v16219_v60 = vld [vmem:[#allocation74_spill] sm:$0xff] }
 0xb33   :  { %v6219_v20 = vpack.c.bf16 %v6193_v28, %v6193_v28  ;;  %v6220_v8 = vpack.c.bf16 %v6194_v31, %v6194_v31  ;;  %v6221_v10 = vpack.c.bf16 %v6195_v63, %v6195_v63  ;;  %v6222_v15 = vpack.c.bf16 %v6196_v12, %v6196_v12 }
 0xb34   :  { %v6223_v61 = vpack.c.bf16 %v6197_v27, %v6197_v27  ;;  %v6224_v52 = vpack.c.bf16 %v6198_v43, %v6198_v43  ;;  %v6225_v0 = vpack.c.bf16 %v6199_v48, %v6199_v48  ;;  %v5896_v36 = vmul.f32 1.442695, %v5866_v24  ;;  %v11243_v27 = vpop.eup %11242  ;;  %v16224_v48 = vld [vmem:[#allocation75_spill] sm:$0xff] }
 0xb35   :  { %v6259_v55 = vunpack.c.l.b16 %v6219_v20  ;;  %v6260_v54 = vunpack.c.l.b16 %v6220_v8  ;;  %v6261_v34 = vunpack.c.l.b16 %v6221_v10  ;;  %v6262_v16 = vunpack.c.l.b16 %v6222_v15  ;;  %v6205_v20 = vld [vmem:[%s16220_s19] sm:$0xff]  ;;  %v6206_v8 = vld [vmem:[%s16220_s19 + $0x8] sm:$0xff]  ;;  %v6207_v15 = vld [vmem:[%s16220_s19 + $0x10] sm:$0xff] }
 0xb36   :  { %v6258_v62 = vunpack.c.l.b16 %v6218_v35  ;;  %v6275_v50 = vsel %vm2606_vm3, %v14478_v25, %v14481_v6  ;;  %v6276_v17 = vrot.slane %v6256_v40, 2  ;;  %v14523_v57 = vmul.f32 %v11227_v13, %v16212_v44  ;;  %v16215_v13 = vld [vmem:[#allocation70_spill] sm:$0xff]  ;;  %v16230_v44 = vld [vmem:[#allocation21_spill] sm:$0xff] }
 0xb37   :  { %v6263_v32 = vunpack.c.l.b16 %v6223_v61  ;;  %v6264_v30 = vunpack.c.l.b16 %v6224_v52  ;;  %v6280_v4 = vrot.slane %v6259_v55, 7  ;;  %v6282_v59 = vrot.slane %v6260_v54, 6 }
 0xb38   :  { %v6265_v11 = vunpack.c.l.b16 %v6225_v0  ;;  %v6284_v24 = vrot.slane %v6261_v34, 5  ;;  %v6286_v1 = vrot.slane %v6262_v16, 4  ;;  %v14529_v25 = vmul.f32 %v14489_v37, %v16213_v22  ;;  %v16218_v37 = vld [vmem:[#allocation73_spill] sm:$0xff]  ;;  %v9576_v0 = vld [vmem:[%s16223_s24] ss:$0 sm:$0xff] }
 0xb39   :  { %v6281_v19 = vsel %vm2598_vm12, %v6280_v4, %v6258_v62  ;;  %11244 = vpow2.f32 %v5896_v36  ;;  %v14532_v40 = vmul.f32 %v11231_v33, %v16214_v49  ;;  %v14536_v26 = vmul.f32 %v11233_v46, %v16215_v13 }
 0xb3a   :  { %v6283_v6 = vsel %vm2600_vm13, %v6282_v59, %v6281_v19  ;;  %v14539_v18 = vmul.f32 %v11235_v3, %v16216_v38  ;;  %v14542_v47 = vmul.f32 %v11237_v7, %v16217_v29  ;;  %v6288_v41 = vrot.slane %v6263_v32, 3 }
 0xb3b   :  { %v6285_v5 = vsel %vm2602_vm14, %v6284_v24, %v6283_v6  ;;  %v14546_v9 = vmul.f32 %v11239_v2, %v16218_v37  ;;  %v14549_v33 = vmul.f32 %v11241_v21, %v16219_v60  ;;  %v6277_v58 = vsel %vm2608_vm4, %v6276_v17, %v6275_v50 }
 0xb3c   :  { %v6287_v46 = vsel %vm2604_vm15, %v6286_v1, %v6285_v5  ;;  %v6290_v3 = vrot.slane %v6264_v30, 2  ;;  %v6278_v7 = vrot.slane %v6257_v23, 1  ;;  %v6292_v31 = vrot.slane %v6265_v11, 1 }
 0xb3d   :  { %v6289_v28 = vsel %vm2606_vm3, %v6288_v41, %v6287_v46  ;;  %v14561_v35 = vmul.f32 %v11243_v27, %v16224_v48  ;;  %v14568_v10 = vpack.c.bf16 %v6206_v8, %v6205_v20  ;;  %v14572_v61 = vpack.c.bf16 %v6207_v15, %v6207_v15 }
 0xb3e   :  { %v6291_v2 = vsel %vm2608_vm4, %v6290_v3, %v6289_v28  ;;  %v6279_v63 = vsel %vm16221_vm11, %v6278_v7, %v6277_v58 }
 0xb3f   :  { %v6293_v12 = vsel %vm16222_vm1, %v6292_v31, %v6291_v2  ;;  %10582 = vmatprep.subr.bf16.mxu1 %v14568_v10  ;;  %16226 = vst [vmem:[#allocation67_spill] sm:$0xff] %v14572_v61  ;;  %v14579_v52 = vsel %vm16228_vm0, %v14572_v61, 0  ;;  %v16231_v2 = vld [vmem:[#allocation22_spill] sm:$0xff] }
 0xb40   :  { %v6294_v21 = vpack.c.b16 %v6293_v12, %v6279_v63  ;;  %16229 = vst [vmem:[#allocation68_spill] sm:$0xff] %v14579_v52 }
 0xb42   :  { %10579 = vmatmul.mubr.msk.bf16.vlgmr.msra.gmra.mrb[128].mxu1 %vm15973_vm9, %v6294_v21 }
 0xb43   :  { %v11245_v43 = vpop.eup %11244  ;;  %10583 = vmatpush3.bf16.msra.mxu1 %v14568_v10 }
 0xb44   :  { %v14564_v23 = vmul.f32 %v11245_v43, %v16225_v45  ;;  %10922 = vmatprep.subr.msk.bf16.mxu1 %vm16227_vm5, %v14572_v61 }
 0xb47   :  { %10585 = vmatpush3.bf16.msra.mxu1 %v14579_v52 }
 0xc15   :  { %v6332_v36 = vpop.f32.mrb[128].mxu1 }
 0xc16   :  { %v14583_v55 = vadd.f32 %v9576_v0, %v6332_v36  ;;  %v10580_v54 = vpop.f32.mrb[129].mxu1 }
 0xc17   :  { %v6335_v34 = vpop.f32.mrb[130].mxu1 }
 0xc18   :  { %v14585_v16 = vadd.f32 %v9576_v0, %v6335_v34  ;;  %6519 = vrot.lane.b32.xlu0 %v14583_v55, %s11535_s30  ;;  %v10581_v62 = vpop.f32.mrb[131].mxu1  ;;  %v6341_v17 = vcombine.high %v14583_v55, %v14583_v55  ;;  %v6348_v32 = vrot.slane %v14583_v55, %v16230_v44 }
 0xc1a   :  { %6521 = vrot.lane.b32.xlu1 %v14585_v16, %s11535_s30  ;;  %v14591_v50 = vpack.c.bf16 %v14585_v16, %v14583_v55  ;;  %v6355_v30 = vrot.slane %v6341_v17, %v16230_v44  ;;  %v6397_v4 = vrot.slane %v14585_v16, %v16230_v44  ;;  %v6390_v59 = vcombine.high %v14585_v16, %v14585_v16 }
 0xc1b   :  { %v6356_v11 = vcombine.high %v6348_v32, %v6348_v32  ;;  %v6364_v22 = vrot.slane %v6348_v32, %v16230_v44 }
 0xc1c   :  { %10856 = vmatprep.subr.bf16.mxu1 %v14591_v50  ;;  %v6357_v24 = vcombine.high %v6355_v30, %v6355_v30  ;;  %v6405_v1 = vcombine.high %v6397_v4, %v6397_v4  ;;  %v6404_v19 = vrot.slane %v6390_v59, %v16230_v44  ;;  %v6371_v6 = vrot.slane %v6355_v30, %v16230_v44 }
 0xc1d   :  { %v6378_v49 = vrot.slane %v6356_v11, %v16230_v44  ;;  %v6413_v38 = vrot.slane %v6397_v4, %v16230_v44  ;;  %v6386_v37 = vcombine.high %v6364_v22, %v6364_v22  ;;  %v6442_v12 = vrot.slane %v6364_v22, %v16231_v2 }
 0xc1e   :  { %v6385_v13 = vrot.slane %v6357_v24, %v16230_v44  ;;  %v6427_v29 = vrot.slane %v6405_v1, %v16230_v44  ;;  %v6420_v5 = vrot.slane %v6404_v19, %v16230_v44  ;;  %v6406_v41 = vcombine.high %v6404_v19, %v6404_v19 }
 0xc1f   :  { %v6388_v60 = vcombine.high %v6378_v49, %v6378_v49  ;;  %v6387_v58 = vcombine.high %v6371_v6, %v6371_v6  ;;  %v6435_v3 = vcombine.high %v6413_v38, %v6413_v38  ;;  %v6446_v63 = vrot.slane %v6378_v49, %v16231_v2 }
 0xc20   :  { %v6389_v46 = vcombine.high %v6385_v13, %v6385_v13  ;;  %v6437_v7 = vcombine.high %v6427_v29, %v6427_v29  ;;  %v14612_v28 = vrot.slane %v6406_v41, %v16230_v44  ;;  %v6436_v31 = vcombine.high %v6420_v5, %v6420_v5 }
 0xc21   :  { %v6450_v21 = vrot.slane %v6386_v37, %v16231_v2  ;;  %v6458_v27 = vrot.slane %v6371_v6, %v16231_v2  ;;  %v6454_v43 = vrot.slane %v6388_v60, %v16231_v2  ;;  %v6462_v48 = vrot.slane %v6385_v13, %v16231_v2 }
 0xc22   :  { %v14621_v45 = vrot.slane %v6387_v58, %v16231_v2  ;;  %v14624_v20 = vrot.slane %v6413_v38, %v16231_v2  ;;  %v14627_v8 = vrot.slane %v6389_v46, %v16231_v2  ;;  %v14630_v15 = vrot.slane %v6427_v29, %v16231_v2 }
 0xc23   :  { %v14633_v0 = vrot.slane %v6435_v3, %v16231_v2  ;;  %v14636_v36 = vrot.slane %v6437_v7, %v16231_v2  ;;  %v14641_v34 = vrot.slane %v6420_v5, %v16231_v2  ;;  %v14645_v62 = vrot.slane %v14612_v28, %v16231_v2 }
 0xc24   :  { %v14648_v17 = vrot.slane %v6436_v31, %v16231_v2 }
 0xc8a   :  { %v14638_v54 = vpop.permute.xlu0 %6519 }
 0xc8b   :  { %v6527_v32 = vadd.f32 %v14638_v54, %v6446_v63  ;;  %v6525_v30 = vadd.f32 %v14638_v54, %v6442_v12  ;;  %v6531_v4 = vadd.f32 %v14638_v54, %v6454_v43  ;;  %v6529_v59 = vadd.f32 %v14638_v54, %v6450_v21 }
 0xc8c   :  { %v14656_v11 = vpop.permute.xlu1 %6521  ;;  %v6535_v24 = vadd.f32 %v14638_v54, %v6462_v48  ;;  %v6533_v1 = vadd.f32 %v14638_v54, %v6458_v27  ;;  %v6539_v19 = vadd.f32 %v14638_v54, %v14627_v8  ;;  %v14664_v22 = vadd.f32 %v14638_v54, %v14621_v45 }
 0xc8d   :  { %v6528_v49 = vadd.f32 %v14656_v11, %v6446_v63  ;;  %vm6559_vm6 = vcmp.gt.f32.partialorder %v6527_v32, 0.0  ;;  %v6591_v6 = vmul.f32 0.2, %v6527_v32  ;;  %v6526_v13 = vadd.f32 %v14656_v11, %v6442_v12 }
 0xc8e   :  { %vm6557_vm8 = vcmp.gt.f32.partialorder %v6525_v30, 0.0  ;;  %v6589_v38 = vmul.f32 0.2, %v6525_v30  ;;  %v6532_v29 = vadd.f32 %v14656_v11, %v6454_v43  ;;  %vm6563_vm2 = vcmp.gt.f32.partialorder %v6531_v4, 0.0 }
 0xc8f   :  { %vm6560_vm11 = vcmp.gt.f32.partialorder %v6528_v49, 0.0  ;;  %v6592_v5 = vmul.f32 0.2, %v6528_v49  ;;  %v6623_v41 = vsel %vm6559_vm6, %v6527_v32, %v6591_v6  ;;  %vm6558_vm1 = vcmp.gt.f32.partialorder %v6526_v13, 0.0 }
 0xc90   :  { %v6590_v37 = vmul.f32 0.2, %v6526_v13  ;;  %v6621_v60 = vsel %vm6557_vm8, %v6525_v30, %v6589_v38  ;;  %vm6564_vm5 = vcmp.gt.f32.partialorder %v6532_v29, 0.0  ;;  %v6595_v58 = vmul.f32 0.2, %v6531_v4 }
 0xc91   :  { %v6624_v46 = vsel %vm6560_vm11, %v6528_v49, %v6592_v5  ;;  %v6596_v3 = vmul.f32 0.2, %v6532_v29  ;;  %v6530_v7 = vadd.f32 %v14656_v11, %v6450_v21  ;;  %vm6561_vm0 = vcmp.gt.f32.partialorder %v6529_v59, 0.0 }
 0xc92   :  { %v6654_v31 = vpack.c.bf16 %v6624_v46, %v6623_v41  ;;  %v6622_v63 = vsel %vm6558_vm1, %v6526_v13, %v6590_v37  ;;  %v6627_v12 = vsel %vm6563_vm2, %v6531_v4, %v6595_v58  ;;  %v6593_v44 = vmul.f32 0.2, %v6529_v59 }
 0xc93   :  { %v6653_v52 = vpack.c.bf16 %v6622_v63, %v6621_v60  ;;  %v6628_v43 = vsel %vm6564_vm5, %v6532_v29, %v6596_v3  ;;  %vm6562_vm9 = vcmp.gt.f32.partialorder %v6530_v7, 0.0  ;;  %v6594_v61 = vmul.f32 0.2, %v6530_v7 }
 0xc94   :  { %6689 = vrot.lane.b32.xlu0 %v6654_v31, %s11536_s6  ;;  %v6656_v32 = vpack.c.bf16 %v6628_v43, %v6627_v12  ;;  %v6625_v30 = vsel %vm6561_vm0, %v6529_v59, %v6593_v44  ;;  %v6536_v6 = vadd.f32 %v14656_v11, %v6462_v48  ;;  %vm6567_vm6 = vcmp.gt.f32.partialorder %v6535_v24, 0.0 }
 0xc95   :  { %6687 = vrot.lane.b32.xlu1 %v6653_v52, %s11536_s6  ;;  %v6626_v21 = vsel %vm6562_vm9, %v6530_v7, %v6594_v61  ;;  %v6599_v49 = vmul.f32 0.2, %v6535_v24  ;;  %v6534_v13 = vadd.f32 %v14656_v11, %v6458_v27  ;;  %vm6565_vm8 = vcmp.gt.f32.partialorder %v6533_v1, 0.0 }
 0xc96   :  { %v6655_v4 = vpack.c.bf16 %v6626_v21, %v6625_v30  ;;  %vm6568_vm2 = vcmp.gt.f32.partialorder %v6536_v6, 0.0  ;;  %v6600_v38 = vmul.f32 0.2, %v6536_v6  ;;  %v6597_v29 = vmul.f32 0.2, %v6533_v1 }
 0xc97   :  { %v6631_v5 = vsel %vm6567_vm6, %v6535_v24, %v6599_v49  ;;  %vm6566_vm11 = vcmp.gt.f32.partialorder %v6534_v13, 0.0  ;;  %v6598_v41 = vmul.f32 0.2, %v6534_v13  ;;  %v6540_v44 = vadd.f32 %v14656_v11, %v14627_v8 }
 0xc98   :  { %6693 = vrot.lane.b32.xlu0 %v6656_v32, %s11536_s6  ;;  %v6632_v48 = vsel %vm6568_vm2, %v6536_v6, %v6600_v38  ;;  %v6629_v59 = vsel %vm6565_vm8, %v6533_v1, %v6597_v29  ;;  %vm6571_vm1 = vcmp.gt.f32.partialorder %v6539_v19, 0.0  ;;  %v6603_v61 = vmul.f32 0.2, %v6539_v19 }
 0xc99   :  { %6691 = vrot.lane.b32.xlu1 %v6655_v4, %s11536_s6  ;;  %v6658_v52 = vpack.c.bf16 %v6632_v48, %v6631_v5  ;;  %v6630_v27 = vsel %vm6566_vm11, %v6534_v13, %v6598_v41  ;;  %vm6572_vm9 = vcmp.gt.f32.partialorder %v6540_v44, 0.0  ;;  %v6604_v37 = vmul.f32 0.2, %v6540_v44 }
 0xc9a   :  { %v6657_v60 = vpack.c.bf16 %v6630_v27, %v6629_v59  ;;  %v6635_v58 = vsel %vm6571_vm1, %v6539_v19, %v6603_v61  ;;  %v6538_v24 = vadd.f32 %v14656_v11, %v14621_v45  ;;  %vm6569_vm5 = vcmp.gt.f32.partialorder %v14664_v22, 0.0 }
 0xc9b   :  { %v6636_v8 = vsel %vm6572_vm9, %v6540_v44, %v6604_v37  ;;  %v6601_v46 = vmul.f32 0.2, %v14664_v22  ;;  %v6541_v1 = vadd.f32 %v14638_v54, %v14624_v20  ;;  %v6542_v3 = vadd.f32 %v14656_v11, %v14624_v20 }
 0xc9c   :  { %6697 = vrot.lane.b32.xlu0 %v6658_v52, %s11536_s6  ;;  %v6660_v7 = vpack.c.bf16 %v6636_v8, %v6635_v58  ;;  %vm6570_vm0 = vcmp.gt.f32.partialorder %v6538_v24, 0.0  ;;  %v6602_v31 = vmul.f32 0.2, %v6538_v24  ;;  %v6543_v19 = vadd.f32 %v14638_v54, %v14630_v15 }
 0xc9d   :  { %6695 = vrot.lane.b32.xlu1 %v6657_v60, %s11536_s6  ;;  %v6633_v45 = vsel %vm6569_vm5, %v14664_v22, %v6601_v46  ;;  %vm6573_vm6 = vcmp.gt.f32.partialorder %v6541_v1, 0.0  ;;  %vm6574_vm8 = vcmp.gt.f32.partialorder %v6542_v3, 0.0  ;;  %v6605_v63 = vmul.f32 0.2, %v6541_v1 }
 0xc9e   :  { %v6634_v12 = vsel %vm6570_vm0, %v6538_v24, %v6602_v31  ;;  %v6606_v43 = vmul.f32 0.2, %v6542_v3  ;;  %v6544_v20 = vadd.f32 %v14656_v11, %v14630_v15  ;;  %vm6575_vm2 = vcmp.gt.f32.partialorder %v6543_v19, 0.0 }
 0xc9f   :  { %v6659_v32 = vpack.c.bf16 %v6634_v12, %v6633_v45  ;;  %v6637_v30 = vsel %vm6573_vm6, %v6541_v1, %v6605_v63  ;;  %v6607_v6 = vmul.f32 0.2, %v6543_v19  ;;  %v6545_v21 = vadd.f32 %v14638_v54, %v14633_v0 }
 0xca0   :  { %6701 = vrot.lane.b32.xlu0 %v6660_v7, %s11536_s6  ;;  %v6638_v49 = vsel %vm6574_vm8, %v6542_v3, %v6606_v43  ;;  %vm6576_vm11 = vcmp.gt.f32.partialorder %v6544_v20, 0.0  ;;  %v6608_v22 = vmul.f32 0.2, %v6544_v20  ;;  %v6546_v13 = vadd.f32 %v14656_v11, %v14633_v0 }
 0xca1   :  { %6699 = vrot.lane.b32.xlu1 %v6659_v32, %s11536_s6  ;;  %v6661_v4 = vpack.c.bf16 %v6638_v49, %v6637_v30  ;;  %v6639_v38 = vsel %vm6575_vm2, %v6543_v19, %v6607_v6  ;;  %vm6577_vm1 = vcmp.gt.f32.partialorder %v6545_v21, 0.0  ;;  %v6609_v15 = vmul.f32 0.2, %v6545_v21 }
 0xca2   :  { %v6640_v29 = vsel %vm6576_vm11, %v6544_v20, %v6608_v22  ;;  %vm6578_vm9 = vcmp.gt.f32.partialorder %v6546_v13, 0.0  ;;  %v6610_v5 = vmul.f32 0.2, %v6546_v13  ;;  %v6547_v41 = vadd.f32 %v14638_v54, %v14636_v36 }
 0xca3   :  { %v6662_v44 = vpack.c.bf16 %v6640_v29, %v6639_v38  ;;  %v6641_v48 = vsel %vm6577_vm1, %v6545_v21, %v6609_v15  ;;  %v6548_v59 = vadd.f32 %v14656_v11, %v14636_v36  ;;  %v6549_v0 = vadd.f32 %v14638_v54, %v14641_v34 }
 0xca4   :  { %v6642_v61 = vsel %vm6578_vm9, %v6546_v13, %v6610_v5  ;;  %vm6579_vm5 = vcmp.gt.f32.partialorder %v6547_v41, 0.0  ;;  %v6611_v52 = vmul.f32 0.2, %v6547_v41  ;;  %v6550_v27 = vadd.f32 %v14656_v11, %v14641_v34 }
 0xca5   :  { %6703 = vrot.lane.b32.xlu1 %v6661_v4, %s11536_s6  ;;  %6705 = vrot.lane.b32.xlu0 %v6662_v44, %s11536_s6  ;;  %v6663_v37 = vpack.c.bf16 %v6642_v61, %v6641_v48  ;;  %vm6580_vm0 = vcmp.gt.f32.partialorder %v6548_v59, 0.0  ;;  %v6612_v60 = vmul.f32 0.2, %v6548_v59  ;;  %vm6581_vm6 = vcmp.gt.f32.partialorder %v6549_v0, 0.0  ;;  %v11426_v44 = vld [vmem:[%s11564_s17] sm:$0xff]  ;;  %v11427_v48 = vld [vmem:[%s11564_s17 + $0x8] sm:$0xff] }
 0xca6   :  { %v6643_v58 = vsel %vm6579_vm5, %v6547_v41, %v6611_v52  ;;  %vm6582_vm8 = vcmp.gt.f32.partialorder %v6550_v27, 0.0  ;;  %v6613_v36 = vmul.f32 0.2, %v6549_v0  ;;  %v6614_v24 = vmul.f32 0.2, %v6550_v27  ;;  %v11430_v61 = vld [vmem:[%s11564_s17 + $0x20] sm:$0xff] }
 0xca7   :  { %v6644_v8 = vsel %vm6580_vm0, %v6548_v59, %v6612_v60  ;;  %v6551_v46 = vadd.f32 %v14638_v54, %v14645_v62  ;;  %v6552_v1 = vadd.f32 %v14656_v11, %v14645_v62  ;;  %v6553_v34 = vadd.f32 %v14638_v54, %v14648_v17  ;;  %v11428_v59 = vld [vmem:[%s11564_s17 + $0x10] sm:$0xff]  ;;  %v11431_v52 = vld [vmem:[%s11564_s17 + $0x28] sm:$0xff]  ;;  %v11434_v60 = vld [vmem:[%s11564_s17 + $0x40] sm:$0xff] }
 0xca8   :  { %v6664_v3 = vpack.c.bf16 %v6644_v8, %v6643_v58  ;;  %v6646_v7 = vsel %vm6582_vm8, %v6550_v27, %v6614_v24  ;;  %v6554_v31 = vadd.f32 %v14656_v11, %v14648_v17  ;;  %v16232_v19 = vcombine.high %v14612_v28, %v14612_v28  ;;  %v11432_v27 = vld [vmem:[%s11564_s17 + $0x30] sm:$0xff]  ;;  %v11435_v58 = vld [vmem:[%s11564_s17 + $0x48] sm:$0xff]  ;;  %v11437_v24 = vld [vmem:[%s11564_s17 + $0x58] sm:$0xff] }
 0xca9   :  { %6707 = vrot.lane.b32.xlu1 %v6663_v37, %s11536_s6  ;;  %v6645_v63 = vsel %vm6581_vm6, %v6549_v0, %v6613_v36  ;;  %vm6583_vm2 = vcmp.gt.f32.partialorder %v6551_v46, 0.0  ;;  %vm6584_vm11 = vcmp.gt.f32.partialorder %v6552_v1, 0.0  ;;  %v6615_v12 = vmul.f32 0.2, %v6551_v46  ;;  %v11429_v0 = vld [vmem:[%s11564_s17 + $0x18] sm:$0xff]  ;;  %v11436_v36 = vld [vmem:[%s11564_s17 + $0x50] sm:$0xff] }
 0xcaa   :  { %v6502_v45 = vrot.slane %v16232_v19, %v16231_v2  ;;  %6709 = vrot.lane.b32.xlu0 %v6664_v3, %s11536_s6  ;;  %v6665_v62 = vpack.c.bf16 %v6646_v7, %v6645_v63  ;;  %v6616_v43 = vmul.f32 0.2, %v6552_v1  ;;  %vm6586_vm1 = vcmp.gt.f32.partialorder %v6554_v31, 0.0  ;;  %v11433_v37 = vld [vmem:[%s11564_s17 + $0x38] sm:$0xff]  ;;  %v11438_v8 = vld [vmem:[%s11564_s17 + $0x60] sm:$0xff]  ;;  %v11443_v7 = vld [vmem:[%s11559_s13 + $0x8] sm:$0xff] }
 0xcab   :  { %v6617_v20 = vmul.f32 0.2, %v6553_v34  ;;  %vm6585_vm9 = vcmp.gt.f32.partialorder %v6553_v34, 0.0  ;;  %v6618_v32 = vmul.f32 0.2, %v6554_v31  ;;  %v6647_v28 = vsel %vm6583_vm2, %v6551_v46, %v6615_v12  ;;  %v11439_v46 = vld [vmem:[%s11564_s17 + $0x68] sm:$0xff] }
 0xcac   :  { %v6555_v17 = vadd.f32 %v14638_v54, %v6502_v45  ;;  %v6556_v30 = vadd.f32 %v14656_v11, %v6502_v45  ;;  %v6648_v2 = vsel %vm6584_vm11, %v6552_v1, %v6616_v43  ;;  %v10977_v11 = vpack.i.bf16 %v14585_v16, %v14583_v55  ;;  %v11440_v1 = vld [vmem:[%s11564_s17 + $0x70] sm:$0xff]  ;;  %v11442_v3 = vld [vmem:[%s11559_s13] sm:$0xff]  ;;  %v11445_v19 = vld [vmem:[%s11559_s13 + $0x18] sm:$0xff] }
 0xcad   :  { %6711 = vrot.lane.b32.xlu1 %v6665_v62, %s11536_s6  ;;  %v6666_v6 = vpack.c.bf16 %v6648_v2, %v6647_v28  ;;  %v6650_v21 = vsel %vm6586_vm1, %v6554_v31, %v6618_v32  ;;  %v6649_v49 = vsel %vm6585_vm9, %v6553_v34, %v6617_v20  ;;  %vm16233_vm6 = vcmask 195584   ;;  %v11441_v34 = vld [vmem:[%s11564_s17 + $0x78] sm:$0xff]  ;;  %v11444_v31 = vld [vmem:[%s11559_s13 + $0x10] sm:$0xff]  ;;  %v11446_v45 = vld [vmem:[%s11559_s13 + $0x20] sm:$0xff]  ;;  %s16248_s17 = sld [smem:[#allocation13_spill]] }
 0xcae   :  { %vm6587_vm5 = vcmp.gt.f32.partialorder %v6555_v17, 0.0  ;;  %vm6588_vm0 = vcmp.gt.f32.partialorder %v6556_v30, 0.0  ;;  %v6619_v22 = vmul.f32 0.2, %v6555_v17  ;;  %v6620_v13 = vmul.f32 0.2, %v6556_v30  ;;  %vm16234_vm8 = vmmov %vm16233_vm6 }
 0xcaf   :  { %6713 = vrot.lane.b32.xlu0 %v6666_v6, %s11536_s6  ;;  %v6667_v4 = vpack.c.bf16 %v6650_v21, %v6649_v49  ;;  %vm16235_vm2 = vmmov %vm16233_vm6  ;;  %v11447_v63 = vld [vmem:[%s11559_s13 + $0x28] sm:$0xff]  ;;  %v11448_v12 = vld [vmem:[%s11559_s13 + $0x30] sm:$0xff] }
 0xcb0   :  { %v6651_v38 = vsel %vm6587_vm5, %v6555_v17, %v6619_v22  ;;  %v6652_v15 = vsel %vm6588_vm0, %v6556_v30, %v6620_v13  ;;  %vm16236_vm11 = vmmov %vm16235_vm2  ;;  %v11449_v62 = vld [vmem:[%s11559_s13 + $0x38] sm:$0xff]  ;;  %v11450_v43 = vld [vmem:[%s11559_s13 + $0x40] sm:$0xff] }
 0xcb1   :  { %6715 = vrot.lane.b32.xlu1 %v6667_v4, %s11536_s6  ;;  %v6668_v54 = vpack.c.bf16 %v6652_v15, %v6651_v38  ;;  %vm16237_vm1 = vmmov %vm16235_vm2  ;;  %v11451_v20 = vld [vmem:[%s11559_s13 + $0x48] sm:$0xff]  ;;  %v11452_v32 = vld [vmem:[%s11559_s13 + $0x50] sm:$0xff] }
 0xcb2   :  { %vm16238_vm9 = vmmov %vm16237_vm1  ;;  %v11453_v17 = vld [vmem:[%s11559_s13 + $0x58] sm:$0xff]  ;;  %v11454_v30 = vld [vmem:[%s11559_s13 + $0x60] sm:$0xff] }
 0xcb3   :  { %6717 = vrot.lane.b32.xlu0 %v6668_v54, %s11536_s6  ;;  %vm16239_vm5 = vmmov %vm16237_vm1  ;;  %v11455_v28 = vld [vmem:[%s11559_s13 + $0x68] sm:$0xff]  ;;  %v11456_v2 = vld [vmem:[%s11559_s13 + $0x70] sm:$0xff] }
 0xcb4   :  { %vm16240_vm0 = vmmov %vm16237_vm1  ;;  %v11457_v6 = vld [vmem:[%s11559_s13 + $0x78] sm:$0xff]  ;;  %v6208_v21 = vld [vmem:[%s16248_s17] sm:$0x3f] }
 0xcb5   :  { %10978 = vrot.lane.b32.xlu1 %v10977_v11, %s11536_s6 }
 0xcb7   :  { %9099 = vrot.lane.b32.xlu0 %v14454_v51, %s11537_s12 }
 0xcb9   :  { %9101 = vrot.lane.b32.xlu1 %v14447_v42, %s11537_s12 }
 0xcbb   :  { %9103 = vrot.lane.b32.xlu0 %v14464_v53, %s11537_s12 }
 0xcbd   :  { %9105 = vrot.lane.b32.xlu1 %v14459_v14, %s11537_s12 }
 0xcbf   :  { %9107 = vrot.lane.b32.xlu0 %v14484_v56, %s11537_s12 }
 0xcc1   :  { %9109 = vrot.lane.b32.xlu1 %v14474_v39, %s11537_s12 }
 0xcc3   :  { %9111 = vrot.lane.b32.xlu0 %v14529_v25, %s11537_s12 }
 0xcc5   :  { %9113 = vrot.lane.b32.xlu1 %v14523_v57, %s11537_s12 }
 0xcc7   :  { %9115 = vrot.lane.b32.xlu0 %v14536_v26, %s11537_s12 }
 0xcc9   :  { %9117 = vrot.lane.b32.xlu1 %v14532_v40, %s11537_s12 }
 0xccb   :  { %9119 = vrot.lane.b32.xlu0 %v14542_v47, %s11537_s12 }
 0xccd   :  { %9121 = vrot.lane.b32.xlu1 %v14539_v18, %s11537_s12 }
 0xccf   :  { %9123 = vrot.lane.b32.xlu0 %v14549_v33, %s11537_s12 }
 0xcd1   :  { %9125 = vrot.lane.b32.xlu1 %v14546_v9, %s11537_s12 }
 0xcd3   :  { %9127 = vrot.lane.b32.xlu0 %v14564_v23, %s11537_s12 }
 0xcd5   :  { %9129 = vrot.lane.b32.xlu1 %v14561_v35, %s11537_s12 }
 0xd06   :  { %v6690_v42 = vpop.permute.xlu0 %6689 }
 0xd07   :  { %v6688_v51 = vpop.permute.xlu1 %6687 }
 0xd08   :  { %10586 = vmatprep.mubr.msk.bf16.mxu1 %vm16233_vm6, %v6688_v51  ;;  %vm16241_vm6 = vmmov %vm16240_vm0 }
 0xd09   :  { %10587 = vmatmul.mubr.msk.bf16.vlgmr.msra.gmra.mrb[132].mxu1 %vm16234_vm8, %v6690_v42  ;;  %vm16242_vm8 = vmmov %vm16240_vm0 }
 0xd0a   :  { %10858 = vmatpush3.bf16.msra.mxu1 %v14591_v50  ;;  %v6694_v39 = vpop.permute.xlu0 %6693 }
 0xd0b   :  { %v6692_v14 = vpop.permute.xlu1 %6691 }
 0xd0c   :  { %10590 = vmatprep.mubr.msk.bf16.mxu1 %vm16235_vm2, %v6692_v14  ;;  %vm16243_vm2 = vmmov %vm16240_vm0 }
 0xd0e   :  { %v6698_v25 = vpop.permute.xlu0 %6697 }
 0xd0f   :  { %v6696_v53 = vpop.permute.xlu1 %6695 }
 0xd11   :  { %10591 = vmatmul.mubr.msk.bf16.gmra.mrb[136].mxu1 %vm16236_vm11, %v6694_v39  ;;  %vm16244_vm11 = vmmov %vm16240_vm0 }
 0xd12   :  { %10594 = vmatprep.mubr.msk.bf16.mxu1 %vm16237_vm1, %v6696_v53  ;;  %v6702_v18 = vpop.permute.xlu0 %6701  ;;  %vm16245_vm1 = vmmov %vm16240_vm0 }
 0xd13   :  { %v6700_v56 = vpop.permute.xlu1 %6699 }
 0xd17   :  { %v6704_v57 = vpop.permute.xlu1 %6703  ;;  %v6706_v33 = vpop.permute.xlu0 %6705 }
 0xd19   :  { %10595 = vmatmul.mubr.msk.bf16.gmra.mrb[140].mxu1 %vm16238_vm9, %v6698_v25  ;;  %vm16246_vm9 = vmmov %vm16240_vm0 }
 0xd1a   :  { %10598 = vmatprep.mubr.msk.bf16.mxu1 %vm16239_vm5, %v6700_v56  ;;  %vm16247_vm5 = vmmov %vm16240_vm0 }
 0xd1b   :  { %v6708_v40 = vpop.permute.xlu1 %6707 }
 0xd1c   :  { %v6710_v29 = vpop.permute.xlu0 %6709 }
 0xd1f   :  { %v6712_v26 = vpop.permute.xlu1 %6711 }
 0xd21   :  { %10599 = vmatmul.mubr.msk.bf16.gmra.mrb[144].mxu1 %vm16240_vm0, %v6702_v18  ;;  %v6714_v5 = vpop.permute.xlu0 %6713 }
 0xd22   :  { %10602 = vmatprep.mubr.msk.bf16.mxu1 %vm16241_vm6, %v6704_v57  ;;  %vm7508_vm6 = vcmask 1045504  }
 0xd23   :  { %v6716_v47 = vpop.permute.xlu1 %6715  ;;  %10618 = vmatprep.subr.msk.mxu0 %vm7508_vm6, %v6208_v21 }
 0xd24   :  { %10619 = vmatpush3.msk.msra.mxu0 %vm7508_vm6, %v6208_v21 }
 0xd25   :  { %v6718_v41 = vpop.permute.xlu0 %6717  ;;  %10724 = vmatprep.subr.bf16.mxu0 %v14568_v10 }
 0xd27   :  { %v10979_v9 = vpop.permute.xlu1 %10978 }
 0xd28   :  { %v10981_v35 = vunpack.i.h.bf16 %v10979_v9  ;;  %v10980_v23 = vunpack.i.l.bf16 %v10979_v9 }
 0xd29   :  { %10603 = vmatmul.mubr.msk.bf16.gmra.mrb[148].mxu1 %vm16242_vm8, %v6706_v33  ;;  %vm6931_vm8 = vcmask 48128  }
 0xd2a   :  { %v10859_v50 = vpack.c.bf16 %v10981_v35, %v10980_v23  ;;  %10606 = vmatprep.mubr.msk.bf16.mxu1 %vm16243_vm2, %v6708_v40  ;;  %vm16266_vm2 = vcmask 1047559  }
 0xd2c   :  { %10860 = vmatprep.subr.bf16.mxu1 %v10859_v50 }
 0xd31   :  { %10607 = vmatmul.mubr.msk.bf16.gmra.mrb[152].mxu1 %vm16244_vm11, %v6710_v29  ;;  %vm16268_vm11 = vmmov %vm16266_vm2 }
 0xd32   :  { %10610 = vmatprep.mubr.msk.bf16.mxu1 %vm16245_vm1, %v6712_v26  ;;  %vm16279_vm1 = vcmask 1043456  }
 0xd39   :  { %10611 = vmatmul.mubr.msk.bf16.gmra.mrb[156].mxu1 %vm16246_vm9, %v6714_v5 }
 0xd3a   :  { %10614 = vmatprep.mubr.msk.bf16.mxu1 %vm16247_vm5, %v6716_v47 }
 0xd41   :  { %10615 = vmatmul.mubr.msk.bf16.gmra.mrb[160].mxu1 %vm16240_vm0, %v6718_v41 }
 0xd42   :  { %10672 = vmatprep.mubr.msk.f32.mxu1 %vm2012_vm10, %v11426_v44 }
 0xd49   :  { %10673 = vmatmul.mubr.msk.f32.vlgmr.msra.gmra.mrb[164].mxu1 %vm2012_vm10, %v11427_v48 }
 0xd4a   :  { %10862 = vmatpush3.bf16.msra.mxu1 %v10859_v50  ;;  %10675 = vmatprep.mubr.msk.f32.mxu1 %vm2012_vm10, %v11428_v59 }
 0xd4d   :  { %10676 = vmatmul.mubr.msk.f32.gmra.mrb[166].mxu1 %vm2012_vm10, %v11429_v0 }
 0xd4e   :  { %10678 = vmatprep.mubr.msk.f32.mxu1 %vm2012_vm10, %v11430_v61 }
 0xd51   :  { %10679 = vmatmul.mubr.msk.f32.gmra.mrb[168].mxu1 %vm2012_vm10, %v11431_v52 }
 0xd52   :  { %10681 = vmatprep.mubr.msk.f32.mxu1 %vm2012_vm10, %v11432_v27 }
 0xd55   :  { %10682 = vmatmul.mubr.msk.f32.gmra.mrb[170].mxu1 %vm2012_vm10, %v11433_v37 }
 0xd56   :  { %10684 = vmatprep.mubr.msk.f32.mxu1 %vm2012_vm10, %v11434_v60 }
 0xd59   :  { %10685 = vmatmul.mubr.msk.f32.gmra.mrb[172].mxu1 %vm2012_vm10, %v11435_v58 }
 0xd5a   :  { %10687 = vmatprep.mubr.msk.f32.mxu1 %vm2012_vm10, %v11436_v36 }
 0xd5d   :  { %10688 = vmatmul.mubr.msk.f32.gmra.mrb[174].mxu1 %vm2012_vm10, %v11437_v24 }
 0xd5e   :  { %10690 = vmatprep.mubr.msk.f32.mxu1 %vm2012_vm10, %v11438_v8 }
 0xd61   :  { %10691 = vmatmul.mubr.msk.f32.gmra.mrb[176].mxu1 %vm2012_vm10, %v11439_v46 }
 0xd62   :  { %10693 = vmatprep.mubr.msk.f32.mxu1 %vm2012_vm10, %v11440_v1 }
 0xd65   :  { %10694 = vmatmul.mubr.msk.f32.gmra.mrb[178].mxu1 %vm2012_vm10, %v11441_v34 }
 0xd66   :  { %10700 = vmatprep.mubr.msk.f32.mxu1 %vm2012_vm10, %v11442_v3 }
 0xd69   :  { %10701 = vmatmul.mubr.msk.f32.vlgmr.msra.gmra.mrb[164].mxu1 %vm2012_vm10, %v11443_v7 }
 0xd6a   :  { %10703 = vmatprep.mubr.msk.f32.mxu1 %vm2012_vm10, %v11444_v31 }
 0xd6d   :  { %10704 = vmatmul.mubr.msk.f32.gmra.mrb[166].mxu1 %vm2012_vm10, %v11445_v19 }
 0xd6e   :  { %10706 = vmatprep.mubr.msk.f32.mxu1 %vm2012_vm10, %v11446_v45 }
 0xd71   :  { %10707 = vmatmul.mubr.msk.f32.gmra.mrb[168].mxu1 %vm2012_vm10, %v11447_v63 }
 0xd72   :  { %10709 = vmatprep.mubr.msk.f32.mxu1 %vm2012_vm10, %v11448_v12 }
 0xd75   :  { %10710 = vmatmul.mubr.msk.f32.gmra.mrb[170].mxu1 %vm2012_vm10, %v11449_v62 }
 0xd76   :  { %10712 = vmatprep.mubr.msk.f32.mxu1 %vm2012_vm10, %v11450_v43 }
 0xd79   :  { %10713 = vmatmul.mubr.msk.f32.gmra.mrb[172].mxu1 %vm2012_vm10, %v11451_v20 }
 0xd7a   :  { %10715 = vmatprep.mubr.msk.f32.mxu1 %vm2012_vm10, %v11452_v32 }
 0xd7d   :  { %10716 = vmatmul.mubr.msk.f32.gmra.mrb[174].mxu1 %vm2012_vm10, %v11453_v17 }
 0xd7e   :  { %10718 = vmatprep.mubr.msk.f32.mxu1 %vm2012_vm10, %v11454_v30 }
 0xd81   :  { %10719 = vmatmul.mubr.msk.f32.gmra.mrb[176].mxu1 %vm2012_vm10, %v11455_v28 }
 0xd82   :  { %10721 = vmatprep.mubr.msk.f32.mxu1 %vm2012_vm10, %v11456_v2 }
 0xd85   :  { %10722 = vmatmul.mubr.msk.f32.gmra.mrb[178].mxu1 %vm2012_vm10, %v11457_v6 }
 0xd86   :  { %10776 = vmatprep.mubr.msk.f32.mxu1 %vm2012_vm10, %v11442_v3 }
 0xddc   :  { %v10588_v49 = vpop.f32.mrb[132].mxu1 }
 0xddd   :  { %v6804_v22 = vpop.f32.mrb[133].mxu1  ;;  %v6941_v4 = vsel %vm6931_vm8, %v10588_v49, -inf }
 0xdde   :  { %v10589_v13 = vpop.f32.mrb[134].mxu1  ;;  %v6932_v54 = vsel %vm6931_vm8, %v6804_v22, -inf }
 0xddf   :  { %v6942_v38 = vsel %vm6931_vm8, %v10589_v13, -inf  ;;  %v6807_v15 = vpop.f32.mrb[135].mxu1 }
 0xde0   :  { %v6943_v11 = vmax.f32 %v6941_v4, %v6942_v38  ;;  %v6933_v42 = vsel %vm6931_vm8, %v6807_v15, -inf }
 0xde1   :  { %v6934_v51 = vmax.f32 %v6932_v54, %v6933_v42 }
 0xde2   :  { %v6944_v14 = vrot.slane %v6943_v11, 4 }
 0xde3   :  { %v6935_v53 = vrot.slane %v6934_v51, 4 }
 0xde4   :  { %v6945_v39 = vmax.f32 %v6943_v11, %v6944_v14  ;;  %v14836_v56 = vpop.f32.mrb[136].mxu1 }
 0xde5   :  { %v6936_v57 = vmax.f32 %v6934_v51, %v6935_v53  ;;  %v14838_v25 = vpop.f32.mrb[137].mxu1  ;;  %v6959_v47 = vsel %vm6931_vm8, %v14836_v56, -inf }
 0xde6   :  { %v6946_v40 = vrot.slane %v6945_v39, 2  ;;  %v14840_v26 = vpop.f32.mrb[138].mxu1  ;;  %v6950_v23 = vsel %vm6931_vm8, %v14838_v25, -inf }
 0xde7   :  { %v6937_v18 = vrot.slane %v6936_v57, 2  ;;  %v6960_v9 = vsel %vm6931_vm8, %v14840_v26, -inf  ;;  %v14846_v33 = vpop.f32.mrb[139].mxu1 }
 0xde8   :  { %v6947_v35 = vmax.f32 %v6945_v39, %v6946_v40  ;;  %v6961_v50 = vmax.f32 %v6959_v47, %v6960_v9  ;;  %v6951_v29 = vsel %vm6931_vm8, %v14846_v33, -inf }
 0xde9   :  { %v6938_v5 = vmax.f32 %v6936_v57, %v6937_v18  ;;  %v6952_v41 = vmax.f32 %v6950_v23, %v6951_v29 }
 0xdea   :  { %v6948_v44 = vrot.slane %v6947_v35, 1  ;;  %v6962_v48 = vrot.slane %v6961_v50, 4 }
 0xdeb   :  { %v6939_v59 = vrot.slane %v6938_v5, 1  ;;  %v6953_v0 = vrot.slane %v6952_v41, 4 }
 0xdec   :  { %v6949_v61 = vmax.f32 %v6947_v35, %v6948_v44  ;;  %v6963_v52 = vmax.f32 %v6961_v50, %v6962_v48  ;;  %v14852_v27 = vpop.f32.mrb[140].mxu1 }
 0xded   :  { %v6940_v37 = vmax.f32 %v6938_v5, %v6939_v59  ;;  %v6954_v60 = vmax.f32 %v6952_v41, %v6953_v0  ;;  %v14854_v58 = vpop.f32.mrb[141].mxu1  ;;  %v6977_v46 = vsel %vm6931_vm8, %v14852_v27, -inf }
 0xdee   :  { %v7078_v36 = vsub.f32 %v10588_v49, %v6949_v61  ;;  %v7079_v24 = vsub.f32 %v10589_v13, %v6949_v61  ;;  %v6964_v8 = vrot.slane %v6963_v52, 2  ;;  %v14858_v1 = vpop.f32.mrb[142].mxu1  ;;  %v6968_v28 = vsel %vm6931_vm8, %v14854_v58, -inf }
 0xdef   :  { %v7076_v34 = vsub.f32 %v6804_v22, %v6940_v37  ;;  %v7077_v3 = vsub.f32 %v6807_v15, %v6940_v37  ;;  %v8424_v7 = vsel %vm2598_vm12, %v6949_v61, %v6940_v37  ;;  %v6955_v31 = vrot.slane %v6954_v60, 2  ;;  %v14861_v19 = vpop.f32.mrb[143].mxu1 }
 0xdf0   :  { %v7112_v45 = vmul.f32 1.442695, %v7078_v36  ;;  %v7114_v63 = vmul.f32 1.442695, %v7079_v24  ;;  %v6965_v12 = vmax.f32 %v6963_v52, %v6964_v8  ;;  %v6978_v62 = vsel %vm6931_vm8, %v14858_v1, -inf }
 0xdf1   :  { %v7108_v43 = vmul.f32 1.442695, %v7076_v34  ;;  %v7110_v20 = vmul.f32 1.442695, %v7077_v3  ;;  %v6956_v32 = vmax.f32 %v6954_v60, %v6955_v31  ;;  %v6979_v17 = vmax.f32 %v6977_v46, %v6978_v62  ;;  %v16249_v34 = vld [vmem:[#allocation40_spill] sm:$0xff] }
 0xdf2   :  { %11246 = vpow2.f32 %v7112_v45  ;;  %v6966_v30 = vrot.slane %v6965_v12, 1  ;;  %v6969_v2 = vsel %vm6931_vm8, %v14861_v19, -inf }
 0xdf3   :  { %11248 = vpow2.f32 %v7114_v63  ;;  %v6957_v6 = vrot.slane %v6956_v32, 1  ;;  %v6980_v21 = vrot.slane %v6979_v17, 4  ;;  %v6970_v49 = vmax.f32 %v6968_v28, %v6969_v2 }
 0xdf4   :  { %11250 = vpow2.f32 %v7108_v43  ;;  %v6967_v22 = vmax.f32 %v6965_v12, %v6966_v30  ;;  %v14869_v13 = vpop.f32.mrb[144].mxu1  ;;  %v16250_v30 = vld [vmem:[#allocation23_spill] sm:$0xff] }
 0xdf5   :  { %11252 = vpow2.f32 %v7110_v20  ;;  %v6958_v4 = vmax.f32 %v6956_v32, %v6957_v6  ;;  %v6981_v38 = vmax.f32 %v6979_v17, %v6980_v21  ;;  %v6971_v15 = vrot.slane %v6970_v49, 4  ;;  %v14871_v54 = vpop.f32.mrb[145].mxu1 }
 0xdf6   :  { %v7082_v11 = vsub.f32 %v14836_v56, %v6967_v22  ;;  %v7083_v42 = vsub.f32 %v14840_v26, %v6967_v22  ;;  %v6995_v51 = vsel %vm6931_vm8, %v14869_v13, -inf  ;;  %v6986_v14 = vsel %vm6931_vm8, %v14871_v54, -inf  ;;  %v14879_v53 = vpop.f32.mrb[146].mxu1 }
 0xdf7   :  { %v7080_v39 = vsub.f32 %v14838_v25, %v6958_v4  ;;  %v7081_v57 = vsub.f32 %v14846_v33, %v6958_v4  ;;  %v8425_v40 = vsel %vm2600_vm13, %v6958_v4, %v8424_v7  ;;  %v6982_v18 = vrot.slane %v6981_v38, 2  ;;  %v14884_v47 = vpop.f32.mrb[147].mxu1 }
 0xdf8   :  { %v7120_v56 = vmul.f32 1.442695, %v7082_v11  ;;  %v7122_v9 = vmul.f32 1.442695, %v7083_v42  ;;  %v6972_v26 = vmax.f32 %v6970_v49, %v6971_v15  ;;  %v8426_v35 = vsel %vm2602_vm14, %v6967_v22, %v8425_v40 }
 0xdf9   :  { %v7116_v23 = vmul.f32 1.442695, %v7080_v39  ;;  %v7118_v50 = vmul.f32 1.442695, %v7081_v57  ;;  %v6983_v29 = vmax.f32 %v6981_v38, %v6982_v18  ;;  %v6996_v5 = vsel %vm6931_vm8, %v14879_v53, -inf }
 0xdfa   :  { %11254 = vpow2.f32 %v7120_v56  ;;  %v6973_v25 = vrot.slane %v6972_v26, 2  ;;  %v6997_v41 = vmax.f32 %v6995_v51, %v6996_v5  ;;  %v6987_v33 = vsel %vm6931_vm8, %v14884_v47, -inf }
 0xdfb   :  { %11256 = vpow2.f32 %v7122_v9  ;;  %v6984_v44 = vrot.slane %v6983_v29, 1  ;;  %v6988_v48 = vmax.f32 %v6986_v14, %v6987_v33 }
 0xdfc   :  { %v14891_v59 = vpop.eup %11246  ;;  %11258 = vpow2.f32 %v7116_v23  ;;  %v6974_v0 = vmax.f32 %v6972_v26, %v6973_v25  ;;  %v6998_v61 = vrot.slane %v6997_v41, 4  ;;  %v14893_v52 = vpop.f32.mrb[148].mxu1 }
 0xdfd   :  { %v11249_v37 = vpop.eup %11248  ;;  %11260 = vpow2.f32 %v7118_v50  ;;  %v14895_v60 = vmax.f32 %v6983_v29, %v6984_v44  ;;  %v6989_v36 = vrot.slane %v6988_v48, 4  ;;  %v7013_v24 = vsel %vm6931_vm8, %v14893_v52, -inf  ;;  %v14899_v8 = vpop.f32.mrb[149].mxu1  ;;  %v16251_v29 = vld [vmem:[#allocation42_spill] sm:$0xff] }
 0xdfe   :  { %v14901_v46 = vpop.eup %11250  ;;  %v14904_v3 = vmul.f32 %v11249_v37, %v16249_v34  ;;  %v6975_v7 = vrot.slane %v6974_v0, 1  ;;  %v6999_v31 = vmax.f32 %v6997_v41, %v6998_v61  ;;  %v7004_v45 = vsel %vm6931_vm8, %v14899_v8, -inf  ;;  %v14908_v63 = vpop.f32.mrb[150].mxu1 }
 0xdff   :  { %v11253_v12 = vpop.eup %11252  ;;  %v7086_v62 = vsub.f32 %v14852_v27, %v14895_v60  ;;  %v7087_v43 = vsub.f32 %v14858_v1, %v14895_v60  ;;  %v6990_v20 = vmax.f32 %v6988_v48, %v6989_v36  ;;  %v7014_v32 = vsel %vm6931_vm8, %v14908_v63, -inf  ;;  %v14916_v17 = vpop.f32.mrb[151].mxu1  ;;  %v16252_v36 = vld [vmem:[#allocation41_spill] sm:$0xff] }
 0xe00   :  { %v14919_v28 = vmul.f32 %v11253_v12, %v16250_v30  ;;  %v6976_v2 = vmax.f32 %v6974_v0, %v6975_v7  ;;  %v7000_v6 = vrot.slane %v6999_v31, 2  ;;  %v7015_v21 = vmax.f32 %v7013_v24, %v7014_v32 }
 0xe01   :  { %v7128_v49 = vmul.f32 1.442695, %v7086_v62  ;;  %v7130_v22 = vmul.f32 1.442695, %v7087_v43  ;;  %v6991_v4 = vrot.slane %v6990_v20, 2  ;;  %v7005_v27 = vsel %vm6931_vm8, %v14916_v17, -inf }
 0xe02   :  { %v7084_v1 = vsub.f32 %v14854_v58, %v6976_v2  ;;  %v7085_v38 = vsub.f32 %v14861_v19, %v6976_v2  ;;  %v14926_v15 = vsel %vm2604_vm15, %v6976_v2, %v8426_v35  ;;  %v7001_v11 = vmax.f32 %v6999_v31, %v7000_v6 }
 0xe03   :  { %11262 = vpow2.f32 %v7128_v49  ;;  %v6992_v42 = vmax.f32 %v6990_v20, %v6991_v4  ;;  %v7016_v51 = vrot.slane %v7015_v21, 4  ;;  %v7006_v14 = vmax.f32 %v7004_v45, %v7005_v27 }
 0xe04   :  { %v14928_v39 = vpop.eup %11254  ;;  %11264 = vpow2.f32 %v7130_v22  ;;  %v7124_v57 = vmul.f32 1.442695, %v7084_v1  ;;  %v7126_v40 = vmul.f32 1.442695, %v7085_v38  ;;  %v7002_v18 = vrot.slane %v7001_v11, 1  ;;  %v14930_v56 = vpop.f32.mrb[152].mxu1 }
 0xe05   :  { %v11257_v9 = vpop.eup %11256  ;;  %v6993_v58 = vrot.slane %v6992_v42, 1  ;;  %v7017_v26 = vmax.f32 %v7015_v21, %v7016_v51  ;;  %v7007_v19 = vrot.slane %v7006_v14, 4  ;;  %v7031_v35 = vsel %vm6931_vm8, %v14930_v56, -inf  ;;  %v14934_v23 = vpop.f32.mrb[153].mxu1 }
 0xe06   :  { %v14936_v50 = vpop.eup %11258  ;;  %v14939_v5 = vmul.f32 %v11257_v9, %v16251_v29  ;;  %11266 = vpow2.f32 %v7124_v57  ;;  %v14941_v25 = vmax.f32 %v7001_v11, %v7002_v18  ;;  %v7022_v41 = vsel %vm6931_vm8, %v14934_v23, -inf  ;;  %v14945_v33 = vpop.f32.mrb[154].mxu1 }
 0xe07   :  { %v11261_v44 = vpop.eup %11260  ;;  %11268 = vpow2.f32 %v7126_v40  ;;  %v14947_v48 = vmax.f32 %v6992_v42, %v6993_v58  ;;  %v7018_v0 = vrot.slane %v7017_v26, 2  ;;  %v7008_v61 = vmax.f32 %v7006_v14, %v7007_v19  ;;  %v14949_v37 = vpop.f32.mrb[155].mxu1 }
 0xe08   :  { %v14952_v24 = vmul.f32 %v11261_v44, %v16252_v36  ;;  %v7090_v34 = vsub.f32 %v14869_v13, %v14941_v25  ;;  %v7091_v7 = vsub.f32 %v14879_v53, %v14941_v25  ;;  %v7032_v31 = vsel %vm6931_vm8, %v14945_v33, -inf }
 0xe09   :  { %v7088_v45 = vsub.f32 %v14871_v54, %v14947_v48  ;;  %v7089_v12 = vsub.f32 %v14884_v47, %v14947_v48  ;;  %v7019_v62 = vmax.f32 %v7017_v26, %v7018_v0  ;;  %v7009_v43 = vrot.slane %v7008_v61, 2  ;;  %v16253_v54 = vld [vmem:[#allocation39_spill] sm:$0xff] }
 0xe0a   :  { %v7136_v20 = vmul.f32 1.442695, %v7090_v34  ;;  %v7138_v32 = vmul.f32 1.442695, %v7091_v7  ;;  %v7033_v30 = vmax.f32 %v7031_v35, %v7032_v31  ;;  %v7023_v13 = vsel %vm6931_vm8, %v14949_v37, -inf }
 0xe0b   :  { %v7132_v2 = vmul.f32 1.442695, %v7088_v45  ;;  %v7134_v6 = vmul.f32 1.442695, %v7089_v12  ;;  %v7020_v53 = vrot.slane %v7019_v62, 1  ;;  %v7010_v21 = vmax.f32 %v7008_v61, %v7009_v43 }
 0xe0c   :  { %11270 = vpow2.f32 %v7136_v20  ;;  %v7034_v49 = vrot.slane %v7033_v30, 4  ;;  %v7024_v22 = vmax.f32 %v7022_v41, %v7023_v13  ;;  %v14966_v4 = vpop.f32.mrb[156].mxu1  ;;  %v14970_v47 = vmul.f32 %v14901_v46, %v16253_v54  ;;  %v16254_v46 = vld [vmem:[#allocation44_spill] sm:$0xff] }
 0xe0d   :  { %v14972_v27 = vpop.eup %11262  ;;  %11272 = vpow2.f32 %v7138_v32  ;;  %v7021_v1 = vmax.f32 %v7019_v62, %v7020_v53  ;;  %v7011_v38 = vrot.slane %v7010_v21, 1  ;;  %v7049_v11 = vsel %vm6931_vm8, %v14966_v4, -inf  ;;  %v14976_v42 = vpop.f32.mrb[157].mxu1 }
 0xe0e   :  { %v11265_v51 = vpop.eup %11264  ;;  %11274 = vpow2.f32 %v7132_v2  ;;  %v7035_v14 = vmax.f32 %v7033_v30, %v7034_v49  ;;  %v7025_v57 = vrot.slane %v7024_v22, 4  ;;  %v7040_v40 = vsel %vm6931_vm8, %v14976_v42, -inf  ;;  %v14980_v18 = vpop.f32.mrb[158].mxu1 }
 0xe0f   :  { %v14983_v9 = vmul.f32 %v11265_v51, %v16254_v46  ;;  %11276 = vpow2.f32 %v7134_v6  ;;  %v7094_v58 = vsub.f32 %v14893_v52, %v7021_v1  ;;  %v7095_v26 = vsub.f32 %v14908_v63, %v7021_v1  ;;  %v14987_v19 = vpop.f32.mrb[159].mxu1  ;;  %v16255_v52 = vld [vmem:[#allocation43_spill] sm:$0xff] }
 0xe10   :  { %v14989_v35 = vpop.eup %11266  ;;  %v7012_v29 = vmax.f32 %v7010_v21, %v7011_v38  ;;  %v7036_v41 = vrot.slane %v7035_v14, 2  ;;  %v7026_v44 = vmax.f32 %v7024_v22, %v7025_v57  ;;  %v7050_v0 = vsel %vm6931_vm8, %v14980_v18, -inf }
 0xe11   :  { %v11269_v61 = vpop.eup %11268  ;;  %v7144_v36 = vmul.f32 1.442695, %v7094_v58  ;;  %v7146_v34 = vmul.f32 1.442695, %v7095_v26  ;;  %v7051_v7 = vmax.f32 %v7049_v11, %v7050_v0  ;;  %v7041_v31 = vsel %vm6931_vm8, %v14987_v19, -inf  ;;  %v16256_v26 = vld [vmem:[#allocation46_spill] sm:$0xff] }
 0xe12   :  { %v14996_v45 = vmul.f32 %v11269_v61, %v16255_v52  ;;  %v7092_v63 = vsub.f32 %v14899_v8, %v7012_v29  ;;  %v7093_v12 = vsub.f32 %v14916_v17, %v7012_v29  ;;  %v8431_v62 = vsel %vm2598_vm12, %v7021_v1, %v7012_v29  ;;  %v16257_v52 = vld [vmem:[#allocation45_spill] sm:$0xff] }
 0xe13   :  { %11278 = vpow2.f32 %v7144_v36  ;;  %v7037_v43 = vmax.f32 %v7035_v14, %v7036_v41  ;;  %v7027_v20 = vrot.slane %v7026_v44, 2  ;;  %v7052_v32 = vrot.slane %v7051_v7, 4 }
 0xe14   :  { %11280 = vpow2.f32 %v7146_v34  ;;  %v7140_v30 = vmul.f32 1.442695, %v7092_v63  ;;  %v7142_v13 = vmul.f32 1.442695, %v7093_v12  ;;  %v7042_v2 = vmax.f32 %v7040_v40, %v7041_v31  ;;  %v15001_v6 = vpop.f32.mrb[160].mxu1 }
 0xe15   :  { %v7038_v53 = vrot.slane %v7037_v43, 1  ;;  %v7028_v21 = vmax.f32 %v7026_v44, %v7027_v20  ;;  %v7053_v49 = vmax.f32 %v7051_v7, %v7052_v32  ;;  %v7067_v8 = vsel %vm6931_vm8, %v15001_v6, -inf  ;;  %v15005_v22 = vpop.f32.mrb[161].mxu1 }
 0xe16   :  { %v15007_v17 = vpop.eup %11270  ;;  %11282 = vpow2.f32 %v7140_v30  ;;  %v7043_v54 = vrot.slane %v7042_v2, 4  ;;  %v7058_v1 = vsel %vm6931_vm8, %v15005_v22, -inf  ;;  %v15011_v38 = vpop.f32.mrb[162].mxu1  ;;  %v7204_v11 = vsel %vm6931_vm8, %v14970_v47, 0.0 }
 0xe17   :  { %v11273_v51 = vpop.eup %11272  ;;  %11284 = vpow2.f32 %v7142_v13  ;;  %v7039_v14 = vmax.f32 %v7037_v43, %v7038_v53  ;;  %v7029_v57 = vrot.slane %v7028_v21, 1  ;;  %v7054_v40 = vrot.slane %v7053_v49, 2  ;;  %v15015_v46 = vpop.f32.mrb[163].mxu1 }
 0xe18   :  { %v15017_v58 = vpop.eup %11274  ;;  %v15020_v29 = vmul.f32 %v11273_v51, %v16256_v26  ;;  %v7044_v41 = vmax.f32 %v7042_v2, %v7043_v54  ;;  %v7068_v44 = vsel %vm6931_vm8, %v15011_v38, -inf  ;;  %v7059_v0 = vsel %vm6931_vm8, %v15015_v46, -inf  ;;  %v16258_v26 = vld [vmem:[#allocation49_spill] sm:$0xff] }
 0xe19   :  { %v11277_v61 = vpop.eup %11276  ;;  %v7098_v36 = vsub.f32 %v14930_v56, %v7039_v14  ;;  %v7099_v34 = vsub.f32 %v14945_v33, %v7039_v14  ;;  %v7030_v7 = vmax.f32 %v7028_v21, %v7029_v57  ;;  %v7055_v31 = vmax.f32 %v7053_v49, %v7054_v40 }
 0xe1a   :  { %v15029_v63 = vmul.f32 %v11277_v61, %v16257_v52  ;;  %v7045_v12 = vrot.slane %v7044_v41, 2  ;;  %v7069_v43 = vmax.f32 %v7067_v8, %v7068_v44  ;;  %v7060_v20 = vmax.f32 %v7058_v1, %v7059_v0  ;;  %v16259_v52 = vld [vmem:[#allocation24_spill] sm:$0xff] }
 0xe1b   :  { %v7152_v32 = vmul.f32 1.442695, %v7098_v36  ;;  %v7154_v30 = vmul.f32 1.442695, %v7099_v34  ;;  %v7096_v13 = vsub.f32 %v14934_v23, %v7030_v7  ;;  %v7097_v2 = vsub.f32 %v14949_v37, %v7030_v7 }
 0xe1c   :  { %v8432_v53 = vsel %vm2600_vm13, %v7030_v7, %v8431_v62  ;;  %v7056_v54 = vrot.slane %v7055_v31, 1  ;;  %v7046_v56 = vmax.f32 %v7044_v41, %v7045_v12  ;;  %v7070_v51 = vrot.slane %v7069_v43, 4 }
 0xe1d   :  { %v15034_v33 = vpop.eup %11278  ;;  %11286 = vpow2.f32 %v7152_v32  ;;  %v7148_v21 = vmul.f32 1.442695, %v7096_v13  ;;  %v7150_v49 = vmul.f32 1.442695, %v7097_v2  ;;  %v8433_v57 = vsel %vm2602_vm14, %v7039_v14, %v8432_v53 }
 0xe1e   :  { %v11281_v8 = vpop.eup %11280  ;;  %11288 = vpow2.f32 %v7154_v30  ;;  %v15037_v1 = vmax.f32 %v7055_v31, %v7056_v54  ;;  %v7047_v40 = vrot.slane %v7046_v56, 1  ;;  %v7071_v23 = vmax.f32 %v7069_v43, %v7070_v51  ;;  %v16260_v43 = vld [vmem:[#allocation48_spill] sm:$0xff] }
 0xe1f   :  { %v15040_v37 = vmul.f32 %v11281_v8, %v16258_v26  ;;  %11290 = vpow2.f32 %v7148_v21  ;;  %v7061_v62 = vrot.slane %v7060_v20, 4  ;;  %v7205_v41 = vsel %vm6931_vm8, %v14919_v28, 0.0 }
 0xe20   :  { %v15044_v44 = vpop.eup %11282  ;;  %11292 = vpow2.f32 %v7150_v49  ;;  %v7102_v14 = vsub.f32 %v14966_v4, %v15037_v1  ;;  %v7103_v0 = vsub.f32 %v14980_v18, %v15037_v1  ;;  %v7048_v61 = vmax.f32 %v7046_v56, %v7047_v40 }
 0xe21   :  { %v11285_v36 = vpop.eup %11284  ;;  %v7072_v34 = vrot.slane %v7071_v23, 2  ;;  %v7062_v7 = vmax.f32 %v7060_v20, %v7061_v62  ;;  %v7206_v31 = vadd.f32 %v7205_v41, %v7204_v11  ;;  %v15052_v12 = vmul.f32 %v14891_v59, %v16259_v52 }
 0xe22   :  { %v15055_v32 = vmul.f32 %v11285_v36, %v16260_v43  ;;  %v7160_v30 = vmul.f32 1.442695, %v7102_v14  ;;  %v7162_v13 = vmul.f32 1.442695, %v7103_v0  ;;  %v7100_v2 = vsub.f32 %v14976_v42, %v7048_v61 }
 0xe23   :  { %v7101_v4 = vsub.f32 %v14987_v19, %v7048_v61  ;;  %v15060_v18 = vsel %vm2604_vm15, %v7048_v61, %v8433_v57  ;;  %v7073_v53 = vmax.f32 %v7071_v23, %v7072_v34  ;;  %v7063_v54 = vrot.slane %v7062_v7, 2  ;;  %v16261_v19 = vld [vmem:[#allocation25_spill] sm:$0xff]  ;;  %v16262_v61 = vld [vmem:[#allocation26_spill] sm:$0xff] }
 0xe24   :  { %11294 = vpow2.f32 %v7160_v30  ;;  %v7156_v11 = vmul.f32 1.442695, %v7100_v2  ;;  %v7207_v20 = vrot.slane %v7206_v31, 4  ;;  %v7213_v59 = vsel %vm6931_vm8, %v15052_v12, 0.0  ;;  %v16263_v34 = vld [vmem:[#allocation53_spill] sm:$0xff] }
 0xe25   :  { %11296 = vpow2.f32 %v7162_v13  ;;  %v7158_v56 = vmul.f32 1.442695, %v7101_v4  ;;  %v7074_v51 = vrot.slane %v7073_v53, 1  ;;  %v7064_v21 = vmax.f32 %v7062_v7, %v7063_v54  ;;  %v16264_v54 = vld [vmem:[#allocation52_spill] sm:$0xff] }
 0xe26   :  { %11298 = vpow2.f32 %v7156_v11  ;;  %v7208_v49 = vadd.f32 %v7207_v20, %v7206_v31  ;;  %v7214_v42 = vsel %vm6931_vm8, %v14904_v3, 0.0  ;;  %v15068_v57 = vmul.f32 %v14936_v50, %v16261_v19 }
 0xe27   :  { %v15070_v8 = vpop.eup %11286  ;;  %11300 = vpow2.f32 %v7158_v56  ;;  %v7075_v40 = vmax.f32 %v7073_v53, %v7074_v51  ;;  %v7065_v23 = vrot.slane %v7064_v21, 1  ;;  %v7215_v26 = vadd.f32 %v7214_v42, %v7213_v59 }
 0xe28   :  { %v11289_v62 = vpop.eup %11288  ;;  %v7209_v41 = vrot.slane %v7208_v49, 2  ;;  %v7222_v14 = vsel %vm6931_vm8, %v15068_v57, 0.0  ;;  %v7223_v0 = vsel %vm6931_vm8, %v14952_v24, 0.0  ;;  %v15078_v36 = vmul.f32 %v14928_v39, %v16262_v61  ;;  %v16265_v61 = vld [vmem:[#allocation55_spill] sm:$0xff] }
 0xe29   :  { %v15080_v50 = vpop.eup %11290  ;;  %v15083_v7 = vmul.f32 %v11289_v62, %v16263_v34  ;;  %v7106_v31 = vsub.f32 %v15001_v6, %v7075_v40  ;;  %v7107_v52 = vsub.f32 %v15011_v38, %v7075_v40  ;;  %v7066_v43 = vmax.f32 %v7064_v21, %v7065_v23 }
 0xe2a   :  { %v11293_v30 = vpop.eup %11292  ;;  %v7210_v13 = vadd.f32 %v7209_v41, %v7208_v49  ;;  %v7216_v2 = vrot.slane %v7215_v26, 4  ;;  %v7224_v4 = vadd.f32 %v7223_v0, %v7222_v14  ;;  %v7231_v53 = vsel %vm6931_vm8, %v15078_v36, 0.0 }
 0xe2b   :  { %v15090_v39 = vmul.f32 %v11293_v30, %v16264_v54  ;;  %v7168_v11 = vmul.f32 1.442695, %v7106_v31  ;;  %v7170_v20 = vmul.f32 1.442695, %v7107_v52  ;;  %v7104_v59 = vsub.f32 %v15005_v22, %v7066_v43 }
 0xe2c   :  { %v7105_v56 = vsub.f32 %v15015_v46, %v7066_v43  ;;  %v7211_v6 = vrot.slane %v7210_v13, 1  ;;  %v7217_v51 = vadd.f32 %v7216_v2, %v7215_v26  ;;  %v7225_v38 = vrot.slane %v7224_v4, 4 }
 0xe2d   :  { %11302 = vpow2.f32 %v7168_v11  ;;  %v7164_v21 = vmul.f32 1.442695, %v7104_v59  ;;  %v7232_v49 = vsel %vm6931_vm8, %v14939_v5, 0.0  ;;  %v8428_v42 = vsel %vm2606_vm3, %v14895_v60, %v14926_v15 }
 0xe2e   :  { %v15099_v19 = vpop.eup %11294  ;;  %11304 = vpow2.f32 %v7170_v20  ;;  %v7166_v23 = vmul.f32 1.442695, %v7105_v56  ;;  %v7212_v62 = vadd.f32 %v7211_v6, %v7210_v13  ;;  %v7218_v22 = vrot.slane %v7217_v51, 2  ;;  %v16269_v56 = vld [vmem:[#allocation27_spill] sm:$0xff] }
 0xe2f   :  { %v11297_v41 = vpop.eup %11296  ;;  %11306 = vpow2.f32 %v7164_v21  ;;  %v7226_v46 = vadd.f32 %v7225_v38, %v7224_v4  ;;  %v7233_v26 = vadd.f32 %v7232_v49, %v7231_v53  ;;  %v8429_v14 = vsel %vm2608_vm4, %v14947_v48, %v8428_v42  ;;  %v16267_v4 = vld [vmem:[#allocation54_spill] sm:$0xff] }
 0xe30   :  { %v15103_v0 = vpop.eup %11298  ;;  %v15106_v34 = vmul.f32 %v11297_v41, %v16265_v61  ;;  %11308 = vpow2.f32 %v7166_v23  ;;  %v7348_v60 = vmax.f32 %v7212_v62, 1e-30  ;;  %v7219_v15 = vadd.f32 %v7218_v22, %v7217_v51  ;;  %v16271_v62 = vld [vmem:[#allocation29_spill] sm:$0xff] }
 0xe31   :  { %v11301_v31 = vpop.eup %11300  ;;  %v7227_v52 = vrot.slane %v7226_v46, 2  ;;  %v7234_v30 = vrot.slane %v7233_v26, 4  ;;  %v8430_v13 = vsel %vm16266_vm2, %v14941_v25, %v8429_v14  ;;  %v8435_v2 = vsel %vm2606_vm3, %v15037_v1, %v15060_v18  ;;  %v16270_v18 = vld [vmem:[#allocation28_spill] sm:$0xff] }
 0xe32   :  { %v15114_v48 = vmul.f32 %v11301_v31, %v16267_v4  ;;  %11310 = vrcp.f32 %v7348_v60  ;;  %v7220_v53 = vrot.slane %v7219_v15, 1  ;;  %v8436_v54 = vsel %vm2608_vm4, %v7066_v43, %v8435_v2  ;;  %v16272_v31 = vld [vmem:[#allocation30_spill] sm:$0xff] }
 0xe33   :  { %v7228_v11 = vadd.f32 %v7227_v52, %v7226_v46  ;;  %v7235_v20 = vadd.f32 %v7234_v30, %v7233_v26  ;;  %v8437_v59 = vsel %vm16268_vm11, %v7075_v40, %v8436_v54  ;;  %v15120_v6 = vmul.f32 %v14989_v35, %v16269_v56  ;;  %v16273_v30 = vld [vmem:[#allocation57_spill] sm:$0xff] }
 0xe34   :  { %v7221_v25 = vadd.f32 %v7220_v53, %v7219_v15  ;;  %v15122_v51 = vpack.c.bf16 %v8437_v59, %v8430_v13  ;;  %v7241_v1 = vsel %vm6931_vm8, %v14996_v45, 0.0  ;;  %v15128_v38 = vmul.f32 %v14972_v27, %v16270_v18 }
 0xe35   :  { %v7229_v21 = vrot.slane %v7228_v11, 1  ;;  %v7236_v43 = vrot.slane %v7235_v20, 2  ;;  %v7240_v49 = vsel %vm6931_vm8, %v15120_v6, 0.0  ;;  %v7250_v40 = vsel %vm6931_vm8, %v14983_v9, 0.0 }
 0xe36   :  { %v7349_v35 = vmax.f32 %v7221_v25, 1e-30  ;;  %v7242_v42 = vadd.f32 %v7241_v1, %v7240_v49  ;;  %v7249_v23 = vsel %vm6931_vm8, %v15128_v38, 0.0  ;;  %v15138_v22 = vmul.f32 %v15017_v58, %v16271_v62  ;;  %v16274_v25 = vld [vmem:[#allocation56_spill] sm:$0xff] }
 0xe37   :  { %v15140_v41 = vpop.eup %11302  ;;  %v7230_v27 = vadd.f32 %v7229_v21, %v7228_v11  ;;  %v7237_v46 = vadd.f32 %v7236_v43, %v7235_v20  ;;  %v7251_v26 = vadd.f32 %v7250_v40, %v7249_v23  ;;  %v7259_v14 = vsel %vm6931_vm8, %v15029_v63, 0.0 }
 0xe38   :  { %v11305_v61 = vpop.eup %11304  ;;  %11312 = vrcp.f32 %v7349_v35  ;;  %v7243_v60 = vrot.slane %v7242_v42, 4  ;;  %v7258_v15 = vsel %vm6931_vm8, %v15138_v22, 0.0  ;;  %v15148_v52 = vmul.f32 %v15007_v17, %v16272_v31  ;;  %v16275_v35 = vld [vmem:[#allocation31_spill] sm:$0xff] }
 0xe39   :  { %v15150_v58 = vpop.eup %11306  ;;  %v15153_v13 = vmul.f32 %v11305_v61, %v16273_v30  ;;  %v7350_v2 = vmax.f32 %v7230_v27, 1e-30  ;;  %v7238_v4 = vrot.slane %v7237_v46, 1  ;;  %v7252_v53 = vrot.slane %v7251_v26, 4  ;;  %v16276_v30 = vld [vmem:[#allocation32_spill] sm:$0xff] }
 0xe3a   :  { %v11309_v54 = vpop.eup %11308  ;;  %v7244_v11 = vadd.f32 %v7243_v60, %v7242_v42  ;;  %v7260_v20 = vadd.f32 %v7259_v14, %v7258_v15  ;;  %v7267_v59 = vsel %vm6931_vm8, %v15148_v52, 0.0  ;;  %v7268_v56 = vsel %vm6931_vm8, %v15020_v29, 0.0 }
 0xe3b   :  { %v15160_v17 = vmul.f32 %v11309_v54, %v16274_v25  ;;  %11314 = vrcp.f32 %v7350_v2  ;;  %v7239_v1 = vadd.f32 %v7238_v4, %v7237_v46  ;;  %v7253_v18 = vadd.f32 %v7252_v53, %v7251_v26  ;;  %v16277_v25 = vld [vmem:[#allocation33_spill] sm:$0xff] }
 0xe3c   :  { %v15162_v21 = vpop.eup %11310  ;;  %v7245_v43 = vrot.slane %v7244_v11, 2  ;;  %v7261_v49 = vrot.slane %v7260_v20, 4  ;;  %v7269_v40 = vadd.f32 %v7268_v56, %v7267_v59  ;;  %v15166_v42 = vmul.f32 %v15044_v44, %v16275_v35  ;;  %v15168_v23 = vpop.f32.mrb[164].mxu1 }
 0xe3d   :  { %v7380_v62 = vmul.f32 %v15162_v21, %v14970_v47  ;;  %v7381_v27 = vmul.f32 %v15162_v21, %v14919_v28  ;;  %v7351_v14 = vmax.f32 %v7239_v1, 1e-30  ;;  %v7254_v46 = vrot.slane %v7253_v18, 2  ;;  %v15174_v26 = vpop.f32.mrb[165].mxu1 }
 0xe3e   :  { %v7246_v61 = vadd.f32 %v7245_v43, %v7244_v11  ;;  %v7262_v60 = vadd.f32 %v7261_v49, %v7260_v20  ;;  %v7270_v15 = vrot.slane %v7269_v40, 4  ;;  %v7276_v31 = vsel %vm6931_vm8, %v15166_v42, 0.0  ;;  %v16278_v43 = vld [vmem:[#allocation67_spill] sm:$0xff] }
 0xe3f   :  { %10620 = vmatprep.mubr.msk.f32.mxu0 %vm6931_vm8, %v7380_v62  ;;  %11316 = vrcp.f32 %v7351_v14  ;;  %v7255_v44 = vadd.f32 %v7254_v46, %v7253_v18  ;;  %v7277_v47 = vsel %vm6931_vm8, %v15055_v32, 0.0  ;;  %v15183_v28 = vmul.f32 %v15034_v33, %v16276_v30 }
 0xe40   :  { %10621 = vmatmul.mubr.msk.f32.vlgmr.msra.gmra.mrb[136].mxu0 %vm6931_vm8, %v7381_v27  ;;  %v7247_v2 = vrot.slane %v7246_v61, 1  ;;  %v7263_v4 = vrot.slane %v7262_v60, 2  ;;  %v7271_v53 = vadd.f32 %v7270_v15, %v7269_v40  ;;  %v7278_v54 = vadd.f32 %v7277_v47, %v7276_v31  ;;  %v15186_v11 = vpop.f32.mrb[166].mxu1 }
 0xe41   :  { %10725 = vmatpush3.bf16.msra.mxu0 %v14568_v10  ;;  %v7256_v20 = vrot.slane %v7255_v44, 1  ;;  %v7285_v59 = vsel %vm6931_vm8, %v15183_v28, 0.0  ;;  %v7286_v56 = vsel %vm6931_vm8, %v15040_v37, 0.0  ;;  %v15195_v33 = vmul.f32 %v15080_v50, %v16277_v25  ;;  %v15197_v1 = vpop.f32.mrb[167].mxu1 }
 0xe42   :  { %v15199_v18 = vpop.eup %11312  ;;  %10923 = vmatprep.subr.msk.bf16.mxu0 %vm16279_vm1, %v16278_v43  ;;  %v7248_v49 = vadd.f32 %v7247_v2, %v7246_v61  ;;  %v7264_v10 = vadd.f32 %v7263_v4, %v7262_v60  ;;  %v7272_v40 = vrot.slane %v7271_v53, 2  ;;  %v7279_v35 = vrot.slane %v7278_v54, 4  ;;  %v16280_v61 = vld [vmem:[#allocation68_spill] sm:$0xff] }
 0xe43   :  { %v7382_v62 = vmul.f32 %v15199_v18, %v15052_v12  ;;  %v7383_v27 = vmul.f32 %v15199_v18, %v14904_v3  ;;  %v7257_v14 = vadd.f32 %v7256_v20, %v7255_v44  ;;  %v7287_v50 = vadd.f32 %v7286_v56, %v7285_v59 }
 0xe44   :  { %v7352_v46 = vmax.f32 %v7248_v49, 1e-30  ;;  %v7265_v15 = vrot.slane %v7264_v10, 1  ;;  %v7273_v31 = vadd.f32 %v7272_v40, %v7271_v53  ;;  %v7280_v47 = vadd.f32 %v7279_v35, %v7278_v54  ;;  %v15207_v30 = vpop.f32.mrb[168].mxu1  ;;  %v16281_v40 = vld [vmem:[#allocation34_spill] sm:$0xff] }
 0xe45   :  { %v15209_v25 = vpop.eup %11314  ;;  %10623 = vmatprep.mubr.msk.f32.mxu0 %vm6931_vm8, %v7382_v62  ;;  %10727 = vmatpush3.bf16.msra.mxu0 %v16280_v61  ;;  %v7353_v60 = vmax.f32 %v7257_v14, 1e-30  ;;  %v7288_v2 = vrot.slane %v7287_v50, 4  ;;  %v7294_v12 = vsel %vm6931_vm8, %v15195_v33, 0.0  ;;  %v7295_v3 = vsel %vm6931_vm8, %v15090_v39, 0.0  ;;  %v15217_v44 = vpop.f32.mrb[169].mxu1 }
 0xe46   :  { %10624 = vmatmul.mubr.msk.f32.gmra.mrb[138].mxu0 %vm6931_vm8, %v7383_v27  ;;  %v7384_v4 = vmul.f32 %v15209_v25, %v15068_v57  ;;  %v7385_v53 = vmul.f32 %v15209_v25, %v14952_v24  ;;  %10864 = vmatprep.subr.bf16.mxu0 %v15122_v51  ;;  %11318 = vrcp.f32 %v7352_v46  ;;  %v7266_v54 = vadd.f32 %v7265_v15, %v7264_v10  ;;  %v16282_v46 = vld [vmem:[#allocation35_spill] sm:$0xff] }
 0xe47   :  { %11320 = vrcp.f32 %v7353_v60  ;;  %v7274_v20 = vrot.slane %v7273_v31, 1  ;;  %v7281_v59 = vrot.slane %v7280_v47, 2  ;;  %v7289_v56 = vadd.f32 %v7288_v2, %v7287_v50 }
 0xe48   :  { %10626 = vmatprep.mubr.msk.f32.mxu0 %vm6931_vm8, %v7384_v4  ;;  %v7354_v43 = vmax.f32 %v7266_v54, 1e-30  ;;  %v7296_v49 = vadd.f32 %v7295_v3, %v7294_v12  ;;  %v15228_v35 = vmul.f32 %v15070_v8, %v16281_v40  ;;  %v7304_v57 = vsel %vm6931_vm8, %v15083_v7, 0.0  ;;  %v15232_v24 = vpop.f32.mrb[170].mxu1 }
 0xe49   :  { %v15234_v62 = vpop.eup %11316  ;;  %v7275_v10 = vadd.f32 %v7274_v20, %v7273_v31  ;;  %v7282_v27 = vadd.f32 %v7281_v59, %v7280_v47  ;;  %v7290_v14 = vrot.slane %v7289_v56, 2  ;;  %v15238_v50 = vmul.f32 %v15103_v0, %v16282_v46  ;;  %v15240_v15 = vpop.f32.mrb[171].mxu1 }
 0xe4a   :  { %10627 = vmatmul.mubr.msk.f32.gmra.mrb[140].mxu0 %vm6931_vm8, %v7385_v53  ;;  %v7386_v8 = vmul.f32 %v15234_v62, %v15078_v36  ;;  %v7387_v61 = vmul.f32 %v15234_v62, %v14939_v5  ;;  %11322 = vrcp.f32 %v7354_v43  ;;  %v7297_v60 = vrot.slane %v7296_v49, 4 }
 0xe4b   :  { %v7355_v2 = vmax.f32 %v7275_v10, 1e-30  ;;  %v7283_v31 = vrot.slane %v7282_v27, 1  ;;  %v7291_v47 = vadd.f32 %v7290_v14, %v7289_v56  ;;  %v7303_v12 = vsel %vm6931_vm8, %v15228_v35, 0.0 }
 0xe4c   :  { %10629 = vmatprep.mubr.msk.f32.mxu0 %vm6931_vm8, %v7386_v8  ;;  %v7298_v0 = vadd.f32 %v7297_v60, %v7296_v49  ;;  %v7305_v3 = vadd.f32 %v7304_v57, %v7303_v12  ;;  %v7312_v4 = vsel %vm6931_vm8, %v15238_v50, 0.0  ;;  %v7313_v36 = vsel %vm6931_vm8, %v15114_v48, 0.0  ;;  %v15254_v53 = vpop.f32.mrb[172].mxu1  ;;  %v16283_v49 = vld [vmem:[#allocation36_spill] sm:$0xff]  ;;  %v16284_v8 = vld [vmem:[#allocation37_spill] sm:$0xff] }
 0xe4d   :  { %11324 = vrcp.f32 %v7355_v2  ;;  %v7284_v5 = vadd.f32 %v7283_v31, %v7282_v27  ;;  %v7292_v54 = vrot.slane %v7291_v47, 1  ;;  %v7314_v20 = vadd.f32 %v7313_v36, %v7312_v4  ;;  %v15256_v59 = vpop.f32.mrb[173].mxu1 }
 0xe4e   :  { %10630 = vmatmul.mubr.msk.f32.gmra.mrb[142].mxu0 %vm6931_vm8, %v7387_v61  ;;  %v7299_v56 = vrot.slane %v7298_v0, 2  ;;  %v7306_v43 = vrot.slane %v7305_v3, 4  ;;  %v15261_v40 = vmul.f32 %v15099_v19, %v16283_v49  ;;  %v7322_v57 = vsel %vm6931_vm8, %v15106_v34, 0.0 }
 0xe4f   :  { %v7356_v10 = vmax.f32 %v7284_v5, 1e-30  ;;  %v7293_v14 = vadd.f32 %v7292_v54, %v7291_v47  ;;  %v7315_v46 = vrot.slane %v7314_v20, 4  ;;  %v15267_v27 = vmul.f32 %v15150_v58, %v16284_v8 }
 0xe50   :  { %v15269_v60 = vpop.eup %11318  ;;  %v7300_v2 = vadd.f32 %v7299_v56, %v7298_v0  ;;  %v7307_v61 = vadd.f32 %v7306_v43, %v7305_v3  ;;  %v7321_v31 = vsel %vm6931_vm8, %v15261_v40, 0.0  ;;  %v7331_v19 = vsel %vm6931_vm8, %v15160_v17, 0.0  ;;  %v15275_v12 = vpop.f32.mrb[174].mxu1 }
 0xe51   :  { %v15277_v4 = vpop.eup %11320  ;;  %v7388_v47 = vmul.f32 %v15269_v60, %v15120_v6  ;;  %v7389_v58 = vmul.f32 %v15269_v60, %v14996_v45  ;;  %11326 = vrcp.f32 %v7356_v10  ;;  %v7357_v36 = vmax.f32 %v7293_v14, 1e-30  ;;  %v15283_v0 = vpop.f32.mrb[175].mxu1 }
 0xe52   :  { %v7390_v3 = vmul.f32 %v15277_v4, %v15128_v38  ;;  %v7391_v5 = vmul.f32 %v15277_v4, %v14983_v9  ;;  %v7301_v54 = vrot.slane %v7300_v2, 1  ;;  %v7308_v56 = vrot.slane %v7307_v61, 2 }
 0xe53   :  { %10632 = vmatprep.mubr.msk.f32.mxu0 %vm6931_vm8, %v7388_v47  ;;  %11328 = vrcp.f32 %v7357_v36  ;;  %v7316_v43 = vadd.f32 %v7315_v46, %v7314_v20  ;;  %v7323_v6 = vadd.f32 %v7322_v57, %v7321_v31  ;;  %v7330_v45 = vsel %vm6931_vm8, %v15267_v27, 0.0 }
 0xe54   :  { %v15292_v49 = vpop.eup %11322  ;;  %10633 = vmatmul.mubr.msk.f32.gmra.mrb[144].mxu0 %vm6931_vm8, %v7389_v58  ;;  %v7302_v10 = vadd.f32 %v7301_v54, %v7300_v2  ;;  %v7309_v14 = vadd.f32 %v7308_v56, %v7307_v61  ;;  %v7332_v38 = vadd.f32 %v7331_v19, %v7330_v45  ;;  %vm8232_vm9 = vcmp.gt.f32.partialorder %v15168_v23, 0.0  ;;  %v15296_v9 = vpop.f32.mrb[176].mxu1 }
 0xe55   :  { %10635 = vmatprep.mubr.msk.f32.mxu0 %vm6931_vm8, %v7390_v3  ;;  %v7392_v20 = vmul.f32 %v15292_v49, %v15138_v22  ;;  %v7393_v57 = vmul.f32 %v15292_v49, %v15029_v63  ;;  %v7317_v46 = vrot.slane %v7316_v43, 2  ;;  %v7324_v8 = vrot.slane %v7323_v6, 4  ;;  %v15303_v31 = vpop.f32.mrb[177].mxu1 }
 0xe56   :  { %v7358_v47 = vmax.f32 %v7302_v10, 1e-30  ;;  %v7310_v2 = vrot.slane %v7309_v14, 1  ;;  %v7333_v61 = vrot.slane %v7332_v38, 4  ;;  %v8248_v19 = vmul.f32 0.2, %v15168_v23 }
 0xe57   :  { %v15306_v58 = vpop.eup %11324  ;;  %v7318_v36 = vadd.f32 %v7317_v46, %v7316_v43  ;;  %v7325_v54 = vadd.f32 %v7324_v8, %v7323_v6  ;;  %vm8231_vm5 = vcmp.gt.f32.partialorder %v15174_v26, 0.0  ;;  %v8247_v22 = vmul.f32 0.2, %v15174_v26 }
 0xe58   :  { %10636 = vmatmul.mubr.msk.f32.gmra.mrb[146].mxu0 %vm6931_vm8, %v7391_v5  ;;  %v7394_v63 = vmul.f32 %v15306_v58, %v15148_v52  ;;  %v7395_v3 = vmul.f32 %v15306_v58, %v15020_v29  ;;  %11330 = vrcp.f32 %v7358_v47  ;;  %v7311_v56 = vadd.f32 %v7310_v2, %v7309_v14  ;;  %v15315_v45 = vpop.f32.mrb[178].mxu1  ;;  %v16285_v29 = vld [vmem:[#allocation38_spill] sm:$0xff] }
 0xe59   :  { %10638 = vmatprep.mubr.msk.f32.mxu0 %vm6931_vm8, %v7392_v20  ;;  %v7319_v43 = vrot.slane %v7318_v36, 1  ;;  %v7326_v6 = vrot.slane %v7325_v54, 2  ;;  %v7334_v10 = vadd.f32 %v7333_v61, %v7332_v38  ;;  %v15321_v46 = vsel %vm8232_vm9, %v15168_v23, %v8248_v19  ;;  %v15323_v5 = vpop.f32.mrb[179].mxu1 }
 0xe5a   :  { %v7359_v52 = vmax.f32 %v7311_v56, 1e-30  ;;  %v15326_v8 = vsel %vm8231_vm5, %v15174_v26, %v8247_v22  ;;  %v15330_v14 = vmul.f32 %v15140_v41, %v16285_v29  ;;  %v7340_v20 = vsel %vm6931_vm8, %v15153_v13, 0.0 }
 0xe5b   :  { %v11327_v47 = vpop.eup %11326  ;;  %v7320_v38 = vadd.f32 %v7319_v43, %v7318_v36  ;;  %v7327_v2 = vadd.f32 %v7326_v6, %v7325_v54  ;;  %v7335_v61 = vrot.slane %v7334_v10, 2  ;;  %v8279_v23 = vpack.c.bf16 %v15321_v46, %v15326_v8  ;;  %v11461_v46 = vld [vmem:[%s11559_s13 + $0x20] sm:$0xff]  ;;  %v11462_v8 = vld [vmem:[%s11559_s13 + $0x28] sm:$0xff] }
 0xe5c   :  { %10639 = vmatmul.mubr.msk.f32.gmra.mrb[148].mxu0 %vm6931_vm8, %v7393_v57  ;;  %v7396_v19 = vmul.f32 %v11327_v47, %v15166_v42  ;;  %v7397_v26 = vmul.f32 %v11327_v47, %v15055_v32  ;;  %11332 = vrcp.f32 %v7359_v52  ;;  %v7339_v41 = vsel %vm6931_vm8, %v15330_v14, 0.0 }
 0xe5d   :  { %v11329_v22 = vpop.eup %11328  ;;  %10641 = vmatprep.mubr.msk.f32.mxu0 %vm6931_vm8, %v7394_v63  ;;  %v7360_v56 = vmax.f32 %v7320_v38, 1e-30  ;;  %v7328_v36 = vrot.slane %v7327_v2, 1  ;;  %v7336_v54 = vadd.f32 %v7335_v61, %v7334_v10  ;;  %v7341_v43 = vadd.f32 %v7340_v20, %v7339_v41 }
 0xe5e   :  { %v7398_v6 = vmul.f32 %v11329_v22, %v15183_v28  ;;  %v7399_v29 = vmul.f32 %v11329_v22, %v15040_v37  ;;  %vm8234_vm0 = vcmp.gt.f32.partialorder %v15186_v11, 0.0  ;;  %v8250_v42 = vmul.f32 0.2, %v15186_v11 }
 0xe5f   :  { %11334 = vrcp.f32 %v7360_v56  ;;  %v7329_v32 = vadd.f32 %v7328_v36, %v7327_v2  ;;  %v7337_v57 = vrot.slane %v7336_v54, 1  ;;  %v7342_v52 = vrot.slane %v7341_v43, 4 }
 0xe60   :  { %10642 = vmatmul.mubr.msk.f32.gmra.mrb[150].mxu0 %vm6931_vm8, %v7395_v3  ;;  %v15348_v63 = vsel %vm8234_vm0, %v15186_v11, %v8250_v42  ;;  %v8601_v10 = vsel %vm2598_vm12, %v15199_v18, %v15162_v21  ;;  %v8608_v28 = vsel %vm2598_vm12, %v11329_v22, %v11327_v47  ;;  %vm8233_vm6 = vcmp.gt.f32.partialorder %v15197_v1, 0.0 }
 0xe61   :  { %10644 = vmatprep.mubr.msk.f32.mxu0 %vm6931_vm8, %v7396_v19  ;;  %v7361_v37 = vmax.f32 %v7329_v32, 1e-30  ;;  %v7338_v20 = vadd.f32 %v7337_v57, %v7336_v54  ;;  %v7343_v38 = vadd.f32 %v7342_v52, %v7341_v43  ;;  %v8602_v2 = vsel %vm2600_vm13, %v15209_v25, %v8601_v10 }
 0xe62   :  { %v11331_v3 = vpop.eup %11330  ;;  %v8603_v11 = vsel %vm2602_vm14, %v15234_v62, %v8602_v2  ;;  %v8249_v61 = vmul.f32 0.2, %v15197_v1  ;;  %vm8236_vm2 = vcmp.gt.f32.partialorder %v15207_v30, 0.0  ;;  %v8252_v21 = vmul.f32 0.2, %v15207_v30 }
 0xe63   :  { %v7400_v18 = vmul.f32 %v11331_v3, %v15195_v33  ;;  %v7401_v47 = vmul.f32 %v11331_v3, %v15090_v39  ;;  %11336 = vrcp.f32 %v7361_v37  ;;  %v7362_v19 = vmax.f32 %v7338_v20, 1e-30 }
 0xe64   :  { %10645 = vmatmul.mubr.msk.f32.gmra.mrb[152].mxu0 %vm6931_vm8, %v7397_v26  ;;  %v7344_v41 = vrot.slane %v7343_v38, 2  ;;  %v8604_v25 = vsel %vm2604_vm15, %v15269_v60, %v8603_v11  ;;  %v8609_v62 = vsel %vm2600_vm13, %v11331_v3, %v8608_v28  ;;  %v15372_v22 = vsel %vm8233_vm6, %v15197_v1, %v8249_v61 }
 0xe65   :  { %10647 = vmatprep.mubr.msk.f32.mxu0 %vm6931_vm8, %v7398_v6  ;;  %11338 = vrcp.f32 %v7362_v19  ;;  %v8605_v39 = vsel %vm2606_vm3, %v15277_v4, %v8604_v25  ;;  %v8280_v33 = vpack.c.bf16 %v15348_v63, %v15372_v22  ;;  %v15380_v26 = vsel %vm8236_vm2, %v15207_v30, %v8252_v21  ;;  %v11465_v63 = vld [vmem:[%s11559_s13 + $0x40] sm:$0xff]  ;;  %v11466_v22 = vld [vmem:[%s11559_s13 + $0x48] sm:$0xff] }
 0xe66   :  { %v11333_v60 = vpop.eup %11332  ;;  %v7345_v56 = vadd.f32 %v7344_v41, %v7343_v38  ;;  %v8606_v36 = vsel %vm2608_vm4, %v15292_v49, %v8605_v39  ;;  %vm8235_vm11 = vcmp.gt.f32.partialorder %v15217_v44, 0.0  ;;  %v8251_v1 = vmul.f32 0.2, %v15217_v44 }
 0xe67   :  { %v7402_v54 = vmul.f32 %v11333_v60, %v15228_v35  ;;  %v7403_v43 = vmul.f32 %v11333_v60, %v15083_v7  ;;  %vm16286_vm1 = vcmask 1047559   ;;  %v8610_v30 = vsel %vm2602_vm14, %v11333_v60, %v8609_v62 }
 0xe68   :  { %v15390_v4 = vsel %vm16286_vm1, %v15306_v58, %v8606_v36  ;;  %10648 = vmatmul.mubr.msk.f32.gmra.mrb[154].mxu0 %vm6931_vm8, %v7399_v29  ;;  %v7346_v6 = vrot.slane %v7345_v56, 1  ;;  %v15395_v42 = vsel %vm8235_vm11, %v15217_v44, %v8251_v1  ;;  %vm8238_vm9 = vcmp.gt.f32.partialorder %v15232_v24, 0.0 }
 0xe69   :  { %v8254_v49 = vmul.f32 0.2, %v15232_v24  ;;  %v11335_v32 = vpop.eup %11334  ;;  %10650 = vmatprep.mubr.msk.f32.mxu0 %vm6931_vm8, %v7400_v18  ;;  %v8281_v7 = vpack.c.bf16 %v15380_v26, %v15395_v42  ;;  %vm8237_vm5 = vcmp.gt.f32.partialorder %v15240_v15, 0.0  ;;  %v8253_v35 = vmul.f32 0.2, %v15240_v15  ;;  %v11468_v26 = vld [vmem:[%s11559_s13 + $0x58] sm:$0xff] }
 0xe6a   :  { %vm8240_vm0 = vcmp.gt.f32.partialorder %v15254_v53, 0.0  ;;  %v7404_v58 = vmul.f32 %v11335_v32, %v15238_v50  ;;  %v7405_v44 = vmul.f32 %v11335_v32, %v15114_v48  ;;  %v7347_v29 = vadd.f32 %v7346_v6, %v7345_v56  ;;  %v11473_v6 = vld [vmem:[%s11559_s13] sm:$0xff] }
 0xe6b   :  { %v8611_v57 = vsel %vm2604_vm15, %v11335_v32, %v8610_v30  ;;  %v15409_v52 = vsel %vm8238_vm9, %v15232_v24, %v8254_v49  ;;  %v15412_v10 = vsel %vm8237_vm5, %v15240_v15, %v8253_v35  ;;  %v8256_v28 = vmul.f32 0.2, %v15254_v53  ;;  %v11472_v30 = vld [vmem:[%s11559_s13 + $0x78] sm:$0xff] }
 0xe6c   :  { %vm8239_vm6 = vcmp.gt.f32.partialorder %v15256_v59, 0.0  ;;  %10651 = vmatmul.mubr.msk.f32.gmra.mrb[156].mxu0 %vm6931_vm8, %v7401_v47  ;;  %v7363_v37 = vmax.f32 %v7347_v29, 1e-30  ;;  %v8282_v50 = vpack.c.bf16 %v15409_v52, %v15412_v10  ;;  %v8255_v48 = vmul.f32 0.2, %v15256_v59 }
 0xe6d   :  { %vm8242_vm2 = vcmp.gt.f32.partialorder %v15275_v12, 0.0  ;;  %v11337_v20 = vpop.eup %11336  ;;  %10653 = vmatprep.mubr.msk.f32.mxu0 %vm6931_vm8, %v7402_v54  ;;  %v15425_v24 = vsel %vm8240_vm0, %v15254_v53, %v8256_v28  ;;  %v8258_v15 = vmul.f32 0.2, %v15275_v12  ;;  %vm8241_vm11 = vcmp.gt.f32.partialorder %v15283_v0, 0.0  ;;  %v11469_v54 = vld [vmem:[%s11559_s13 + $0x60] sm:$0xff] }
 0xe6e   :  { %v8257_v38 = vmul.f32 0.2, %v15283_v0  ;;  %v7406_v2 = vmul.f32 %v11337_v20, %v15261_v40  ;;  %v7407_v3 = vmul.f32 %v11337_v20, %v15106_v34  ;;  %11340 = vrcp.f32 %v7363_v37 }
 0xe6f   :  { %v8612_v11 = vsel %vm2606_vm3, %v11337_v20, %v8611_v57  ;;  %v11339_v61 = vpop.eup %11338  ;;  %v8271_v21 = vsel %vm8239_vm6, %v15256_v59, %v8255_v48  ;;  %v15437_v53 = vsel %vm8242_vm2, %v15275_v12, %v8258_v15  ;;  %vm8244_vm1 = vcmp.gt.f32.partialorder %v15296_v9, 0.0 }
 0xe70   :  { %v15440_v18 = vsel %vm8241_vm11, %v15283_v0, %v8257_v38  ;;  %10654 = vmatmul.mubr.msk.f32.gmra.mrb[158].mxu0 %vm6931_vm8, %v7403_v43  ;;  %v7408_v34 = vmul.f32 %v11339_v61, %v15267_v27  ;;  %v7409_v40 = vmul.f32 %v11339_v61, %v15160_v17  ;;  %v8613_v47 = vsel %vm2608_vm4, %v11339_v61, %v8612_v11  ;;  %v11470_v43 = vld [vmem:[%s11559_s13 + $0x68] sm:$0xff] }
 0xe71   :  { %v8283_v19 = vpack.c.bf16 %v15425_v24, %v8271_v21  ;;  %10656 = vmatprep.mubr.msk.f32.mxu0 %vm6931_vm8, %v7404_v58  ;;  %v8284_v59 = vpack.c.bf16 %v15437_v53, %v15440_v18  ;;  %v8260_v12 = vmul.f32 0.2, %v15296_v9  ;;  %vm8243_vm9 = vcmp.gt.f32.partialorder %v15303_v31, 0.0 }
 0xe72   :  { %v8259_v0 = vmul.f32 0.2, %v15303_v31  ;;  %vm8246_vm5 = vcmp.gt.f32.partialorder %v15315_v45, 0.0  ;;  %v8262_v27 = vmul.f32 0.2, %v15315_v45  ;;  %vm8245_vm0 = vcmp.gt.f32.partialorder %v15323_v5, 0.0 }
 0xe73   :  { %v8261_v17 = vmul.f32 0.2, %v15323_v5  ;;  %v8276_v41 = vsel %vm8244_vm1, %v15296_v9, %v8260_v12  ;;  %vm16287_vm6 = vcmask 1047559   ;;  %vm16288_vm2 = vcmask 195584  }
 0xe74   :  { %v8275_v25 = vsel %vm8243_vm9, %v15303_v31, %v8259_v0  ;;  %10657 = vmatmul.mubr.msk.f32.gmra.mrb[160].mxu0 %vm6931_vm8, %v7405_v44  ;;  %v8278_v39 = vsel %vm8246_vm5, %v15315_v45, %v8262_v27  ;;  %vm16289_vm11 = vmmov %vm16288_vm2  ;;  %v16296_v42 = vmov 0.0   ;;  %v11538_v49 = vmov 0.0|0.0  }
 0xe75   :  { %v8285_v62 = vpack.c.bf16 %v8276_v41, %v8275_v25  ;;  %v8277_v60 = vsel %vm8245_vm0, %v15323_v5, %v8261_v17  ;;  %10659 = vmatprep.mubr.msk.f32.mxu0 %vm6931_vm8, %v7406_v2  ;;  %v11458_v5 = vld [vmem:[%s11559_s13 + $0x8] sm:$0xff]  ;;  %vm16291_vm1 = vmmov %vm16288_vm2 }
 0xe76   :  { %v8286_v56 = vpack.c.bf16 %v8278_v39, %v8277_v60  ;;  %vm16292_vm9 = vmmov %vm16291_vm1 }
 0xe77   :  { %vm16293_vm5 = vmmov %vm16291_vm1 }
 0xe78   :  { %v11341_v36 = vpop.eup %11340  ;;  %10660 = vmatmul.mubr.msk.f32.gmra.mrb[162].mxu0 %vm6931_vm8, %v7407_v3  ;;  %vm16294_vm0 = vmmov %vm16291_vm1 }
 0xe79   :  { %10662 = vmatprep.mubr.msk.f32.mxu0 %vm6931_vm8, %v7408_v34  ;;  %v7410_v9 = vmul.f32 %v11341_v36, %v15330_v14  ;;  %v8614_v31 = vsel %vm16287_vm6, %v11341_v36, %v8613_v47  ;;  %v7411_v1 = vmul.f32 %v11341_v36, %v15153_v13  ;;  %v11459_v13 = vld [vmem:[%s11559_s13 + $0x10] sm:$0xff]  ;;  %v11460_v14 = vld [vmem:[%s11559_s13 + $0x18] sm:$0xff]  ;;  %vm16295_vm6 = vmmov %vm16294_vm0 }
 0xe7a   :  { %v10867_v45 = vpack.c.bf16 %v8614_v31, %v15390_v4  ;;  %v11471_v4 = vld [vmem:[%s11559_s13 + $0x70] sm:$0xff] }
 0xe7c   :  { %10663 = vmatmul.mubr.msk.f32.gmra.mrb[164].mxu0 %vm6931_vm8, %v7409_v40  ;;  %10868 = vmatprep.subr.bf16.mxu1 %v10867_v45 }
 0xe7d   :  { %10665 = vmatprep.mubr.msk.f32.mxu0 %vm6931_vm8, %v7410_v9  ;;  %10870 = vmatpush3.bf16.msra.mxu1 %v10867_v45 }
 0xe80   :  { %10666 = vmatmul.mubr.msk.f32.gmra.mrb[166].mxu0 %vm6931_vm8, %v7411_v1  ;;  %10777 = vmatmul.mubr.msk.f32.vlgmr.msra.gmra.mrb[180].mxu1 %vm2012_vm10, %v11458_v5  ;;  %vm16290_vm8 = vmmov %vm16288_vm2 }
 0xe81   :  { %10728 = vmatprep.mubr.msk.bf16.mxu0 %vm16288_vm2, %v8279_v23  ;;  %10779 = vmatprep.mubr.msk.f32.mxu1 %vm2012_vm10, %v11459_v13  ;;  %v11463_v23 = vld [vmem:[%s11559_s13 + $0x30] sm:$0xff]  ;;  %vm16297_vm2 = vmmov %vm16294_vm0 }
 0xe84   :  { %10729 = vmatmul.mubr.msk.bf16.vlgmr.msra.gmra.mrb[168].mxu0 %vm16289_vm11, %v8280_v33  ;;  %10780 = vmatmul.mubr.msk.f32.gmra.mrb[182].mxu1 %vm2012_vm10, %v11460_v14  ;;  %v11467_v33 = vld [vmem:[%s11559_s13 + $0x50] sm:$0xff]  ;;  %vm16298_vm11 = vmmov %vm16294_vm0 }
 0xe85   :  { %10866 = vmatpush3.bf16.msra.mxu0 %v15122_v51  ;;  %10732 = vmatprep.mubr.msk.bf16.mxu0 %vm16290_vm8, %v8281_v7  ;;  %v11464_v51 = vld [vmem:[%s11559_s13 + $0x38] sm:$0xff]  ;;  %vm16299_vm8 = vmmov %vm16294_vm0  ;;  %s16303_s13 = sld [smem:[#allocation14_spill]] }
 0xe86   :  { %10782 = vmatprep.mubr.msk.f32.mxu1 %vm2012_vm10, %v11461_v46  ;;  %10871 = vmatprep.subr.bf16.mxu0 %v11538_v49 }
 0xe88   :  { %10783 = vmatmul.mubr.msk.f32.gmra.mrb[184].mxu1 %vm2012_vm10, %v11462_v8 }
 0xe89   :  { %10785 = vmatprep.mubr.msk.f32.mxu1 %vm2012_vm10, %v11463_v23 }
 0xe8b   :  { %v15560_v31 = vld [vmem:[%s16303_s13] ss:$0 sm:$0xff] }
 0xe8c   :  { %10733 = vmatmul.mubr.msk.bf16.gmra.mrb[172].mxu0 %vm16291_vm1, %v8282_v50  ;;  %10786 = vmatmul.mubr.msk.f32.gmra.mrb[186].mxu1 %vm2012_vm10, %v11464_v51  ;;  %vm16300_vm1 = vmmov %vm16294_vm0 }
 0xe8d   :  { %10736 = vmatprep.mubr.msk.bf16.mxu0 %vm16292_vm9, %v8283_v19  ;;  %10788 = vmatprep.mubr.msk.f32.mxu1 %vm2012_vm10, %v11465_v63  ;;  %vm16301_vm9 = vmmov %vm16294_vm0 }
 0xe90   :  { %10789 = vmatmul.mubr.msk.f32.gmra.mrb[188].mxu1 %vm2012_vm10, %v11466_v22 }
 0xe91   :  { %10791 = vmatprep.mubr.msk.f32.mxu1 %vm2012_vm10, %v11467_v33 }
 0xe94   :  { %10737 = vmatmul.mubr.msk.bf16.gmra.mrb[176].mxu0 %vm16293_vm5, %v8284_v59  ;;  %10792 = vmatmul.mubr.msk.f32.gmra.mrb[190].mxu1 %vm2012_vm10, %v11468_v26  ;;  %vm16302_vm5 = vmmov %vm16294_vm0 }
 0xe95   :  { %10740 = vmatprep.mubr.msk.bf16.mxu0 %vm16294_vm0, %v8285_v62  ;;  %10794 = vmatprep.mubr.msk.f32.mxu1 %vm2012_vm10, %v11469_v54 }
 0xe98   :  { %10795 = vmatmul.mubr.msk.f32.gmra.mrb[192].mxu1 %vm2012_vm10, %v11470_v43 }
 0xe99   :  { %10797 = vmatprep.mubr.msk.f32.mxu1 %vm2012_vm10, %v11471_v4 }
 0xe9c   :  { %10741 = vmatmul.mubr.msk.bf16.gmra.mrb[180].mxu0 %vm16295_vm6, %v8286_v56  ;;  %10798 = vmatmul.mubr.msk.f32.gmra.mrb[194].mxu1 %vm2012_vm10, %v11472_v30  ;;  %vm16304_vm6 = vmmov %vm16294_vm0 }
 0xe9d   :  { %10748 = vmatprep.mubr.msk.f32.mxu0 %vm2012_vm10, %v11473_v6 }
 0xea4   :  { %10749 = vmatmul.mubr.msk.f32.vlgmr.msra.gmra.mrb[184].mxu0 %vm2012_vm10, %v11458_v5 }
 0xea5   :  { %10751 = vmatprep.mubr.msk.f32.mxu0 %vm2012_vm10, %v11459_v13 }
 0xea8   :  { %10752 = vmatmul.mubr.msk.f32.gmra.mrb[186].mxu0 %vm2012_vm10, %v11460_v14 }
 0xea9   :  { %10754 = vmatprep.mubr.msk.f32.mxu0 %vm2012_vm10, %v11461_v46 }
 0xeac   :  { %10755 = vmatmul.mubr.msk.f32.gmra.mrb[188].mxu0 %vm2012_vm10, %v11462_v8 }
 0xead   :  { %10757 = vmatprep.mubr.msk.f32.mxu0 %vm2012_vm10, %v11463_v23 }
 0xeb0   :  { %10758 = vmatmul.mubr.msk.f32.gmra.mrb[190].mxu0 %vm2012_vm10, %v11464_v51 }
 0xeb1   :  { %10760 = vmatprep.mubr.msk.f32.mxu0 %vm2012_vm10, %v11465_v63 }
 0xeb4   :  { %10761 = vmatmul.mubr.msk.f32.gmra.mrb[192].mxu0 %vm2012_vm10, %v11466_v22 }
 0xeb5   :  { %10763 = vmatprep.mubr.msk.f32.mxu0 %vm2012_vm10, %v11467_v33 }
 0xeb8   :  { %10764 = vmatmul.mubr.msk.f32.gmra.mrb[194].mxu0 %vm2012_vm10, %v11468_v26 }
 0xeb9   :  { %10766 = vmatprep.mubr.msk.f32.mxu0 %vm2012_vm10, %v11469_v54 }
 0xebc   :  { %10767 = vmatmul.mubr.msk.f32.gmra.mrb[196].mxu0 %vm2012_vm10, %v11470_v43 }
 0xebd   :  { %10769 = vmatprep.mubr.msk.f32.mxu0 %vm2012_vm10, %v11471_v4 }
 0xec0   :  { %10770 = vmatmul.mubr.msk.f32.gmra.mrb[198].mxu0 %vm2012_vm10, %v11472_v30 }
 0xec1   :  { %10804 = vmatprep.mubr.msk.f32.mxu0 %vm16195_vm7, %v16296_v42 }
 0xf13   :  { %v10622_v32 = vpop.f32.mrb[136].mxu0 }
 0xf14   :  { %v7738_v7 = vmul.f32 %v10622_v32, %v14585_v16  ;;  %v7578_v35 = vpop.f32.mrb[137].mxu0 }
 0xf15   :  { %v7737_v58 = vmul.f32 %v7578_v35, %v14583_v55 }
 0xf16   :  { %v7770_v44 = vsel %vm16297_vm2, %v7738_v7, 0.0  ;;  %vm16305_vm2 = vmmov %vm16294_vm0 }
 0xf17   :  { %v7769_v29 = vsel %vm16298_vm11, %v7737_v58, 0.0  ;;  %vm16306_vm11 = vmmov %vm16294_vm0 }
 0xf18   :  { %v7771_v57 = vadd.f32 %v7770_v44, %v7769_v29 }
 0xf19   :  { %v10625_v52 = vpop.f32.mrb[138].mxu0 }
 0xf1a   :  { %v7772_v10 = vrot.slane %v7771_v57, 4  ;;  %v7740_v28 = vmul.f32 %v10625_v52, %v14585_v16  ;;  %v7588_v37 = vpop.f32.mrb[139].mxu0 }
 0xf1b   :  { %v7739_v50 = vmul.f32 %v7588_v37, %v14583_v55 }
 0xf1c   :  { %v7773_v48 = vadd.f32 %v7772_v10, %v7771_v57  ;;  %v7779_v20 = vsel %vm16299_vm8, %v7740_v28, 0.0  ;;  %vm16307_vm8 = vmmov %vm16294_vm0 }
 0xf1d   :  { %v7778_v24 = vsel %vm16300_vm1, %v7739_v50, 0.0  ;;  %v10628_v15 = vpop.f32.mrb[140].mxu0  ;;  %vm16308_vm1 = vmmov %vm16294_vm0 }
 0xf1e   :  { %v7774_v38 = vrot.slane %v7773_v48, 2  ;;  %v7780_v2 = vadd.f32 %v7779_v20, %v7778_v24  ;;  %v7742_v3 = vmul.f32 %v10628_v15, %v14585_v16  ;;  %v7598_v11 = vpop.f32.mrb[141].mxu0 }
 0xf1f   :  { %v7741_v61 = vmul.f32 %v7598_v11, %v14583_v55 }
 0xf20   :  { %v7775_v21 = vadd.f32 %v7774_v38, %v7773_v48  ;;  %v7781_v53 = vrot.slane %v7780_v2, 4  ;;  %v7788_v18 = vsel %vm16301_vm9, %v7742_v3, 0.0  ;;  %vm16309_vm9 = vmmov %vm16294_vm0 }
 0xf21   :  { %v7787_v34 = vsel %vm16302_vm5, %v7741_v61, 0.0  ;;  %v10631_v40 = vpop.f32.mrb[142].mxu0  ;;  %vm16310_vm5 = vmmov %vm16294_vm0 }
 0xf22   :  { %v7782_v47 = vadd.f32 %v7781_v53, %v7780_v2  ;;  %v7789_v19 = vadd.f32 %v7788_v18, %v7787_v34  ;;  %v7744_v59 = vmul.f32 %v10631_v40, %v14585_v16  ;;  %v7608_v12 = vpop.f32.mrb[143].mxu0  ;;  %v7776_v0 = vrot.slane %v7775_v21, 1 }
 0xf23   :  { %v7743_v27 = vmul.f32 %v7608_v12, %v14583_v55 }
 0xf24   :  { %v7783_v17 = vrot.slane %v7782_v47, 2  ;;  %v7790_v41 = vrot.slane %v7789_v19, 4  ;;  %v7797_v25 = vsel %vm16294_vm0, %v7744_v59, 0.0  ;;  %v7777_v36 = vadd.f32 %v7776_v0, %v7775_v21 }
 0xf25   :  { %v7796_v62 = vsel %vm16304_vm6, %v7743_v27, 0.0  ;;  %vm16311_vm6 = vmmov %vm16294_vm0 }
 0xf26   :  { %v7784_v39 = vadd.f32 %v7783_v17, %v7782_v47  ;;  %v7791_v60 = vadd.f32 %v7790_v41, %v7789_v19  ;;  %v7798_v56 = vadd.f32 %v7797_v25, %v7796_v62  ;;  %v7919_v63 = vadd.f32 %v15560_v31, %v7777_v36 }
 0xf27   :  { %v10634_v9 = vpop.f32.mrb[144].mxu0 }
 0xf28   :  { %v7785_v1 = vrot.slane %v7784_v39, 1  ;;  %v7792_v45 = vrot.slane %v7791_v60, 2  ;;  %v7799_v5 = vrot.slane %v7798_v56, 4  ;;  %v7618_v13 = vpop.f32.mrb[145].mxu0  ;;  %v7746_v14 = vmul.f32 %v10634_v9, %v14585_v16 }
 0xf29   :  { %v7745_v46 = vmul.f32 %v7618_v13, %v14583_v55  ;;  %v8826_v29 = vmax.f32 %v7919_v63, 0.0 }
 0xf2a   :  { %v7786_v8 = vadd.f32 %v7785_v1, %v7784_v39  ;;  %v7793_v23 = vadd.f32 %v7792_v45, %v7791_v60  ;;  %v7800_v51 = vadd.f32 %v7799_v5, %v7798_v56  ;;  %v7806_v22 = vsel %vm16305_vm2, %v7746_v14, 0.0  ;;  %vm16312_vm2 = vmmov %vm16294_vm0 }
 0xf2b   :  { %v7805_v33 = vsel %vm16306_vm11, %v7745_v46, 0.0  ;;  %v10637_v26 = vpop.f32.mrb[146].mxu0  ;;  %vm16313_vm11 = vmmov %vm16294_vm0 }
 0xf2c   :  { %v7920_v54 = vadd.f32 %v15560_v31, %v7786_v8  ;;  %v7794_v43 = vrot.slane %v7793_v23, 1  ;;  %v7801_v4 = vrot.slane %v7800_v51, 2  ;;  %v7807_v30 = vadd.f32 %v7806_v22, %v7805_v33  ;;  %v7628_v6 = vpop.f32.mrb[147].mxu0 }
 0xf2d   :  { %v7748_v49 = vmul.f32 %v10637_v26, %v14585_v16  ;;  %v7747_v32 = vmul.f32 %v7628_v6, %v14583_v55 }
 0xf2e   :  { %v8827_v7 = vmax.f32 %v7920_v54, 0.0  ;;  %v7795_v35 = vadd.f32 %v7794_v43, %v7793_v23  ;;  %v7802_v58 = vadd.f32 %v7801_v4, %v7800_v51  ;;  %v7808_v44 = vrot.slane %v7807_v30, 4 }
 0xf2f   :  { %v7815_v57 = vsel %vm16307_vm8, %v7748_v49, 0.0  ;;  %v7814_v52 = vsel %vm16308_vm1, %v7747_v32, 0.0  ;;  %v10640_v10 = vpop.f32.mrb[148].mxu0  ;;  %vm16314_vm8 = vmmov %vm16294_vm0 }
 0xf30   :  { %v8858_v28 = vrot.slane %v8827_v7, 7  ;;  %v7921_v37 = vadd.f32 %v15560_v31, %v7795_v35  ;;  %v7803_v50 = vrot.slane %v7802_v58, 1  ;;  %v7809_v48 = vadd.f32 %v7808_v44, %v7807_v30  ;;  %v7638_v20 = vpop.f32.mrb[149].mxu0  ;;  %vm16315_vm1 = vmmov %vm16294_vm0 }
 0xf31   :  { %v7816_v24 = vadd.f32 %v7815_v57, %v7814_v52  ;;  %v7750_v15 = vmul.f32 %v10640_v10, %v14585_v16  ;;  %v7749_v38 = vmul.f32 %v7638_v20, %v14583_v55 }
 0xf32   :  { %v8859_v2 = vsel %vm2598_vm12, %v8858_v28, %v8826_v29  ;;  %v8828_v3 = vmax.f32 %v7921_v37, 0.0  ;;  %v7804_v11 = vadd.f32 %v7803_v50, %v7802_v58  ;;  %v7810_v61 = vrot.slane %v7809_v48, 2 }
 0xf33   :  { %v7817_v21 = vrot.slane %v7816_v24, 4  ;;  %v7824_v53 = vsel %vm16309_vm9, %v7750_v15, 0.0  ;;  %v7823_v18 = vsel %vm16310_vm5, %v7749_v38, 0.0  ;;  %v10643_v34 = vpop.f32.mrb[150].mxu0  ;;  %vm16316_vm9 = vmmov %vm16294_vm0 }
 0xf34   :  { %v8860_v40 = vrot.slane %v8828_v3, 6  ;;  %v7922_v47 = vadd.f32 %v15560_v31, %v7804_v11  ;;  %v7811_v19 = vadd.f32 %v7810_v61, %v7809_v48  ;;  %v7825_v59 = vadd.f32 %v7824_v53, %v7823_v18  ;;  %v7648_v12 = vpop.f32.mrb[151].mxu0  ;;  %vm16317_vm5 = vmmov %vm16294_vm0 }
 0xf35   :  { %v7818_v0 = vadd.f32 %v7817_v21, %v7816_v24  ;;  %v7752_v27 = vmul.f32 %v10643_v34, %v14585_v16  ;;  %v7751_v17 = vmul.f32 %v7648_v12, %v14583_v55 }
 0xf36   :  { %v8861_v41 = vsel %vm2600_vm13, %v8860_v40, %v8859_v2  ;;  %v8829_v25 = vmax.f32 %v7922_v47, 0.0  ;;  %v7812_v62 = vrot.slane %v7811_v19, 1  ;;  %v7826_v39 = vrot.slane %v7825_v59, 4 }
 0xf37   :  { %v7819_v60 = vrot.slane %v7818_v0, 2  ;;  %v7833_v56 = vsel %vm16294_vm0, %v7752_v27, 0.0  ;;  %v7832_v36 = vsel %vm16311_vm6, %v7751_v17, 0.0  ;;  %v10646_v9 = vpop.f32.mrb[152].mxu0  ;;  %vm16318_vm6 = vmmov %vm16294_vm0 }
 0xf38   :  { %v8862_v1 = vrot.slane %v8829_v25, 5  ;;  %v7813_v45 = vadd.f32 %v7812_v62, %v7811_v19  ;;  %v7827_v5 = vadd.f32 %v7826_v39, %v7825_v59  ;;  %v7834_v13 = vadd.f32 %v7833_v56, %v7832_v36  ;;  %v7658_v14 = vpop.f32.mrb[153].mxu0 }
 0xf39   :  { %v7820_v46 = vadd.f32 %v7819_v60, %v7818_v0  ;;  %v7754_v8 = vmul.f32 %v10646_v9, %v14585_v16  ;;  %v7753_v23 = vmul.f32 %v7658_v14, %v14583_v55 }
 0xf3a   :  { %v8863_v51 = vsel %vm2602_vm14, %v8862_v1, %v8861_v41  ;;  %v7923_v63 = vadd.f32 %v15560_v31, %v7813_v45  ;;  %v7828_v22 = vrot.slane %v7827_v5, 2  ;;  %v7835_v33 = vrot.slane %v7834_v13, 4 }
 0xf3b   :  { %v7821_v26 = vrot.slane %v7820_v46, 1  ;;  %v7842_v54 = vsel %vm16312_vm2, %v7754_v8, 0.0  ;;  %v7841_v43 = vsel %vm16313_vm11, %v7753_v23, 0.0  ;;  %v10649_v4 = vpop.f32.mrb[154].mxu0  ;;  %vm16319_vm2 = vmmov %vm16294_vm0 }
 0xf3c   :  { %v8830_v30 = vmax.f32 %v7923_v63, 0.0  ;;  %v7829_v6 = vadd.f32 %v7828_v22, %v7827_v5  ;;  %v7836_v49 = vadd.f32 %v7835_v33, %v7834_v13  ;;  %v7843_v32 = vadd.f32 %v7842_v54, %v7841_v43  ;;  %v7668_v7 = vpop.f32.mrb[155].mxu0  ;;  %vm16320_vm11 = vmmov %vm16294_vm0 }
 0xf3d   :  { %v7822_v35 = vadd.f32 %v7821_v26, %v7820_v46  ;;  %v7756_v58 = vmul.f32 %v10649_v4, %v14585_v16  ;;  %v7755_v44 = vmul.f32 %v7668_v7, %v14583_v55 }
 0xf3e   :  { %v8864_v29 = vrot.slane %v8830_v30, 4  ;;  %v7830_v57 = vrot.slane %v7829_v6, 1  ;;  %v7837_v52 = vrot.slane %v7836_v49, 2  ;;  %v7844_v10 = vrot.slane %v7843_v32, 4 }
 0xf3f   :  { %v7924_v28 = vadd.f32 %v15560_v31, %v7822_v35  ;;  %v7851_v37 = vsel %vm16314_vm8, %v7756_v58, 0.0  ;;  %v7850_v50 = vsel %vm16315_vm1, %v7755_v44, 0.0  ;;  %v10652_v48 = vpop.f32.mrb[156].mxu0  ;;  %vm16321_vm8 = vcmask 1047559   ;;  %vm16322_vm1 = vmmov %vm16294_vm0 }
 0xf40   :  { %v8865_v20 = vsel %vm2604_vm15, %v8864_v29, %v8863_v51  ;;  %v7831_v24 = vadd.f32 %v7830_v57, %v7829_v6  ;;  %v7838_v15 = vadd.f32 %v7837_v52, %v7836_v49  ;;  %v7845_v38 = vadd.f32 %v7844_v10, %v7843_v32  ;;  %v7678_v2 = vpop.f32.mrb[157].mxu0 }
 0xf41   :  { %v8831_v3 = vmax.f32 %v7924_v28, 0.0  ;;  %v7852_v11 = vadd.f32 %v7851_v37, %v7850_v50  ;;  %v7758_v61 = vmul.f32 %v10652_v48, %v14585_v16  ;;  %v7757_v21 = vmul.f32 %v7678_v2, %v14583_v55 }
 0xf42   :  { %v7925_v53 = vadd.f32 %v15560_v31, %v7831_v24  ;;  %v7839_v18 = vrot.slane %v7838_v15, 1  ;;  %v7846_v34 = vrot.slane %v7845_v38, 2 }
 0xf43   :  { %v8866_v40 = vrot.slane %v8831_v3, 3  ;;  %v7853_v47 = vrot.slane %v7852_v11, 4  ;;  %v7860_v19 = vsel %vm16316_vm9, %v7758_v61, 0.0  ;;  %v7859_v59 = vsel %vm16317_vm5, %v7757_v21, 0.0  ;;  %v10655_v12 = vpop.f32.mrb[158].mxu0  ;;  %vm16323_vm9 = vmmov %vm16294_vm0 }
 0xf44   :  { %v8832_v0 = vmax.f32 %v7925_v53, 0.0  ;;  %v7840_v27 = vadd.f32 %v7839_v18, %v7838_v15  ;;  %v7847_v17 = vadd.f32 %v7846_v34, %v7845_v38  ;;  %v7861_v41 = vadd.f32 %v7860_v19, %v7859_v59  ;;  %v7688_v25 = vpop.f32.mrb[159].mxu0  ;;  %vm16324_vm5 = vmmov %vm16294_vm0 }
 0xf45   :  { %v7854_v62 = vadd.f32 %v7853_v47, %v7852_v11  ;;  %v7760_v39 = vmul.f32 %v10655_v12, %v14585_v16  ;;  %v7759_v60 = vmul.f32 %v7688_v25, %v14583_v55  ;;  %v8867_v56 = vsel %vm2606_vm3, %v8866_v40, %v8865_v20 }
 0xf46   :  { %v8868_v36 = vrot.slane %v8832_v0, 2  ;;  %v7926_v9 = vadd.f32 %v15560_v31, %v7840_v27  ;;  %v7862_v1 = vrot.slane %v7861_v41, 4  ;;  %v7848_v45 = vrot.slane %v7847_v17, 1 }
 0xf47   :  { %v7855_v5 = vrot.slane %v7854_v62, 2  ;;  %v7869_v13 = vsel %vm16294_vm0, %v7760_v39, 0.0  ;;  %v7868_v14 = vsel %vm16318_vm6, %v7759_v60, 0.0  ;;  %v10658_v46 = vpop.f32.mrb[160].mxu0  ;;  %vm16325_vm6 = vmmov %vm16294_vm0 }
 0xf48   :  { %v8833_v8 = vmax.f32 %v7926_v9, 0.0  ;;  %v7863_v23 = vadd.f32 %v7862_v1, %v7861_v41  ;;  %v7870_v51 = vadd.f32 %v7869_v13, %v7868_v14  ;;  %v7698_v63 = vpop.f32.mrb[161].mxu0  ;;  %v7762_v33 = vmul.f32 %v10658_v46, %v14585_v16 }
 0xf49   :  { %v7856_v22 = vadd.f32 %v7855_v5, %v7854_v62  ;;  %v7761_v26 = vmul.f32 %v7698_v63, %v14583_v55  ;;  %v8869_v54 = vsel %vm2608_vm4, %v8868_v36, %v8867_v56  ;;  %v7849_v6 = vadd.f32 %v7848_v45, %v7847_v17 }
 0xf4a   :  { %v8870_v43 = vrot.slane %v8833_v8, 1  ;;  %v7864_v4 = vrot.slane %v7863_v23, 2  ;;  %v7871_v30 = vrot.slane %v7870_v51, 4  ;;  %v7878_v32 = vsel %vm16319_vm2, %v7762_v33, 0.0  ;;  %vm16326_vm2 = vmmov %vm16294_vm0 }
 0xf4b   :  { %v7857_v49 = vrot.slane %v7856_v22, 1  ;;  %v7877_v7 = vsel %vm16320_vm11, %v7761_v26, 0.0  ;;  %v10661_v35 = vpop.f32.mrb[162].mxu0  ;;  %v7927_v24 = vadd.f32 %v15560_v31, %v7849_v6 }
 0xf4c   :  { %v7865_v58 = vadd.f32 %v7864_v4, %v7863_v23  ;;  %v7872_v44 = vadd.f32 %v7871_v30, %v7870_v51  ;;  %v7879_v29 = vadd.f32 %v7878_v32, %v7877_v7  ;;  %v7708_v57 = vpop.f32.mrb[163].mxu0  ;;  %v7764_v10 = vmul.f32 %v10661_v35, %v14585_v16 }
 0xf4d   :  { %v7858_v52 = vadd.f32 %v7857_v49, %v7856_v22  ;;  %v7763_v28 = vmul.f32 %v7708_v57, %v14583_v55  ;;  %v15615_v37 = vsel %vm16321_vm8, %v8870_v43, %v8869_v54  ;;  %v8834_v27 = vmax.f32 %v7927_v24, 0.0 }
 0xf4e   :  { %v7866_v50 = vrot.slane %v7865_v58, 1  ;;  %v7873_v48 = vrot.slane %v7872_v44, 2  ;;  %v7880_v20 = vrot.slane %v7879_v29, 4  ;;  %v7887_v38 = vsel %vm16322_vm1, %v7764_v10, 0.0 }
 0xf4f   :  { %v7928_v15 = vadd.f32 %v15560_v31, %v7858_v52  ;;  %v7886_v2 = vsel %vm16323_vm9, %v7763_v28, 0.0  ;;  %v10664_v3 = vpop.f32.mrb[164].mxu0 }
 0xf50   :  { %v7867_v11 = vadd.f32 %v7866_v50, %v7865_v58  ;;  %v7874_v61 = vadd.f32 %v7873_v48, %v7872_v44  ;;  %v7881_v21 = vadd.f32 %v7880_v20, %v7879_v29  ;;  %v7888_v53 = vadd.f32 %v7887_v38, %v7886_v2  ;;  %v7718_v18 = vpop.f32.mrb[165].mxu0 }
 0xf51   :  { %v8835_v34 = vmax.f32 %v7928_v15, 0.0  ;;  %v7766_v40 = vmul.f32 %v10664_v3, %v14585_v16  ;;  %v7765_v47 = vmul.f32 %v7718_v18, %v14583_v55 }
 0xf52   :  { %v7929_v19 = vadd.f32 %v15560_v31, %v7867_v11  ;;  %v7875_v59 = vrot.slane %v7874_v61, 1  ;;  %v7882_v12 = vrot.slane %v7881_v21, 2  ;;  %v7889_v0 = vrot.slane %v7888_v53, 4 }
 0xf53   :  { %v8872_v17 = vrot.slane %v8835_v34, 7  ;;  %v7896_v41 = vsel %vm16324_vm5, %v7766_v40, 0.0  ;;  %v7895_v25 = vsel %vm16294_vm0, %v7765_v47, 0.0  ;;  %v10667_v62 = vpop.f32.mrb[166].mxu0  ;;  %v15626_v39 = vpop.f32.mrb[180].mxu1 }
 0xf54   :  { %v8836_v60 = vmax.f32 %v7929_v19, 0.0  ;;  %v7876_v56 = vadd.f32 %v7875_v59, %v7874_v61  ;;  %v7883_v36 = vadd.f32 %v7882_v12, %v7881_v21  ;;  %v7890_v9 = vadd.f32 %v7889_v0, %v7888_v53  ;;  %v7728_v1 = vpop.f32.mrb[167].mxu0  ;;  %v15628_v45 = vpop.f32.mrb[181].mxu1 }
 0xf55   :  { %v8873_v5 = vsel %vm2598_vm12, %v8872_v17, %v8834_v27  ;;  %v7897_v13 = vadd.f32 %v7896_v41, %v7895_v25  ;;  %v7768_v14 = vmul.f32 %v10667_v62, %v14585_v16  ;;  %v7767_v46 = vmul.f32 %v7728_v1, %v14583_v55  ;;  %vm16328_vm12 = vmmov %vm16321_vm8 }
 0xf56   :  { %v8874_v8 = vrot.slane %v8836_v60, 6  ;;  %v7930_v23 = vadd.f32 %v15560_v31, %v7876_v56  ;;  %v7884_v51 = vrot.slane %v7883_v36, 1  ;;  %v7891_v63 = vrot.slane %v7890_v9, 2 }
 0xf57   :  { %v7898_v22 = vrot.slane %v7897_v13, 4  ;;  %v7905_v33 = vsel %vm16325_vm6, %v7768_v14, 0.0  ;;  %v7904_v26 = vsel %vm16326_vm2, %v7767_v46, 0.0  ;;  %v15636_v54 = vpop.f32.mrb[168].mxu0  ;;  %v15638_v43 = vpop.f32.mrb[182].mxu1 }
 0xf58   :  { %v8875_v4 = vsel %vm2600_vm13, %v8874_v8, %v8873_v5  ;;  %v8837_v30 = vmax.f32 %v7930_v23, 0.0  ;;  %v7885_v16 = vadd.f32 %v7884_v51, %v7883_v36  ;;  %v7892_v6 = vadd.f32 %v7891_v63, %v7890_v9  ;;  %v15641_v55 = vpop.f32.mrb[169].mxu0  ;;  %v15643_v49 = vpop.f32.mrb[183].mxu1 }
 0xf59   :  { %v7899_v32 = vadd.f32 %v7898_v22, %v7897_v13  ;;  %v7906_v7 = vadd.f32 %v7905_v33, %v7904_v26  ;;  %v15645_v35 = vpop.f32.mrb[170].mxu0  ;;  %vm16330_vm13 = vcmask 1043456  }
 0xf5a   :  { %v8876_v58 = vrot.slane %v8837_v30, 5  ;;  %v7931_v44 = vadd.f32 %v15560_v31, %v7885_v16  ;;  %v7893_v29 = vrot.slane %v7892_v6, 1  ;;  %v15648_v57 = vpop.f32.mrb[171].mxu0  ;;  %v11475_v16 = vld [vmem:[%s11549_s5 + $0x8] sm:$0xff] }
 0xf5b   :  { %v7900_v52 = vrot.slane %v7899_v32, 2  ;;  %v7907_v10 = vrot.slane %v7906_v7, 4  ;;  %v15650_v28 = vpop.f32.mrb[184].mxu1 }
 0xf5c   :  { %v8877_v50 = vsel %vm2602_vm14, %v8876_v58, %v8875_v4  ;;  %v8838_v48 = vmax.f32 %v7931_v44, 0.0  ;;  %v7894_v20 = vadd.f32 %v7893_v29, %v7892_v6  ;;  %v15653_v24 = vpop.f32.mrb[185].mxu1  ;;  %v11474_v4 = vld [vmem:[%s11549_s5] sm:$0xff]  ;;  %s11539_s5 = smov 8   ;;  %vm9227_vm14 = vcmask 64512  }
 0xf5d   :  { %v7901_v15 = vadd.f32 %v7900_v52, %v7899_v32  ;;  %v7908_v38 = vadd.f32 %v7907_v10, %v7906_v7  ;;  %v8888_v30 = vadd.f32 %v11474_v4, %v15615_v37 }
 0xf5e   :  { %v8878_v2 = vrot.slane %v8838_v48, 4  ;;  %v7932_v3 = vadd.f32 %v15560_v31, %v7894_v20 }
 0xf5f   :  { %v7902_v11 = vrot.slane %v7901_v15, 1  ;;  %v7909_v61 = vrot.slane %v7908_v38, 2  ;;  %v15656_v21 = vpop.f32.mrb[172].mxu0  ;;  %v15658_v53 = vpop.f32.mrb[186].mxu1 }
 0xf60   :  { %v8879_v18 = vsel %vm2604_vm15, %v8878_v2, %v8877_v50  ;;  %v8839_v34 = vmax.f32 %v7932_v3, 0.0  ;;  %v15661_v40 = vpop.f32.mrb[173].mxu0  ;;  %v15663_v47 = vpop.f32.mrb[187].mxu1  ;;  %v8890_v50 = vld [vmem:[%s16327_s7] sm:$0x3]  ;;  %vm9244_vm15 = vcmask 113664  }
 0xf61   :  { %v7903_v19 = vadd.f32 %v7902_v11, %v7901_v15  ;;  %v7910_v59 = vadd.f32 %v7909_v61, %v7908_v38  ;;  %v15665_v12 = vpop.f32.mrb[174].mxu0 }
 0xf62   :  { %v8880_v0 = vrot.slane %v8839_v34, 3  ;;  %v8364_v27 = vpop.f32.mrb[175].mxu0 }
 0xf63   :  { %v7933_v17 = vadd.f32 %v15560_v31, %v7903_v19  ;;  %v7911_v41 = vrot.slane %v7910_v59, 1  ;;  %v15668_v25 = vpop.f32.mrb[188].mxu1 }
 0xf64   :  { %v8881_v62 = vsel %vm2606_vm3, %v8880_v0, %v8879_v18  ;;  %v15671_v60 = vpop.f32.mrb[189].mxu1  ;;  %vm16332_vm3 = vcmask 31744  }
 0xf65   :  { %v8840_v56 = vmax.f32 %v7933_v17, 0.0  ;;  %v7912_v36 = vadd.f32 %v7911_v41, %v7910_v59  ;;  %vm16336_vm11 = vmmov %vm16332_vm3 }
 0xf66   :  { %vm16338_vm8 = vmmov %vm16332_vm3 }
 0xf67   :  { %v8882_v9 = vrot.slane %v8840_v56, 2  ;;  %v7934_v1 = vadd.f32 %v15560_v31, %v7912_v36  ;;  %v15674_v5 = vpop.f32.mrb[176].mxu0  ;;  %v15676_v13 = vpop.f32.mrb[190].mxu1  ;;  %vm16340_vm1 = vmmov %vm16332_vm3 }
 0xf68   :  { %v15678_v14 = vpop.f32.mrb[177].mxu0  ;;  %v15680_v46 = vpop.f32.mrb[191].mxu1  ;;  %vm16342_vm9 = vmmov %vm16340_vm1 }
 0xf69   :  { %v8841_v8 = vmax.f32 %v7934_v1, 0.0  ;;  %v15682_v23 = vpop.f32.mrb[178].mxu0  ;;  %v8883_v51 = vsel %vm2608_vm4, %v8882_v9, %v8881_v62  ;;  %vm16334_vm4 = vmmov %vm16332_vm3 }
 0xf6a   :  { %v15685_v63 = vpop.f32.mrb[179].mxu0  ;;  %vm16344_vm5 = vmmov %vm16340_vm1 }
 0xf6b   :  { %v8884_v22 = vrot.slane %v8841_v8, 1  ;;  %v15687_v33 = vpop.f32.mrb[192].mxu1  ;;  %vm16346_vm0 = vmmov %vm16340_vm1 }
 0xf6c   :  { %v15689_v31 = vpop.f32.mrb[193].mxu1  ;;  %vm16348_vm6 = vmmov %vm16346_vm0 }
 0xf6d   :  { %v8885_v26 = vsel %vm16328_vm12, %v8884_v22, %v8883_v51  ;;  %vm16350_vm2 = vmmov %vm16346_vm0 }
 0xf6e   :  { %v8889_v6 = vadd.f32 %v11475_v16, %v8885_v26  ;;  %vm16352_vm12 = vmmov %vm16346_vm0 }
 0xf6f   :  { %v15695_v32 = vpop.f32.mrb[180].mxu0  ;;  %v15697_v7 = vpop.f32.mrb[194].mxu1 }
 0xf70   :  { %v10872_v58 = vpack.c.bf16 %v8889_v6, %v8888_v30  ;;  %v15699_v44 = vpop.f32.mrb[181].mxu0  ;;  %v15701_v29 = vpop.f32.mrb[195].mxu1 }
 0xf71   :  { %v15703_v52 = vpop.f32.mrb[182].mxu0 }
 0xf72   :  { %10873 = vmatpush3.bf16.msra.mxu0 %v10872_v58  ;;  %v15705_v10 = vpop.f32.mrb[183].mxu0 }
 0xf73   :  { %10807 = vmatprep.subr.bf16.mxu0 %v16296_v42 }
 0xf75   :  { %10805 = vmatmul.mubr.msk.f32.vlgmr.msra.gmra.mrb[200].mxu0 %vm2012_vm10, %v8890_v50 }
 0xf76   :  { %10811 = vmatprep.mubr.msk.bf16.mxu0 %vm16195_vm7, %v16296_v42 }
 0xf77   :  { %v10750_v37 = vpop.f32.mrb[184].mxu0 }
 0xf78   :  { %v8763_v48 = vsub.f32 %v15648_v57, %v10750_v37  ;;  %v8506_v20 = vpop.f32.mrb[185].mxu0 }
 0xf79   :  { %v8762_v15 = vsub.f32 %v15641_v55, %v8506_v20 }
 0xf7a   :  { %v8780_v38 = vmul.f32 1.442695, %v8763_v48 }
 0xf7b   :  { %v8778_v2 = vmul.f32 1.442695, %v8762_v15  ;;  %v10753_v3 = vpop.f32.mrb[186].mxu0 }
 0xf7c   :  { %11342 = vpow2.f32 %v8780_v38  ;;  %v8765_v11 = vsub.f32 %v15645_v35, %v10753_v3  ;;  %v8516_v61 = vpop.f32.mrb[187].mxu0 }
 0xf7d   :  { %11344 = vpow2.f32 %v8778_v2  ;;  %v8764_v18 = vsub.f32 %v15636_v54, %v8516_v61 }
 0xf7e   :  { %v8784_v34 = vmul.f32 1.442695, %v8765_v11 }
 0xf7f   :  { %v8782_v19 = vmul.f32 1.442695, %v8764_v18  ;;  %v10756_v59 = vpop.f32.mrb[188].mxu0 }
 0xf80   :  { %11346 = vpow2.f32 %v8784_v34  ;;  %v8767_v0 = vsub.f32 %v8364_v27, %v10756_v59  ;;  %v8526_v17 = vpop.f32.mrb[189].mxu0 }
 0xf81   :  { %11348 = vpow2.f32 %v8782_v19  ;;  %v8766_v57 = vsub.f32 %v15661_v40, %v8526_v17 }
 0xf82   :  { %v8788_v55 = vmul.f32 1.442695, %v8767_v0 }
 0xf83   :  { %v8786_v41 = vmul.f32 1.442695, %v8766_v57  ;;  %v10759_v62 = vpop.f32.mrb[190].mxu0 }
 0xf84   :  { %11350 = vpow2.f32 %v8788_v55  ;;  %v8769_v56 = vsub.f32 %v15665_v12, %v10759_v62  ;;  %v8536_v35 = vpop.f32.mrb[191].mxu0  ;;  %v8964_v55 = vld [vmem:[%s16329_s10] sm:$0xff] }
 0xf85   :  { %11352 = vpow2.f32 %v8786_v41  ;;  %v8768_v36 = vsub.f32 %v15656_v21, %v8536_v35  ;;  %v8965_v41 = vld [vmem:[%s16329_s10 + $0x8] sm:$0xff] }
 0xf86   :  { %v11343_v54 = vpop.eup %11342  ;;  %v8792_v9 = vmul.f32 1.442695, %v8769_v56  ;;  %v8968_v56 = vpack.c.bf16 %v8965_v41, %v8964_v55  ;;  %v16345_v41 = vld [vmem:[#allocation59_spill] sm:$0xff] }
 0xf87   :  { %v11345_v1 = vpop.eup %11344  ;;  %v8790_v8 = vmul.f32 1.442695, %v8768_v36  ;;  %v8811_v27 = vmul.f32 %v11343_v54, %v15626_v39  ;;  %v10762_v51 = vpop.f32.mrb[192].mxu0 }
 0xf88   :  { %11354 = vpow2.f32 %v8792_v9  ;;  %v8771_v40 = vsub.f32 %v15685_v63, %v10762_v51  ;;  %v8810_v22 = vmul.f32 %v11345_v1, %v15628_v45  ;;  %v8546_v26 = vpop.f32.mrb[193].mxu0  ;;  %10808 = vmatpush3.bf16.msra.mxu0 %v8968_v56  ;;  %v8966_v1 = vld [vmem:[%s16329_s10 + $0x10] sm:$0xff] }
 0xf89   :  { %11356 = vpow2.f32 %v8790_v8  ;;  %v8770_v12 = vsub.f32 %v15678_v14, %v8546_v26  ;;  %9165 = vrot.lane.b32.xlu1 %v8811_v27, %s11539_s5  ;;  %10809 = vmatprep.subr.bf16.mxu0 %v16296_v42  ;;  %v9102_v27 = vpop.permute.xlu1 %9101 }
 0xf8a   :  { %v11347_v21 = vpop.eup %11346  ;;  %v8796_v4 = vmul.f32 1.442695, %v8771_v40  ;;  %9163 = vrot.lane.b32.xlu0 %v8810_v22, %s11539_s5 }
 0xf8b   :  { %v11349_v30 = vpop.eup %11348  ;;  %v8794_v16 = vmul.f32 1.442695, %v8770_v12  ;;  %v8813_v39 = vmul.f32 %v11347_v21, %v15638_v43  ;;  %v10765_v6 = vpop.f32.mrb[194].mxu0 }
 0xf8c   :  { %11358 = vpow2.f32 %v8796_v4  ;;  %v8773_v63 = vsub.f32 %v15682_v23, %v10765_v6  ;;  %v8812_v45 = vmul.f32 %v11349_v30, %v15643_v49  ;;  %v8556_v58 = vpop.f32.mrb[195].mxu0 }
 0xf8d   :  { %11360 = vpow2.f32 %v8794_v16  ;;  %v8772_v14 = vsub.f32 %v15674_v5, %v8556_v58  ;;  %9169 = vrot.lane.b32.xlu1 %v8813_v39, %s11539_s5  ;;  %v9106_v51 = vpop.permute.xlu1 %9105 }
 0xf8e   :  { %v11351_v50 = vpop.eup %11350  ;;  %v8800_v37 = vmul.f32 1.442695, %v8773_v63  ;;  %9167 = vrot.lane.b32.xlu0 %v8812_v45, %s11539_s5  ;;  %v16331_v45 = vld [vmem:[#allocation51_spill] sm:$0xff] }
 0xf8f   :  { %v11353_v48 = vpop.eup %11352  ;;  %v8798_v20 = vmul.f32 1.442695, %v8772_v14  ;;  %v8815_v43 = vmul.f32 %v11351_v50, %v15650_v28  ;;  %v10768_v15 = vpop.f32.mrb[196].mxu0  ;;  %v9212_v58 = vsel %vm16332_vm3, %v16331_v45, %v9102_v27  ;;  %v16333_v50 = vld [vmem:[#allocation47_spill] sm:$0xff]  ;;  %vm16356_vm3 = vmmov %vm16346_vm0 }
 0xf90   :  { %11362 = vpow2.f32 %v8800_v37  ;;  %v8775_v23 = vsub.f32 %v15705_v10, %v10768_v15  ;;  %v8814_v49 = vmul.f32 %v11353_v48, %v15653_v24  ;;  %v8566_v38 = vpop.f32.mrb[197].mxu0 }
 0xf91   :  { %11364 = vpow2.f32 %v8798_v20  ;;  %v8774_v5 = vsub.f32 %v15699_v44, %v8566_v38  ;;  %9173 = vrot.lane.b32.xlu1 %v8815_v43, %s11539_s5  ;;  %v9110_v22 = vpop.permute.xlu1 %9109 }
 0xf92   :  { %v11355_v2 = vpop.eup %11354  ;;  %v8804_v3 = vmul.f32 1.442695, %v8775_v23  ;;  %9171 = vrot.lane.b32.xlu0 %v8814_v49, %s11539_s5  ;;  %v16335_v49 = vld [vmem:[#allocation17_spill] sm:$0xff] }
 0xf93   :  { %v11357_v11 = vpop.eup %11356  ;;  %v8802_v61 = vmul.f32 1.442695, %v8774_v5  ;;  %v8817_v28 = vmul.f32 %v11355_v2, %v15658_v53  ;;  %v10771_v18 = vpop.f32.mrb[198].mxu0  ;;  %v9214_v38 = vsel %vm16336_vm11, %v16335_v49, %v9106_v51  ;;  %v16337_v2 = vld [vmem:[#allocation18_spill] sm:$0xff]  ;;  %vm16360_vm11 = vmmov %vm16346_vm0 }
 0xf94   :  { %11366 = vpow2.f32 %v8804_v3  ;;  %v8777_v10 = vsub.f32 %v15703_v52, %v10771_v18  ;;  %v8816_v24 = vmul.f32 %v11357_v11, %v15663_v47  ;;  %v8576_v34 = vpop.f32.mrb[199].mxu0  ;;  %v16359_v49 = vld [vmem:[#allocation66_spill] sm:$0xff] }
 0xf95   :  { %11368 = vpow2.f32 %v8802_v61  ;;  %v8776_v44 = vsub.f32 %v15695_v32, %v8576_v34  ;;  %9177 = vrot.lane.b32.xlu1 %v8817_v28, %s11539_s5 }
 0xf96   :  { %v11359_v19 = vpop.eup %11358  ;;  %v8808_v59 = vmul.f32 1.442695, %v8777_v10  ;;  %9175 = vrot.lane.b32.xlu0 %v8816_v24, %s11539_s5  ;;  %v16339_v24 = vld [vmem:[#allocation20_spill] sm:$0xff] }
 0xf97   :  { %v11361_v0 = vpop.eup %11360  ;;  %v8806_v53 = vmul.f32 1.442695, %v8776_v44  ;;  %v8819_v17 = vmul.f32 %v11359_v19, %v15668_v25  ;;  %v9216_v34 = vsel %vm16340_vm1, %v16339_v24, %v9110_v22  ;;  %v16341_v19 = vld [vmem:[#allocation19_spill] sm:$0xff]  ;;  %vm16364_vm1 = vcmask 195584  }
 0xf98   :  { %11370 = vpow2.f32 %v8808_v59  ;;  %v8818_v52 = vmul.f32 %v11361_v0, %v15671_v60 }
 0xf99   :  { %11372 = vpow2.f32 %v8806_v53  ;;  %9181 = vrot.lane.b32.xlu1 %v8819_v17, %s11539_s5 }
 0xf9a   :  { %v11363_v47 = vpop.eup %11362  ;;  %9179 = vrot.lane.b32.xlu0 %v8818_v52, %s11539_s5 }
 0xf9b   :  { %v11365_v32 = vpop.eup %11364  ;;  %v8821_v57 = vmul.f32 %v11363_v47, %v15676_v13 }
 0xf9c   :  { %v8820_v62 = vmul.f32 %v11365_v32, %v15680_v46  ;;  %v16343_v32 = vld [vmem:[#allocation58_spill] sm:$0xff] }
 0xf9d   :  { %9185 = vrot.lane.b32.xlu1 %v8821_v57, %s11539_s5 }
 0xf9e   :  { %v11367_v25 = vpop.eup %11366  ;;  %9183 = vrot.lane.b32.xlu0 %v8820_v62, %s11539_s5 }
 0xf9f   :  { %v11369_v60 = vpop.eup %11368  ;;  %v8823_v35 = vmul.f32 %v11367_v25, %v15687_v33  ;;  %v8969_v33 = vpack.c.bf16 %v8966_v1, %v8966_v1 }
 0xfa0   :  { %v8822_v36 = vmul.f32 %v11369_v60, %v15689_v31  ;;  %v9100_v31 = vpop.permute.xlu0 %9099 }
 0xfa1   :  { %9189 = vrot.lane.b32.xlu1 %v8823_v35, %s11539_s5  ;;  %v8981_v8 = vsel %vm16330_vm13, %v8969_v33, 0  ;;  %v9211_v37 = vsel %vm16334_vm4, %v16333_v50, %v9100_v31  ;;  %vm16354_vm13 = vmmov %vm16346_vm0 }
 0xfa2   :  { %v11371_v13 = vpop.eup %11370  ;;  %9187 = vrot.lane.b32.xlu0 %v8822_v36, %s11539_s5  ;;  %10810 = vmatpush3.bf16.msra.mxu0 %v8981_v8  ;;  %vm16358_vm4 = vmmov %vm16346_vm0 }
 0xfa3   :  { %v11373_v46 = vpop.eup %11372  ;;  %v8825_v54 = vmul.f32 %v11371_v13, %v15697_v7  ;;  %10815 = vmatprep.subr.bf16.mxu0 %v16296_v42  ;;  %v9114_v7 = vpop.permute.xlu1 %9113  ;;  %v16347_v13 = vld [vmem:[#allocation60_spill] sm:$0xff] }
 0xfa4   :  { %v8824_v9 = vmul.f32 %v11373_v46, %v15701_v29  ;;  %v9104_v40 = vpop.permute.xlu0 %9103  ;;  %v9218_v57 = vsel %vm16344_vm5, %v16343_v32, %v9114_v7  ;;  %v16353_v7 = vld [vmem:[#allocation63_spill] sm:$0xff] }
 0xfa5   :  { %9193 = vrot.lane.b32.xlu1 %v8825_v54, %s11539_s5  ;;  %v9213_v3 = vsel %vm16338_vm8, %v16337_v2, %v9104_v40  ;;  %v16351_v40 = vld [vmem:[#allocation62_spill] sm:$0xff]  ;;  %vm16362_vm8 = vmmov %vm16346_vm0 }
 0xfa6   :  { %9191 = vrot.lane.b32.xlu0 %v8824_v9, %s11539_s5  ;;  %v16349_v9 = vld [vmem:[#allocation61_spill] sm:$0xff] }
 0xfa7   :  { %v9118_v29 = vpop.permute.xlu1 %9117 }
 0xfa8   :  { %v9108_v26 = vpop.permute.xlu0 %9107  ;;  %v9220_v46 = vsel %vm16348_vm6, %v16347_v13, %v9118_v29 }
 0xfa9   :  { %v9215_v59 = vsel %vm16342_vm9, %v16341_v19, %v9108_v26 }
 0xfab   :  { %v9122_v4 = vpop.permute.xlu1 %9121 }
 0xfac   :  { %v9112_v12 = vpop.permute.xlu0 %9111  ;;  %v9222_v22 = vsel %vm16352_vm12, %v16351_v40, %v9122_v4  ;;  %v16355_v4 = vld [vmem:[#allocation64_spill] sm:$0xff] }
 0xfad   :  { %v9217_v62 = vsel %vm16346_vm0, %v16345_v41, %v9112_v12 }
 0xfaf   :  { %v15765_v16 = vpop.permute.xlu1 %9125 }
 0xfb0   :  { %v9116_v21 = vpop.permute.xlu0 %9115  ;;  %v9224_v50 = vsel %vm16356_vm3, %v16355_v4, %v15765_v16 }
 0xfb1   :  { %v9219_v1 = vsel %vm16350_vm2, %v16349_v9, %v9116_v21 }
 0xfb3   :  { %v15769_v6 = vpop.permute.xlu1 %9129 }
 0xfb4   :  { %v9120_v30 = vpop.permute.xlu0 %9119 }
 0xfb5   :  { %v9221_v12 = vsel %vm16354_vm13, %v16353_v7, %v9120_v30  ;;  %v16357_v30 = vld [vmem:[#allocation65_spill] sm:$0xff] }
 0xfb8   :  { %v15767_v39 = vpop.permute.xlu0 %9123 }
 0xfbc   :  { %v15771_v63 = vpop.permute.xlu0 %9127 }
 0xffb   :  { %v9166_v14 = vpop.permute.xlu1 %9165 }
 0xffc   :  { %v9229_v48 = vsel %vm9227_vm14, %v9212_v58, %v9166_v14  ;;  %v9164_v20 = vpop.permute.xlu0 %9163 }
 0xffd   :  { %v9246_v43 = vsel %vm9244_vm15, %v9229_v48, 0.0  ;;  %v9228_v15 = vsel %vm9227_vm14, %v9211_v37, %v9164_v20  ;;  %v9223_v48 = vsel %vm16358_vm4, %v16357_v30, %v15767_v39 }
 0xffe   :  { %9262 = vst.msk [vmem:[%s11694_s4 + $0x8] sm:$0xff] %vm2012_vm10, %v9246_v43  ;;  %v9245_v23 = vsel %vm9244_vm15, %v9228_v15, 0.0 }
 0xfff   :  { %9261 = vst.msk [vmem:[%s11694_s4] sm:$0xff] %vm2012_vm10, %v9245_v23  ;;  %v9170_v5 = vpop.permute.xlu1 %9169 }
0x1000   :  { %v9231_v11 = vsel %vm9227_vm14, %v9214_v38, %v9170_v5  ;;  %v9168_v61 = vpop.permute.xlu0 %9167  ;;  %v9226_v38 = vsel %vm16360_vm11, %v16359_v49, %v15769_v6  ;;  %v16361_v5 = vld [vmem:[#allocation50_spill] sm:$0xff] }
0x1001   :  { %v9248_v28 = vsel %vm9244_vm15, %v9231_v11, 0.0  ;;  %v9230_v18 = vsel %vm9227_vm14, %v9213_v3, %v9168_v61  ;;  %v9225_v2 = vsel %vm16362_vm8, %v16361_v5, %v15771_v63  ;;  %v9024_v63 = vld [vmem:[%s11679_s21] sm:$0xff] }
0x1002   :  { %9264 = vst.msk [vmem:[%s11694_s4 + $0x18] sm:$0xff] %vm2012_vm10, %v9248_v28  ;;  %v9247_v10 = vsel %vm9244_vm15, %v9230_v18, 0.0 }
0x1003   :  { %9263 = vst.msk [vmem:[%s11694_s4 + $0x10] sm:$0xff] %vm2012_vm10, %v9247_v10  ;;  %v9174_v44 = vpop.permute.xlu1 %9173 }
0x1004   :  { %v9233_v0 = vsel %vm9227_vm14, %v9216_v34, %v9174_v44  ;;  %v9172_v53 = vpop.permute.xlu0 %9171  ;;  %v9025_v34 = vld [vmem:[%s11679_s21 + $0x8] sm:$0xff]  ;;  %v9026_v44 = vld [vmem:[%s11679_s21 + $0x10] sm:$0xff] }
0x1005   :  { %v9250_v17 = vsel %vm9244_vm15, %v9233_v0, 0.0  ;;  %v9232_v52 = vsel %vm9227_vm14, %v9215_v59, %v9172_v53  ;;  %v9029_v19 = vpack.c.bf16 %v9025_v34, %v9024_v63  ;;  %v9027_v59 = vld [vmem:[%s11679_s21 + $0x18] sm:$0xff]  ;;  %v9701_v53 = vld [vmem:[%s16363_s11] ss:$0 sm:$0xff] }
0x1006   :  { %9266 = vst.msk [vmem:[%s11694_s4 + $0x28] sm:$0xff] %vm2012_vm10, %v9250_v17  ;;  %v9249_v47 = vsel %vm9244_vm15, %v9232_v52, 0.0  ;;  %v9030_v0 = vpack.c.bf16 %v9027_v59, %v9026_v44 }
0x1007   :  { %9265 = vst.msk [vmem:[%s11694_s4 + $0x20] sm:$0xff] %vm2012_vm10, %v9249_v47  ;;  %v9178_v55 = vpop.permute.xlu1 %9177 }
0x1008   :  { %v9235_v56 = vsel %vm9227_vm14, %v9218_v57, %v9178_v55  ;;  %v9176_v25 = vpop.permute.xlu0 %9175 }
0x1009   :  { %v9252_v60 = vsel %vm9244_vm15, %v9235_v56, 0.0  ;;  %v9234_v35 = vsel %vm9227_vm14, %v9217_v62, %v9176_v25  ;;  %v9703_v62 = vld [vmem:[%s11684_s20] ss:$0 sm:$0xff] }
0x100a   :  { %9268 = vst.msk [vmem:[%s11694_s4 + $0x38] sm:$0xff] %vm2012_vm10, %v9252_v60  ;;  %v9251_v36 = vsel %vm9244_vm15, %v9234_v35, 0.0 }
0x100b   :  { %9267 = vst.msk [vmem:[%s11694_s4 + $0x30] sm:$0xff] %vm2012_vm10, %v9251_v36  ;;  %v9182_v54 = vpop.permute.xlu1 %9181 }
0x100c   :  { %v9237_v33 = vsel %vm9227_vm14, %v9220_v46, %v9182_v54  ;;  %v9180_v8 = vpop.permute.xlu0 %9179 }
0x100d   :  { %v9254_v27 = vsel %vm9244_vm15, %v9237_v33, 0.0  ;;  %v9236_v31 = vsel %vm9227_vm14, %v9219_v1, %v9180_v8 }
0x100e   :  { %9270 = vst.msk [vmem:[%s11694_s4 + $0x48] sm:$0xff] %vm2012_vm10, %v9254_v27  ;;  %v9253_v51 = vsel %vm9244_vm15, %v9236_v31, 0.0 }
0x100f   :  { %9269 = vst.msk [vmem:[%s11694_s4 + $0x40] sm:$0xff] %vm2012_vm10, %v9253_v51  ;;  %v9186_v26 = vpop.permute.xlu1 %9185 }
0x1010   :  { %v9239_v29 = vsel %vm9227_vm14, %v9222_v22, %v9186_v26  ;;  %v9184_v21 = vpop.permute.xlu0 %9183 }
0x1011   :  { %v9256_v45 = vsel %vm9244_vm15, %v9239_v29, 0.0  ;;  %v9238_v58 = vsel %vm9227_vm14, %v9221_v12, %v9184_v21 }
0x1012   :  { %9272 = vst.msk [vmem:[%s11694_s4 + $0x58] sm:$0xff] %vm2012_vm10, %v9256_v45  ;;  %v9255_v14 = vsel %vm9244_vm15, %v9238_v58, 0.0 }
0x1013   :  { %9271 = vst.msk [vmem:[%s11694_s4 + $0x50] sm:$0xff] %vm2012_vm10, %v9255_v14  ;;  %v9190_v37 = vpop.permute.xlu1 %9189 }
0x1014   :  { %v9241_v20 = vsel %vm9227_vm14, %v9224_v50, %v9190_v37  ;;  %v9188_v43 = vpop.permute.xlu0 %9187 }
0x1015   :  { %v9258_v15 = vsel %vm9244_vm15, %v9241_v20, 0.0  ;;  %v9240_v23 = vsel %vm9227_vm14, %v9223_v48, %v9188_v43 }
0x1016   :  { %9274 = vst.msk [vmem:[%s11694_s4 + $0x68] sm:$0xff] %vm2012_vm10, %v9258_v15  ;;  %v9257_v16 = vsel %vm9244_vm15, %v9240_v23, 0.0 }
0x1017   :  { %9273 = vst.msk [vmem:[%s11694_s4 + $0x60] sm:$0xff] %vm2012_vm10, %v9257_v16  ;;  %v9194_v39 = vpop.permute.xlu1 %9193 }
0x1018   :  { %v9243_v3 = vsel %vm9227_vm14, %v9226_v38, %v9194_v39  ;;  %v9192_v11 = vpop.permute.xlu0 %9191 }
0x1019   :  { %v9260_v61 = vsel %vm9244_vm15, %v9243_v3, 0.0  ;;  %v9242_v28 = vsel %vm9227_vm14, %v9225_v2, %v9192_v11 }
0x101a   :  { %9276 = vst.msk [vmem:[%s11694_s4 + $0x78] sm:$0xff] %vm2012_vm10, %v9260_v61  ;;  %v9259_v6 = vsel %vm9244_vm15, %v9242_v28, 0.0 }
0x101b   :  { %9275 = vst.msk [vmem:[%s11694_s4 + $0x70] sm:$0xff] %vm2012_vm10, %v9259_v6  ;;  %vm16365_vm10 = vcmask 261120   ;;  %s11540_s4 = smov [#allocation2]  }
0x101c   :  { %s9283_s15 = sshll.u32 %s11540_s4, 4  ;;  %s9284_s15 = int_to_ptr.vmem [resolvable:$true] %s9283_s15 }
0x101d   :  { %s11476_s21 = scalar_lea.vmem %s9284_s15, 32  ;;  %p11481_p1 = scmp.lt.s32.totalorder %s9284_s15, %s9284_s15 }
0x101e   :  { %p11477_p0 = scmp.ne.s32.totalorder %s9284_s15, %s11476_s21  ;;  %p11482_p2 = scmp.lt.s32.totalorder %s11476_s21, %s11476_s21 }
0x1020   :  { %p11483_p3 = por %p11482_p2, %p11481_p1 }
0x1022   :  { %p11484_p4 = pnand %p11483_p3, %p11477_p0 }
0x1048   :  { %v8960_v18 = vpop.f32.mrb[200].mxu0 }
0x1049   :  { %v8967_v10 = vpack.c.bf16 %v8960_v18, %v8960_v18  ;;  %v10806_v24 = vpop.f32.mrb[201].mxu0 }
0x104b   :  { %10812 = vmatmul.mubr.msk.bf16.vlgmr.msra.gmra.mrb[204].mxu0 %vm16364_vm1, %v8967_v10 }
0x104c   :  { %10819 = vmatprep.mubr.msk.bf16.mxu0 %vm16195_vm7, %v16296_v42  ;;  %10816 = vmatpush3.bf16.msra.mxu0 %v9029_v19  ;;  %vm9081_vm7 = vcmask 9216  }
0x104d   :  { %10817 = vmatprep.subr.bf16.mxu0 %v16296_v42 }
0x1050   :  { %10818 = vmatpush3.bf16.msra.mxu0 %v9030_v0 }
0x111e   :  { %v9017_v17 = vpop.f32.mrb[204].mxu0 }
0x111f   :  { %v9018_v52 = vadd.f32 %v9701_v53, %v9017_v17  ;;  %v10813_v47 = vpop.f32.mrb[205].mxu0 }
0x1120   :  { %v9020_v32 = vpop.f32.mrb[206].mxu0 }
0x1121   :  { %v9023_v57 = vmax.f32 %v9018_v52, 0.0  ;;  %v10814_v55 = vpop.f32.mrb[207].mxu0 }
0x1123   :  { %v9028_v41 = vpack.c.bf16 %v9023_v57, %v9023_v57 }
0x1125   :  { %10820 = vmatmul.mubr.msk.bf16.vlgmr.msra.gmra.mrb[208].mxu0 %vm16365_vm10, %v9028_v41 }
0x11f8   :  { %v9075_v56 = vpop.f32.mrb[208].mxu0 }
0x11f9   :  { %v9076_v25 = vadd.f32 %v9703_v62, %v9075_v56  ;;  %v10821_v60 = vpop.f32.mrb[209].mxu0 }
0x11fa   :  { %v9078_v42 = vpop.f32.mrb[210].mxu0 }
0x11fb   :  { %v10822_v35 = vpop.f32.mrb[211].mxu0  ;;  %9082 = vst.msk [vmem:[#allocation2] sm:$0x3] %vm9081_vm7, %v9076_v25 }
0x11fc   :  { %11487 = shalt.err (!%p11484_p4)
}
0x11fd   :  { %s11488_s20 = scalar_lea.hbm %s11689_s27, 32 }
0x11fe   :  { %p11489_p5 = scmp.ne.s32.totalorder %s11689_s27, %s11488_s20  ;;  %p11492_p6 = scmp.lt.u32.totalorder %s11488_s20, %s11689_s27 }
0x1200   :  { %p11494_p7 = pnand %p11492_p6, %p11489_p5 }
0x1202   :  { %11497 = shalt.err (!%p11494_p7)
}
0x1203   :  { %9286 = dma.vmem_to_hbm [thread:$0]  %s9284_s15, 32, %s11689_s27, [#allocation3]  }
0x1204   :  { %11498 = dma.done.wait [#allocation3], 32  }
0x1205   :  { %11499 = vsyncadd [#allocation3], 4294967264 }
0x1206   :  { %9294 = vsyncpa [#allocation3], 1 }

</bundles_post_ra>
